<compile_context>
chip_gen: v6e
topology: v6e:2x2x1
jax: 0.10.0
libtpu: 0.0.40
codegen_flags: <defaults>
</compile_context>

<pallas_src>
import functools

import jax
import jax.numpy as jnp
from jax.experimental import pallas as pl
from jax.experimental.pallas import tpu as pltpu

_GRID_PAD = 128  # tail lane padding so 3x3 shifted-window reads stay in bounds


# ------------------------------ fused kernel ------------------------------

def _fused_forward_kernel(x0_ref, w1k_ref, b1k_ref, w2k_ref, b2k_ref,
                          w1e_ref, b_l1_ref, w_l2_ref, b_l2_ref,
                          w_cls_ref, b_cls_ref, o_ref,
                          act1_ref, act2_ref, *, img_w, n_batch, kh, kw):
    grid = w1e_ref.shape[1]            # H*W spatial grid on lanes (256)
    pad = act1_ref.shape[1] - grid     # tail pad (128)
    rows1 = w1k_ref.shape[1]           # conv1 out_c * batch
    rows2 = w2k_ref.shape[1]           # conv2 out_c * batch
    c2 = w1e_ref.shape[0]              # conv2 out_c

    # ---- conv1 + ReLU: shift-and-accumulate, one MXU matmul per 3x3 tap ----
    acc1 = jnp.zeros((rows1, grid), jnp.float32)
    for i in range(kh):
        for j in range(kw):
            off = i * img_w + j
            acc1 += jnp.dot(w1k_ref[i * kw + j], x0_ref[:, off:off + grid],
                            preferred_element_type=jnp.float32)
    act1_ref[:, 0:grid] = jnp.maximum(acc1 + b1k_ref[...], 0.0)
    act1_ref[:, grid:] = jnp.zeros((rows1, pad), jnp.float32)

    # ---- conv2 + ReLU (conv3 = Identity) ----
    acc2 = jnp.zeros((rows2, grid), jnp.float32)
    for i in range(kh):
        for j in range(kw):
            off = i * img_w + j
            acc2 += jnp.dot(w2k_ref[i * kw + j], act1_ref[:, off:off + grid],
                            preferred_element_type=jnp.float32)
    act2_ref[...] = jnp.maximum(acc2 + b2k_ref[...], 0.0).astype(act2_ref.dtype)

    # ---- flatten (NCHW order folded into w1e at pack time) + lin1 + ReLU ----
    y1 = jnp.zeros((n_batch, b_l1_ref.shape[1]), jnp.float32)
    for c in range(c2):
        y1 += jnp.dot(act2_ref[c * n_batch:(c + 1) * n_batch, :], w1e_ref[c],
                      preferred_element_type=jnp.float32)
    y1 = jnp.maximum(y1 + b_l1_ref[...], 0.0)

    # ---- lin2 + ReLU (lin3 = Identity) ----
    y2 = jnp.dot(y1, w_l2_ref[...], preferred_element_type=jnp.float32)
    y2 = jnp.maximum(y2 + b_l2_ref[...], 0.0)

    # ---- classifier + log_softmax (f32 epilogue) ----
    logits = jnp.dot(y2, w_cls_ref[...], preferred_element_type=jnp.float32)
    logits = logits + b_cls_ref[...]
    m = jnp.max(logits, axis=-1, keepdims=True)
    z = logits - m
    lse = jnp.log(jnp.sum(jnp.exp(z), axis=-1, keepdims=True))
    o_ref[...] = (z - lse).astype(o_ref.dtype)


# --------------------------- parameter handling ---------------------------

def init_params(key, in_ch, h, w, num_classes=10):
    """Raw parameters in PyTorch layout (conv: [out,in,kh,kw], lin: [out,in])."""
    ks = jax.random.split(key, 10)

    def conv_w(k, out_c, in_c, kh, kw):
        scale = (2.0 / (in_c * kh * kw)) ** 0.5
        return scale * jax.random.normal(k, (out_c, in_c, kh, kw), jnp.float32)

    def lin_w(k, out_f, in_f):
        scale = (2.0 / in_f) ** 0.5
        return scale * jax.random.normal(k, (out_f, in_f), jnp.float32)

    p = {}
    p["conv1_w"] = conv_w(ks[0], 32, in_ch, 3, 3)
    p["conv1_b"] = 0.01 * jax.random.normal(ks[1], (32,), jnp.float32)
    p["conv2_w"] = conv_w(ks[2], 32, 32, 3, 3)
    p["conv2_b"] = 0.01 * jax.random.normal(ks[3], (32,), jnp.float32)

    h2, w2 = h - 4, w - 4                 # two valid 3x3 convs
    flat = 32 * h2 * w2
    p["lin1_w"] = lin_w(ks[4], 128, flat)
    p["lin1_b"] = 0.01 * jax.random.normal(ks[5], (128,), jnp.float32)
    p["lin2_w"] = lin_w(ks[6], 64, 128)
    p["lin2_b"] = 0.01 * jax.random.normal(ks[7], (64,), jnp.float32)
    p["cls_w"] = lin_w(ks[8], num_classes, 64)
    p["cls_b"] = 0.01 * jax.random.normal(ks[9], (num_classes,), jnp.float32)
    return p


def pack_params(params, n_batch, h, w):
    """One-time re-layout of weights for the fused kernel (done at init time)."""
    n = n_batch
    eye = jnp.eye(n, dtype=jnp.float32)

    def kron_conv(wgt):  # [oc, ic, kh, kw] -> [kh*kw, oc*n, ic*n] (batch block-diag)
        oc, ic, kh, kw = wgt.shape
        wt = jnp.transpose(wgt, (2, 3, 0, 1)).reshape(kh * kw, oc, ic)
        return jnp.einsum("toc,mn->tomcn", wt, eye).reshape(kh * kw, oc * n, ic * n)

    def kron_bias(b):  # [oc] -> [oc*n, 1]
        return jnp.repeat(b, n).reshape(-1, 1)

    p = {}
    p["w1k"] = kron_conv(params["conv1_w"])
    p["b1k"] = kron_bias(params["conv1_b"])
    p["w2k"] = kron_conv(params["conv2_w"])
    p["b2k"] = kron_bias(params["conv2_b"])

    # lin1: absorb torch.flatten's NCHW order + valid-region crop into an
    # expanded weight on the full H*W input grid (zeros at invalid positions).
    oh2, ow2 = h - 4, w - 4
    d1 = params["lin1_w"].shape[0]
    c2 = params["conv2_w"].shape[0]
    w1 = params["lin1_w"].reshape(d1, c2, oh2, ow2)
    w1g = jnp.zeros((d1, c2, h, w), jnp.float32).at[:, :, :oh2, :ow2].set(w1)
    w1e = jnp.transpose(w1g.reshape(d1, c2, h * w), (1, 2, 0))   # [c2, H*W, d1]
    p["w1e"] = w1e.astype(jnp.bfloat16)          # bf16 MXU operand; f32 accumulate
    p["b_l1"] = params["lin1_b"].reshape(1, -1)
    p["w_l2"] = params["lin2_w"].T
    p["b_l2"] = params["lin2_b"].reshape(1, -1)
    p["w_cls"] = params["cls_w"].T
    p["b_cls"] = params["cls_b"].reshape(1, -1)
    return p


# ------------------------------ forward pass ------------------------------

def model_space_forward(packed, x, *, kh=3, kw=3):
    n, c, h, w = x.shape
    grid = h * w

    # Tiny input re-layout: rows = in_channel*batch, lanes = H*W grid (+ zero tail).
    x0 = jnp.transpose(x, (1, 0, 2, 3)).reshape(c * n, grid)
    x0 = jnp.pad(x0, ((0, 0), (0, _GRID_PAD)))

    rows1 = packed["w1k"].shape[1]
    rows2 = packed["w2k"].shape[1]
    c2, _, d1 = packed["w1e"].shape
    num_classes = packed["w_cls"].shape[1]

    operands = (x0, packed["w1k"], packed["b1k"], packed["w2k"], packed["b2k"],
                packed["w1e"], packed["b_l1"], packed["w_l2"], packed["b_l2"],
                packed["w_cls"], packed["b_cls"])

    flops = 2 * (kh * kw * rows1 * (c * n) * grid
                 + kh * kw * rows2 * rows1 * grid
                 + c2 * n * grid * d1
                 + n * packed["w_l2"].shape[0] * packed["w_l2"].shape[1]
                 + n * packed["w_cls"].shape[0] * num_classes)
    bytes_accessed = sum(int(a.size) * a.dtype.itemsize for a in operands)
    bytes_accessed += n * num_classes * 4

    kernel = functools.partial(_fused_forward_kernel,
                               img_w=w, n_batch=n, kh=kh, kw=kw)
    vmem = pl.BlockSpec(memory_space=pltpu.MemorySpace.VMEM)

    return pl.pallas_call(
        kernel,
        out_shape=jax.ShapeDtypeStruct((n, num_classes), jnp.float32),
        in_specs=[vmem] * len(operands),
        out_specs=vmem,
        scratch_shapes=[pltpu.VMEM((rows1, grid + _GRID_PAD), jnp.float32),
                        pltpu.VMEM((rows2, grid), jnp.bfloat16)],
        cost_estimate=pl.CostEstimate(flops=int(flops),
                                      transcendentals=int(n * (num_classes + 1)),
                                      bytes_accessed=int(bytes_accessed)),
    )(*operands)


# --------------------------- pure-JAX reference ----------------------------

def reference_forward(params, x):
    def conv_relu(y, wgt, b):
        y = jax.lax.conv_general_dilated(
            y, wgt, (1, 1), "VALID", dimension_numbers=("NCHW", "OIHW", "NCHW"))
        return jax.nn.relu(y + b.reshape(1, -1, 1, 1))

    y = conv_relu(x, params["conv1_w"], params["conv1_b"])
    y = conv_relu(y, params["conv2_w"], params["conv2_b"])
    y = y.reshape(y.shape[0], -1)                       # torch.flatten(x, 1)
    y = jax.nn.relu(y @ params["lin1_w"].T + params["lin1_b"])
    y = jax.nn.relu(y @ params["lin2_w"].T + params["lin2_b"])
    logits = y @ params["cls_w"].T + params["cls_b"]
    return jax.nn.log_softmax(logits, axis=-1)


# --------------------------------- main ------------------------------------

if __name__ == "__main__":
    key = jax.random.PRNGKey(0)
    k_x, k_p = jax.random.split(key)

    N, C, H, W = 2, 4, 16, 16
    x = jax.random.normal(k_x, (N, C, H, W), jnp.float32)
    params = init_params(k_p, C, H, W, num_classes=10)
    packed = pack_params(params, N, H, W)               # one-time weight re-layout

    out = jax.jit(model_space_forward)(packed, x)
    out = jax.block_until_ready(out)

    assert out.shape == (N, 10), out.shape
    # log_softmax rows must sum to ~1 in prob space
    row_sums = jnp.sum(jnp.exp(out), axis=1)
    assert bool(jnp.all(jnp.abs(row_sums - 1.0) < 1e-4)), row_sums
    # match the f32 reference (bf16 lin1 operand -> loose-ish tolerance)
    ref = jax.jit(reference_forward)(params, x)
    assert bool(jnp.allclose(out, ref, atol=5e-2, rtol=0.0)), (out, ref)

    print("KERNEL_OK")
</pallas_src>

<mosaic_0001>
module attributes {stable_mosaic.version = 11 : i64} {
  func.func @_fused_forward_kernel(%arg0: memref<8x384xf32, #tpu.memory_space<vmem>>, %arg1: memref<9x64x8xf32, #tpu.memory_space<vmem>>, %arg2: memref<64x1xf32, #tpu.memory_space<vmem>>, %arg3: memref<9x64x64xf32, #tpu.memory_space<vmem>>, %arg4: memref<64x1xf32, #tpu.memory_space<vmem>>, %arg5: memref<32x256x128xbf16, #tpu.memory_space<vmem>>, %arg6: memref<1x128xf32, #tpu.memory_space<vmem>>, %arg7: memref<128x64xf32, #tpu.memory_space<vmem>>, %arg8: memref<1x64xf32, #tpu.memory_space<vmem>>, %arg9: memref<64x10xf32, #tpu.memory_space<vmem>>, %arg10: memref<1x10xf32, #tpu.memory_space<vmem>>, %arg11: memref<2x10xf32, #tpu.memory_space<vmem>>, %arg12: memref<64x384xf32, #tpu.memory_space<vmem>>, %arg13: memref<64x256xbf16, #tpu.memory_space<vmem>>) attributes {dimension_semantics = [], scalar_prefetch = 0 : i64, scratch_operands = 2 : i64, tpu.core_type = #tpu.core_type<tc>} {
    %cst = arith.constant 0.000000e+00 : f32
    %0 = vector.broadcast %cst : f32 to vector<64x256xf32>
    %c0 = arith.constant 0 : index
    %c0_0 = arith.constant 0 : index
    %c0_1 = arith.constant 0 : index
    %1 = vector.load %arg1[%c0, %c0_0, %c0_1] : memref<9x64x8xf32, #tpu.memory_space<vmem>>, vector<1x64x8xf32>
    %2 = vector.shape_cast %1 : vector<1x64x8xf32> to vector<64x8xf32>
    %c0_2 = arith.constant 0 : index
    %c0_3 = arith.constant 0 : index
    %3 = vector.load %arg0[%c0_2, %c0_3] : memref<8x384xf32, #tpu.memory_space<vmem>>, vector<8x256xf32>
    %cst_4 = arith.constant dense<0.000000e+00> : vector<64x256xf32>
    %4 = tpu.matmul %2, %3, %cst_4 {dimension_numbers = #tpu.dot_dimension_numbers<[1], [0], [0], [1], [0, 0, 1, 1], [], []>} : vector<64x8xf32>, vector<8x256xf32>, vector<64x256xf32> -> vector<64x256xf32>
    %5 = arith.addf %0, %4 : vector<64x256xf32>
    %c1 = arith.constant 1 : index
    %c0_5 = arith.constant 0 : index
    %c0_6 = arith.constant 0 : index
    %6 = vector.load %arg1[%c1, %c0_5, %c0_6] : memref<9x64x8xf32, #tpu.memory_space<vmem>>, vector<1x64x8xf32>
    %7 = vector.shape_cast %6 : vector<1x64x8xf32> to vector<64x8xf32>
    %c0_7 = arith.constant 0 : index
    %c1_8 = arith.constant 1 : index
    %8 = vector.load %arg0[%c0_7, %c1_8] : memref<8x384xf32, #tpu.memory_space<vmem>>, vector<8x256xf32>
    %cst_9 = arith.constant dense<0.000000e+00> : vector<64x256xf32>
    %9 = tpu.matmul %7, %8, %cst_9 {dimension_numbers = #tpu.dot_dimension_numbers<[1], [0], [0], [1], [0, 0, 1, 1], [], []>} : vector<64x8xf32>, vector<8x256xf32>, vector<64x256xf32> -> vector<64x256xf32>
    %10 = arith.addf %5, %9 : vector<64x256xf32>
    %c2 = arith.constant 2 : index
    %c0_10 = arith.constant 0 : index
    %c0_11 = arith.constant 0 : index
    %11 = vector.load %arg1[%c2, %c0_10, %c0_11] : memref<9x64x8xf32, #tpu.memory_space<vmem>>, vector<1x64x8xf32>
    %12 = vector.shape_cast %11 : vector<1x64x8xf32> to vector<64x8xf32>
    %c0_12 = arith.constant 0 : index
    %c2_13 = arith.constant 2 : index
    %13 = vector.load %arg0[%c0_12, %c2_13] : memref<8x384xf32, #tpu.memory_space<vmem>>, vector<8x256xf32>
    %cst_14 = arith.constant dense<0.000000e+00> : vector<64x256xf32>
    %14 = tpu.matmul %12, %13, %cst_14 {dimension_numbers = #tpu.dot_dimension_numbers<[1], [0], [0], [1], [0, 0, 1, 1], [], []>} : vector<64x8xf32>, vector<8x256xf32>, vector<64x256xf32> -> vector<64x256xf32>
    %15 = arith.addf %10, %14 : vector<64x256xf32>
    %c3 = arith.constant 3 : index
    %c0_15 = arith.constant 0 : index
    %c0_16 = arith.constant 0 : index
    %16 = vector.load %arg1[%c3, %c0_15, %c0_16] : memref<9x64x8xf32, #tpu.memory_space<vmem>>, vector<1x64x8xf32>
    %17 = vector.shape_cast %16 : vector<1x64x8xf32> to vector<64x8xf32>
    %c0_17 = arith.constant 0 : index
    %c16 = arith.constant 16 : index
    %18 = vector.load %arg0[%c0_17, %c16] : memref<8x384xf32, #tpu.memory_space<vmem>>, vector<8x256xf32>
    %cst_18 = arith.constant dense<0.000000e+00> : vector<64x256xf32>
    %19 = tpu.matmul %17, %18, %cst_18 {dimension_numbers = #tpu.dot_dimension_numbers<[1], [0], [0], [1], [0, 0, 1, 1], [], []>} : vector<64x8xf32>, vector<8x256xf32>, vector<64x256xf32> -> vector<64x256xf32>
    %20 = arith.addf %15, %19 : vector<64x256xf32>
    %c4 = arith.constant 4 : index
    %c0_19 = arith.constant 0 : index
    %c0_20 = arith.constant 0 : index
    %21 = vector.load %arg1[%c4, %c0_19, %c0_20] : memref<9x64x8xf32, #tpu.memory_space<vmem>>, vector<1x64x8xf32>
    %22 = vector.shape_cast %21 : vector<1x64x8xf32> to vector<64x8xf32>
    %c0_21 = arith.constant 0 : index
    %c17 = arith.constant 17 : index
    %23 = vector.load %arg0[%c0_21, %c17] : memref<8x384xf32, #tpu.memory_space<vmem>>, vector<8x256xf32>
    %cst_22 = arith.constant dense<0.000000e+00> : vector<64x256xf32>
    %24 = tpu.matmul %22, %23, %cst_22 {dimension_numbers = #tpu.dot_dimension_numbers<[1], [0], [0], [1], [0, 0, 1, 1], [], []>} : vector<64x8xf32>, vector<8x256xf32>, vector<64x256xf32> -> vector<64x256xf32>
    %25 = arith.addf %20, %24 : vector<64x256xf32>
    %c5 = arith.constant 5 : index
    %c0_23 = arith.constant 0 : index
    %c0_24 = arith.constant 0 : index
    %26 = vector.load %arg1[%c5, %c0_23, %c0_24] : memref<9x64x8xf32, #tpu.memory_space<vmem>>, vector<1x64x8xf32>
    %27 = vector.shape_cast %26 : vector<1x64x8xf32> to vector<64x8xf32>
    %c0_25 = arith.constant 0 : index
    %c18 = arith.constant 18 : index
    %28 = vector.load %arg0[%c0_25, %c18] : memref<8x384xf32, #tpu.memory_space<vmem>>, vector<8x256xf32>
    %cst_26 = arith.constant dense<0.000000e+00> : vector<64x256xf32>
    %29 = tpu.matmul %27, %28, %cst_26 {dimension_numbers = #tpu.dot_dimension_numbers<[1], [0], [0], [1], [0, 0, 1, 1], [], []>} : vector<64x8xf32>, vector<8x256xf32>, vector<64x256xf32> -> vector<64x256xf32>
    %30 = arith.addf %25, %29 : vector<64x256xf32>
    %c6 = arith.constant 6 : index
    %c0_27 = arith.constant 0 : index
    %c0_28 = arith.constant 0 : index
    %31 = vector.load %arg1[%c6, %c0_27, %c0_28] : memref<9x64x8xf32, #tpu.memory_space<vmem>>, vector<1x64x8xf32>
    %32 = vector.shape_cast %31 : vector<1x64x8xf32> to vector<64x8xf32>
    %c0_29 = arith.constant 0 : index
    %c32 = arith.constant 32 : index
    %33 = vector.load %arg0[%c0_29, %c32] : memref<8x384xf32, #tpu.memory_space<vmem>>, vector<8x256xf32>
    %cst_30 = arith.constant dense<0.000000e+00> : vector<64x256xf32>
    %34 = tpu.matmul %32, %33, %cst_30 {dimension_numbers = #tpu.dot_dimension_numbers<[1], [0], [0], [1], [0, 0, 1, 1], [], []>} : vector<64x8xf32>, vector<8x256xf32>, vector<64x256xf32> -> vector<64x256xf32>
    %35 = arith.addf %30, %34 : vector<64x256xf32>
    %c7 = arith.constant 7 : index
    %c0_31 = arith.constant 0 : index
    %c0_32 = arith.constant 0 : index
    %36 = vector.load %arg1[%c7, %c0_31, %c0_32] : memref<9x64x8xf32, #tpu.memory_space<vmem>>, vector<1x64x8xf32>
    %37 = vector.shape_cast %36 : vector<1x64x8xf32> to vector<64x8xf32>
    %c0_33 = arith.constant 0 : index
    %c33 = arith.constant 33 : index
    %38 = vector.load %arg0[%c0_33, %c33] : memref<8x384xf32, #tpu.memory_space<vmem>>, vector<8x256xf32>
    %cst_34 = arith.constant dense<0.000000e+00> : vector<64x256xf32>
    %39 = tpu.matmul %37, %38, %cst_34 {dimension_numbers = #tpu.dot_dimension_numbers<[1], [0], [0], [1], [0, 0, 1, 1], [], []>} : vector<64x8xf32>, vector<8x256xf32>, vector<64x256xf32> -> vector<64x256xf32>
    %40 = arith.addf %35, %39 : vector<64x256xf32>
    %c8 = arith.constant 8 : index
    %c0_35 = arith.constant 0 : index
    %c0_36 = arith.constant 0 : index
    %41 = vector.load %arg1[%c8, %c0_35, %c0_36] : memref<9x64x8xf32, #tpu.memory_space<vmem>>, vector<1x64x8xf32>
    %42 = vector.shape_cast %41 : vector<1x64x8xf32> to vector<64x8xf32>
    %c0_37 = arith.constant 0 : index
    %c34 = arith.constant 34 : index
    %43 = vector.load %arg0[%c0_37, %c34] : memref<8x384xf32, #tpu.memory_space<vmem>>, vector<8x256xf32>
    %cst_38 = arith.constant dense<0.000000e+00> : vector<64x256xf32>
    %44 = tpu.matmul %42, %43, %cst_38 {dimension_numbers = #tpu.dot_dimension_numbers<[1], [0], [0], [1], [0, 0, 1, 1], [], []>} : vector<64x8xf32>, vector<8x256xf32>, vector<64x256xf32> -> vector<64x256xf32>
    %45 = arith.addf %40, %44 : vector<64x256xf32>
    %c0_39 = arith.constant 0 : index
    %c0_40 = arith.constant 0 : index
    %46 = vector.load %arg2[%c0_39, %c0_40] : memref<64x1xf32, #tpu.memory_space<vmem>>, vector<64x1xf32>
    %47 = vector.broadcast %46 : vector<64x1xf32> to vector<64x256xf32>
    %48 = arith.addf %45, %47 : vector<64x256xf32>
    %cst_41 = arith.constant 0.000000e+00 : f32
    %49 = vector.broadcast %cst_41 : f32 to vector<64x256xf32>
    %50 = arith.maximumf %48, %49 : vector<64x256xf32>
    %c0_42 = arith.constant 0 : index
    %c0_43 = arith.constant 0 : index
    %51 = vector.load %arg12[%c0_42, %c0_43] : memref<64x384xf32, #tpu.memory_space<vmem>>, vector<64x256xf32>
    tpu.vector_store %arg12[%c0_42, %c0_43], %50 {strides = array<i32>} : memref<64x384xf32, #tpu.memory_space<vmem>>, vector<64x256xf32>,
    %cst_44 = arith.constant 0.000000e+00 : f32
    %52 = vector.broadcast %cst_44 : f32 to vector<64x128xf32>
    %c0_45 = arith.constant 0 : index
    %c256 = arith.constant 256 : index
    %53 = vector.load %arg12[%c0_45, %c256] : memref<64x384xf32, #tpu.memory_space<vmem>>, vector<64x128xf32>
    tpu.vector_store %arg12[%c0_45, %c256], %52 {strides = array<i32>} : memref<64x384xf32, #tpu.memory_space<vmem>>, vector<64x128xf32>,
    %cst_46 = arith.constant 0.000000e+00 : f32
    %54 = vector.broadcast %cst_46 : f32 to vector<64x256xf32>
    %c0_47 = arith.constant 0 : index
    %c0_48 = arith.constant 0 : index
    %c0_49 = arith.constant 0 : index
    %55 = vector.load %arg3[%c0_47, %c0_48, %c0_49] : memref<9x64x64xf32, #tpu.memory_space<vmem>>, vector<1x64x64xf32>
    %56 = vector.shape_cast %55 : vector<1x64x64xf32> to vector<64x64xf32>
    %c0_50 = arith.constant 0 : index
    %c0_51 = arith.constant 0 : index
    %57 = vector.load %arg12[%c0_50, %c0_51] : memref<64x384xf32, #tpu.memory_space<vmem>>, vector<64x256xf32>
    %cst_52 = arith.constant dense<0.000000e+00> : vector<64x256xf32>
    %58 = tpu.matmul %56, %57, %cst_52 {dimension_numbers = #tpu.dot_dimension_numbers<[1], [0], [0], [1], [0, 0, 1, 1], [], []>} : vector<64x64xf32>, vector<64x256xf32>, vector<64x256xf32> -> vector<64x256xf32>
    %59 = arith.addf %54, %58 : vector<64x256xf32>
    %c1_53 = arith.constant 1 : index
    %c0_54 = arith.constant 0 : index
    %c0_55 = arith.constant 0 : index
    %60 = vector.load %arg3[%c1_53, %c0_54, %c0_55] : memref<9x64x64xf32, #tpu.memory_space<vmem>>, vector<1x64x64xf32>
    %61 = vector.shape_cast %60 : vector<1x64x64xf32> to vector<64x64xf32>
    %c0_56 = arith.constant 0 : index
    %c1_57 = arith.constant 1 : index
    %62 = vector.load %arg12[%c0_56, %c1_57] : memref<64x384xf32, #tpu.memory_space<vmem>>, vector<64x256xf32>
    %cst_58 = arith.constant dense<0.000000e+00> : vector<64x256xf32>
    %63 = tpu.matmul %61, %62, %cst_58 {dimension_numbers = #tpu.dot_dimension_numbers<[1], [0], [0], [1], [0, 0, 1, 1], [], []>} : vector<64x64xf32>, vector<64x256xf32>, vector<64x256xf32> -> vector<64x256xf32>
    %64 = arith.addf %59, %63 : vector<64x256xf32>
    %c2_59 = arith.constant 2 : index
    %c0_60 = arith.constant 0 : index
    %c0_61 = arith.constant 0 : index
    %65 = vector.load %arg3[%c2_59, %c0_60, %c0_61] : memref<9x64x64xf32, #tpu.memory_space<vmem>>, vector<1x64x64xf32>
    %66 = vector.shape_cast %65 : vector<1x64x64xf32> to vector<64x64xf32>
    %c0_62 = arith.constant 0 : index
    %c2_63 = arith.constant 2 : index
    %67 = vector.load %arg12[%c0_62, %c2_63] : memref<64x384xf32, #tpu.memory_space<vmem>>, vector<64x256xf32>
    %cst_64 = arith.constant dense<0.000000e+00> : vector<64x256xf32>
    %68 = tpu.matmul %66, %67, %cst_64 {dimension_numbers = #tpu.dot_dimension_numbers<[1], [0], [0], [1], [0, 0, 1, 1], [], []>} : vector<64x64xf32>, vector<64x256xf32>, vector<64x256xf32> -> vector<64x256xf32>
    %69 = arith.addf %64, %68 : vector<64x256xf32>
    %c3_65 = arith.constant 3 : index
    %c0_66 = arith.constant 0 : index
    %c0_67 = arith.constant 0 : index
    %70 = vector.load %arg3[%c3_65, %c0_66, %c0_67] : memref<9x64x64xf32, #tpu.memory_space<vmem>>, vector<1x64x64xf32>
    %71 = vector.shape_cast %70 : vector<1x64x64xf32> to vector<64x64xf32>
    %c0_68 = arith.constant 0 : index
    %c16_69 = arith.constant 16 : index
    %72 = vector.load %arg12[%c0_68, %c16_69] : memref<64x384xf32, #tpu.memory_space<vmem>>, vector<64x256xf32>
    %cst_70 = arith.constant dense<0.000000e+00> : vector<64x256xf32>
    %73 = tpu.matmul %71, %72, %cst_70 {dimension_numbers = #tpu.dot_dimension_numbers<[1], [0], [0], [1], [0, 0, 1, 1], [], []>} : vector<64x64xf32>, vector<64x256xf32>, vector<64x256xf32> -> vector<64x256xf32>
    %74 = arith.addf %69, %73 : vector<64x256xf32>
    %c4_71 = arith.constant 4 : index
    %c0_72 = arith.constant 0 : index
    %c0_73 = arith.constant 0 : index
    %75 = vector.load %arg3[%c4_71, %c0_72, %c0_73] : memref<9x64x64xf32, #tpu.memory_space<vmem>>, vector<1x64x64xf32>
    %76 = vector.shape_cast %75 : vector<1x64x64xf32> to vector<64x64xf32>
    %c0_74 = arith.constant 0 : index
    %c17_75 = arith.constant 17 : index
    %77 = vector.load %arg12[%c0_74, %c17_75] : memref<64x384xf32, #tpu.memory_space<vmem>>, vector<64x256xf32>
    %cst_76 = arith.constant dense<0.000000e+00> : vector<64x256xf32>
    %78 = tpu.matmul %76, %77, %cst_76 {dimension_numbers = #tpu.dot_dimension_numbers<[1], [0], [0], [1], [0, 0, 1, 1], [], []>} : vector<64x64xf32>, vector<64x256xf32>, vector<64x256xf32> -> vector<64x256xf32>
    %79 = arith.addf %74, %78 : vector<64x256xf32>
    %c5_77 = arith.constant 5 : index
    %c0_78 = arith.constant 0 : index
    %c0_79 = arith.constant 0 : index
    %80 = vector.load %arg3[%c5_77, %c0_78, %c0_79] : memref<9x64x64xf32, #tpu.memory_space<vmem>>, vector<1x64x64xf32>
    %81 = vector.shape_cast %80 : vector<1x64x64xf32> to vector<64x64xf32>
    %c0_80 = arith.constant 0 : index
    %c18_81 = arith.constant 18 : index
    %82 = vector.load %arg12[%c0_80, %c18_81] : memref<64x384xf32, #tpu.memory_space<vmem>>, vector<64x256xf32>
    %cst_82 = arith.constant dense<0.000000e+00> : vector<64x256xf32>
    %83 = tpu.matmul %81, %82, %cst_82 {dimension_numbers = #tpu.dot_dimension_numbers<[1], [0], [0], [1], [0, 0, 1, 1], [], []>} : vector<64x64xf32>, vector<64x256xf32>, vector<64x256xf32> -> vector<64x256xf32>
    %84 = arith.addf %79, %83 : vector<64x256xf32>
    %c6_83 = arith.constant 6 : index
    %c0_84 = arith.constant 0 : index
    %c0_85 = arith.constant 0 : index
    %85 = vector.load %arg3[%c6_83, %c0_84, %c0_85] : memref<9x64x64xf32, #tpu.memory_space<vmem>>, vector<1x64x64xf32>
    %86 = vector.shape_cast %85 : vector<1x64x64xf32> to vector<64x64xf32>
    %c0_86 = arith.constant 0 : index
    %c32_87 = arith.constant 32 : index
    %87 = vector.load %arg12[%c0_86, %c32_87] : memref<64x384xf32, #tpu.memory_space<vmem>>, vector<64x256xf32>
    %cst_88 = arith.constant dense<0.000000e+00> : vector<64x256xf32>
    %88 = tpu.matmul %86, %87, %cst_88 {dimension_numbers = #tpu.dot_dimension_numbers<[1], [0], [0], [1], [0, 0, 1, 1], [], []>} : vector<64x64xf32>, vector<64x256xf32>, vector<64x256xf32> -> vector<64x256xf32>
    %89 = arith.addf %84, %88 : vector<64x256xf32>
    %c7_89 = arith.constant 7 : index
    %c0_90 = arith.constant 0 : index
    %c0_91 = arith.constant 0 : index
    %90 = vector.load %arg3[%c7_89, %c0_90, %c0_91] : memref<9x64x64xf32, #tpu.memory_space<vmem>>, vector<1x64x64xf32>
    %91 = vector.shape_cast %90 : vector<1x64x64xf32> to vector<64x64xf32>
    %c0_92 = arith.constant 0 : index
    %c33_93 = arith.constant 33 : index
    %92 = vector.load %arg12[%c0_92, %c33_93] : memref<64x384xf32, #tpu.memory_space<vmem>>, vector<64x256xf32>
    %cst_94 = arith.constant dense<0.000000e+00> : vector<64x256xf32>
    %93 = tpu.matmul %91, %92, %cst_94 {dimension_numbers = #tpu.dot_dimension_numbers<[1], [0], [0], [1], [0, 0, 1, 1], [], []>} : vector<64x64xf32>, vector<64x256xf32>, vector<64x256xf32> -> vector<64x256xf32>
    %94 = arith.addf %89, %93 : vector<64x256xf32>
    %c8_95 = arith.constant 8 : index
    %c0_96 = arith.constant 0 : index
    %c0_97 = arith.constant 0 : index
    %95 = vector.load %arg3[%c8_95, %c0_96, %c0_97] : memref<9x64x64xf32, #tpu.memory_space<vmem>>, vector<1x64x64xf32>
    %96 = vector.shape_cast %95 : vector<1x64x64xf32> to vector<64x64xf32>
    %c0_98 = arith.constant 0 : index
    %c34_99 = arith.constant 34 : index
    %97 = vector.load %arg12[%c0_98, %c34_99] : memref<64x384xf32, #tpu.memory_space<vmem>>, vector<64x256xf32>
    %cst_100 = arith.constant dense<0.000000e+00> : vector<64x256xf32>
    %98 = tpu.matmul %96, %97, %cst_100 {dimension_numbers = #tpu.dot_dimension_numbers<[1], [0], [0], [1], [0, 0, 1, 1], [], []>} : vector<64x64xf32>, vector<64x256xf32>, vector<64x256xf32> -> vector<64x256xf32>
    %99 = arith.addf %94, %98 : vector<64x256xf32>
    %c0_101 = arith.constant 0 : index
    %c0_102 = arith.constant 0 : index
    %100 = vector.load %arg4[%c0_101, %c0_102] : memref<64x1xf32, #tpu.memory_space<vmem>>, vector<64x1xf32>
    %101 = vector.broadcast %100 : vector<64x1xf32> to vector<64x256xf32>
    %102 = arith.addf %99, %101 : vector<64x256xf32>
    %cst_103 = arith.constant 0.000000e+00 : f32
    %103 = vector.broadcast %cst_103 : f32 to vector<64x256xf32>
    %104 = arith.maximumf %102, %103 : vector<64x256xf32>
    %105 = arith.truncf %104 : vector<64x256xf32> to vector<64x256xbf16>
    %c0_104 = arith.constant 0 : index
    %c0_105 = arith.constant 0 : index
    %106 = vector.load %arg13[%c0_104, %c0_105] : memref<64x256xbf16, #tpu.memory_space<vmem>>, vector<64x256xbf16>
    tpu.vector_store %arg13[%c0_104, %c0_105], %105 {strides = array<i32>} : memref<64x256xbf16, #tpu.memory_space<vmem>>, vector<64x256xbf16>,
    %cst_106 = arith.constant 0.000000e+00 : f32
    %107 = vector.broadcast %cst_106 : f32 to vector<2x128xf32>
    %c0_107 = arith.constant 0 : index
    %c0_108 = arith.constant 0 : index
    %108 = vector.load %arg13[%c0_107, %c0_108] : memref<64x256xbf16, #tpu.memory_space<vmem>>, vector<2x256xbf16>
    %c0_109 = arith.constant 0 : index
    %c0_110 = arith.constant 0 : index
    %c0_111 = arith.constant 0 : index
    %109 = vector.load %arg5[%c0_109, %c0_110, %c0_111] : memref<32x256x128xbf16, #tpu.memory_space<vmem>>, vector<1x256x128xbf16>
    %110 = vector.shape_cast %109 : vector<1x256x128xbf16> to vector<256x128xbf16>
    %cst_112 = arith.constant dense<0.000000e+00> : vector<2x128xf32>
    %111 = tpu.matmul %108, %110, %cst_112 {dimension_numbers = #tpu.dot_dimension_numbers<[1], [0], [0], [1], [0, 0, 1, 1], [], []>} : vector<2x256xbf16>, vector<256x128xbf16>, vector<2x128xf32> -> vector<2x128xf32>
    %112 = arith.addf %107, %111 : vector<2x128xf32>
    %c2_113 = arith.constant 2 : index
    %c0_114 = arith.constant 0 : index
    %113 = vector.load %arg13[%c2_113, %c0_114] : memref<64x256xbf16, #tpu.memory_space<vmem>>, vector<2x256xbf16>
    %c1_115 = arith.constant 1 : index
    %c0_116 = arith.constant 0 : index
    %c0_117 = arith.constant 0 : index
    %114 = vector.load %arg5[%c1_115, %c0_116, %c0_117] : memref<32x256x128xbf16, #tpu.memory_space<vmem>>, vector<1x256x128xbf16>
    %115 = vector.shape_cast %114 : vector<1x256x128xbf16> to vector<256x128xbf16>
    %cst_118 = arith.constant dense<0.000000e+00> : vector<2x128xf32>
    %116 = tpu.matmul %113, %115, %cst_118 {dimension_numbers = #tpu.dot_dimension_numbers<[1], [0], [0], [1], [0, 0, 1, 1], [], []>} : vector<2x256xbf16>, vector<256x128xbf16>, vector<2x128xf32> -> vector<2x128xf32>
    %117 = arith.addf %112, %116 : vector<2x128xf32>
    %c4_119 = arith.constant 4 : index
    %c0_120 = arith.constant 0 : index
    %118 = vector.load %arg13[%c4_119, %c0_120] : memref<64x256xbf16, #tpu.memory_space<vmem>>, vector<2x256xbf16>
    %c2_121 = arith.constant 2 : index
    %c0_122 = arith.constant 0 : index
    %c0_123 = arith.constant 0 : index
    %119 = vector.load %arg5[%c2_121, %c0_122, %c0_123] : memref<32x256x128xbf16, #tpu.memory_space<vmem>>, vector<1x256x128xbf16>
    %120 = vector.shape_cast %119 : vector<1x256x128xbf16> to vector<256x128xbf16>
    %cst_124 = arith.constant dense<0.000000e+00> : vector<2x128xf32>
    %121 = tpu.matmul %118, %120, %cst_124 {dimension_numbers = #tpu.dot_dimension_numbers<[1], [0], [0], [1], [0, 0, 1, 1], [], []>} : vector<2x256xbf16>, vector<256x128xbf16>, vector<2x128xf32> -> vector<2x128xf32>
    %122 = arith.addf %117, %121 : vector<2x128xf32>
    %c6_125 = arith.constant 6 : index
    %c0_126 = arith.constant 0 : index
    %123 = vector.load %arg13[%c6_125, %c0_126] : memref<64x256xbf16, #tpu.memory_space<vmem>>, vector<2x256xbf16>
    %c3_127 = arith.constant 3 : index
    %c0_128 = arith.constant 0 : index
    %c0_129 = arith.constant 0 : index
    %124 = vector.load %arg5[%c3_127, %c0_128, %c0_129] : memref<32x256x128xbf16, #tpu.memory_space<vmem>>, vector<1x256x128xbf16>
    %125 = vector.shape_cast %124 : vector<1x256x128xbf16> to vector<256x128xbf16>
    %cst_130 = arith.constant dense<0.000000e+00> : vector<2x128xf32>
    %126 = tpu.matmul %123, %125, %cst_130 {dimension_numbers = #tpu.dot_dimension_numbers<[1], [0], [0], [1], [0, 0, 1, 1], [], []>} : vector<2x256xbf16>, vector<256x128xbf16>, vector<2x128xf32> -> vector<2x128xf32>
    %127 = arith.addf %122, %126 : vector<2x128xf32>
    %c8_131 = arith.constant 8 : index
    %c0_132 = arith.constant 0 : index
    %128 = vector.load %arg13[%c8_131, %c0_132] : memref<64x256xbf16, #tpu.memory_space<vmem>>, vector<2x256xbf16>
    %c4_133 = arith.constant 4 : index
    %c0_134 = arith.constant 0 : index
    %c0_135 = arith.constant 0 : index
    %129 = vector.load %arg5[%c4_133, %c0_134, %c0_135] : memref<32x256x128xbf16, #tpu.memory_space<vmem>>, vector<1x256x128xbf16>
    %130 = vector.shape_cast %129 : vector<1x256x128xbf16> to vector<256x128xbf16>
    %cst_136 = arith.constant dense<0.000000e+00> : vector<2x128xf32>
    %131 = tpu.matmul %128, %130, %cst_136 {dimension_numbers = #tpu.dot_dimension_numbers<[1], [0], [0], [1], [0, 0, 1, 1], [], []>} : vector<2x256xbf16>, vector<256x128xbf16>, vector<2x128xf32> -> vector<2x128xf32>
    %132 = arith.addf %127, %131 : vector<2x128xf32>
    %c10 = arith.constant 10 : index
    %c0_137 = arith.constant 0 : index
    %133 = vector.load %arg13[%c10, %c0_137] : memref<64x256xbf16, #tpu.memory_space<vmem>>, vector<2x256xbf16>
    %c5_138 = arith.constant 5 : index
    %c0_139 = arith.constant 0 : index
    %c0_140 = arith.constant 0 : index
    %134 = vector.load %arg5[%c5_138, %c0_139, %c0_140] : memref<32x256x128xbf16, #tpu.memory_space<vmem>>, vector<1x256x128xbf16>
    %135 = vector.shape_cast %134 : vector<1x256x128xbf16> to vector<256x128xbf16>
    %cst_141 = arith.constant dense<0.000000e+00> : vector<2x128xf32>
    %136 = tpu.matmul %133, %135, %cst_141 {dimension_numbers = #tpu.dot_dimension_numbers<[1], [0], [0], [1], [0, 0, 1, 1], [], []>} : vector<2x256xbf16>, vector<256x128xbf16>, vector<2x128xf32> -> vector<2x128xf32>
    %137 = arith.addf %132, %136 : vector<2x128xf32>
    %c12 = arith.constant 12 : index
    %c0_142 = arith.constant 0 : index
    %138 = vector.load %arg13[%c12, %c0_142] : memref<64x256xbf16, #tpu.memory_space<vmem>>, vector<2x256xbf16>
    %c6_143 = arith.constant 6 : index
    %c0_144 = arith.constant 0 : index
    %c0_145 = arith.constant 0 : index
    %139 = vector.load %arg5[%c6_143, %c0_144, %c0_145] : memref<32x256x128xbf16, #tpu.memory_space<vmem>>, vector<1x256x128xbf16>
    %140 = vector.shape_cast %139 : vector<1x256x128xbf16> to vector<256x128xbf16>
    %cst_146 = arith.constant dense<0.000000e+00> : vector<2x128xf32>
    %141 = tpu.matmul %138, %140, %cst_146 {dimension_numbers = #tpu.dot_dimension_numbers<[1], [0], [0], [1], [0, 0, 1, 1], [], []>} : vector<2x256xbf16>, vector<256x128xbf16>, vector<2x128xf32> -> vector<2x128xf32>
    %142 = arith.addf %137, %141 : vector<2x128xf32>
    %c14 = arith.constant 14 : index
    %c0_147 = arith.constant 0 : index
    %143 = vector.load %arg13[%c14, %c0_147] : memref<64x256xbf16, #tpu.memory_space<vmem>>, vector<2x256xbf16>
    %c7_148 = arith.constant 7 : index
    %c0_149 = arith.constant 0 : index
    %c0_150 = arith.constant 0 : index
    %144 = vector.load %arg5[%c7_148, %c0_149, %c0_150] : memref<32x256x128xbf16, #tpu.memory_space<vmem>>, vector<1x256x128xbf16>
    %145 = vector.shape_cast %144 : vector<1x256x128xbf16> to vector<256x128xbf16>
    %cst_151 = arith.constant dense<0.000000e+00> : vector<2x128xf32>
    %146 = tpu.matmul %143, %145, %cst_151 {dimension_numbers = #tpu.dot_dimension_numbers<[1], [0], [0], [1], [0, 0, 1, 1], [], []>} : vector<2x256xbf16>, vector<256x128xbf16>, vector<2x128xf32> -> vector<2x128xf32>
    %147 = arith.addf %142, %146 : vector<2x128xf32>
    %c16_152 = arith.constant 16 : index
    %c0_153 = arith.constant 0 : index
    %148 = vector.load %arg13[%c16_152, %c0_153] : memref<64x256xbf16, #tpu.memory_space<vmem>>, vector<2x256xbf16>
    %c8_154 = arith.constant 8 : index
    %c0_155 = arith.constant 0 : index
    %c0_156 = arith.constant 0 : index
    %149 = vector.load %arg5[%c8_154, %c0_155, %c0_156] : memref<32x256x128xbf16, #tpu.memory_space<vmem>>, vector<1x256x128xbf16>
    %150 = vector.shape_cast %149 : vector<1x256x128xbf16> to vector<256x128xbf16>
    %cst_157 = arith.constant dense<0.000000e+00> : vector<2x128xf32>
    %151 = tpu.matmul %148, %150, %cst_157 {dimension_numbers = #tpu.dot_dimension_numbers<[1], [0], [0], [1], [0, 0, 1, 1], [], []>} : vector<2x256xbf16>, vector<256x128xbf16>, vector<2x128xf32> -> vector<2x128xf32>
    %152 = arith.addf %147, %151 : vector<2x128xf32>
    %c18_158 = arith.constant 18 : index
    %c0_159 = arith.constant 0 : index
    %153 = vector.load %arg13[%c18_158, %c0_159] : memref<64x256xbf16, #tpu.memory_space<vmem>>, vector<2x256xbf16>
    %c9 = arith.constant 9 : index
    %c0_160 = arith.constant 0 : index
    %c0_161 = arith.constant 0 : index
    %154 = vector.load %arg5[%c9, %c0_160, %c0_161] : memref<32x256x128xbf16, #tpu.memory_space<vmem>>, vector<1x256x128xbf16>
    %155 = vector.shape_cast %154 : vector<1x256x128xbf16> to vector<256x128xbf16>
    %cst_162 = arith.constant dense<0.000000e+00> : vector<2x128xf32>
    %156 = tpu.matmul %153, %155, %cst_162 {dimension_numbers = #tpu.dot_dimension_numbers<[1], [0], [0], [1], [0, 0, 1, 1], [], []>} : vector<2x256xbf16>, vector<256x128xbf16>, vector<2x128xf32> -> vector<2x128xf32>
    %157 = arith.addf %152, %156 : vector<2x128xf32>
    %c20 = arith.constant 20 : index
    %c0_163 = arith.constant 0 : index
    %158 = vector.load %arg13[%c20, %c0_163] : memref<64x256xbf16, #tpu.memory_space<vmem>>, vector<2x256xbf16>
    %c10_164 = arith.constant 10 : index
    %c0_165 = arith.constant 0 : index
    %c0_166 = arith.constant 0 : index
    %159 = vector.load %arg5[%c10_164, %c0_165, %c0_166] : memref<32x256x128xbf16, #tpu.memory_space<vmem>>, vector<1x256x128xbf16>
    %160 = vector.shape_cast %159 : vector<1x256x128xbf16> to vector<256x128xbf16>
    %cst_167 = arith.constant dense<0.000000e+00> : vector<2x128xf32>
    %161 = tpu.matmul %158, %160, %cst_167 {dimension_numbers = #tpu.dot_dimension_numbers<[1], [0], [0], [1], [0, 0, 1, 1], [], []>} : vector<2x256xbf16>, vector<256x128xbf16>, vector<2x128xf32> -> vector<2x128xf32>
    %162 = arith.addf %157, %161 : vector<2x128xf32>
    %c22 = arith.constant 22 : index
    %c0_168 = arith.constant 0 : index
    %163 = vector.load %arg13[%c22, %c0_168] : memref<64x256xbf16, #tpu.memory_space<vmem>>, vector<2x256xbf16>
    %c11 = arith.constant 11 : index
    %c0_169 = arith.constant 0 : index
    %c0_170 = arith.constant 0 : index
    %164 = vector.load %arg5[%c11, %c0_169, %c0_170] : memref<32x256x128xbf16, #tpu.memory_space<vmem>>, vector<1x256x128xbf16>
    %165 = vector.shape_cast %164 : vector<1x256x128xbf16> to vector<256x128xbf16>
    %cst_171 = arith.constant dense<0.000000e+00> : vector<2x128xf32>
    %166 = tpu.matmul %163, %165, %cst_171 {dimension_numbers = #tpu.dot_dimension_numbers<[1], [0], [0], [1], [0, 0, 1, 1], [], []>} : vector<2x256xbf16>, vector<256x128xbf16>, vector<2x128xf32> -> vector<2x128xf32>
    %167 = arith.addf %162, %166 : vector<2x128xf32>
    %c24 = arith.constant 24 : index
    %c0_172 = arith.constant 0 : index
    %168 = vector.load %arg13[%c24, %c0_172] : memref<64x256xbf16, #tpu.memory_space<vmem>>, vector<2x256xbf16>
    %c12_173 = arith.constant 12 : index
    %c0_174 = arith.constant 0 : index
    %c0_175 = arith.constant 0 : index
    %169 = vector.load %arg5[%c12_173, %c0_174, %c0_175] : memref<32x256x128xbf16, #tpu.memory_space<vmem>>, vector<1x256x128xbf16>
    %170 = vector.shape_cast %169 : vector<1x256x128xbf16> to vector<256x128xbf16>
    %cst_176 = arith.constant dense<0.000000e+00> : vector<2x128xf32>
    %171 = tpu.matmul %168, %170, %cst_176 {dimension_numbers = #tpu.dot_dimension_numbers<[1], [0], [0], [1], [0, 0, 1, 1], [], []>} : vector<2x256xbf16>, vector<256x128xbf16>, vector<2x128xf32> -> vector<2x128xf32>
    %172 = arith.addf %167, %171 : vector<2x128xf32>
    %c26 = arith.constant 26 : index
    %c0_177 = arith.constant 0 : index
    %173 = vector.load %arg13[%c26, %c0_177] : memref<64x256xbf16, #tpu.memory_space<vmem>>, vector<2x256xbf16>
    %c13 = arith.constant 13 : index
    %c0_178 = arith.constant 0 : index
    %c0_179 = arith.constant 0 : index
    %174 = vector.load %arg5[%c13, %c0_178, %c0_179] : memref<32x256x128xbf16, #tpu.memory_space<vmem>>, vector<1x256x128xbf16>
    %175 = vector.shape_cast %174 : vector<1x256x128xbf16> to vector<256x128xbf16>
    %cst_180 = arith.constant dense<0.000000e+00> : vector<2x128xf32>
    %176 = tpu.matmul %173, %175, %cst_180 {dimension_numbers = #tpu.dot_dimension_numbers<[1], [0], [0], [1], [0, 0, 1, 1], [], []>} : vector<2x256xbf16>, vector<256x128xbf16>, vector<2x128xf32> -> vector<2x128xf32>
    %177 = arith.addf %172, %176 : vector<2x128xf32>
    %c28 = arith.constant 28 : index
    %c0_181 = arith.constant 0 : index
    %178 = vector.load %arg13[%c28, %c0_181] : memref<64x256xbf16, #tpu.memory_space<vmem>>, vector<2x256xbf16>
    %c14_182 = arith.constant 14 : index
    %c0_183 = arith.constant 0 : index
    %c0_184 = arith.constant 0 : index
    %179 = vector.load %arg5[%c14_182, %c0_183, %c0_184] : memref<32x256x128xbf16, #tpu.memory_space<vmem>>, vector<1x256x128xbf16>
    %180 = vector.shape_cast %179 : vector<1x256x128xbf16> to vector<256x128xbf16>
    %cst_185 = arith.constant dense<0.000000e+00> : vector<2x128xf32>
    %181 = tpu.matmul %178, %180, %cst_185 {dimension_numbers = #tpu.dot_dimension_numbers<[1], [0], [0], [1], [0, 0, 1, 1], [], []>} : vector<2x256xbf16>, vector<256x128xbf16>, vector<2x128xf32> -> vector<2x128xf32>
    %182 = arith.addf %177, %181 : vector<2x128xf32>
    %c30 = arith.constant 30 : index
    %c0_186 = arith.constant 0 : index
    %183 = vector.load %arg13[%c30, %c0_186] : memref<64x256xbf16, #tpu.memory_space<vmem>>, vector<2x256xbf16>
    %c15 = arith.constant 15 : index
    %c0_187 = arith.constant 0 : index
    %c0_188 = arith.constant 0 : index
    %184 = vector.load %arg5[%c15, %c0_187, %c0_188] : memref<32x256x128xbf16, #tpu.memory_space<vmem>>, vector<1x256x128xbf16>
    %185 = vector.shape_cast %184 : vector<1x256x128xbf16> to vector<256x128xbf16>
    %cst_189 = arith.constant dense<0.000000e+00> : vector<2x128xf32>
    %186 = tpu.matmul %183, %185, %cst_189 {dimension_numbers = #tpu.dot_dimension_numbers<[1], [0], [0], [1], [0, 0, 1, 1], [], []>} : vector<2x256xbf16>, vector<256x128xbf16>, vector<2x128xf32> -> vector<2x128xf32>
    %187 = arith.addf %182, %186 : vector<2x128xf32>
    %c32_190 = arith.constant 32 : index
    %c0_191 = arith.constant 0 : index
    %188 = vector.load %arg13[%c32_190, %c0_191] : memref<64x256xbf16, #tpu.memory_space<vmem>>, vector<2x256xbf16>
    %c16_192 = arith.constant 16 : index
    %c0_193 = arith.constant 0 : index
    %c0_194 = arith.constant 0 : index
    %189 = vector.load %arg5[%c16_192, %c0_193, %c0_194] : memref<32x256x128xbf16, #tpu.memory_space<vmem>>, vector<1x256x128xbf16>
    %190 = vector.shape_cast %189 : vector<1x256x128xbf16> to vector<256x128xbf16>
    %cst_195 = arith.constant dense<0.000000e+00> : vector<2x128xf32>
    %191 = tpu.matmul %188, %190, %cst_195 {dimension_numbers = #tpu.dot_dimension_numbers<[1], [0], [0], [1], [0, 0, 1, 1], [], []>} : vector<2x256xbf16>, vector<256x128xbf16>, vector<2x128xf32> -> vector<2x128xf32>
    %192 = arith.addf %187, %191 : vector<2x128xf32>
    %c34_196 = arith.constant 34 : index
    %c0_197 = arith.constant 0 : index
    %193 = vector.load %arg13[%c34_196, %c0_197] : memref<64x256xbf16, #tpu.memory_space<vmem>>, vector<2x256xbf16>
    %c17_198 = arith.constant 17 : index
    %c0_199 = arith.constant 0 : index
    %c0_200 = arith.constant 0 : index
    %194 = vector.load %arg5[%c17_198, %c0_199, %c0_200] : memref<32x256x128xbf16, #tpu.memory_space<vmem>>, vector<1x256x128xbf16>
    %195 = vector.shape_cast %194 : vector<1x256x128xbf16> to vector<256x128xbf16>
    %cst_201 = arith.constant dense<0.000000e+00> : vector<2x128xf32>
    %196 = tpu.matmul %193, %195, %cst_201 {dimension_numbers = #tpu.dot_dimension_numbers<[1], [0], [0], [1], [0, 0, 1, 1], [], []>} : vector<2x256xbf16>, vector<256x128xbf16>, vector<2x128xf32> -> vector<2x128xf32>
    %197 = arith.addf %192, %196 : vector<2x128xf32>
    %c36 = arith.constant 36 : index
    %c0_202 = arith.constant 0 : index
    %198 = vector.load %arg13[%c36, %c0_202] : memref<64x256xbf16, #tpu.memory_space<vmem>>, vector<2x256xbf16>
    %c18_203 = arith.constant 18 : index
    %c0_204 = arith.constant 0 : index
    %c0_205 = arith.constant 0 : index
    %199 = vector.load %arg5[%c18_203, %c0_204, %c0_205] : memref<32x256x128xbf16, #tpu.memory_space<vmem>>, vector<1x256x128xbf16>
    %200 = vector.shape_cast %199 : vector<1x256x128xbf16> to vector<256x128xbf16>
    %cst_206 = arith.constant dense<0.000000e+00> : vector<2x128xf32>
    %201 = tpu.matmul %198, %200, %cst_206 {dimension_numbers = #tpu.dot_dimension_numbers<[1], [0], [0], [1], [0, 0, 1, 1], [], []>} : vector<2x256xbf16>, vector<256x128xbf16>, vector<2x128xf32> -> vector<2x128xf32>
    %202 = arith.addf %197, %201 : vector<2x128xf32>
    %c38 = arith.constant 38 : index
    %c0_207 = arith.constant 0 : index
    %203 = vector.load %arg13[%c38, %c0_207] : memref<64x256xbf16, #tpu.memory_space<vmem>>, vector<2x256xbf16>
    %c19 = arith.constant 19 : index
    %c0_208 = arith.constant 0 : index
    %c0_209 = arith.constant 0 : index
    %204 = vector.load %arg5[%c19, %c0_208, %c0_209] : memref<32x256x128xbf16, #tpu.memory_space<vmem>>, vector<1x256x128xbf16>
    %205 = vector.shape_cast %204 : vector<1x256x128xbf16> to vector<256x128xbf16>
    %cst_210 = arith.constant dense<0.000000e+00> : vector<2x128xf32>
    %206 = tpu.matmul %203, %205, %cst_210 {dimension_numbers = #tpu.dot_dimension_numbers<[1], [0], [0], [1], [0, 0, 1, 1], [], []>} : vector<2x256xbf16>, vector<256x128xbf16>, vector<2x128xf32> -> vector<2x128xf32>
    %207 = arith.addf %202, %206 : vector<2x128xf32>
    %c40 = arith.constant 40 : index
    %c0_211 = arith.constant 0 : index
    %208 = vector.load %arg13[%c40, %c0_211] : memref<64x256xbf16, #tpu.memory_space<vmem>>, vector<2x256xbf16>
    %c20_212 = arith.constant 20 : index
    %c0_213 = arith.constant 0 : index
    %c0_214 = arith.constant 0 : index
    %209 = vector.load %arg5[%c20_212, %c0_213, %c0_214] : memref<32x256x128xbf16, #tpu.memory_space<vmem>>, vector<1x256x128xbf16>
    %210 = vector.shape_cast %209 : vector<1x256x128xbf16> to vector<256x128xbf16>
    %cst_215 = arith.constant dense<0.000000e+00> : vector<2x128xf32>
    %211 = tpu.matmul %208, %210, %cst_215 {dimension_numbers = #tpu.dot_dimension_numbers<[1], [0], [0], [1], [0, 0, 1, 1], [], []>} : vector<2x256xbf16>, vector<256x128xbf16>, vector<2x128xf32> -> vector<2x128xf32>
    %212 = arith.addf %207, %211 : vector<2x128xf32>
    %c42 = arith.constant 42 : index
    %c0_216 = arith.constant 0 : index
    %213 = vector.load %arg13[%c42, %c0_216] : memref<64x256xbf16, #tpu.memory_space<vmem>>, vector<2x256xbf16>
    %c21 = arith.constant 21 : index
    %c0_217 = arith.constant 0 : index
    %c0_218 = arith.constant 0 : index
    %214 = vector.load %arg5[%c21, %c0_217, %c0_218] : memref<32x256x128xbf16, #tpu.memory_space<vmem>>, vector<1x256x128xbf16>
    %215 = vector.shape_cast %214 : vector<1x256x128xbf16> to vector<256x128xbf16>
    %cst_219 = arith.constant dense<0.000000e+00> : vector<2x128xf32>
    %216 = tpu.matmul %213, %215, %cst_219 {dimension_numbers = #tpu.dot_dimension_numbers<[1], [0], [0], [1], [0, 0, 1, 1], [], []>} : vector<2x256xbf16>, vector<256x128xbf16>, vector<2x128xf32> -> vector<2x128xf32>
    %217 = arith.addf %212, %216 : vector<2x128xf32>
    %c44 = arith.constant 44 : index
    %c0_220 = arith.constant 0 : index
    %218 = vector.load %arg13[%c44, %c0_220] : memref<64x256xbf16, #tpu.memory_space<vmem>>, vector<2x256xbf16>
    %c22_221 = arith.constant 22 : index
    %c0_222 = arith.constant 0 : index
    %c0_223 = arith.constant 0 : index
    %219 = vector.load %arg5[%c22_221, %c0_222, %c0_223] : memref<32x256x128xbf16, #tpu.memory_space<vmem>>, vector<1x256x128xbf16>
    %220 = vector.shape_cast %219 : vector<1x256x128xbf16> to vector<256x128xbf16>
    %cst_224 = arith.constant dense<0.000000e+00> : vector<2x128xf32>
    %221 = tpu.matmul %218, %220, %cst_224 {dimension_numbers = #tpu.dot_dimension_numbers<[1], [0], [0], [1], [0, 0, 1, 1], [], []>} : vector<2x256xbf16>, vector<256x128xbf16>, vector<2x128xf32> -> vector<2x128xf32>
    %222 = arith.addf %217, %221 : vector<2x128xf32>
    %c46 = arith.constant 46 : index
    %c0_225 = arith.constant 0 : index
    %223 = vector.load %arg13[%c46, %c0_225] : memref<64x256xbf16, #tpu.memory_space<vmem>>, vector<2x256xbf16>
    %c23 = arith.constant 23 : index
    %c0_226 = arith.constant 0 : index
    %c0_227 = arith.constant 0 : index
    %224 = vector.load %arg5[%c23, %c0_226, %c0_227] : memref<32x256x128xbf16, #tpu.memory_space<vmem>>, vector<1x256x128xbf16>
    %225 = vector.shape_cast %224 : vector<1x256x128xbf16> to vector<256x128xbf16>
    %cst_228 = arith.constant dense<0.000000e+00> : vector<2x128xf32>
    %226 = tpu.matmul %223, %225, %cst_228 {dimension_numbers = #tpu.dot_dimension_numbers<[1], [0], [0], [1], [0, 0, 1, 1], [], []>} : vector<2x256xbf16>, vector<256x128xbf16>, vector<2x128xf32> -> vector<2x128xf32>
    %227 = arith.addf %222, %226 : vector<2x128xf32>
    %c48 = arith.constant 48 : index
    %c0_229 = arith.constant 0 : index
    %228 = vector.load %arg13[%c48, %c0_229] : memref<64x256xbf16, #tpu.memory_space<vmem>>, vector<2x256xbf16>
    %c24_230 = arith.constant 24 : index
    %c0_231 = arith.constant 0 : index
    %c0_232 = arith.constant 0 : index
    %229 = vector.load %arg5[%c24_230, %c0_231, %c0_232] : memref<32x256x128xbf16, #tpu.memory_space<vmem>>, vector<1x256x128xbf16>
    %230 = vector.shape_cast %229 : vector<1x256x128xbf16> to vector<256x128xbf16>
    %cst_233 = arith.constant dense<0.000000e+00> : vector<2x128xf32>
    %231 = tpu.matmul %228, %230, %cst_233 {dimension_numbers = #tpu.dot_dimension_numbers<[1], [0], [0], [1], [0, 0, 1, 1], [], []>} : vector<2x256xbf16>, vector<256x128xbf16>, vector<2x128xf32> -> vector<2x128xf32>
    %232 = arith.addf %227, %231 : vector<2x128xf32>
    %c50 = arith.constant 50 : index
    %c0_234 = arith.constant 0 : index
    %233 = vector.load %arg13[%c50, %c0_234] : memref<64x256xbf16, #tpu.memory_space<vmem>>, vector<2x256xbf16>
    %c25 = arith.constant 25 : index
    %c0_235 = arith.constant 0 : index
    %c0_236 = arith.constant 0 : index
    %234 = vector.load %arg5[%c25, %c0_235, %c0_236] : memref<32x256x128xbf16, #tpu.memory_space<vmem>>, vector<1x256x128xbf16>
    %235 = vector.shape_cast %234 : vector<1x256x128xbf16> to vector<256x128xbf16>
    %cst_237 = arith.constant dense<0.000000e+00> : vector<2x128xf32>
    %236 = tpu.matmul %233, %235, %cst_237 {dimension_numbers = #tpu.dot_dimension_numbers<[1], [0], [0], [1], [0, 0, 1, 1], [], []>} : vector<2x256xbf16>, vector<256x128xbf16>, vector<2x128xf32> -> vector<2x128xf32>
    %237 = arith.addf %232, %236 : vector<2x128xf32>
    %c52 = arith.constant 52 : index
    %c0_238 = arith.constant 0 : index
    %238 = vector.load %arg13[%c52, %c0_238] : memref<64x256xbf16, #tpu.memory_space<vmem>>, vector<2x256xbf16>
    %c26_239 = arith.constant 26 : index
    %c0_240 = arith.constant 0 : index
    %c0_241 = arith.constant 0 : index
    %239 = vector.load %arg5[%c26_239, %c0_240, %c0_241] : memref<32x256x128xbf16, #tpu.memory_space<vmem>>, vector<1x256x128xbf16>
    %240 = vector.shape_cast %239 : vector<1x256x128xbf16> to vector<256x128xbf16>
    %cst_242 = arith.constant dense<0.000000e+00> : vector<2x128xf32>
    %241 = tpu.matmul %238, %240, %cst_242 {dimension_numbers = #tpu.dot_dimension_numbers<[1], [0], [0], [1], [0, 0, 1, 1], [], []>} : vector<2x256xbf16>, vector<256x128xbf16>, vector<2x128xf32> -> vector<2x128xf32>
    %242 = arith.addf %237, %241 : vector<2x128xf32>
    %c54 = arith.constant 54 : index
    %c0_243 = arith.constant 0 : index
    %243 = vector.load %arg13[%c54, %c0_243] : memref<64x256xbf16, #tpu.memory_space<vmem>>, vector<2x256xbf16>
    %c27 = arith.constant 27 : index
    %c0_244 = arith.constant 0 : index
    %c0_245 = arith.constant 0 : index
    %244 = vector.load %arg5[%c27, %c0_244, %c0_245] : memref<32x256x128xbf16, #tpu.memory_space<vmem>>, vector<1x256x128xbf16>
    %245 = vector.shape_cast %244 : vector<1x256x128xbf16> to vector<256x128xbf16>
    %cst_246 = arith.constant dense<0.000000e+00> : vector<2x128xf32>
    %246 = tpu.matmul %243, %245, %cst_246 {dimension_numbers = #tpu.dot_dimension_numbers<[1], [0], [0], [1], [0, 0, 1, 1], [], []>} : vector<2x256xbf16>, vector<256x128xbf16>, vector<2x128xf32> -> vector<2x128xf32>
    %247 = arith.addf %242, %246 : vector<2x128xf32>
    %c56 = arith.constant 56 : index
    %c0_247 = arith.constant 0 : index
    %248 = vector.load %arg13[%c56, %c0_247] : memref<64x256xbf16, #tpu.memory_space<vmem>>, vector<2x256xbf16>
    %c28_248 = arith.constant 28 : index
    %c0_249 = arith.constant 0 : index
    %c0_250 = arith.constant 0 : index
    %249 = vector.load %arg5[%c28_248, %c0_249, %c0_250] : memref<32x256x128xbf16, #tpu.memory_space<vmem>>, vector<1x256x128xbf16>
    %250 = vector.shape_cast %249 : vector<1x256x128xbf16> to vector<256x128xbf16>
    %cst_251 = arith.constant dense<0.000000e+00> : vector<2x128xf32>
    %251 = tpu.matmul %248, %250, %cst_251 {dimension_numbers = #tpu.dot_dimension_numbers<[1], [0], [0], [1], [0, 0, 1, 1], [], []>} : vector<2x256xbf16>, vector<256x128xbf16>, vector<2x128xf32> -> vector<2x128xf32>
    %252 = arith.addf %247, %251 : vector<2x128xf32>
    %c58 = arith.constant 58 : index
    %c0_252 = arith.constant 0 : index
    %253 = vector.load %arg13[%c58, %c0_252] : memref<64x256xbf16, #tpu.memory_space<vmem>>, vector<2x256xbf16>
    %c29 = arith.constant 29 : index
    %c0_253 = arith.constant 0 : index
    %c0_254 = arith.constant 0 : index
    %254 = vector.load %arg5[%c29, %c0_253, %c0_254] : memref<32x256x128xbf16, #tpu.memory_space<vmem>>, vector<1x256x128xbf16>
    %255 = vector.shape_cast %254 : vector<1x256x128xbf16> to vector<256x128xbf16>
    %cst_255 = arith.constant dense<0.000000e+00> : vector<2x128xf32>
    %256 = tpu.matmul %253, %255, %cst_255 {dimension_numbers = #tpu.dot_dimension_numbers<[1], [0], [0], [1], [0, 0, 1, 1], [], []>} : vector<2x256xbf16>, vector<256x128xbf16>, vector<2x128xf32> -> vector<2x128xf32>
    %257 = arith.addf %252, %256 : vector<2x128xf32>
    %c60 = arith.constant 60 : index
    %c0_256 = arith.constant 0 : index
    %258 = vector.load %arg13[%c60, %c0_256] : memref<64x256xbf16, #tpu.memory_space<vmem>>, vector<2x256xbf16>
    %c30_257 = arith.constant 30 : index
    %c0_258 = arith.constant 0 : index
    %c0_259 = arith.constant 0 : index
    %259 = vector.load %arg5[%c30_257, %c0_258, %c0_259] : memref<32x256x128xbf16, #tpu.memory_space<vmem>>, vector<1x256x128xbf16>
    %260 = vector.shape_cast %259 : vector<1x256x128xbf16> to vector<256x128xbf16>
    %cst_260 = arith.constant dense<0.000000e+00> : vector<2x128xf32>
    %261 = tpu.matmul %258, %260, %cst_260 {dimension_numbers = #tpu.dot_dimension_numbers<[1], [0], [0], [1], [0, 0, 1, 1], [], []>} : vector<2x256xbf16>, vector<256x128xbf16>, vector<2x128xf32> -> vector<2x128xf32>
    %262 = arith.addf %257, %261 : vector<2x128xf32>
    %c62 = arith.constant 62 : index
    %c0_261 = arith.constant 0 : index
    %263 = vector.load %arg13[%c62, %c0_261] : memref<64x256xbf16, #tpu.memory_space<vmem>>, vector<2x256xbf16>
    %c31 = arith.constant 31 : index
    %c0_262 = arith.constant 0 : index
    %c0_263 = arith.constant 0 : index
    %264 = vector.load %arg5[%c31, %c0_262, %c0_263] : memref<32x256x128xbf16, #tpu.memory_space<vmem>>, vector<1x256x128xbf16>
    %265 = vector.shape_cast %264 : vector<1x256x128xbf16> to vector<256x128xbf16>
    %cst_264 = arith.constant dense<0.000000e+00> : vector<2x128xf32>
    %266 = tpu.matmul %263, %265, %cst_264 {dimension_numbers = #tpu.dot_dimension_numbers<[1], [0], [0], [1], [0, 0, 1, 1], [], []>} : vector<2x256xbf16>, vector<256x128xbf16>, vector<2x128xf32> -> vector<2x128xf32>
    %267 = arith.addf %262, %266 : vector<2x128xf32>
    %c0_265 = arith.constant 0 : index
    %c0_266 = arith.constant 0 : index
    %268 = vector.load %arg6[%c0_265, %c0_266] : memref<1x128xf32, #tpu.memory_space<vmem>>, vector<1x128xf32>
    %269 = vector.broadcast %268 : vector<1x128xf32> to vector<2x128xf32>
    %270 = arith.addf %267, %269 : vector<2x128xf32>
    %cst_267 = arith.constant 0.000000e+00 : f32
    %271 = vector.broadcast %cst_267 : f32 to vector<2x128xf32>
    %272 = arith.maximumf %270, %271 : vector<2x128xf32>
    %c0_268 = arith.constant 0 : index
    %c0_269 = arith.constant 0 : index
    %273 = vector.load %arg7[%c0_268, %c0_269] : memref<128x64xf32, #tpu.memory_space<vmem>>, vector<128x64xf32>
    %cst_270 = arith.constant dense<0.000000e+00> : vector<2x64xf32>
    %274 = tpu.matmul %272, %273, %cst_270 {dimension_numbers = #tpu.dot_dimension_numbers<[1], [0], [0], [1], [0, 0, 1, 1], [], []>} : vector<2x128xf32>, vector<128x64xf32>, vector<2x64xf32> -> vector<2x64xf32>
    %c0_271 = arith.constant 0 : index
    %c0_272 = arith.constant 0 : index
    %275 = vector.load %arg8[%c0_271, %c0_272] : memref<1x64xf32, #tpu.memory_space<vmem>>, vector<1x64xf32>
    %276 = vector.broadcast %275 : vector<1x64xf32> to vector<2x64xf32>
    %277 = arith.addf %274, %276 : vector<2x64xf32>
    %cst_273 = arith.constant 0.000000e+00 : f32
    %278 = vector.broadcast %cst_273 : f32 to vector<2x64xf32>
    %279 = arith.maximumf %277, %278 : vector<2x64xf32>
    %c0_274 = arith.constant 0 : index
    %c0_275 = arith.constant 0 : index
    %280 = vector.load %arg9[%c0_274, %c0_275] : memref<64x10xf32, #tpu.memory_space<vmem>>, vector<64x10xf32>
    %cst_276 = arith.constant dense<0.000000e+00> : vector<2x10xf32>
    %281 = tpu.matmul %279, %280, %cst_276 {dimension_numbers = #tpu.dot_dimension_numbers<[1], [0], [0], [1], [0, 0, 1, 1], [], []>} : vector<2x64xf32>, vector<64x10xf32>, vector<2x10xf32> -> vector<2x10xf32>
    %c0_277 = arith.constant 0 : index
    %c0_278 = arith.constant 0 : index
    %282 = vector.load %arg10[%c0_277, %c0_278] : memref<1x10xf32, #tpu.memory_space<vmem>>, vector<1x10xf32>
    %283 = vector.broadcast %282 : vector<1x10xf32> to vector<2x10xf32>
    %284 = arith.addf %281, %283 : vector<2x10xf32>
    %cst_279 = arith.constant dense<0xFF800000> : vector<2xf32>
    %285 = vector.multi_reduction <maximumf>, %284, %cst_279 [1] : vector<2x10xf32> to vector<2xf32>
    %286 = vector.shape_cast %285 : vector<2xf32> to vector<2x1xf32>
    %287 = vector.broadcast %286 : vector<2x1xf32> to vector<2x10xf32>
    %288 = arith.subf %284, %287 : vector<2x10xf32>
    %289 = math.exp %288 : vector<2x10xf32>
    %cst_280 = arith.constant dense<0.000000e+00> : vector<2xf32>
    %290 = vector.multi_reduction <add>, %289, %cst_280 [1] : vector<2x10xf32> to vector<2xf32>
    %291 = vector.shape_cast %290 : vector<2xf32> to vector<2x1xf32>
    %292 = math.log %291 : vector<2x1xf32>
    %293 = vector.broadcast %292 : vector<2x1xf32> to vector<2x10xf32>
    %294 = arith.subf %288, %293 : vector<2x10xf32>
    %c0_281 = arith.constant 0 : index
    %c0_282 = arith.constant 0 : index
    %295 = vector.load %arg11[%c0_281, %c0_282] : memref<2x10xf32, #tpu.memory_space<vmem>>, vector<2x10xf32>
    tpu.vector_store %arg11[%c0_281, %c0_282], %294 {strides = array<i32>} : memref<2x10xf32, #tpu.memory_space<vmem>>, vector<2x10xf32>,
    return
  }
}

</mosaic_0001>

<bundles_post_ra>
// kernel: model_space_forward.1
= control target key start
LH: loop header
LB: loop body
LE: loop exit
PB: predicated region body
PF: predicated region fallthrough
CT: control target
= control target key end

     0   :  { %16 = vsyncpa [#allocation5], 0  ;;  %s15064_s0 = inlined_call_operand.vmem [shape: f32[8,384], index: 0, kind: input, shape index: {}]   ;;  %s15065_s1 = inlined_call_operand.vmem [shape: f32[9,64,8], index: 1, kind: input, shape index: {}]   ;;  %s15066_s2 = inlined_call_operand.vmem [shape: f32[64,1], index: 2, kind: input, shape index: {}]   ;;  %s15067_s3 = inlined_call_operand.hbm [shape: f32[9,64,64], index: 3, kind: input, shape index: {}]   ;;  %s15068_s4 = inlined_call_operand.vmem [shape: f32[64,1], index: 4, kind: input, shape index: {}]   ;;  %s15069_s5 = inlined_call_operand.hbm [shape: bf16[32,256,128], index: 5, kind: input, shape index: {}]   ;;  %s15070_s6 = inlined_call_operand.hbm [shape: f32[1,128], index: 6, kind: input, shape index: {}]   ;;  %s15071_s7 = inlined_call_operand.vmem [shape: f32[128,64], index: 7, kind: input, shape index: {}]   ;;  %s15072_s8 = inlined_call_operand.hbm [shape: f32[1,64], index: 8, kind: input, shape index: {}]   ;;  %s15073_s9 = inlined_call_operand.vmem [shape: f32[64,10], index: 9, kind: input, shape index: {}]   ;;  %s15074_s10 = inlined_call_operand.hbm [shape: f32[1,10], index: 10, kind: input, shape index: {}]   ;;  %s15075_s11 = inlined_call_operand.hbm [shape: f32[2,10], index: 11, kind: output, shape index: {}]  }
   0x1   :  { %17 = vsyncpa [#allocation8], 0 }
   0x2   :  { %18 = vsyncpa [#allocation11], 0 }
   0x3   :  { %19 = vsyncpa [#allocation6], 0  ;;  %s12438_s17 = smov [#allocation7]  }
   0x4   :  { %s45_s18 = sshll.u32 %s12438_s17, 4  ;;  %s46_s18 = int_to_ptr.vmem [resolvable:$true] %s45_s18 }
   0x5   :  { %s12318_s19 = scalar_lea.vmem %s46_s18, 65536  ;;  %p12323_p1 = scmp.lt.s32.totalorder %s46_s18, %s46_s18 }
   0x6   :  { %p12319_p0 = scmp.ne.s32.totalorder %s46_s18, %s12318_s19  ;;  %p12324_p2 = scmp.lt.s32.totalorder %s12318_s19, %s12318_s19 }
   0x8   :  { %p12325_p3 = por %p12324_p2, %p12323_p1 }
   0xa   :  { %p12326_p4 = pnand %p12325_p3, %p12319_p0 }
   0xc   :  { %12329 = shalt.err (!%p12326_p4)
}
   0xd   :  { %s12439_s20 = smov 64   ;;  %s12440_s21 = smov 4  }
   0xe   :  { %51 = dma.hbm_to_vmem [thread:$0]  %s15069_s5, 65536, %s46_s18, [#allocation8], %s12439_s20, %s12439_s20, %s12440_s21  }
   0xf   :  { %s12441_s24 = smov [#allocation10]   ;;  %s12442_s26 = smov [#allocation4]  }
  0x10   :  { %s70_s25 = sshll.u32 %s12441_s24, 4  ;;  %s31_s27 = sshll.u32 %s12442_s26, 4  ;;  %s71_s25 = int_to_ptr.vmem [resolvable:$true] %s70_s25  ;;  %s32_s27 = int_to_ptr.vmem [resolvable:$true] %s31_s27 }
  0x11   :  { %s12338_s28 = scalar_lea.vmem %s71_s25, 16  ;;  %s12342_s29 = scalar_lea.vmem %s71_s25, 32 }
  0x12   :  { %p12339_p5 = scmp.ne.s32.totalorder %s71_s25, %s12338_s28  ;;  %p12343_p6 = scmp.lt.s32.totalorder %s71_s25, %s71_s25 }
  0x13   :  { %p12344_p7 = scmp.lt.s32.totalorder %s12342_s29, %s12338_s28 }
  0x15   :  { %p12345_p8 = por %p12344_p7, %p12343_p6 }
  0x17   :  { %p12346_p9 = pnand %p12345_p8, %p12339_p5 }
  0x19   :  { %12349 = shalt.err (!%p12346_p9)
}
  0x1a   :  { %73 = dma.hbm_to_vmem [thread:$0]  %s15072_s8, 16, %s71_s25, [#allocation11]  }
  0x1b   :  { %s12358_s13 = scalar_lea.vmem %s32_s27, 9216  ;;  %p12363_p11 = scmp.lt.s32.totalorder %s32_s27, %s32_s27 }
  0x1c   :  { %p12359_p10 = scmp.ne.s32.totalorder %s32_s27, %s12358_s13  ;;  %p12364_p12 = scmp.lt.s32.totalorder %s12358_s13, %s12358_s13 }
  0x1e   :  { %p12365_p13 = por %p12364_p12, %p12363_p11 }
  0x20   :  { %p12366_p0 = pnand %p12365_p13, %p12359_p10 }
  0x22   :  { %12369 = shalt.err (!%p12366_p0)
}
  0x23   :  { %s12443_s5 = smov 128   ;;  %s12444_s14 = smov 8  }
  0x24   :  { %37 = dma.hbm_to_vmem [thread:$0]  %s15067_s3, 9216, %s32_s27, [#allocation5], %s12443_s5, %s12443_s5, %s12444_s14  }
  0x25   :  { %s12445_s17 = smov [#allocation9]   ;;  %s12446_s19 = smov [#allocation12]  }
  0x26   :  { %s58_s18 = sshll.u32 %s12445_s17, 4  ;;  %s82_s20 = sshll.u32 %s12446_s19, 4  ;;  %s59_s18 = int_to_ptr.vmem [resolvable:$true] %s58_s18  ;;  %s83_s20 = int_to_ptr.vmem [resolvable:$true] %s82_s20 }
  0x27   :  { %s12378_s8 = scalar_lea.vmem %s59_s18, 16  ;;  %s12382_s21 = scalar_lea.vmem %s59_s18, 32 }
  0x28   :  { %p12379_p1 = scmp.ne.s32.totalorder %s59_s18, %s12378_s8  ;;  %p12383_p2 = scmp.lt.s32.totalorder %s59_s18, %s59_s18 }
  0x29   :  { %p12384_p3 = scmp.lt.s32.totalorder %s12382_s21, %s12378_s8 }
  0x2b   :  { %p12385_p4 = por %p12384_p3, %p12383_p2 }
  0x2d   :  { %p12386_p5 = pnand %p12385_p4, %p12379_p1 }
  0x2f   :  { %12389 = shalt.err (!%p12386_p5)
}
  0x30   :  { %61 = dma.hbm_to_vmem [thread:$0]  %s15070_s6, 16, %s59_s18, [#allocation8]  }
  0x31   :  { %s12398_s24 = scalar_lea.vmem %s83_s20, 16  ;;  %s12402_s3 = scalar_lea.vmem %s83_s20, 32 }
  0x32   :  { %p12399_p6 = scmp.ne.s32.totalorder %s83_s20, %s12398_s24  ;;  %p12403_p7 = scmp.lt.s32.totalorder %s83_s20, %s83_s20 }
  0x33   :  { %p12404_p8 = scmp.lt.s32.totalorder %s12402_s3, %s12398_s24 }
  0x35   :  { %p12405_p9 = por %p12404_p8, %p12403_p7 }
  0x37   :  { %p12406_p10 = pnand %p12405_p9, %p12399_p6 }
  0x39   :  { %12409 = shalt.err (!%p12406_p10)
}
  0x3a   :  { %85 = dma.hbm_to_vmem [thread:$0]  %s15074_s10, 16, %s83_s20, [#allocation11]  }
  0x3b   :  { %12430 = dma.done.wait [#allocation5], 9216  }
  0x3c   :  { %12431 = vsyncadd [#allocation5], 4294958080 }
  0x3d   :  { %12432 = dma.done.wait [#allocation8], 65552  }
  0x3e   :  { %12433 = vsyncadd [#allocation8], 4294901744 }
  0x3f   :  { %12434 = dma.done.wait [#allocation11], 32  }
  0x40   :  { %12435 = vsyncadd [#allocation11], 4294967264  ;;  %v15076_v0 = vmov 0.0   ;;  %v122_v1 = vld [vmem:[%s15064_s0 + $0x8] sm:$0xff]  ;;  %v121_v2 = vld [vmem:[%s15064_s0] sm:$0xff]  ;;  %s12448_s10 = smov 127  }
  0x41   :  { %227 = vmatprep.mubr.f32.mxu0 %v15076_v0  ;;  %263 = vmatprep.mubr.f32.mxu1 %v15076_v0  ;;  %v123_v3 = vld [vmem:[%s15064_s0 + $0x10] sm:$0xff]  ;;  %s12449_s13 = smov 126   ;;  %s12450_s5 = smov 112   ;;  %vm133_vm0 = vcmask 1039360   ;;  %v9957_v6 = vld [vmem:[%s15065_s1 + $0x40] sm:$0xff]  ;;  %vm138_vm1 = vcmask 64512  }
  0x42   :  { %129 = vrot.lane.b32.xlu0 %v122_v1, %s12448_s10  ;;  %127 = vrot.lane.b32.xlu1 %v121_v2, %s12448_s10  ;;  %s12451_s14 = smov 111   ;;  %s12452_s0 = smov 110   ;;  %v9963_v10 = vld [vmem:[%s15065_s1 + $0x70] sm:$0xff]  ;;  %vm428_vm2 = vcmask 1031168   ;;  %v9958_v12 = vld [vmem:[%s15065_s1 + $0x48] sm:$0xff]  ;;  %vm601_vm3 = vcmask 916480  }
  0x43   :  { %s12453_s15 = smov 96   ;;  %s12454_s16 = smov 95   ;;  %v9964_v15 = vld [vmem:[%s15065_s1 + $0x78] sm:$0xff]  ;;  %v9959_v18 = vld [vmem:[%s15065_s1 + $0x50] sm:$0xff]  ;;  %v102_v21 = vld [vmem:[%s15065_s1] sm:$0xff]  ;;  %vm774_vm4 = vcmask 908288  }
  0x44   :  { %s12455_s17 = smov 94   ;;  %v9960_v23 = vld [vmem:[%s15065_s1 + $0x58] sm:$0xff]  ;;  %v103_v26 = vld [vmem:[%s15065_s1 + $0x8] sm:$0xff]  ;;  %v9961_v28 = vld [vmem:[%s15065_s1 + $0x60] sm:$0xff]  ;;  %vm947_vm5 = vcmask 900096   ;;  %vm1120_vm6 = vcmask 785408  }
  0x45   :  { %v104_v31 = vld [vmem:[%s15065_s1 + $0x10] sm:$0xff]  ;;  %v9962_v33 = vld [vmem:[%s15065_s1 + $0x68] sm:$0xff]  ;;  %v105_v36 = vld [vmem:[%s15065_s1 + $0x18] sm:$0xff]  ;;  %v12456_v43 = vmov 0   ;;  %vm1293_vm7 = vcmask 777216   ;;  %vm1466_vm8 = vcmask 769024  }
  0x46   :  { %131 = vrot.lane.b32.xlu0 %v123_v3, %s12448_s10  ;;  %424 = vrot.lane.b32.xlu1 %v122_v1, %s12449_s13  ;;  %v1631_v39 = vld [vmem:[%s15066_s2 + $0x38] sm:$0xff]  ;;  %v106_v40 = vld [vmem:[%s15065_s1 + $0x20] sm:$0xff]  ;;  %vm1889_vm9 = vcmask 523264   ;;  %vm12457_vm10 = vmmov 0   ;;  %vm9926_vm11 = vcmask 74752  }
  0x47   :  { %v9981_v41 = vld [vmem:[%s15065_s1 + $0x80] sm:$0xff]  ;;  %v1630_v42 = vld [vmem:[%s15066_s2 + $0x30] sm:$0xff]  ;;  %11568 = vset.pattern.permute.xlu0 %v12456_v43  ;;  %11569 = vset.pattern.permute.xlu1 %v12456_v43  ;;  %v107_v45 = vld [vmem:[%s15065_s1 + $0x28] sm:$0xff] }
  0x48   :  { %v1628_v44 = vld [vmem:[%s15066_s2 + $0x20] sm:$0xff]  ;;  %v9982_v46 = vld [vmem:[%s15065_s1 + $0x88] sm:$0xff]  ;;  %v1626_v52 = vld [vmem:[%s15066_s2 + $0x10] sm:$0xff] }
  0x49   :  { %v1629_v51 = vld [vmem:[%s15066_s2 + $0x28] sm:$0xff]  ;;  %v108_v53 = vld [vmem:[%s15065_s1 + $0x30] sm:$0xff]  ;;  %v1627_v55 = vld [vmem:[%s15066_s2 + $0x18] sm:$0xff] }
  0x4a   :  { %426 = vrot.lane.b32.xlu0 %v123_v3, %s12449_s13  ;;  %422 = vrot.lane.b32.xlu1 %v121_v2, %s12449_s13  ;;  %v9983_v54 = vld [vmem:[%s15065_s1 + $0x90] sm:$0xff]  ;;  %v1624_v56 = vld [vmem:[%s15066_s2] sm:$0xff] }
  0x4b   :  { %v109_v57 = vld [vmem:[%s15065_s1 + $0x38] sm:$0xff]  ;;  %v9985_v60 = vld [vmem:[%s15065_s1 + $0xa0] sm:$0xff]  ;;  %v9986_v63 = vld [vmem:[%s15065_s1 + $0xa8] sm:$0xff] }
  0x4c   :  { %v9984_v58 = vld [vmem:[%s15065_s1 + $0x98] sm:$0xff]  ;;  %v9997_v61 = vld [vmem:[%s15065_s1 + $0xc0] sm:$0xff] }
  0x4d   :  { %v10061_v43 = vld [vmem:[%s15065_s1 + $0x1c0] sm:$0xff] }
  0x4e   :  { %597 = vrot.lane.b32.xlu0 %v122_v1, %s12450_s5  ;;  %599 = vrot.lane.b32.xlu1 %v123_v3, %s12450_s5 }
  0x52   :  { %595 = vrot.lane.b32.xlu0 %v121_v2, %s12450_s5  ;;  %770 = vrot.lane.b32.xlu1 %v122_v1, %s12451_s14 }
  0x56   :  { %772 = vrot.lane.b32.xlu0 %v123_v3, %s12451_s14  ;;  %768 = vrot.lane.b32.xlu1 %v121_v2, %s12451_s14 }
  0x5a   :  { %943 = vrot.lane.b32.xlu0 %v122_v1, %s12452_s0  ;;  %945 = vrot.lane.b32.xlu1 %v123_v3, %s12452_s0 }
  0x5e   :  { %941 = vrot.lane.b32.xlu0 %v121_v2, %s12452_s0  ;;  %1116 = vrot.lane.b32.xlu1 %v122_v1, %s12453_s15 }
  0x62   :  { %1118 = vrot.lane.b32.xlu0 %v123_v3, %s12453_s15  ;;  %1114 = vrot.lane.b32.xlu1 %v121_v2, %s12453_s15 }
  0x66   :  { %1289 = vrot.lane.b32.xlu0 %v122_v1, %s12454_s16  ;;  %1291 = vrot.lane.b32.xlu1 %v123_v3, %s12454_s16 }
  0x6a   :  { %1287 = vrot.lane.b32.xlu0 %v121_v2, %s12454_s16  ;;  %1462 = vrot.lane.b32.xlu1 %v122_v1, %s12455_s17 }
  0x6e   :  { %1464 = vrot.lane.b32.xlu0 %v123_v3, %s12455_s17  ;;  %1460 = vrot.lane.b32.xlu1 %v121_v2, %s12455_s17 }
  0x72   :  { %1669 = vperm.xlu0 %11568, %v1631_v39   ;;  %1664 = vperm.xlu1 %11569, %v1630_v42   ;;  %v10047_v39 = vld [vmem:[%s15065_s1 + $0x190] sm:$0xff]  ;;  %v10049_v42 = vld [vmem:[%s15065_s1 + $0x1a0] sm:$0xff] }
  0x76   :  { %1654 = vperm.xlu0 %11568, %v1628_v44   ;;  %1659 = vperm.xlu1 %11569, %v1629_v51   ;;  %v10050_v44 = vld [vmem:[%s15065_s1 + $0x1a8] sm:$0xff]  ;;  %v10077_v51 = vld [vmem:[%s15065_s1 + $0x200] sm:$0xff] }
  0x7a   :  { %1644 = vperm.xlu0 %11568, %v1626_v52   ;;  %1649 = vperm.xlu1 %11569, %v1627_v55   ;;  %v10066_v52 = vld [vmem:[%s15065_s1 + $0x1e8] sm:$0xff]  ;;  %v10079_v55 = vld [vmem:[%s15065_s1 + $0x210] sm:$0xff] }
  0x7e   :  { %1634 = vperm.xlu0 %11568, %v1624_v56   ;;  %v10068_v56 = vld [vmem:[%s15065_s1 + $0x1f8] sm:$0xff] }
  0x82   :  { %11571 = vrot.lane.b32.xlu0 %v15076_v0, %s12448_s10 }
  0x86   :  { %11581 = vrot.lane.b32.xlu0 %v15076_v0, %s12448_s10 }
  0x8a   :  { %11591 = vrot.lane.b32.xlu0 %v15076_v0, %s12449_s13 }
  0x8e   :  { %11601 = vrot.lane.b32.xlu0 %v15076_v0, %s12449_s13 }
  0x92   :  { %11611 = vrot.lane.b32.xlu0 %v15076_v0, %s12450_s5 }
  0x96   :  { %11616 = vrot.lane.b32.xlu0 %v15076_v0, %s12451_s14 }
  0x9a   :  { %11621 = vrot.lane.b32.xlu0 %v15076_v0, %s12450_s5 }
  0x9e   :  { %11626 = vrot.lane.b32.xlu0 %v15076_v0, %s12451_s14 }
  0xa2   :  { %11631 = vrot.lane.b32.xlu0 %v15076_v0, %s12450_s5 }
  0xa6   :  { %11636 = vrot.lane.b32.xlu0 %v15076_v0, %s12451_s14 }
  0xaa   :  { %11641 = vrot.lane.b32.xlu0 %v15076_v0, %s12450_s5 }
  0xae   :  { %11646 = vrot.lane.b32.xlu0 %v15076_v0, %s12451_s14 }
  0xb2   :  { %11651 = vrot.lane.b32.xlu0 %v15076_v0, %s12452_s0 }
  0xb4   :  { %v130_v4 = vpop.permute.xlu0 %129  ;;  %v128_v5 = vpop.permute.xlu1 %127 }
  0xb5   :  { %v134_v11 = vsel %vm133_vm0, %v128_v5, %v130_v4  ;;  %v9987_v5 = vld [vmem:[%s15065_s1 + $0xb0] sm:$0xff] }
  0xb6   :  { %11656 = vrot.lane.b32.xlu0 %v15076_v0, %s12453_s15 }
  0xb8   :  { %v132_v7 = vpop.permute.xlu0 %131  ;;  %v425_v8 = vpop.permute.xlu1 %424 }
  0xb9   :  { %v135_v9 = vsel %vm133_vm0, %v130_v4, %v132_v7  ;;  %v9988_v7 = vld [vmem:[%s15065_s1 + $0xb8] sm:$0xff] }
  0xba   :  { %193 = vmatprep.subr.mxu0 %v135_v9  ;;  %11545 = vmatprep.subr.mxu1 %v135_v9 }
  0xbb   :  { %194 = vmatpush1.msra.mxu0 %v134_v11  ;;  %11546 = vmatpush1.msra.mxu1 %v134_v11  ;;  %v10013_v11 = vld [vmem:[%s15065_s1 + $0x100] sm:$0xff] }
  0xbc   :  { %9965 = vmatmul.mubr.msk.f32.vlgmr.msra.gmra.mxu0 %vm138_vm1, %v9957_v6  ;;  %9971 = vmatmul.mubr.msk.f32.vlgmr.msra.gmra.mxu1 %vm138_vm1, %v9963_v10  ;;  %v427_v13 = vpop.permute.xlu0 %426  ;;  %v423_v14 = vpop.permute.xlu1 %422  ;;  %v9999_v6 = vld [vmem:[%s15065_s1 + $0xd0] sm:$0xff]  ;;  %v10001_v10 = vld [vmem:[%s15065_s1 + $0xe0] sm:$0xff] }
  0xbd   :  { %233 = vmatprep.mubr.f32.mxu0 %v15076_v0  ;;  %269 = vmatprep.mubr.f32.mxu1 %v15076_v0  ;;  %v429_v16 = vsel %vm428_vm2, %v423_v14, %v425_v8  ;;  %v430_v17 = vsel %vm428_vm2, %v425_v8, %v427_v13  ;;  %v10000_v8 = vld [vmem:[%s15065_s1 + $0xd8] sm:$0xff]  ;;  %v10002_v13 = vld [vmem:[%s15065_s1 + $0xe8] sm:$0xff] }
  0xbe   :  { %330 = vmatprep.subr.mxu1 %v122_v1  ;;  %487 = vmatprep.subr.mxu0 %v430_v17  ;;  %v9998_v1 = vld [vmem:[%s15065_s1 + $0xc8] sm:$0xff] }
  0xbf   :  { %331 = vmatpush1.msra.mxu1 %v121_v2  ;;  %488 = vmatpush1.msra.mxu0 %v429_v16  ;;  %v10014_v14 = vld [vmem:[%s15065_s1 + $0x108] sm:$0xff] }
  0xc0   :  { %9966 = vmatmul.mubr.msk.f32.gmra.mxu0 %vm138_vm1, %v9958_v12  ;;  %9972 = vmatmul.mubr.msk.f32.gmra.mxu1 %vm138_vm1, %v9964_v15  ;;  %v598_v19 = vpop.permute.xlu0 %597  ;;  %v600_v20 = vpop.permute.xlu1 %599 }
  0xc1   :  { %239 = vmatprep.mubr.f32.mxu0 %v15076_v0  ;;  %364 = vmatprep.mubr.f32.mxu1 %v15076_v0  ;;  %v603_v22 = vsel %vm601_vm3, %v598_v19, %v600_v20  ;;  %v10004_v20 = vld [vmem:[%s15065_s1 + $0xf8] sm:$0xff] }
  0xc2   :  { %660 = vmatprep.subr.mxu1 %v603_v22  ;;  %v1625_v22 = vld [vmem:[%s15066_s2 + $0x8] sm:$0xff]  ;;  %11661 = vrot.lane.b32.xlu0 %v15076_v0, %s12452_s0 }
  0xc3   :  { %1639 = vperm.xlu1 %11569, %v1625_v22  }
  0xc4   :  { %9967 = vmatmul.mubr.msk.f32.gmra.mxu0 %vm138_vm1, %v9959_v18  ;;  %9973 = vmatmul.mubr.msk.f32.vlgmr.msra.gmra.mxu1 %vm138_vm1, %v102_v21  ;;  %v596_v24 = vpop.permute.xlu0 %595  ;;  %v771_v25 = vpop.permute.xlu1 %770  ;;  %v10003_v18 = vld [vmem:[%s15065_s1 + $0xf0] sm:$0xff]  ;;  %v10016_v21 = vld [vmem:[%s15065_s1 + $0x118] sm:$0xff] }
  0xc5   :  { %245 = vmatprep.mubr.f32.mxu0 %v15076_v0  ;;  %370 = vmatprep.mubr.f32.mxu1 %v15076_v0  ;;  %v602_v27 = vsel %vm601_vm3, %v596_v24, %v598_v19  ;;  %v10015_v19 = vld [vmem:[%s15065_s1 + $0x110] sm:$0xff]  ;;  %v10029_v24 = vld [vmem:[%s15065_s1 + $0x140] sm:$0xff] }
  0xc6   :  { %661 = vmatpush1.msra.mxu1 %v602_v27  ;;  %11666 = vrot.lane.b32.xlu0 %v15076_v0, %s12453_s15 }
  0xc7   :  { %11576 = vrot.lane.b32.xlu1 %v15076_v0, %s12448_s10 }
  0xc8   :  { %9968 = vmatmul.mubr.msk.f32.gmra.mxu0 %vm138_vm1, %v9960_v23  ;;  %9974 = vmatmul.mubr.msk.f32.gmra.mxu1 %vm138_vm1, %v103_v26  ;;  %v773_v29 = vpop.permute.xlu0 %772  ;;  %v769_v30 = vpop.permute.xlu1 %768  ;;  %v10017_v23 = vld [vmem:[%s15065_s1 + $0x120] sm:$0xff]  ;;  %v10030_v26 = vld [vmem:[%s15065_s1 + $0x148] sm:$0xff] }
  0xc9   :  { %251 = vmatprep.mubr.f32.mxu0 %v15076_v0  ;;  %376 = vmatprep.mubr.f32.mxu1 %v15076_v0  ;;  %v776_v32 = vsel %vm774_vm4, %v771_v25, %v773_v29  ;;  %v775_v47 = vsel %vm774_vm4, %v769_v30, %v771_v25  ;;  %v10018_v25 = vld [vmem:[%s15065_s1 + $0x128] sm:$0xff]  ;;  %v10031_v29 = vld [vmem:[%s15065_s1 + $0x150] sm:$0xff]  ;;  %v10020_v30 = vld [vmem:[%s15065_s1 + $0x138] sm:$0xff] }
  0xca   :  { %833 = vmatprep.subr.mxu0 %v776_v32  ;;  %v10033_v32 = vld [vmem:[%s15065_s1 + $0x160] sm:$0xff] }
  0xcb   :  { %11586 = vrot.lane.b32.xlu1 %v15076_v0, %s12448_s10 }
  0xcc   :  { %9969 = vmatmul.mubr.msk.f32.gmra.mxu0 %vm138_vm1, %v9961_v28  ;;  %9975 = vmatmul.mubr.msk.f32.gmra.mxu1 %vm138_vm1, %v104_v31  ;;  %v12627_v34 = vpop.permute.xlu0 %943  ;;  %v946_v35 = vpop.permute.xlu1 %945  ;;  %v10019_v28 = vld [vmem:[%s15065_s1 + $0x130] sm:$0xff]  ;;  %v10032_v31 = vld [vmem:[%s15065_s1 + $0x158] sm:$0xff] }
  0xcd   :  { %257 = vmatprep.mubr.f32.mxu0 %v15076_v0  ;;  %382 = vmatprep.mubr.f32.mxu1 %v15076_v0  ;;  %v949_v37 = vsel %vm947_vm5, %v12627_v34, %v946_v35  ;;  %v10034_v35 = vld [vmem:[%s15065_s1 + $0x168] sm:$0xff] }
  0xce   :  { %1006 = vmatprep.subr.mxu1 %v949_v37 }
  0xcf   :  { %11596 = vrot.lane.b32.xlu1 %v15076_v0, %s12449_s13 }
  0xd0   :  { %9970 = vmatmul.mubr.msk.f32.gmra.mxu0 %vm138_vm1, %v9962_v33  ;;  %9976 = vmatmul.mubr.msk.f32.gmra.mxu1 %vm138_vm1, %v105_v36  ;;  %v942_v38 = vpop.permute.xlu0 %941  ;;  %v12664_v48 = vpop.permute.xlu1 %1116  ;;  %v10045_v33 = vld [vmem:[%s15065_s1 + $0x180] sm:$0xff]  ;;  %v10046_v36 = vld [vmem:[%s15065_s1 + $0x188] sm:$0xff] }
  0xd1   :  { %388 = vmatprep.mubr.f32.mxu1 %v15076_v0  ;;  %521 = vmatprep.mubr.f32.mxu0 %v15076_v0  ;;  %v948_v2 = vsel %vm947_vm5, %v942_v38, %v12627_v34  ;;  %v10035_v38 = vld [vmem:[%s15065_s1 + $0x170] sm:$0xff] }
  0xd3   :  { %11606 = vrot.lane.b32.xlu1 %v15076_v0, %s12449_s13 }
  0xd4   :  { %9977 = vmatmul.mubr.msk.f32.gmra.mxu1 %vm138_vm1, %v106_v40  ;;  %9989 = vmatmul.mubr.msk.f32.vlgmr.msra.gmra.mxu0 %vm138_vm1, %v9981_v41  ;;  %v1119_v49 = vpop.permute.xlu0 %1118  ;;  %v1115_v59 = vpop.permute.xlu1 %1114  ;;  %v10036_v40 = vld [vmem:[%s15065_s1 + $0x178] sm:$0xff] }
  0xd5   :  { %394 = vmatprep.mubr.f32.mxu1 %v15076_v0  ;;  %527 = vmatprep.mubr.f32.mxu0 %v15076_v0  ;;  %v1122_v50 = vsel %vm1120_vm6, %v12664_v48, %v1119_v49  ;;  %v1121_v15 = vsel %vm1120_vm6, %v1115_v59, %v12664_v48  ;;  %v10048_v41 = vld [vmem:[%s15065_s1 + $0x198] sm:$0xff]  ;;  %v10082_v59 = vld [vmem:[%s15065_s1 + $0x228] sm:$0xff] }
  0xd6   :  { %834 = vmatpush1.msra.mxu0 %v775_v47  ;;  %v10063_v47 = vld [vmem:[%s15065_s1 + $0x1d0] sm:$0xff]  ;;  %v10052_v48 = vld [vmem:[%s15065_s1 + $0x1b8] sm:$0xff] }
  0xd7   :  { %1179 = vmatprep.subr.mxu0 %v1122_v50  ;;  %v10064_v49 = vld [vmem:[%s15065_s1 + $0x1d8] sm:$0xff]  ;;  %v10065_v50 = vld [vmem:[%s15065_s1 + $0x1e0] sm:$0xff] }
  0xd8   :  { %9978 = vmatmul.mubr.msk.f32.gmra.mxu1 %vm138_vm1, %v107_v45  ;;  %9990 = vmatmul.mubr.msk.f32.gmra.mxu0 %vm138_vm1, %v9982_v46  ;;  %v1292_v62 = vpop.permute.xlu1 %1291  ;;  %v12720_v3 = vpop.permute.xlu0 %1289  ;;  %v10062_v45 = vld [vmem:[%s15065_s1 + $0x1c8] sm:$0xff]  ;;  %v10051_v46 = vld [vmem:[%s15065_s1 + $0x1b0] sm:$0xff] }
  0xd9   :  { %400 = vmatprep.mubr.f32.mxu1 %v15076_v0  ;;  %533 = vmatprep.mubr.f32.mxu0 %v15076_v0  ;;  %v1295_v4 = vsel %vm1293_vm7, %v12720_v3, %v1292_v62 }
  0xdc   :  { %9979 = vmatmul.mubr.msk.f32.gmra.mxu1 %vm138_vm1, %v108_v53  ;;  %9991 = vmatmul.mubr.msk.f32.gmra.mxu0 %vm138_vm1, %v9983_v54  ;;  %v1288_v9 = vpop.permute.xlu0 %1287  ;;  %v1463_v16 = vpop.permute.xlu1 %1462  ;;  %v10078_v53 = vld [vmem:[%s15065_s1 + $0x208] sm:$0xff]  ;;  %v10067_v54 = vld [vmem:[%s15065_s1 + $0x1f0] sm:$0xff] }
  0xdd   :  { %406 = vmatprep.mubr.f32.mxu1 %v15076_v0  ;;  %539 = vmatprep.mubr.f32.mxu0 %v15076_v0  ;;  %v1294_v27 = vsel %vm1293_vm7, %v1288_v9, %v12720_v3 }
  0xe0   :  { %9980 = vmatmul.mubr.msk.f32.gmra.mxu1 %vm138_vm1, %v109_v57  ;;  %9992 = vmatmul.mubr.msk.f32.gmra.mxu0 %vm138_vm1, %v9984_v58  ;;  %v1465_v12 = vpop.permute.xlu0 %1464  ;;  %v1461_v34 = vpop.permute.xlu1 %1460  ;;  %v10080_v57 = vld [vmem:[%s15065_s1 + $0x218] sm:$0xff]  ;;  %v10081_v58 = vld [vmem:[%s15065_s1 + $0x220] sm:$0xff] }
  0xe1   :  { %545 = vmatprep.mubr.f32.mxu0 %v15076_v0  ;;  %694 = vmatprep.mubr.f32.mxu1 %v15076_v0  ;;  %v1468_v17 = vsel %vm1466_vm8, %v1463_v16, %v1465_v12  ;;  %v1467_v37 = vsel %vm1466_vm8, %v1461_v34, %v1463_v16 }
  0xe4   :  { %9993 = vmatmul.mubr.msk.f32.gmra.mxu0 %vm138_vm1, %v9985_v60  ;;  %10005 = vmatmul.mubr.msk.f32.vlgmr.msra.gmra.mxu1 %vm138_vm1, %v9997_v61  ;;  %v10083_v60 = vld [vmem:[%s15065_s1 + $0x230] sm:$0xff]  ;;  %v10084_v61 = vld [vmem:[%s15065_s1 + $0x238] sm:$0xff] }
  0xe5   :  { %551 = vmatprep.mubr.f32.mxu0 %v15076_v0  ;;  %700 = vmatprep.mubr.f32.mxu1 %v15076_v0 }
  0xe6   :  { %1007 = vmatpush1.msra.mxu1 %v948_v2 }
  0xe7   :  { %1352 = vmatprep.subr.mxu1 %v1295_v4 }
  0xe8   :  { %9994 = vmatmul.mubr.msk.f32.gmra.mxu0 %vm138_vm1, %v9986_v63  ;;  %10006 = vmatmul.mubr.msk.f32.gmra.mxu1 %vm138_vm1, %v9998_v1 }
  0xe9   :  { %557 = vmatprep.mubr.f32.mxu0 %v15076_v0  ;;  %706 = vmatprep.mubr.f32.mxu1 %v15076_v0 }
  0xec   :  { %9995 = vmatmul.mubr.msk.f32.gmra.mxu0 %vm138_vm1, %v9987_v5  ;;  %10007 = vmatmul.mubr.msk.f32.gmra.mxu1 %vm138_vm1, %v9999_v6 }
  0xed   :  { %563 = vmatprep.mubr.f32.mxu0 %v15076_v0  ;;  %712 = vmatprep.mubr.f32.mxu1 %v15076_v0 }
  0xf0   :  { %9996 = vmatmul.mubr.msk.f32.gmra.mxu0 %vm138_vm1, %v9988_v7  ;;  %10008 = vmatmul.mubr.msk.f32.gmra.mxu1 %vm138_vm1, %v10000_v8 }
  0xf1   :  { %718 = vmatprep.mubr.f32.mxu1 %v15076_v0  ;;  %867 = vmatprep.mubr.f32.mxu0 %v15076_v0 }
  0xf4   :  { %10009 = vmatmul.mubr.msk.f32.gmra.mxu1 %vm138_vm1, %v10001_v10  ;;  %10021 = vmatmul.mubr.msk.f32.vlgmr.msra.gmra.mxu0 %vm138_vm1, %v10013_v11 }
  0xf5   :  { %724 = vmatprep.mubr.f32.mxu1 %v15076_v0  ;;  %873 = vmatprep.mubr.f32.mxu0 %v15076_v0 }
  0xf6   :  { %1180 = vmatpush1.msra.mxu0 %v1121_v15 }
  0xf7   :  { %1525 = vmatprep.subr.mxu0 %v1468_v17 }
  0xf8   :  { %10010 = vmatmul.mubr.msk.f32.gmra.mxu1 %vm138_vm1, %v10002_v13  ;;  %10022 = vmatmul.mubr.msk.f32.gmra.mxu0 %vm138_vm1, %v10014_v14 }
  0xf9   :  { %730 = vmatprep.mubr.f32.mxu1 %v15076_v0  ;;  %879 = vmatprep.mubr.f32.mxu0 %v15076_v0 }
  0xfc   :  { %10011 = vmatmul.mubr.msk.f32.gmra.mxu1 %vm138_vm1, %v10003_v18  ;;  %10023 = vmatmul.mubr.msk.f32.gmra.mxu0 %vm138_vm1, %v10015_v19 }
  0xfd   :  { %736 = vmatprep.mubr.f32.mxu1 %v15076_v0  ;;  %885 = vmatprep.mubr.f32.mxu0 %v15076_v0 }
 0x100   :  { %10012 = vmatmul.mubr.msk.f32.gmra.mxu1 %vm138_vm1, %v10004_v20  ;;  %10024 = vmatmul.mubr.msk.f32.gmra.mxu0 %vm138_vm1, %v10016_v21 }
 0x101   :  { %891 = vmatprep.mubr.f32.mxu0 %v15076_v0  ;;  %1040 = vmatprep.mubr.f32.mxu1 %v15076_v0 }
 0x104   :  { %10025 = vmatmul.mubr.msk.f32.gmra.mxu0 %vm138_vm1, %v10017_v23  ;;  %10037 = vmatmul.mubr.msk.f32.vlgmr.msra.gmra.mxu1 %vm138_vm1, %v10029_v24 }
 0x105   :  { %897 = vmatprep.mubr.f32.mxu0 %v15076_v0  ;;  %1046 = vmatprep.mubr.f32.mxu1 %v15076_v0 }
 0x106   :  { %1353 = vmatpush1.msra.mxu1 %v1294_v27 }
 0x108   :  { %10026 = vmatmul.mubr.msk.f32.gmra.mxu0 %vm138_vm1, %v10018_v25  ;;  %10038 = vmatmul.mubr.msk.f32.gmra.mxu1 %vm138_vm1, %v10030_v26 }
 0x109   :  { %903 = vmatprep.mubr.f32.mxu0 %v15076_v0  ;;  %1052 = vmatprep.mubr.f32.mxu1 %v15076_v0 }
 0x10c   :  { %10027 = vmatmul.mubr.msk.f32.gmra.mxu0 %vm138_vm1, %v10019_v28  ;;  %10039 = vmatmul.mubr.msk.f32.gmra.mxu1 %vm138_vm1, %v10031_v29 }
 0x10d   :  { %909 = vmatprep.mubr.f32.mxu0 %v15076_v0  ;;  %1058 = vmatprep.mubr.f32.mxu1 %v15076_v0 }
 0x110   :  { %10028 = vmatmul.mubr.msk.f32.gmra.mxu0 %vm138_vm1, %v10020_v30  ;;  %10040 = vmatmul.mubr.msk.f32.gmra.mxu1 %vm138_vm1, %v10032_v31 }
 0x111   :  { %1064 = vmatprep.mubr.f32.mxu1 %v15076_v0  ;;  %1213 = vmatprep.mubr.f32.mxu0 %v15076_v0 }
 0x114   :  { %10041 = vmatmul.mubr.msk.f32.gmra.mxu1 %vm138_vm1, %v10033_v32  ;;  %10053 = vmatmul.mubr.msk.f32.vlgmr.msra.gmra.mxu0 %vm138_vm1, %v10045_v33 }
 0x115   :  { %1070 = vmatprep.mubr.f32.mxu1 %v15076_v0  ;;  %1219 = vmatprep.mubr.f32.mxu0 %v15076_v0 }
 0x116   :  { %1526 = vmatpush1.msra.mxu0 %v1467_v37 }
 0x118   :  { %10042 = vmatmul.mubr.msk.f32.gmra.mxu1 %vm138_vm1, %v10034_v35  ;;  %10054 = vmatmul.mubr.msk.f32.gmra.mxu0 %vm138_vm1, %v10046_v36 }
 0x119   :  { %1076 = vmatprep.mubr.f32.mxu1 %v15076_v0  ;;  %1225 = vmatprep.mubr.f32.mxu0 %v15076_v0 }
 0x11c   :  { %10043 = vmatmul.mubr.msk.f32.gmra.mxu1 %vm138_vm1, %v10035_v38  ;;  %10055 = vmatmul.mubr.msk.f32.gmra.mxu0 %vm138_vm1, %v10047_v39 }
 0x11d   :  { %1082 = vmatprep.mubr.f32.mxu1 %v15076_v0  ;;  %1231 = vmatprep.mubr.f32.mxu0 %v15076_v0 }
 0x120   :  { %10044 = vmatmul.mubr.msk.f32.gmra.mxu1 %vm138_vm1, %v10036_v40  ;;  %10056 = vmatmul.mubr.msk.f32.gmra.mxu0 %vm138_vm1, %v10048_v41 }
 0x121   :  { %1237 = vmatprep.mubr.f32.mxu0 %v15076_v0  ;;  %1386 = vmatprep.mubr.f32.mxu1 %v15076_v0 }
 0x124   :  { %10057 = vmatmul.mubr.msk.f32.gmra.mxu0 %vm138_vm1, %v10049_v42  ;;  %10069 = vmatmul.mubr.msk.f32.vlgmr.msra.gmra.mxu1 %vm138_vm1, %v10061_v43 }
 0x125   :  { %1243 = vmatprep.mubr.f32.mxu0 %v15076_v0  ;;  %1392 = vmatprep.mubr.f32.mxu1 %v15076_v0 }
 0x128   :  { %10058 = vmatmul.mubr.msk.f32.gmra.mxu0 %vm138_vm1, %v10050_v44  ;;  %10070 = vmatmul.mubr.msk.f32.gmra.mxu1 %vm138_vm1, %v10062_v45 }
 0x129   :  { %1249 = vmatprep.mubr.f32.mxu0 %v15076_v0  ;;  %1398 = vmatprep.mubr.f32.mxu1 %v15076_v0 }
 0x12c   :  { %10059 = vmatmul.mubr.msk.f32.gmra.mxu0 %vm138_vm1, %v10051_v46  ;;  %10071 = vmatmul.mubr.msk.f32.gmra.mxu1 %vm138_vm1, %v10063_v47 }
 0x12d   :  { %1255 = vmatprep.mubr.f32.mxu0 %v15076_v0  ;;  %1404 = vmatprep.mubr.f32.mxu1 %v15076_v0 }
 0x130   :  { %10060 = vmatmul.mubr.msk.f32.gmra.mxu0 %vm138_vm1, %v10052_v48  ;;  %10072 = vmatmul.mubr.msk.f32.gmra.mxu1 %vm138_vm1, %v10064_v49 }
 0x131   :  { %1410 = vmatprep.mubr.f32.mxu1 %v15076_v0  ;;  %1559 = vmatprep.mubr.f32.mxu0 %v15076_v0 }
 0x134   :  { %10073 = vmatmul.mubr.msk.f32.gmra.mxu1 %vm138_vm1, %v10065_v50  ;;  %10085 = vmatmul.mubr.msk.f32.vlgmr.msra.gmra.mxu0 %vm138_vm1, %v10077_v51 }
 0x135   :  { %1416 = vmatprep.mubr.f32.mxu1 %v15076_v0  ;;  %1565 = vmatprep.mubr.f32.mxu0 %v15076_v0 }
 0x138   :  { %10074 = vmatmul.mubr.msk.f32.gmra.mxu1 %vm138_vm1, %v10066_v52  ;;  %10086 = vmatmul.mubr.msk.f32.gmra.mxu0 %vm138_vm1, %v10078_v53 }
 0x139   :  { %1422 = vmatprep.mubr.f32.mxu1 %v15076_v0  ;;  %1571 = vmatprep.mubr.f32.mxu0 %v15076_v0 }
 0x13c   :  { %10075 = vmatmul.mubr.msk.f32.gmra.mxu1 %vm138_vm1, %v10067_v54  ;;  %10087 = vmatmul.mubr.msk.f32.gmra.mxu0 %vm138_vm1, %v10079_v55 }
 0x13d   :  { %1428 = vmatprep.mubr.f32.mxu1 %v15076_v0  ;;  %1577 = vmatprep.mubr.f32.mxu0 %v15076_v0 }
 0x140   :  { %10076 = vmatmul.mubr.msk.f32.gmra.mxu1 %vm138_vm1, %v10068_v56  ;;  %10088 = vmatmul.mubr.msk.f32.gmra.mxu0 %vm138_vm1, %v10080_v57 }
 0x141   :  { %1583 = vmatprep.mubr.f32.mxu0 %v15076_v0  ;;  %1978 = vmatprep.mubr.f32.mxu1 %v15076_v0 }
 0x144   :  { %10089 = vmatmul.mubr.msk.f32.gmra.mxu0 %vm138_vm1, %v10081_v58 }
 0x145   :  { %1589 = vmatprep.mubr.f32.mxu0 %v15076_v0 }
 0x148   :  { %10090 = vmatmul.mubr.msk.f32.gmra.mxu0 %vm138_vm1, %v10082_v59 }
 0x149   :  { %1595 = vmatprep.mubr.f32.mxu0 %v15076_v0 }
 0x14c   :  { %10091 = vmatmul.mubr.msk.f32.gmra.mxu0 %vm138_vm1, %v10083_v60 }
 0x14d   :  { %1601 = vmatprep.mubr.f32.mxu0 %v15076_v0 }
 0x150   :  { %10092 = vmatmul.mubr.msk.f32.gmra.mxu0 %vm138_vm1, %v10084_v61 }
 0x151   :  { %2115 = vmatprep.mubr.f32.mxu0 %v15076_v0 }
 0x17c   :  { %v229_v62 = vpop.f32.mrf.mxu0  ;;  %v265_v63 = vpop.f32.mrf.mxu1 }
 0x17e   :  { %v13021_v1 = vpop.f32.mrf.mxu0  ;;  %v13023_v2 = vpop.f32.mrf.mxu1 }
 0x180   :  { %v235_v3 = vpop.f32.mrf.mxu0  ;;  %v271_v4 = vpop.f32.mrf.mxu1 }
 0x182   :  { %v13025_v5 = vpop.f32.mrf.mxu0  ;;  %v13027_v6 = vpop.f32.mrf.mxu1 }
 0x184   :  { %v241_v7 = vpop.f32.mrf.mxu0  ;;  %v366_v8 = vpop.f32.mrf.mxu1 }
 0x185   :  { %v367_v9 = vadd.f32 %v366_v8, %v229_v62 }
 0x186   :  { %v13029_v10 = vpop.f32.mrf.mxu0  ;;  %v13031_v11 = vpop.f32.mrf.mxu1 }
 0x188   :  { %v247_v12 = vpop.f32.mrf.mxu0  ;;  %v372_v13 = vpop.f32.mrf.mxu1 }
 0x189   :  { %v373_v14 = vadd.f32 %v372_v13, %v235_v3 }
 0x18a   :  { %v13033_v15 = vpop.f32.mrf.mxu0  ;;  %v13035_v16 = vpop.f32.mrf.mxu1 }
 0x18c   :  { %v253_v17 = vpop.f32.mrf.mxu0  ;;  %v378_v18 = vpop.f32.mrf.mxu1 }
 0x18d   :  { %v379_v19 = vadd.f32 %v378_v18, %v241_v7 }
 0x18e   :  { %v13037_v20 = vpop.f32.mrf.mxu0  ;;  %v13039_v21 = vpop.f32.mrf.mxu1 }
 0x190   :  { %v259_v22 = vpop.f32.mrf.mxu0  ;;  %v384_v23 = vpop.f32.mrf.mxu1 }
 0x191   :  { %v385_v24 = vadd.f32 %v384_v23, %v247_v12 }
 0x192   :  { %v13041_v25 = vpop.f32.mrf.mxu0  ;;  %v13043_v26 = vpop.f32.mrf.mxu1 }
 0x194   :  { %v390_v27 = vpop.f32.mrf.mxu1  ;;  %v523_v28 = vpop.f32.mrf.mxu0 }
 0x195   :  { %v391_v29 = vadd.f32 %v390_v27, %v253_v17  ;;  %v13045_v30 = vadd.f32 %v523_v28, %v367_v9 }
 0x196   :  { %v13047_v31 = vpop.f32.mrf.mxu1  ;;  %v13049_v32 = vpop.f32.mrf.mxu0 }
 0x198   :  { %v396_v33 = vpop.f32.mrf.mxu1  ;;  %v529_v34 = vpop.f32.mrf.mxu0 }
 0x199   :  { %v397_v35 = vadd.f32 %v396_v33, %v259_v22  ;;  %v572_v36 = vadd.f32 %v529_v34, %v373_v14 }
 0x19a   :  { %v13051_v37 = vpop.f32.mrf.mxu1  ;;  %v13053_v38 = vpop.f32.mrf.mxu0 }
 0x19c   :  { %v402_v39 = vpop.f32.mrf.mxu1  ;;  %v535_v40 = vpop.f32.mrf.mxu0 }
 0x19d   :  { %v403_v41 = vadd.f32 %v402_v39, %v265_v63  ;;  %v574_v42 = vadd.f32 %v535_v40, %v379_v19 }
 0x19e   :  { %v13055_v43 = vpop.f32.mrf.mxu1  ;;  %v13057_v44 = vpop.f32.mrf.mxu0 }
 0x1a0   :  { %v408_v45 = vpop.f32.mrf.mxu1  ;;  %v541_v46 = vpop.f32.mrf.mxu0 }
 0x1a1   :  { %v409_v47 = vadd.f32 %v408_v45, %v271_v4  ;;  %v576_v48 = vadd.f32 %v541_v46, %v385_v24 }
 0x1a2   :  { %v13059_v49 = vpop.f32.mrf.mxu1  ;;  %v13061_v50 = vpop.f32.mrf.mxu0 }
 0x1a4   :  { %v547_v51 = vpop.f32.mrf.mxu0  ;;  %v13063_v52 = vpop.f32.mrf.mxu1 }
 0x1a5   :  { %v578_v53 = vadd.f32 %v547_v51, %v391_v29 }
 0x1a6   :  { %v13065_v54 = vpop.f32.mrf.mxu0  ;;  %v13067_v55 = vpop.f32.mrf.mxu1 }
 0x1a8   :  { %v553_v56 = vpop.f32.mrf.mxu0  ;;  %v702_v57 = vpop.f32.mrf.mxu1 }
 0x1a9   :  { %v580_v58 = vadd.f32 %v553_v56, %v397_v35  ;;  %v745_v59 = vadd.f32 %v702_v57, %v572_v36 }
 0x1aa   :  { %v13069_v60 = vpop.f32.mrf.mxu0  ;;  %v13071_v61 = vpop.f32.mrf.mxu1 }
 0x1ac   :  { %v559_v62 = vpop.f32.mrf.mxu0  ;;  %v708_v63 = vpop.f32.mrf.mxu1 }
 0x1ad   :  { %v582_v3 = vadd.f32 %v559_v62, %v403_v41  ;;  %v747_v4 = vadd.f32 %v708_v63, %v574_v42 }
 0x1ae   :  { %v13073_v7 = vpop.f32.mrf.mxu0  ;;  %v13075_v8 = vpop.f32.mrf.mxu1 }
 0x1b0   :  { %v565_v9 = vpop.f32.mrf.mxu0  ;;  %v714_v12 = vpop.f32.mrf.mxu1 }
 0x1b1   :  { %v13077_v13 = vadd.f32 %v565_v9, %v409_v47  ;;  %v749_v14 = vadd.f32 %v714_v12, %v576_v48 }
 0x1b2   :  { %v13079_v17 = vpop.f32.mrf.mxu0  ;;  %v13081_v18 = vpop.f32.mrf.mxu1 }
 0x1b4   :  { %v720_v19 = vpop.f32.mrf.mxu1  ;;  %v13083_v22 = vpop.f32.mrf.mxu0 }
 0x1b5   :  { %v751_v23 = vadd.f32 %v720_v19, %v578_v53 }
 0x1b6   :  { %v13085_v24 = vpop.f32.mrf.mxu1  ;;  %v13087_v27 = vpop.f32.mrf.mxu0 }
 0x1b8   :  { %v726_v28 = vpop.f32.mrf.mxu1  ;;  %v875_v29 = vpop.f32.mrf.mxu0 }
 0x1b9   :  { %v753_v33 = vadd.f32 %v726_v28, %v580_v58  ;;  %v13089_v34 = vadd.f32 %v875_v29, %v745_v59 }
 0x1ba   :  { %v13091_v35 = vpop.f32.mrf.mxu1  ;;  %v13093_v36 = vpop.f32.mrf.mxu0 }
 0x1bc   :  { %v732_v39 = vpop.f32.mrf.mxu1  ;;  %v881_v40 = vpop.f32.mrf.mxu0 }
 0x1bd   :  { %v755_v41 = vadd.f32 %v732_v39, %v582_v3  ;;  %v13095_v42 = vadd.f32 %v881_v40, %v747_v4 }
 0x1be   :  { %v13097_v45 = vpop.f32.mrf.mxu1  ;;  %v13099_v46 = vpop.f32.mrf.mxu0 }
 0x1c0   :  { %v13101_v47 = vpop.f32.mrf.mxu1  ;;  %v887_v48 = vpop.f32.mrf.mxu0 }
 0x1c1   :  { %15110 = vst [vmem:[#allocation18_spill] sm:$0xff] %v13101_v47  ;;  %v13103_v51 = vadd.f32 %v887_v48, %v749_v14 }
 0x1c2   :  { %v13105_v53 = vpop.f32.mrf.mxu1  ;;  %v13107_v56 = vpop.f32.mrf.mxu0 }
 0x1c3   :  { %15111 = vst [vmem:[#allocation19_spill] sm:$0xff] %v13103_v51  ;;  %15112 = vst [vmem:[#allocation20_spill] sm:$0xff] %v13105_v53 }
 0x1c4   :  { %15113 = vst [vmem:[#allocation21_spill] sm:$0xff] %v13107_v56  ;;  %v893_v57 = vpop.f32.mrf.mxu0  ;;  %v1042_v58 = vpop.f32.mrf.mxu1 }
 0x1c5   :  { %v13109_v59 = vadd.f32 %v893_v57, %v751_v23 }
 0x1c6   :  { %v13111_v62 = vpop.f32.mrf.mxu0  ;;  %v1044_v63 = vpop.f32.mrf.mxu1 }
 0x1c7   :  { %15114 = vst [vmem:[#allocation22_spill] sm:$0xff] %v13109_v59  ;;  %15115 = vst [vmem:[#allocation23_spill] sm:$0xff] %v13111_v62 }
 0x1c8   :  { %v899_v3 = vpop.f32.mrf.mxu0  ;;  %v13113_v4 = vpop.f32.mrf.mxu1 }
 0x1c9   :  { %v13115_v9 = vadd.f32 %v899_v3, %v753_v33 }
 0x1ca   :  { %v13117_v12 = vpop.f32.mrf.mxu0  ;;  %v13119_v14 = vpop.f32.mrf.mxu1 }
 0x1cb   :  { %15116 = vst [vmem:[#allocation24_spill] sm:$0xff] %v13115_v9  ;;  %15117 = vst [vmem:[#allocation25_spill] sm:$0xff] %v13117_v12 }
 0x1cc   :  { %v905_v19 = vpop.f32.mrf.mxu0  ;;  %v13121_v28 = vpop.f32.mrf.mxu1 }
 0x1cd   :  { %v13123_v29 = vadd.f32 %v905_v19, %v755_v41 }
 0x1ce   :  { %v13125_v39 = vpop.f32.mrf.mxu0  ;;  %v13127_v23 = vpop.f32.mrf.mxu1 }
 0x1cf   :  { %15118 = vst [vmem:[#allocation26_spill] sm:$0xff] %v13123_v29  ;;  %15119 = vst [vmem:[#allocation27_spill] sm:$0xff] %v13125_v39 }
 0x1d0   :  { %15120 = vst [vmem:[#allocation28_spill] sm:$0xff] %v13127_v23  ;;  %v13129_v40 = vpop.f32.mrf.mxu0  ;;  %v13131_v48 = vpop.f32.mrf.mxu1 }
 0x1d1   :  { %15121 = vst [vmem:[#allocation29_spill] sm:$0xff] %v13129_v40  ;;  %15122 = vst [vmem:[#allocation30_spill] sm:$0xff] %v13131_v48  ;;  %v13165_v40 = vpop.permute.xlu0 %1669 }
 0x1d2   :  { %v13133_v57 = vpop.f32.mrf.mxu0  ;;  %v13135_v33 = vpop.f32.mrf.mxu1  ;;  %15136 = vst [vmem:[#allocation44_spill] sm:$0xff] %v13165_v40  ;;  %v743_v40 = vadd.f32 %v13063_v52, %v13045_v30 }
 0x1d3   :  { %15123 = vst [vmem:[#allocation31_spill] sm:$0xff] %v13133_v57  ;;  %15124 = vst [vmem:[#allocation32_spill] sm:$0xff] %v13135_v33 }
 0x1d4   :  { %v13137_v3 = vpop.f32.mrf.mxu1  ;;  %v1215_v0 = vpop.f32.mrf.mxu0  ;;  %v916_v53 = vadd.f32 %v13083_v22, %v743_v40  ;;  %v375_v40 = vadd.f32 %v13035_v16, %v13025_v5 }
 0x1d5   :  { %15125 = vst [vmem:[#allocation33_spill] sm:$0xff] %v13137_v3 }
 0x1d6   :  { %v13139_v9 = vpop.f32.mrf.mxu1  ;;  %v1217_v59 = vpop.f32.mrf.mxu0 }
 0x1d7   :  { %15126 = vst [vmem:[#allocation34_spill] sm:$0xff] %v13139_v9 }
 0x1d8   :  { %v13141_v41 = vpop.f32.mrf.mxu1  ;;  %v13143_v19 = vpop.f32.mrf.mxu0 }
 0x1d9   :  { %15127 = vst [vmem:[#allocation35_spill] sm:$0xff] %v13141_v41 }
 0x1da   :  { %v13145_v29 = vpop.f32.mrf.mxu1  ;;  %v13147_v51 = vpop.f32.mrf.mxu0 }
 0x1db   :  { %15128 = vst [vmem:[#allocation36_spill] sm:$0xff] %v13145_v29 }
 0x1dc   :  { %v13149_v23 = vpop.f32.mrf.mxu1  ;;  %v13151_v48 = vpop.f32.mrf.mxu0 }
 0x1dd   :  { %15129 = vst [vmem:[#allocation37_spill] sm:$0xff] %v13149_v23 }
 0x1de   :  { %v13153_v57 = vpop.f32.mrf.mxu1  ;;  %v13155_v33 = vpop.f32.mrf.mxu0 }
 0x1df   :  { %15130 = vst [vmem:[#allocation38_spill] sm:$0xff] %v13153_v57  ;;  %15131 = vst [vmem:[#allocation39_spill] sm:$0xff] %v13155_v33  ;;  %v369_v33 = vadd.f32 %v13031_v11, %v13021_v1 }
 0x1e0   :  { %v13157_v3 = vpop.f32.mrf.mxu1  ;;  %v13159_v9 = vpop.f32.mrf.mxu0 }
 0x1e1   :  { %15132 = vst [vmem:[#allocation40_spill] sm:$0xff] %v13157_v3  ;;  %15133 = vst [vmem:[#allocation41_spill] sm:$0xff] %v13159_v9  ;;  %v13175_v3 = vpop.permute.xlu0 %1654 }
 0x1e2   :  { %v13161_v12 = vpop.f32.mrf.mxu1  ;;  %v13163_v41 = vpop.f32.mrf.mxu0  ;;  %15140 = vst [vmem:[#allocation48_spill] sm:$0xff] %v13175_v3  ;;  %v1089_v3 = vadd.f32 %v1042_v58, %v916_v53  ;;  %v573_v58 = vadd.f32 %v13053_v38, %v375_v40 }
 0x1e3   :  { %15134 = vst [vmem:[#allocation42_spill] sm:$0xff] %v13161_v12  ;;  %15135 = vst [vmem:[#allocation43_spill] sm:$0xff] %v13163_v41  ;;  %v571_v41 = vadd.f32 %v13049_v32, %v369_v33  ;;  %v13195_v32 = vpop.permute.xlu1 %1664 }
 0x1e4   :  { %v13167_v29 = vpop.f32.mrf.mxu0  ;;  %v1388_v39 = vpop.f32.mrf.mxu1  ;;  %15145 = vst [vmem:[#allocation53_spill] sm:$0xff] %v13195_v32 }
 0x1e5   :  { %15137 = vst [vmem:[#allocation45_spill] sm:$0xff] %v13167_v29 }
 0x1e6   :  { %v13169_v23 = vpop.f32.mrf.mxu0  ;;  %v1390_v62 = vpop.f32.mrf.mxu1 }
 0x1e7   :  { %15138 = vst [vmem:[#allocation46_spill] sm:$0xff] %v13169_v23 }
 0x1e8   :  { %v13171_v56 = vpop.f32.mrf.mxu0  ;;  %v1394_v57 = vpop.f32.mrf.mxu1 }
 0x1e9   :  { %15139 = vst [vmem:[#allocation47_spill] sm:$0xff] %v13171_v56  ;;  %v744_v56 = vadd.f32 %v13067_v55, %v571_v41 }
 0x1ea   :  { %v13177_v9 = vpop.f32.mrf.mxu0  ;;  %v1396_v12 = vpop.f32.mrf.mxu1 }
 0x1eb   :  { %15141 = vst [vmem:[#allocation49_spill] sm:$0xff] %v13177_v9  ;;  %v917_v11 = vadd.f32 %v13087_v27, %v744_v56  ;;  %v13193_v9 = vpop.permute.xlu0 %1644 }
 0x1ec   :  { %v13182_v29 = vpop.f32.mrf.mxu0  ;;  %v13184_v23 = vpop.f32.mrf.mxu1  ;;  %15144 = vst [vmem:[#allocation52_spill] sm:$0xff] %v13193_v9 }
 0x1ed   :  { %15142 = vst [vmem:[#allocation50_spill] sm:$0xff] %v13182_v29  ;;  %v1090_v33 = vadd.f32 %v1044_v63, %v917_v11  ;;  %v1262_v29 = vadd.f32 %v1215_v0, %v1089_v3  ;;  %v13210_v9 = vpop.permute.xlu1 %1659  ;;  %v746_v11 = vadd.f32 %v13071_v61, %v573_v58  ;;  %v405_v58 = vadd.f32 %v13055_v43, %v13023_v2 }
 0x1ee   :  { %v13188_v47 = vpop.f32.mrf.mxu0  ;;  %v13190_v1 = vpop.f32.mrf.mxu1 }
 0x1ef   :  { %15143 = vst [vmem:[#allocation51_spill] sm:$0xff] %v13190_v1  ;;  %v1263_v41 = vadd.f32 %v1217_v59, %v1090_v33  ;;  %v1435_v27 = vadd.f32 %v1388_v39, %v1262_v29  ;;  %v1635_v32 = vpop.permute.xlu0 %1634  ;;  %v919_v16 = vadd.f32 %v13093_v36, %v746_v11  ;;  %v15148_v11 = vld [vmem:[#allocation18_spill] sm:$0xff] }
 0x1f0   :  { %v13197_v30 = vpop.f32.mrf.mxu0  ;;  %v13199_v52 = vpop.f32.mrf.mxu1 }
 0x1f1   :  { %15146 = vst [vmem:[#allocation54_spill] sm:$0xff] %v13199_v52  ;;  %v1436_v1 = vadd.f32 %v1390_v62, %v1263_v41  ;;  %v1091_v62 = vadd.f32 %v13113_v4, %v13089_v34  ;;  %v1092_v33 = vadd.f32 %v13119_v14, %v919_v16  ;;  %v13223_v40 = vpop.permute.xlu1 %1649 }
 0x1f2   :  { %v13201_v55 = vpop.f32.mrf.mxu0  ;;  %v13203_v22 = vpop.f32.mrf.mxu1 }
 0x1f3   :  { %15147 = vst [vmem:[#allocation55_spill] sm:$0xff] %v13203_v22  ;;  %v1264_v36 = vadd.f32 %v13143_v19, %v1091_v62  ;;  %v15153_v62 = vld [vmem:[#allocation29_spill] sm:$0xff] }
 0x1f4   :  { %v13207_v53 = vpop.f32.mrf.mxu1  ;;  %v1561_v56 = vpop.f32.mrf.mxu0 }
 0x1f5   :  { %v1608_v63 = vadd.f32 %v1561_v56, %v1435_v27  ;;  %v1437_v4 = vadd.f32 %v1394_v57, %v1264_v36  ;;  %v1640_v27 = vpop.permute.xlu1 %1639  ;;  %v399_v57 = vadd.f32 %v13051_v37, %v13041_v25 }
 0x1f6   :  { %v13212_v0 = vpop.f32.mrf.mxu1  ;;  %v1563_v3 = vpop.f32.mrf.mxu0 }
 0x1f7   :  { %v1672_v52 = vadd.f32 %v1635_v32, %v1608_v63  ;;  %v1609_v22 = vadd.f32 %v1563_v3, %v1436_v1  ;;  %v1265_v1 = vadd.f32 %v13147_v51, %v1092_v33  ;;  %v387_v51 = vadd.f32 %v13043_v26, %v13033_v15 }
 0x1f8   :  { %v1567_v5 = vpop.f32.mrf.mxu0  ;;  %v13218_v39 = vpop.f32.mrf.mxu1  ;;  %v411_v15 = vadd.f32 %v13059_v49, %v13027_v6  ;;  %v581_v25 = vadd.f32 %v13069_v60, %v399_v57 }
 0x1f9   :  { %v13216_v59 = vmax.f32 %v1672_v52, 0.0  ;;  %v1673_v29 = vadd.f32 %v1635_v32, %v1609_v22  ;;  %v1438_v14 = vadd.f32 %v1396_v12, %v1265_v1  ;;  %v381_v22 = vadd.f32 %v13039_v21, %v13029_v10  ;;  %v15154_v1 = vld [vmem:[#allocation25_spill] sm:$0xff] }
 0x1fa   :  { %v1569_v38 = vpop.f32.mrf.mxu0  ;;  %v13233_v52 = vpop.f32.mrf.mxu1  ;;  %v1610_v41 = vadd.f32 %v1567_v5, %v1437_v4  ;;  %v393_v12 = vadd.f32 %v13047_v31, %v13037_v20  ;;  %v577_v26 = vadd.f32 %v13061_v50, %v387_v51  ;;  %v1093_v20 = vadd.f32 %v13121_v28, %v13095_v42  ;;  %v15151_v5 = vld [vmem:[#allocation23_spill] sm:$0xff] }
 0x1fb   :  { %2415 = vrot.lane.b32.xlu1 %v13216_v59, %s12450_s5  ;;  %1809 = vrot.lane.b32.xlu0 %v13216_v59, %s12448_s10  ;;  %v13231_v32 = vmax.f32 %v1673_v29, 0.0  ;;  %v1611_v56 = vadd.f32 %v1569_v38, %v1438_v14  ;;  %v575_v63 = vadd.f32 %v13057_v44, %v381_v22  ;;  %v583_v31 = vadd.f32 %v13073_v7, %v405_v58  ;;  %v15152_v29 = vld [vmem:[#allocation27_spill] sm:$0xff]  ;;  %v15155_v14 = vld [vmem:[#allocation28_spill] sm:$0xff] }
 0x1fc   :  { %v1573_v61 = vpop.f32.mrf.mxu0  ;;  %v13254_v10 = vpop.f32.mrf.mxu1  ;;  %v579_v2 = vadd.f32 %v13065_v54, %v393_v12  ;;  %v585_v43 = vadd.f32 %v13079_v17, %v411_v15  ;;  %v1266_v44 = vadd.f32 %v13151_v48, %v1093_v20  ;;  %v1674_v49 = vadd.f32 %v1640_v27, %v1610_v41  ;;  %v15156_v51 = vld [vmem:[#allocation19_spill] sm:$0xff]  ;;  %v15157_v41 = vld [vmem:[#allocation30_spill] sm:$0xff] }
 0x1fd   :  { %v748_v37 = vadd.f32 %v13075_v8, %v575_v63  ;;  %v1675_v50 = vadd.f32 %v1640_v27, %v1611_v56  ;;  %v750_v42 = vadd.f32 %v13081_v18, %v577_v26  ;;  %v754_v54 = vadd.f32 %v13091_v35, %v581_v25  ;;  %v15149_v18 = vld [vmem:[#allocation20_spill] sm:$0xff]  ;;  %v15150_v35 = vld [vmem:[#allocation21_spill] sm:$0xff]  ;;  %v15158_v56 = vld [vmem:[#allocation31_spill] sm:$0xff] }
 0x1fe   :  { %v13235_v34 = vpop.f32.mrf.mxu0  ;;  %v752_v28 = vadd.f32 %v13085_v24, %v579_v2  ;;  %v756_v60 = vadd.f32 %v13097_v45, %v583_v31  ;;  %v1426_v3 = vpop.f32.mrf.mxu1  ;;  %v757_v17 = vadd.f32 %v15148_v11, %v13077_v13  ;;  %v1439_v48 = vadd.f32 %v13184_v23, %v1266_v44  ;;  %v15159_v63 = vld [vmem:[#allocation32_spill] sm:$0xff]  ;;  %v15160_v26 = vld [vmem:[#allocation38_spill] sm:$0xff]  ;;  %v15163_v31 = vld [vmem:[#allocation33_spill] sm:$0xff] }
 0x1ff   :  { %1811 = vrot.lane.b32.xlu1 %v13231_v32, %s12448_s10  ;;  %2173 = vrot.lane.b32.xlu0 %v13216_v59, %s12449_s13  ;;  %v921_v8 = vadd.f32 %v13099_v46, %v748_v37  ;;  %v758_v24 = vadd.f32 %v15149_v18, %v585_v43  ;;  %v923_v45 = vadd.f32 %v15150_v35, %v750_v42  ;;  %v13294_v13 = vmax.f32 %v1674_v49, 0.0  ;;  %v15161_v2 = vld [vmem:[#allocation40_spill] sm:$0xff]  ;;  %v15164_v43 = vld [vmem:[#allocation34_spill] sm:$0xff]  ;;  %v13320_v35 = vpop.permute.xlu0 %11571 }
 0x200   :  { %v13243_v19 = vpop.f32.mrf.mxu0  ;;  %v925_v16 = vadd.f32 %v15151_v5, %v752_v28  ;;  %v929_v38 = vadd.f32 %v15152_v29, %v756_v60  ;;  %v930_v33 = vadd.f32 %v15153_v62, %v757_v17  ;;  %v13296_v23 = vmax.f32 %v1675_v50, 0.0  ;;  %v1430_v57 = vpop.f32.mrf.mxu1  ;;  %v15165_v49 = vld [vmem:[#allocation36_spill] sm:$0xff]  ;;  %v15166_v42 = vld [vmem:[#allocation26_spill] sm:$0xff]  ;;  %v15167_v28 = vld [vmem:[#allocation37_spill] sm:$0xff] }
 0x201   :  { %v1612_v36 = vadd.f32 %v1573_v61, %v1439_v48  ;;  %v927_v4 = vadd.f32 %v15154_v1, %v754_v54  ;;  %v1094_v22 = vadd.f32 %v15155_v14, %v921_v8  ;;  %v1095_v27 = vadd.f32 %v15157_v41, %v15156_v51  ;;  %v15162_v61 = vld [vmem:[#allocation22_spill] sm:$0xff]  ;;  %v15169_v18 = vld [vmem:[#allocation52_spill] sm:$0xff]  ;;  %v15171_v5 = vld [vmem:[#allocation35_spill] sm:$0xff] }
 0x202   :  { %v13256_v21 = vpop.f32.mrf.mxu0  ;;  %v931_v12 = vadd.f32 %v15158_v56, %v758_v24  ;;  %v1096_v15 = vadd.f32 %v15159_v63, %v923_v45  ;;  %v1102_v20 = vadd.f32 %v15160_v26, %v929_v38  ;;  %v1103_v25 = vadd.f32 %v15161_v2, %v930_v33  ;;  %v15168_v8 = vld [vmem:[#allocation42_spill] sm:$0xff]  ;;  %v15170_v45 = vld [vmem:[#allocation24_spill] sm:$0xff]  ;;  %v15173_v62 = vld [vmem:[#allocation49_spill] sm:$0xff]  ;;  %v1432_v14 = vpop.f32.mrf.mxu1 }
 0x203   :  { %2175 = vrot.lane.b32.xlu1 %v13231_v32, %s12449_s13  ;;  %2657 = vrot.lane.b32.xlu0 %v13216_v59, %s12451_s14  ;;  %v1097_v37 = vadd.f32 %v15163_v31, %v15162_v61  ;;  %v1098_v44 = vadd.f32 %v15164_v43, %v925_v16  ;;  %v1100_v50 = vadd.f32 %v15165_v49, %v927_v4  ;;  %v15172_v16 = vld [vmem:[#allocation39_spill] sm:$0xff]  ;;  %v15174_v1 = vld [vmem:[#allocation50_spill] sm:$0xff]  ;;  %v15178_v31 = vld [vmem:[#allocation45_spill] sm:$0xff] }
 0x204   :  { %v13271_v6 = vpop.f32.mrf.mxu0  ;;  %v1101_v54 = vadd.f32 %v15167_v28, %v15166_v42  ;;  %v1104_v11 = vadd.f32 %v15168_v8, %v931_v12  ;;  %v1275_v17 = vadd.f32 %v13188_v47, %v1102_v20  ;;  %v1276_v48 = vadd.f32 %v13197_v30, %v1103_v25  ;;  %v15175_v30 = vld [vmem:[#allocation46_spill] sm:$0xff]  ;;  %v15176_v12 = vld [vmem:[#allocation47_spill] sm:$0xff] }
 0x205   :  { %v1676_v24 = vadd.f32 %v15169_v18, %v1612_v36  ;;  %v1099_v29 = vadd.f32 %v15171_v5, %v15170_v45  ;;  %v1267_v38 = vadd.f32 %v15172_v16, %v1094_v22  ;;  %v1273_v33 = vadd.f32 %v15173_v62, %v1100_v50  ;;  %v15177_v25 = vld [vmem:[#allocation43_spill] sm:$0xff]  ;;  %v15183_v45 = vld [vmem:[#allocation54_spill] sm:$0xff] }
 0x206   :  { %v13279_v7 = vpop.f32.mrf.mxu0  ;;  %v1274_v4 = vadd.f32 %v15174_v1, %v1101_v54  ;;  %v1277_v41 = vadd.f32 %v13201_v55, %v1104_v11  ;;  %v1448_v47 = vadd.f32 %v1426_v3, %v1275_v17  ;;  %v1449_v56 = vadd.f32 %v1430_v57, %v1276_v48  ;;  %v15179_v54 = vld [vmem:[#allocation41_spill] sm:$0xff]  ;;  %v15181_v11 = vld [vmem:[#allocation55_spill] sm:$0xff] }
 0x207   :  { %2659 = vrot.lane.b32.xlu1 %v13231_v32, %s12451_s14  ;;  %2417 = vrot.lane.b32.xlu0 %v13231_v32, %s12450_s5  ;;  %v1271_v36 = vadd.f32 %v15175_v30, %v1098_v44  ;;  %v1272_v22 = vadd.f32 %v15176_v12, %v1099_v29  ;;  %v1446_v63 = vadd.f32 %v13233_v52, %v1273_v33  ;;  %v13336_v2 = vmax.f32 %v1676_v24, 0.0 }
 0x208   :  { %v1591_v46 = vpop.f32.mrf.mxu0  ;;  %v1447_v26 = vadd.f32 %v13254_v10, %v1274_v4  ;;  %v1450_v55 = vadd.f32 %v1432_v14, %v1277_v41  ;;  %v1269_v61 = vadd.f32 %v15177_v25, %v1096_v15  ;;  %v1270_v43 = vadd.f32 %v15178_v31, %v1097_v37  ;;  %v13346_v10 = vpop.permute.xlu0 %11581  ;;  %v15185_v4 = vld [vmem:[#allocation48_spill] sm:$0xff] }
 0x209   :  { %v1445_v49 = vadd.f32 %v13218_v39, %v1272_v22  ;;  %v1444_v42 = vadd.f32 %v13212_v0, %v1271_v36  ;;  %v1268_v15 = vadd.f32 %v15179_v54, %v1095_v27  ;;  %v15180_v39 = vld [vmem:[#allocation44_spill] sm:$0xff]  ;;  %v15184_v27 = vld [vmem:[#allocation51_spill] sm:$0xff] }
 0x20a   :  { %v1593_v58 = vpop.f32.mrf.mxu0  ;;  %v1443_v37 = vadd.f32 %v13207_v53, %v1270_v43  ;;  %v1442_v17 = vadd.f32 %v15181_v11, %v1269_v61  ;;  %v1440_v62 = vadd.f32 %v15184_v27, %v1267_v38 }
 0x20b   :  { %2423 = vrot.lane.b32.xlu1 %v13296_v23, %s12450_s5  ;;  %1815 = vrot.lane.b32.xlu0 %v13294_v13, %s12448_s10  ;;  %v1619_v28 = vadd.f32 %v1593_v58, %v1446_v63  ;;  %v1618_v8 = vadd.f32 %v1591_v46, %v1445_v49  ;;  %v1617_v0 = vadd.f32 %v13279_v7, %v1444_v42  ;;  %v15182_v58 = vld [vmem:[#allocation53_spill] sm:$0xff]  ;;  %v13493_v49 = vpop.permute.xlu1 %11576 }
 0x20c   :  { %v1597_v60 = vpop.f32.mrf.mxu0  ;;  %v1441_v5 = vadd.f32 %v15183_v45, %v1268_v15  ;;  %v1616_v29 = vadd.f32 %v13271_v6, %v1443_v37  ;;  %v1615_v53 = vadd.f32 %v13256_v21, %v1442_v17  ;;  %v1613_v38 = vadd.f32 %v13235_v34, %v1440_v62 }
 0x20d   :  { %v1620_v50 = vadd.f32 %v1597_v60, %v1447_v26  ;;  %v1683_v46 = vadd.f32 %v13210_v9, %v1619_v28  ;;  %v1682_v6 = vadd.f32 %v13210_v9, %v1618_v8  ;;  %v1681_v21 = vadd.f32 %v15185_v4, %v1617_v0 }
 0x20e   :  { %v1599_v51 = vpop.f32.mrf.mxu0  ;;  %v1614_v7 = vadd.f32 %v13243_v19, %v1441_v5  ;;  %v1680_v41 = vadd.f32 %v15185_v4, %v1616_v29  ;;  %v1679_v9 = vadd.f32 %v13223_v40, %v1615_v53  ;;  %v1677_v30 = vadd.f32 %v15169_v18, %v1613_v38 }
 0x20f   :  { %2665 = vrot.lane.b32.xlu1 %v13296_v23, %s12451_s14  ;;  %2179 = vrot.lane.b32.xlu0 %v13294_v13, %s12449_s13  ;;  %v1621_v3 = vadd.f32 %v1599_v51, %v1448_v47  ;;  %v1684_v16 = vadd.f32 %v15182_v58, %v1620_v50  ;;  %v13376_v51 = vpop.permute.xlu0 %11591  ;;  %v13383_v19 = vmax.f32 %v1683_v46, 0.0  ;;  %v13395_v36 = vmax.f32 %v1681_v21, 0.0 }
 0x210   :  { %v1603_v20 = vpop.f32.mrf.mxu0  ;;  %v1678_v34 = vadd.f32 %v13223_v40, %v1614_v7  ;;  %v13398_v12 = vmax.f32 %v1680_v41, 0.0  ;;  %v13401_v22 = vmax.f32 %v1679_v9, 0.0  ;;  %v13413_v18 = vmax.f32 %v1677_v30, 0.0  ;;  %v1728_v9 = vld [vmem:[#allocation4] sm:$0xff] }
 0x211   :  { %v1622_v57 = vadd.f32 %v1603_v20, %v1449_v56  ;;  %v1685_v48 = vadd.f32 %v15182_v58, %v1621_v3  ;;  %v13379_v47 = vmax.f32 %v1684_v16, 0.0  ;;  %v13389_v56 = vmax.f32 %v1682_v6, 0.0 }
 0x212   :  { %v1605_v44 = vpop.f32.mrf.mxu0  ;;  %v13408_v63 = vmax.f32 %v1678_v34, 0.0 }
 0x213   :  { %v1623_v52 = vadd.f32 %v1605_v44, %v1450_v55  ;;  %1821 = vrot.lane.b32.xlu1 %v13336_v2, %s12448_s10  ;;  %2421 = vrot.lane.b32.xlu0 %v13294_v13, %s12450_s5  ;;  %v1686_v60 = vadd.f32 %v15180_v39, %v1622_v57  ;;  %v13373_v14 = vmax.f32 %v1685_v48, 0.0  ;;  %v13406_v40 = vpop.permute.xlu0 %11601  ;;  %v13503_v44 = vpop.permute.xlu1 %11586 }
 0x215   :  { %v1687_v24 = vadd.f32 %v15180_v39, %v1623_v52  ;;  %v13369_v1 = vmax.f32 %v1686_v60, 0.0 }
 0x217   :  { %v13361_v33 = vmax.f32 %v1687_v24, 0.0  ;;  %2185 = vrot.lane.b32.xlu1 %v13336_v2, %s12449_s13  ;;  %2663 = vrot.lane.b32.xlu0 %v13294_v13, %s12451_s14  ;;  %v13424_v26 = vpop.permute.xlu0 %11611  ;;  %v13513_v28 = vpop.permute.xlu1 %11596  ;;  %v15200_v24 = vmov 0.0  }
 0x219   :  { %2067 = vmatprep.subr.mxu0 %v13361_v33 }
 0x21a   :  { %2068 = vmatpush1.msra.mxu0 %v13369_v1 }
 0x21b   :  { %2069 = vmatprep.subr.mxu0 %v13373_v14  ;;  %2427 = vrot.lane.b32.xlu1 %v13336_v2, %s12450_s5  ;;  %v13435_v20 = vpop.permute.xlu0 %11616  ;;  %v13523_v54 = vpop.permute.xlu1 %11606 }
 0x21c   :  { %1817 = vrot.lane.b32.xlu0 %v13296_v23, %s12448_s10  ;;  %2070 = vmatpush1.msra.mxu0 %v13379_v47 }
 0x21d   :  { %2071 = vmatprep.subr.mxu0 %v13383_v19 }
 0x21e   :  { %2072 = vmatpush1.msra.mxu0 %v13389_v56 }
 0x21f   :  { %2073 = vmatprep.subr.mxu0 %v13395_v36  ;;  %2669 = vrot.lane.b32.xlu1 %v13336_v2, %s12451_s14  ;;  %v13443_v55 = vpop.permute.xlu0 %11621 }
 0x220   :  { %2181 = vrot.lane.b32.xlu0 %v13296_v23, %s12449_s13  ;;  %2074 = vmatpush1.msra.mxu0 %v13398_v12 }
 0x221   :  { %2075 = vmatprep.subr.mxu0 %v13401_v22 }
 0x222   :  { %2076 = vmatpush1.msra.mxu0 %v13408_v63 }
 0x223   :  { %2077 = vmatprep.subr.mxu0 %v13413_v18  ;;  %2671 = vrot.lane.b32.xlu1 %v13413_v18, %s12451_s14  ;;  %v13451_v3 = vpop.permute.xlu0 %11626 }
 0x224   :  { %1823 = vrot.lane.b32.xlu0 %v13413_v18, %s12448_s10  ;;  %2078 = vmatpush1.msra.mxu0 %v13336_v2  ;;  %15186 = vst [vmem:[#allocation18_spill] sm:$0xff] %v13451_v3 }
 0x225   :  { %2079 = vmatprep.subr.mxu0 %v13296_v23 }
 0x226   :  { %2080 = vmatpush1.msra.mxu0 %v13294_v13 }
 0x227   :  { %2081 = vmatprep.subr.mxu0 %v13231_v32  ;;  %1827 = vrot.lane.b32.xlu1 %v13408_v63, %s12448_s10  ;;  %v13459_v57 = vpop.permute.xlu0 %11631 }
 0x228   :  { %2187 = vrot.lane.b32.xlu0 %v13413_v18, %s12449_s13  ;;  %2082 = vmatpush1.msra.mxu0 %v13216_v59  ;;  %15187 = vst [vmem:[#allocation20_spill] sm:$0xff] %v13459_v57  ;;  %v3859_v57 = vld [vmem:[%s15068_s4 + $0x8] sm:$0xff] }
 0x229   :  { %10101 = vmatmul.mubr.msk.f32.vlgmr.msra.gmra.mxu0 %vm1889_vm9, %v1728_v9 }
 0x22a   :  { %2121 = vmatprep.mubr.f32.mxu0 %v15200_v24 }
 0x22b   :  { %2191 = vrot.lane.b32.xlu1 %v13408_v63, %s12449_s13  ;;  %v13467_v25 = vpop.permute.xlu0 %11636 }
 0x22c   :  { %2429 = vrot.lane.b32.xlu0 %v13413_v18, %s12450_s5  ;;  %15188 = vst [vmem:[#allocation21_spill] sm:$0xff] %v13467_v25 }
 0x22f   :  { %1829 = vrot.lane.b32.xlu1 %v13401_v22, %s12448_s10  ;;  %v13475_v61 = vpop.permute.xlu0 %11641 }
 0x230   :  { %2433 = vrot.lane.b32.xlu0 %v13408_v63, %s12450_s5  ;;  %15189 = vst [vmem:[#allocation23_spill] sm:$0xff] %v13475_v61 }
 0x233   :  { %2193 = vrot.lane.b32.xlu1 %v13401_v22, %s12449_s13  ;;  %v13483_v31 = vpop.permute.xlu0 %11646 }
 0x234   :  { %2675 = vrot.lane.b32.xlu0 %v13408_v63, %s12451_s14  ;;  %15190 = vst [vmem:[#allocation27_spill] sm:$0xff] %v13483_v31 }
 0x237   :  { %2435 = vrot.lane.b32.xlu1 %v13401_v22, %s12450_s5  ;;  %v13491_v43 = vpop.permute.xlu0 %11651 }
 0x238   :  { %1833 = vrot.lane.b32.xlu0 %v13398_v12, %s12448_s10  ;;  %15191 = vst [vmem:[#allocation29_spill] sm:$0xff] %v13491_v43 }
 0x23b   :  { %2677 = vrot.lane.b32.xlu1 %v13401_v22, %s12451_s14  ;;  %v13501_v50 = vpop.permute.xlu0 %11656 }
 0x23c   :  { %2197 = vrot.lane.b32.xlu0 %v13398_v12, %s12449_s13  ;;  %15192 = vst [vmem:[#allocation25_spill] sm:$0xff] %v13501_v50  ;;  %v1730_v50 = vld [vmem:[#allocation4 + $0x10] sm:$0xff] }
 0x23f   :  { %2439 = vrot.lane.b32.xlu1 %v13398_v12, %s12450_s5  ;;  %v13511_v42 = vpop.permute.xlu0 %11661 }
 0x240   :  { %2441 = vrot.lane.b32.xlu0 %v13395_v36, %s12450_s5  ;;  %15193 = vst [vmem:[#allocation28_spill] sm:$0xff] %v13511_v42 }
 0x243   :  { %2681 = vrot.lane.b32.xlu1 %v13398_v12, %s12451_s14  ;;  %v13521_v52 = vpop.permute.xlu0 %11666 }
 0x244   :  { %2925 = vrot.lane.b32.xlu0 %v13395_v36, %s12452_s0  ;;  %15194 = vst [vmem:[#allocation19_spill] sm:$0xff] %v13521_v52  ;;  %v1729_v52 = vld [vmem:[#allocation4 + $0x8] sm:$0xff] }
 0x245   :  { %10102 = vmatmul.mubr.msk.f32.gmra.mxu0 %vm1889_vm9, %v1729_v52 }
 0x246   :  { %2127 = vmatprep.mubr.f32.mxu0 %v15200_v24 }
 0x247   :  { %2923 = vrot.lane.b32.xlu1 %v13398_v12, %s12452_s0 }
 0x248   :  { %1839 = vrot.lane.b32.xlu0 %v13389_v56, %s12448_s10 }
 0x249   :  { %10103 = vmatmul.mubr.msk.f32.gmra.mxu0 %vm1889_vm9, %v1730_v50 }
 0x24a   :  { %2133 = vmatprep.mubr.f32.mxu0 %v15200_v24 }
 0x24b   :  { %1835 = vrot.lane.b32.xlu1 %v13395_v36, %s12448_s10 }
 0x24c   :  { %2203 = vrot.lane.b32.xlu0 %v13389_v56, %s12449_s13 }
 0x24f   :  { %2199 = vrot.lane.b32.xlu1 %v13395_v36, %s12449_s13 }
 0x250   :  { %2445 = vrot.lane.b32.xlu0 %v13389_v56, %s12450_s5 }
 0x253   :  { %2683 = vrot.lane.b32.xlu1 %v13395_v36, %s12451_s14 }
 0x254   :  { %2687 = vrot.lane.b32.xlu0 %v13389_v56, %s12451_s14 }
 0x257   :  { %2447 = vrot.lane.b32.xlu1 %v13383_v19, %s12450_s5 }
 0x258   :  { %2929 = vrot.lane.b32.xlu0 %v13389_v56, %s12452_s0 }
 0x25b   :  { %2689 = vrot.lane.b32.xlu1 %v13383_v19, %s12451_s14 }
 0x25c   :  { %3171 = vrot.lane.b32.xlu0 %v13389_v56, %s12453_s15 }
 0x25f   :  { %2931 = vrot.lane.b32.xlu1 %v13383_v19, %s12452_s0 }
 0x260   :  { %1841 = vrot.lane.b32.xlu0 %v13383_v19, %s12448_s10 }
 0x263   :  { %3173 = vrot.lane.b32.xlu1 %v13383_v19, %s12453_s15 }
 0x264   :  { %2205 = vrot.lane.b32.xlu0 %v13383_v19, %s12449_s13 }
 0x267   :  { %1845 = vrot.lane.b32.xlu1 %v13379_v47, %s12448_s10 }
 0x268   :  { %1847 = vrot.lane.b32.xlu0 %v13373_v14, %s12448_s10 }
 0x26b   :  { %2209 = vrot.lane.b32.xlu1 %v13379_v47, %s12449_s13 }
 0x26c   :  { %2211 = vrot.lane.b32.xlu0 %v13373_v14, %s12449_s13 }
 0x26d   :  { %v13531_v15 = vpop.permute.xlu1 %2415  ;;  %v13533_v37 = vpop.permute.xlu0 %1809 }
 0x26e   :  { %15195 = vst [vmem:[#allocation30_spill] sm:$0xff] %v13531_v15 }
 0x26f   :  { %2451 = vrot.lane.b32.xlu1 %v13379_v47, %s12450_s5 }
 0x270   :  { %2453 = vrot.lane.b32.xlu0 %v13373_v14, %s12450_s5 }
 0x271   :  { %v13539_v8 = vpop.permute.xlu1 %1811  ;;  %v13541_v39 = vpop.permute.xlu0 %2173 }
 0x273   :  { %2693 = vrot.lane.b32.xlu1 %v13379_v47, %s12451_s14 }
 0x274   :  { %2937 = vrot.lane.b32.xlu0 %v13373_v14, %s12452_s0 }
 0x275   :  { %v13547_v60 = vpop.permute.xlu1 %2175  ;;  %v13549_v11 = vpop.permute.xlu0 %2657 }
 0x276   :  { %15196 = vst [vmem:[#allocation31_spill] sm:$0xff] %v13549_v11  ;;  %v1731_v11 = vld [vmem:[#allocation4 + $0x18] sm:$0xff] }
 0x277   :  { %2935 = vrot.lane.b32.xlu1 %v13379_v47, %s12452_s0  ;;  %10104 = vmatmul.mubr.msk.f32.gmra.mxu0 %vm1889_vm9, %v1731_v11 }
 0x278   :  { %2699 = vrot.lane.b32.xlu0 %v13369_v1, %s12451_s14  ;;  %2139 = vmatprep.mubr.f32.mxu0 %v15200_v24 }
 0x279   :  { %v13555_v17 = vpop.permute.xlu1 %2659  ;;  %v13557_v0 = vpop.permute.xlu0 %2417 }
 0x27a   :  { %15197 = vst [vmem:[#allocation32_spill] sm:$0xff] %v13555_v17  ;;  %15198 = vst [vmem:[#allocation38_spill] sm:$0xff] %v13557_v0 }
 0x27b   :  { %3177 = vrot.lane.b32.xlu1 %v13379_v47, %s12453_s15 }
 0x27c   :  { %3183 = vrot.lane.b32.xlu0 %v13369_v1, %s12453_s15 }
 0x27d   :  { %v13563_v58 = vpop.permute.xlu1 %2423  ;;  %v13565_v48 = vpop.permute.xlu0 %1815 }
 0x27e   :  { %15199 = vst [vmem:[#allocation40_spill] sm:$0xff] %v13563_v58 }
 0x27f   :  { %2695 = vrot.lane.b32.xlu1 %v13373_v14, %s12451_s14 }
 0x280   :  { %11671 = vrot.lane.b32.xlu0 %v15200_v24, %s12452_s0 }
 0x281   :  { %v13571_v45 = vpop.permute.xlu1 %2665  ;;  %v13573_v5 = vpop.permute.xlu0 %2179 }
 0x282   :  { %15201 = vst [vmem:[#allocation22_spill] sm:$0xff] %v13571_v45 }
 0x283   :  { %3179 = vrot.lane.b32.xlu1 %v13373_v14, %s12453_s15 }
 0x284   :  { %2917 = vrot.lane.b32.xlu0 %v13408_v63, %s12452_s0 }
 0x285   :  { %v13579_v29 = vpop.permute.xlu1 %1821  ;;  %v13581_v16 = vpop.permute.xlu0 %2421 }
 0x286   :  { %15202 = vst [vmem:[#allocation33_spill] sm:$0xff] %v13581_v16 }
 0x287   :  { %1851 = vrot.lane.b32.xlu1 %v13369_v1, %s12448_s10 }
 0x288   :  { %2913 = vrot.lane.b32.xlu0 %v13413_v18, %s12452_s0 }
 0x289   :  { %v13587_v27 = vpop.permute.xlu1 %2185  ;;  %v13589_v62 = vpop.permute.xlu0 %2663 }
 0x28a   :  { %15203 = vst [vmem:[#allocation34_spill] sm:$0xff] %v13589_v62  ;;  %v1732_v62 = vld [vmem:[#allocation4 + $0x20] sm:$0xff] }
 0x28b   :  { %2215 = vrot.lane.b32.xlu1 %v13369_v1, %s12449_s13  ;;  %10105 = vmatmul.mubr.msk.f32.gmra.mxu0 %vm1889_vm9, %v1732_v62 }
 0x28c   :  { %11676 = vrot.lane.b32.xlu0 %v15200_v24, %s12453_s15  ;;  %2145 = vmatprep.mubr.f32.mxu0 %v15200_v24 }
 0x28d   :  { %v13595_v53 = vpop.permute.xlu1 %2427 }
 0x28e   :  { %15204 = vst [vmem:[#allocation36_spill] sm:$0xff] %v13595_v53  ;;  %v13597_v46 = vpop.permute.xlu0 %1817 }
 0x28f   :  { %2457 = vrot.lane.b32.xlu1 %v13369_v1, %s12450_s5 }
 0x290   :  { %3159 = vrot.lane.b32.xlu0 %v13408_v63, %s12453_s15 }
 0x291   :  { %v13603_v7 = vpop.permute.xlu1 %2669 }
 0x292   :  { %15205 = vst [vmem:[#allocation26_spill] sm:$0xff] %v13603_v7  ;;  %v13605_v6 = vpop.permute.xlu0 %2181  ;;  %v1733_v7 = vld [vmem:[#allocation4 + $0x28] sm:$0xff] }
 0x293   :  { %2941 = vrot.lane.b32.xlu1 %v13369_v1, %s12452_s0  ;;  %10106 = vmatmul.mubr.msk.f32.gmra.mxu0 %vm1889_vm9, %v1733_v7 }
 0x294   :  { %11681 = vrot.lane.b32.xlu0 %v15200_v24, %s12452_s0  ;;  %2151 = vmatprep.mubr.f32.mxu0 %v15200_v24 }
 0x295   :  { %v13611_v38 = vpop.permute.xlu1 %2671 }
 0x296   :  { %15206 = vst [vmem:[#allocation37_spill] sm:$0xff] %v13611_v38  ;;  %v13613_v4 = vpop.permute.xlu0 %1823  ;;  %v1734_v38 = vld [vmem:[#allocation4 + $0x30] sm:$0xff] }
 0x297   :  { %1853 = vrot.lane.b32.xlu1 %v13361_v33, %s12448_s10  ;;  %10107 = vmatmul.mubr.msk.f32.gmra.mxu0 %vm1889_vm9, %v1734_v38 }
 0x298   :  { %2905 = vrot.lane.b32.xlu0 %v13294_v13, %s12452_s0  ;;  %2157 = vmatprep.mubr.f32.mxu0 %v15200_v24 }
 0x299   :  { %v13619_v21 = vpop.permute.xlu1 %1827 }
 0x29a   :  { %v13621_v41 = vpop.permute.xlu0 %2187 }
 0x29b   :  { %2919 = vrot.lane.b32.xlu1 %v13401_v22, %s12452_s0 }
 0x29c   :  { %2901 = vrot.lane.b32.xlu0 %v13231_v32, %s12452_s0 }
 0x29d   :  { %v13628_v34 = vpop.permute.xlu1 %2191 }
 0x29e   :  { %v13631_v30 = vpop.permute.xlu0 %2429 }
 0x29f   :  { %15207 = vst [vmem:[#allocation42_spill] sm:$0xff] %v13631_v30  ;;  %3167 = vrot.lane.b32.xlu1 %v13395_v36, %s12453_s15 }
 0x2a0   :  { %11686 = vrot.lane.b32.xlu0 %v15200_v24, %s12453_s15 }
 0x2a1   :  { %v13638_v42 = vpop.permute.xlu1 %1829 }
 0x2a2   :  { %v13641_v9 = vpop.permute.xlu0 %2433 }
 0x2a3   :  { %15208 = vst [vmem:[#allocation52_spill] sm:$0xff] %v13641_v9  ;;  %3165 = vrot.lane.b32.xlu1 %v13398_v12, %s12453_s15 }
 0x2a4   :  { %3147 = vrot.lane.b32.xlu0 %v13294_v13, %s12453_s15 }
 0x2a5   :  { %v13648_v43 = vpop.permute.xlu1 %2193 }
 0x2a6   :  { %v13651_v52 = vpop.permute.xlu0 %2675 }
 0x2a7   :  { %15209 = vst [vmem:[#allocation24_spill] sm:$0xff] %v13651_v52  ;;  %3161 = vrot.lane.b32.xlu1 %v13401_v22, %s12453_s15  ;;  %v1735_v52 = vld [vmem:[#allocation4 + $0x38] sm:$0xff] }
 0x2a8   :  { %3141 = vrot.lane.b32.xlu0 %v13216_v59, %s12453_s15  ;;  %10108 = vmatmul.mubr.msk.f32.gmra.mxu0 %vm1889_vm9, %v1735_v52 }
 0x2a9   :  { %v13658_v17 = vpop.permute.xlu1 %2435  ;;  %2583 = vmatprep.mubr.f32.mxu0 %v15200_v24 }
 0x2aa   :  { %15210 = vst [vmem:[#allocation35_spill] sm:$0xff] %v13658_v17  ;;  %v13661_v50 = vpop.permute.xlu0 %1833 }
 0x2ab   :  { %2911 = vrot.lane.b32.xlu1 %v13336_v2, %s12452_s0 }
 0x2ac   :  { %11691 = vrot.lane.b32.xlu0 %v15200_v24, %s12454_s16 }
 0x2ad   :  { %v13668_v45 = vpop.permute.xlu1 %2677 }
 0x2ae   :  { %15211 = vst [vmem:[#allocation39_spill] sm:$0xff] %v13668_v45  ;;  %v13671_v11 = vpop.permute.xlu0 %2197 }
 0x2af   :  { %2907 = vrot.lane.b32.xlu1 %v13296_v23, %s12452_s0 }
 0x2b0   :  { %3421 = vrot.lane.b32.xlu0 %v13373_v14, %s12454_s16 }
 0x2b1   :  { %v13678_v15 = vpop.permute.xlu1 %2439 }
 0x2b2   :  { %15212 = vst [vmem:[#allocation49_spill] sm:$0xff] %v13678_v15  ;;  %v13681_v62 = vpop.permute.xlu0 %2441 }
 0x2b3   :  { %15213 = vst [vmem:[#allocation50_spill] sm:$0xff] %v13681_v62  ;;  %3155 = vrot.lane.b32.xlu1 %v13413_v18, %s12453_s15 }
 0x2b4   :  { %11696 = vrot.lane.b32.xlu0 %v15200_v24, %s12455_s17 }
 0x2b5   :  { %v13688_v0 = vpop.permute.xlu1 %2681 }
 0x2b6   :  { %15214 = vst [vmem:[#allocation46_spill] sm:$0xff] %v13688_v0  ;;  %v13691_v7 = vpop.permute.xlu0 %2925 }
 0x2b7   :  { %15215 = vst [vmem:[#allocation47_spill] sm:$0xff] %v13691_v7  ;;  %2217 = vrot.lane.b32.xlu1 %v13361_v33, %s12449_s13 }
 0x2b8   :  { %3667 = vrot.lane.b32.xlu0 %v13369_v1, %s12455_s17 }
 0x2b9   :  { %v13698_v31 = vpop.permute.xlu1 %2923 }
 0x2ba   :  { %15216 = vst [vmem:[#allocation43_spill] sm:$0xff] %v13698_v31  ;;  %v13701_v38 = vpop.permute.xlu0 %1839 }
 0x2bb   :  { %3153 = vrot.lane.b32.xlu1 %v13336_v2, %s12453_s15 }
 0x2bc   :  { %11701 = vrot.lane.b32.xlu0 %v15200_v24, %s12454_s16 }
 0x2bd   :  { %v13707_v7 = vpop.permute.xlu1 %1835 }
 0x2be   :  { %v13709_v45 = vpop.permute.xlu0 %2203 }
 0x2bf   :  { %3149 = vrot.lane.b32.xlu1 %v13296_v23, %s12453_s15 }
 0x2c0   :  { %3413 = vrot.lane.b32.xlu0 %v13389_v56, %s12454_s16 }
 0x2c1   :  { %v13715_v52 = vpop.permute.xlu1 %2199 }
 0x2c2   :  { %v13717_v31 = vpop.permute.xlu0 %2445 }
 0x2c3   :  { %15217 = vst [vmem:[#allocation45_spill] sm:$0xff] %v13717_v31  ;;  %2899 = vrot.lane.b32.xlu1 %v13216_v59, %s12452_s0 }
 0x2c4   :  { %3409 = vrot.lane.b32.xlu0 %v13395_v36, %s12454_s16 }
 0x2c5   :  { %v13723_v16 = vpop.permute.xlu1 %2683 }
 0x2c6   :  { %15218 = vst [vmem:[#allocation41_spill] sm:$0xff] %v13723_v16  ;;  %v13725_v58 = vpop.permute.xlu0 %2687 }
 0x2c7   :  { %15219 = vst [vmem:[#allocation44_spill] sm:$0xff] %v13725_v58  ;;  %3143 = vrot.lane.b32.xlu1 %v13231_v32, %s12453_s15 }
 0x2c8   :  { %11706 = vrot.lane.b32.xlu0 %v15200_v24, %s12455_s17 }
 0x2c9   :  { %v13731_v0 = vpop.permute.xlu1 %2447 }
 0x2ca   :  { %15220 = vst [vmem:[#allocation55_spill] sm:$0xff] %v13731_v0  ;;  %v13733_v53 = vpop.permute.xlu0 %2929  ;;  %v11574_v0 = vunpack.i.h.bf16 %v13320_v35 }
 0x2cb   :  { %15221 = vst [vmem:[#allocation53_spill] sm:$0xff] %v13733_v53  ;;  %3425 = vrot.lane.b32.xlu1 %v13369_v1, %s12454_s16 }
 0x2cc   :  { %3655 = vrot.lane.b32.xlu0 %v13389_v56, %s12455_s17 }
 0x2cd   :  { %v13739_v25 = vpop.permute.xlu1 %2689 }
 0x2ce   :  { %15222 = vst [vmem:[#allocation54_spill] sm:$0xff] %v13739_v25  ;;  %v13741_v16 = vpop.permute.xlu0 %3171 }
 0x2cf   :  { %15223 = vst [vmem:[#allocation51_spill] sm:$0xff] %v13741_v16  ;;  %3419 = vrot.lane.b32.xlu1 %v13379_v47, %s12454_s16 }
 0x2d0   :  { %11711 = vrot.lane.b32.xlu0 %v15200_v24, %s12454_s16 }
 0x2d1   :  { %v13747_v30 = vpop.permute.xlu1 %2931 }
 0x2d2   :  { %15224 = vst [vmem:[#allocation48_spill] sm:$0xff] %v13747_v30  ;;  %v13749_v58 = vpop.permute.xlu0 %1841 }
 0x2d3   :  { %2459 = vrot.lane.b32.xlu1 %v13361_v33, %s12450_s5 }
 0x2d4   :  { %3401 = vrot.lane.b32.xlu0 %v13408_v63, %s12454_s16 }
 0x2d5   :  { %v13755_v1 = vpop.permute.xlu1 %3173 }
 0x2d6   :  { %15225 = vst [vmem:[#allocation56_spill] sm:$0xff] %v13755_v1  ;;  %v13757_v56 = vpop.permute.xlu0 %2205 }
 0x2d7   :  { %2701 = vrot.lane.b32.xlu1 %v13361_v33, %s12451_s14 }
 0x2d8   :  { %3397 = vrot.lane.b32.xlu0 %v13413_v18, %s12454_s16 }
 0x2d9   :  { %v13763_v16 = vpop.permute.xlu1 %1845 }
 0x2da   :  { %v13765_v53 = vpop.permute.xlu0 %1847 }
 0x2db   :  { %3415 = vrot.lane.b32.xlu1 %v13383_v19, %s12454_s16 }
 0x2dc   :  { %11716 = vrot.lane.b32.xlu0 %v15200_v24, %s12455_s17 }
 0x2dd   :  { %v13771_v30 = vpop.permute.xlu1 %2209 }
 0x2de   :  { %v13773_v1 = vpop.permute.xlu0 %2211 }
 0x2df   :  { %3663 = vrot.lane.b32.xlu1 %v13373_v14, %s12455_s17 }
 0x2e0   :  { %3643 = vrot.lane.b32.xlu0 %v13408_v63, %s12455_s17 }
 0x2e1   :  { %v13779_v9 = vpop.permute.xlu1 %2451 }
 0x2e2   :  { %v13781_v25 = vpop.permute.xlu0 %2453 }
 0x2e3   :  { %3661 = vrot.lane.b32.xlu1 %v13379_v47, %s12455_s17 }
 0x2e4   :  { %11721 = vrot.lane.b32.xlu0 %v15200_v24, %s12454_s16 }
 0x2e5   :  { %v13787_v61 = vpop.permute.xlu1 %2693 }
 0x2e6   :  { %15226 = vst [vmem:[#allocation57_spill] sm:$0xff] %v13787_v61  ;;  %v13789_v17 = vpop.permute.xlu0 %2937 }
 0x2e7   :  { %15227 = vst [vmem:[#allocation58_spill] sm:$0xff] %v13789_v17  ;;  %3657 = vrot.lane.b32.xlu1 %v13383_v19, %s12455_s17 }
 0x2e8   :  { %3389 = vrot.lane.b32.xlu0 %v13294_v13, %s12454_s16 }
 0x2e9   :  { %v13795_v14 = vpop.permute.xlu1 %2935 }
 0x2ea   :  { %15228 = vst [vmem:[#allocation59_spill] sm:$0xff] %v13795_v14  ;;  %v13797_v63 = vpop.permute.xlu0 %2699 }
 0x2eb   :  { %15229 = vst [vmem:[#allocation60_spill] sm:$0xff] %v13797_v63  ;;  %3407 = vrot.lane.b32.xlu1 %v13398_v12, %s12454_s16 }
 0x2ec   :  { %3385 = vrot.lane.b32.xlu0 %v13231_v32, %s12454_s16 }
 0x2ed   :  { %v3178_v47 = vpop.permute.xlu1 %3177 }
 0x2ee   :  { %v13803_v15 = vpop.permute.xlu0 %3183 }
 0x2ef   :  { %15230 = vst [vmem:[#allocation61_spill] sm:$0xff] %v13803_v15  ;;  %3403 = vrot.lane.b32.xlu1 %v13401_v22, %s12454_s16 }
 0x2f0   :  { %11726 = vrot.lane.b32.xlu0 %v15200_v24, %s12455_s17 }
 0x2f1   :  { %v13809_v19 = vpop.permute.xlu1 %2695 }
 0x2f2   :  { %15231 = vst [vmem:[#allocation62_spill] sm:$0xff] %v13809_v19  ;;  %v11672_v14 = vpop.permute.xlu0 %11671 }
 0x2f3   :  { %2943 = vrot.lane.b32.xlu1 %v13361_v33, %s12452_s0  ;;  %v11674_v3 = vunpack.i.h.bf16 %v11672_v14  ;;  %v11673_v63 = vunpack.i.l.bf16 %v11672_v14 }
 0x2f4   :  { %3631 = vrot.lane.b32.xlu0 %v13294_v13, %s12455_s17 }
 0x2f5   :  { %v13815_v17 = vpop.permute.xlu1 %3179 }
 0x2f6   :  { %15232 = vst [vmem:[#allocation63_spill] sm:$0xff] %v13815_v17  ;;  %v13819_v15 = vsel %vm1120_vm6, %v3178_v47, %v13815_v17  ;;  %v2918_v61 = vpop.permute.xlu0 %2917  ;;  %v3861_v17 = vld [vmem:[%s15068_s4 + $0x18] sm:$0xff] }
 0x2f7   :  { %15233 = vst [vmem:[#allocation64_spill] sm:$0xff] %v13819_v15  ;;  %3185 = vrot.lane.b32.xlu1 %v13361_v33, %s12453_s15 }
 0x2f8   :  { %3625 = vrot.lane.b32.xlu0 %v13216_v59, %s12455_s17 }
 0x2f9   :  { %v1852_v19 = vpop.permute.xlu1 %1851 }
 0x2fa   :  { %v13828_v13 = vpop.permute.xlu0 %2913 }
 0x2fb   :  { %3651 = vrot.lane.b32.xlu1 %v13395_v36, %s12455_s17  ;;  %v13834_v47 = vsel %vm947_vm5, %v13828_v13, %v11674_v3  ;;  %v3863_v36 = vld [vmem:[%s15068_s4 + $0x28] sm:$0xff] }
 0x2fc   :  { %15234 = vst [vmem:[#allocation65_spill] sm:$0xff] %v13834_v47  ;;  %3873 = vperm.xlu0 %11568, %v3859_v57   ;;  %v3865_v47 = vld [vmem:[%s15068_s4 + $0x38] sm:$0xff] }
 0x2fd   :  { %v13836_v15 = vpop.permute.xlu1 %2215 }
 0x2fe   :  { %v13841_v62 = vpop.permute.xlu0 %11676 }
 0x2ff   :  { %3649 = vrot.lane.b32.xlu1 %v13398_v12, %s12455_s17  ;;  %v11573_v12 = vunpack.i.l.bf16 %v13320_v35  ;;  %v1869_v35 = vsel %vm133_vm0, %v13763_v16, %v13765_v53 }
 0x300   :  { %3883 = vperm.xlu0 %11568, %v3861_v17  }
 0x301   :  { %v13845_v31 = vpop.permute.xlu1 %2457 }
 0x302   :  { %v13852_v3 = vpop.permute.xlu0 %3159 }
 0x303   :  { %3645 = vrot.lane.b32.xlu1 %v13401_v22, %s12455_s17  ;;  %15235 = vst [vmem:[#allocation66_spill] sm:$0xff] %v13852_v3 }
 0x304   :  { %3893 = vperm.xlu0 %11568, %v3863_v36  }
 0x305   :  { %v13854_v57 = vpop.permute.xlu1 %2941 }
 0x306   :  { %15236 = vst [vmem:[#allocation67_spill] sm:$0xff] %v13854_v57  ;;  %v13865_v3 = vpop.permute.xlu0 %11681  ;;  %v11578_v57 = vunpack.i.l.bf16 %v13493_v49 }
 0x307   :  { %3395 = vrot.lane.b32.xlu1 %v13336_v2, %s12454_s16 }
 0x308   :  { %3903 = vperm.xlu0 %11568, %v3865_v47   ;;  %v1870_v47 = vsel %vm133_vm0, %v13765_v53, %v11574_v0  ;;  %v1867_v0 = vsel %vm133_vm0, %v13701_v38, %v13749_v58  ;;  %v1863_v38 = vsel %vm133_vm0, %v13619_v21, %v13638_v42 }
 0x309   :  { %v1854_v17 = vpop.permute.xlu1 %1853 }
 0x30a   :  { %v1871_v22 = vsel %vm133_vm0, %v1852_v19, %v1854_v17  ;;  %v1872_v36 = vsel %vm133_vm0, %v1854_v17, %v11573_v12  ;;  %v11579_v19 = vunpack.i.h.bf16 %v13493_v49  ;;  %v1868_v17 = vsel %vm133_vm0, %v13749_v58, %v11578_v57  ;;  %v13892_v16 = vpop.permute.xlu0 %2905 }
 0x30b   :  { %3391 = vrot.lane.b32.xlu1 %v13296_v23, %s12454_s16  ;;  %1930 = vmatprep.subr.mxu1 %v1872_v36  ;;  %v11583_v49 = vunpack.i.l.bf16 %v13346_v10  ;;  %v11584_v58 = vunpack.i.h.bf16 %v13346_v10  ;;  %v11588_v57 = vunpack.i.l.bf16 %v13503_v44  ;;  %v1861_v10 = vsel %vm133_vm0, %v13579_v29, %v13613_v4 }
 0x30c   :  { %1931 = vmatpush1.msra.mxu1 %v1871_v22  ;;  %v11589_v36 = vunpack.i.h.bf16 %v13503_v44  ;;  %v1859_v29 = vsel %vm133_vm0, %v13565_v48, %v13597_v46 }
 0x30d   :  { %v2920_v14 = vpop.permute.xlu1 %2919  ;;  %1932 = vmatprep.subr.mxu1 %v1870_v47 }
 0x30e   :  { %v13877_v12 = vsel %vm947_vm5, %v2918_v61, %v2920_v14  ;;  %1933 = vmatpush1.msra.mxu1 %v1869_v35  ;;  %v13882_v22 = vsel %vm947_vm5, %v2920_v14, %v11673_v63  ;;  %v1866_v61 = vsel %vm133_vm0, %v13707_v7, %v11579_v19  ;;  %v1865_v63 = vsel %vm133_vm0, %v13661_v50, %v13707_v7  ;;  %v13920_v21 = vpop.permute.xlu0 %2901 }
 0x30f   :  { %3639 = vrot.lane.b32.xlu1 %v13413_v18, %s12455_s17  ;;  %1934 = vmatprep.subr.mxu1 %v1868_v17  ;;  %v1864_v18 = vsel %vm133_vm0, %v13638_v42, %v11583_v49  ;;  %v1862_v50 = vsel %vm133_vm0, %v13613_v4, %v11584_v58  ;;  %v1860_v42 = vsel %vm133_vm0, %v13597_v46, %v11588_v57  ;;  %v1753_v4 = vld [vmem:[#allocation4 + $0x40] sm:$0xff]  ;;  %v11593_v49 = vunpack.i.l.bf16 %v13376_v51  ;;  %v3860_v57 = vld [vmem:[%s15068_s4 + $0x10] sm:$0xff] }
 0x310   :  { %1935 = vmatpush1.msra.mxu1 %v1867_v0  ;;  %v1858_v44 = vsel %vm133_vm0, %v13539_v8, %v11589_v36  ;;  %v1857_v14 = vsel %vm133_vm0, %v13533_v37, %v13539_v8  ;;  %v11679_v8 = vunpack.i.h.bf16 %v13841_v62 }
 0x311   :  { %v13894_v53 = vpop.permute.xlu1 %3167  ;;  %1936 = vmatprep.subr.mxu1 %v1866_v61  ;;  %v1757_v61 = vld [vmem:[#allocation4 + $0x60] sm:$0xff] }
 0x312   :  { %1937 = vmatpush1.msra.mxu1 %v1865_v63  ;;  %v13938_v48 = vpop.permute.xlu0 %11686 }
 0x313   :  { %3427 = vrot.lane.b32.xlu1 %v13361_v33, %s12454_s16  ;;  %1938 = vmatprep.subr.mxu1 %v1864_v18 }
 0x314   :  { %1939 = vmatpush1.msra.mxu1 %v1863_v38 }
 0x315   :  { %v3166_v7 = vpop.permute.xlu1 %3165  ;;  %1940 = vmatprep.subr.mxu1 %v1862_v50  ;;  %v11598_v50 = vunpack.i.l.bf16 %v13513_v28 }
 0x316   :  { %v13916_v47 = vsel %vm1120_vm6, %v3166_v7, %v13894_v53  ;;  %1941 = vmatpush1.msra.mxu1 %v1861_v10  ;;  %v13951_v17 = vpop.permute.xlu0 %3147  ;;  %v1758_v10 = vld [vmem:[#allocation4 + $0x68] sm:$0xff] }
 0x317   :  { %3669 = vrot.lane.b32.xlu1 %v13361_v33, %s12455_s17  ;;  %1942 = vmatprep.subr.mxu1 %v1860_v42  ;;  %v1754_v33 = vld [vmem:[#allocation4 + $0x48] sm:$0xff]  ;;  %v11599_v42 = vunpack.i.h.bf16 %v13513_v28  ;;  %v11603_v28 = vunpack.i.l.bf16 %v13406_v40 }
 0x318   :  { %1943 = vmatpush1.msra.mxu1 %v1859_v29 }
 0x319   :  { %v13929_v35 = vpop.permute.xlu1 %3161  ;;  %1944 = vmatprep.subr.mxu1 %v1858_v44  ;;  %v2232_v44 = vsel %vm428_vm2, %v13757_v56, %v11598_v50  ;;  %v11614_v50 = vunpack.i.h.bf16 %v13424_v26 }
 0x31a   :  { %1945 = vmatpush1.msra.mxu1 %v1857_v14  ;;  %v13968_v63 = vpop.permute.xlu0 %3141  ;;  %v2230_v14 = vsel %vm428_vm2, %v13715_v52, %v11599_v42  ;;  %v11623_v42 = vunpack.i.l.bf16 %v13443_v55 }
 0x31b   :  { %3637 = vrot.lane.b32.xlu1 %v13336_v2, %s12455_s17  ;;  %10093 = vmatmul.mubr.msk.f32.vlgmr.msra.gmra.mxu1 %vm1889_vm9, %v1753_v4  ;;  %v1755_v2 = vld [vmem:[#allocation4 + $0x50] sm:$0xff]  ;;  %v2231_v4 = vsel %vm428_vm2, %v13709_v45, %v13757_v56  ;;  %v2229_v45 = vsel %vm428_vm2, %v13671_v11, %v13715_v52  ;;  %v11604_v56 = vunpack.i.h.bf16 %v13406_v40  ;;  %v11608_v11 = vunpack.i.l.bf16 %v13523_v54 }
 0x31c   :  { %1984 = vmatprep.mubr.f32.mxu1 %v15200_v24 }
 0x31d   :  { %v2912_v46 = vpop.permute.xlu1 %2911 }
 0x31e   :  { %v13942_v19 = vsel %vm947_vm5, %v2912_v46, %v13828_v13  ;;  %v1756_v13 = vld [vmem:[#allocation4 + $0x58] sm:$0xff]  ;;  %v13989_v29 = vpop.permute.xlu0 %11691  ;;  %v2228_v46 = vsel %vm428_vm2, %v13648_v43, %v11603_v28 }
 0x31f   :  { %3633 = vrot.lane.b32.xlu1 %v13296_v23, %s12455_s17  ;;  %10094 = vmatmul.mubr.msk.f32.gmra.mxu1 %vm1889_vm9, %v1754_v33  ;;  %v1759_v33 = vld [vmem:[#allocation4 + $0x70] sm:$0xff]  ;;  %v15237_v28 = vld [vmem:[#allocation60_spill] sm:$0xff] }
 0x320   :  { %1990 = vmatprep.mubr.f32.mxu1 %v15200_v24 }
 0x321   :  { %v13948_v37 = vpop.permute.xlu1 %2907 }
 0x322   :  { %v14020_v52 = vpop.permute.xlu0 %3421 }
 0x323   :  { %3383 = vrot.lane.b32.xlu1 %v13216_v59, %s12454_s16  ;;  %10095 = vmatmul.mubr.msk.f32.gmra.mxu1 %vm1889_vm9, %v1755_v2  ;;  %v3858_v59 = vld [vmem:[%s15068_s4] sm:$0xff]  ;;  %v2227_v2 = vsel %vm428_vm2, %v13628_v34, %v13648_v43  ;;  %v2225_v43 = vsel %vm428_vm2, %v13587_v27, %v13621_v41  ;;  %v11609_v34 = vunpack.i.h.bf16 %v13523_v54 }
 0x324   :  { %1996 = vmatprep.mubr.f32.mxu1 %v15200_v24  ;;  %v2165_v54 = vld [vmem:[#allocation4 + $0x80] sm:$0xff] }
 0x325   :  { %v3156_v23 = vpop.permute.xlu1 %3155  ;;  %v2222_v27 = vsel %vm428_vm2, %v13547_v60, %v11609_v34  ;;  %v2170_v34 = vld [vmem:[#allocation4 + $0xa8] sm:$0xff] }
 0x326   :  { %v13958_v0 = vsel %vm1120_vm6, %v3156_v23, %v11679_v8  ;;  %v3864_v8 = vld [vmem:[%s15068_s4 + $0x30] sm:$0xff] }
 0x327   :  { %3627 = vrot.lane.b32.xlu1 %v13231_v32, %s12455_s17  ;;  %10096 = vmatmul.mubr.msk.f32.gmra.mxu1 %vm1889_vm9, %v1756_v13  ;;  %v11594_v32 = vunpack.i.h.bf16 %v13376_v51  ;;  %v2233_v51 = vsel %vm428_vm2, %v13771_v30, %v13773_v1  ;;  %v3862_v30 = vld [vmem:[%s15068_s4 + $0x20] sm:$0xff]  ;;  %v2226_v13 = vsel %vm428_vm2, %v13621_v41, %v11604_v56  ;;  %v2221_v41 = vsel %vm428_vm2, %v13541_v39, %v13547_v60 }
 0x328   :  { %2002 = vmatprep.mubr.f32.mxu1 %v15200_v24  ;;  %v11613_v39 = vunpack.i.l.bf16 %v13424_v26  ;;  %v2475_v26 = vsel %vm601_vm3, %v13779_v9, %v13781_v25 }
 0x329   :  { %v2218_v58 = vpop.permute.xlu1 %2217 }
 0x32a   :  { %v2235_v18 = vsel %vm428_vm2, %v13836_v15, %v2218_v58  ;;  %v2236_v38 = vsel %vm428_vm2, %v2218_v58, %v11593_v49  ;;  %v2234_v15 = vsel %vm428_vm2, %v13773_v1, %v11594_v32  ;;  %v2224_v49 = vsel %vm428_vm2, %v13605_v6, %v11608_v11  ;;  %v14045_v58 = vpop.permute.xlu0 %11696  ;;  %v2167_v32 = vld [vmem:[#allocation4 + $0x90] sm:$0xff] }
 0x32b   :  { %3868 = vperm.xlu1 %11569, %v3858_v59   ;;  %10097 = vmatmul.mubr.msk.f32.gmra.mxu1 %vm1889_vm9, %v1757_v61  ;;  %v2223_v59 = vsel %vm428_vm2, %v13573_v5, %v13605_v6  ;;  %v2166_v6 = vld [vmem:[#allocation4 + $0x88] sm:$0xff] }
 0x32c   :  { %2293 = vmatprep.subr.mxu1 %v2236_v38  ;;  %2008 = vmatprep.mubr.f32.mxu1 %v15200_v24 }
 0x32d   :  { %2294 = vmatpush1.msra.mxu1 %v2235_v18  ;;  %v3154_v7 = vpop.permute.xlu1 %3153 }
 0x32e   :  { %v13986_v36 = vsel %vm1120_vm6, %v3154_v7, %v3156_v23  ;;  %2295 = vmatprep.subr.mxu1 %v2234_v15  ;;  %v1760_v23 = vld [vmem:[#allocation4 + $0x78] sm:$0xff]  ;;  %v14052_v18 = vpop.permute.xlu0 %3667 }
 0x32f   :  { %2296 = vmatpush1.msra.mxu1 %v2233_v51  ;;  %3878 = vperm.xlu1 %11569, %v3860_v57   ;;  %v2168_v57 = vld [vmem:[#allocation4 + $0x98] sm:$0xff]  ;;  %v11618_v51 = vunpack.i.l.bf16 %v13435_v20 }
 0x330   :  { %10098 = vmatmul.mubr.msk.f32.gmra.mxu1 %vm1889_vm9, %v1758_v10  ;;  %2297 = vmatprep.subr.mxu1 %v2232_v44  ;;  %v2476_v44 = vsel %vm601_vm3, %v13781_v25, %v11614_v50  ;;  %v15239_v25 = vld [vmem:[#allocation45_spill] sm:$0xff]  ;;  %v15247_v50 = vld [vmem:[#allocation23_spill] sm:$0xff] }
 0x331   :  { %2298 = vmatpush1.msra.mxu1 %v2231_v4  ;;  %v14001_v1 = vpop.permute.xlu1 %3149  ;;  %2014 = vmatprep.mubr.f32.mxu1 %v15200_v24  ;;  %v2169_v4 = vld [vmem:[#allocation4 + $0xa0] sm:$0xff] }
 0x332   :  { %2299 = vmatprep.subr.mxu1 %v2230_v14  ;;  %v14064_v10 = vpop.permute.xlu0 %11701 }
 0x333   :  { %2300 = vmatpush1.msra.mxu1 %v2229_v45  ;;  %3888 = vperm.xlu1 %11569, %v3862_v30   ;;  %v11624_v30 = vunpack.i.h.bf16 %v13443_v55  ;;  %v15240_v55 = vld [vmem:[#allocation50_spill] sm:$0xff] }
 0x334   :  { %10099 = vmatmul.mubr.msk.f32.gmra.mxu1 %vm1889_vm9, %v1759_v33  ;;  %2301 = vmatprep.subr.mxu1 %v2228_v46  ;;  %v15238_v33 = vld [vmem:[#allocation55_spill] sm:$0xff]  ;;  %v11619_v46 = vunpack.i.h.bf16 %v13435_v20  ;;  %v15242_v20 = vld [vmem:[#allocation62_spill] sm:$0xff] }
 0x335   :  { %2302 = vmatpush1.msra.mxu1 %v2227_v2  ;;  %v14022_v40 = vpop.permute.xlu1 %2899  ;;  %2020 = vmatprep.mubr.f32.mxu1 %v15200_v24  ;;  %v2474_v45 = vsel %vm601_vm3, %v15238_v33, %v11623_v42  ;;  %v2473_v9 = vsel %vm601_vm3, %v15239_v25, %v15238_v33  ;;  %v2472_v2 = vsel %vm601_vm3, %v15240_v55, %v11624_v30  ;;  %v15249_v42 = vld [vmem:[#allocation52_spill] sm:$0xff]  ;;  %v15251_v30 = vld [vmem:[#allocation42_spill] sm:$0xff]  ;;  %v15252_v33 = vld [vmem:[#allocation41_spill] sm:$0xff] }
 0x336   :  { %2303 = vmatprep.subr.mxu1 %v2226_v13  ;;  %v14089_v13 = vpop.permute.xlu0 %3413 }
 0x337   :  { %2304 = vmatpush1.msra.mxu1 %v2225_v43  ;;  %3898 = vperm.xlu1 %11569, %v3864_v8   ;;  %v15241_v8 = vld [vmem:[#allocation20_spill] sm:$0xff]  ;;  %v2718_v43 = vsel %vm774_vm4, %v15242_v20, %v11619_v46  ;;  %v15253_v46 = vld [vmem:[#allocation21_spill] sm:$0xff] }
 0x338   :  { %10100 = vmatmul.mubr.msk.f32.gmra.mxu1 %vm1889_vm9, %v1760_v23  ;;  %2305 = vmatprep.subr.mxu1 %v2224_v49  ;;  %v11633_v11 = vunpack.i.l.bf16 %v15241_v8  ;;  %v15243_v49 = vld [vmem:[#allocation18_spill] sm:$0xff]  ;;  %v11638_v25 = vunpack.i.l.bf16 %v15253_v46 }
 0x339   :  { %2306 = vmatpush1.msra.mxu1 %v2223_v59  ;;  %v14037_v61 = vpop.permute.xlu1 %3143  ;;  %2341 = vmatprep.mubr.f32.mxu1 %v15200_v24  ;;  %v11628_v59 = vunpack.i.l.bf16 %v15243_v49 }
 0x33a   :  { %2307 = vmatprep.subr.mxu1 %v2222_v27  ;;  %v15244_v27 = vld [vmem:[#allocation57_spill] sm:$0xff] }
 0x33b   :  { %2308 = vmatpush1.msra.mxu1 %v2221_v41  ;;  %v15245_v41 = vld [vmem:[#allocation49_spill] sm:$0xff] }
 0x33c   :  { %10109 = vmatmul.mubr.msk.f32.vlgmr.msra.gmra.mxu1 %vm1889_vm9, %v2165_v54  ;;  %v2717_v54 = vsel %vm774_vm4, %v15244_v27, %v15242_v20  ;;  %v15256_v20 = vld [vmem:[#allocation40_spill] sm:$0xff]  ;;  %v15258_v27 = vld [vmem:[#allocation39_spill] sm:$0xff] }
 0x33d   :  { %v14048_v5 = vpop.permute.xlu1 %3425  ;;  %2347 = vmatprep.mubr.f32.mxu1 %v15200_v24 }
 0x340   :  { %10110 = vmatmul.mubr.msk.f32.gmra.mxu1 %vm1889_vm9, %v2166_v6  ;;  %v2471_v6 = vsel %vm601_vm3, %v15245_v41, %v15240_v55  ;;  %v15254_v55 = vld [vmem:[#allocation36_spill] sm:$0xff] }
 0x341   :  { %v14054_v38 = vpop.permute.xlu1 %3419  ;;  %2353 = vmatprep.mubr.f32.mxu1 %v15200_v24 }
 0x344   :  { %10111 = vmatmul.mubr.msk.f32.gmra.mxu1 %vm1889_vm9, %v2167_v32  ;;  %v11634_v32 = vunpack.i.h.bf16 %v15241_v8  ;;  %v15255_v8 = vld [vmem:[#allocation46_spill] sm:$0xff] }
 0x345   :  { %v2460_v60 = vpop.permute.xlu1 %2459  ;;  %2359 = vmatprep.mubr.f32.mxu1 %v15200_v24 }
 0x346   :  { %v2477_v7 = vsel %vm601_vm3, %v13845_v31, %v2460_v60  ;;  %v2478_v15 = vsel %vm601_vm3, %v2460_v60, %v11613_v39  ;;  %v15246_v39 = vld [vmem:[#allocation35_spill] sm:$0xff] }
 0x347   :  { %2535 = vmatprep.subr.mxu0 %v2478_v15  ;;  %v2470_v60 = vsel %vm601_vm3, %v15246_v39, %v11633_v11  ;;  %v15248_v15 = vld [vmem:[#allocation54_spill] sm:$0xff]  ;;  %v2713_v11 = vsel %vm774_vm4, %v15255_v8, %v15252_v33 }
 0x348   :  { %10112 = vmatmul.mubr.msk.f32.gmra.mxu1 %vm1889_vm9, %v2168_v57  ;;  %2536 = vmatpush1.msra.mxu0 %v2477_v7  ;;  %v11629_v57 = vunpack.i.h.bf16 %v15243_v49  ;;  %v11643_v7 = vunpack.i.l.bf16 %v15247_v50  ;;  %v15257_v49 = vld [vmem:[#allocation33_spill] sm:$0xff] }
 0x349   :  { %v2702_v31 = vpop.permute.xlu1 %2701  ;;  %2537 = vmatprep.subr.mxu0 %v2476_v44  ;;  %2365 = vmatprep.mubr.f32.mxu1 %v15200_v24  ;;  %v2469_v44 = vsel %vm601_vm3, %v15249_v42, %v15246_v39  ;;  %v15260_v39 = vld [vmem:[#allocation24_spill] sm:$0xff]  ;;  %v2407_v42 = vld [vmem:[#allocation4 + $0xc0] sm:$0xff] }
 0x34a   :  { %v2719_v14 = vsel %vm774_vm4, %v15237_v28, %v2702_v31  ;;  %2538 = vmatpush1.msra.mxu0 %v2475_v26  ;;  %v2720_v56 = vsel %vm774_vm4, %v2702_v31, %v11618_v51  ;;  %v2716_v51 = vsel %vm774_vm4, %v15248_v15, %v11628_v59  ;;  %v15250_v26 = vld [vmem:[#allocation44_spill] sm:$0xff]  ;;  %v2468_v28 = vsel %vm601_vm3, %v15251_v30, %v11634_v32 }
 0x34b   :  { %2539 = vmatprep.subr.mxu0 %v2474_v45  ;;  %2777 = vmatprep.subr.mxu1 %v2720_v56  ;;  %v2715_v31 = vsel %vm774_vm4, %v15250_v26, %v15248_v15  ;;  %v2714_v45 = vsel %vm774_vm4, %v15252_v33, %v11629_v57  ;;  %v2171_v56 = vld [vmem:[#allocation4 + $0xb0] sm:$0xff]  ;;  %v2465_v59 = vsel %vm601_vm3, %v15257_v49, %v15256_v20  ;;  %v15261_v57 = vld [vmem:[#allocation38_spill] sm:$0xff] }
 0x34c   :  { %10113 = vmatmul.mubr.msk.f32.gmra.mxu1 %vm1889_vm9, %v2169_v4  ;;  %2540 = vmatpush1.msra.mxu0 %v2473_v9  ;;  %v14125_v9 = vpop.permute.xlu0 %3409  ;;  %v15263_v26 = vld [vmem:[#allocation30_spill] sm:$0xff] }
 0x34d   :  { %2778 = vmatpush1.msra.mxu1 %v2719_v14  ;;  %v14091_v23 = vpop.permute.xlu1 %3415  ;;  %2541 = vmatprep.subr.mxu0 %v2472_v2  ;;  %v11644_v14 = vunpack.i.h.bf16 %v15247_v50  ;;  %v2467_v2 = vsel %vm601_vm3, %v15254_v55, %v15251_v30  ;;  %v15264_v30 = vld [vmem:[#allocation26_spill] sm:$0xff] }
 0x34e   :  { %2779 = vmatprep.subr.mxu1 %v2718_v43  ;;  %2371 = vmatprep.mubr.f32.mxu1 %v15200_v24  ;;  %v2466_v43 = vsel %vm601_vm3, %v15256_v20, %v11643_v7  ;;  %v15262_v7 = vld [vmem:[#allocation37_spill] sm:$0xff]  ;;  %v2408_v55 = vld [vmem:[#allocation4 + $0xc8] sm:$0xff]  ;;  %v15268_v20 = vld [vmem:[#allocation31_spill] sm:$0xff] }
 0x34f   :  { %2542 = vmatpush1.msra.mxu0 %v2471_v6  ;;  %2780 = vmatpush1.msra.mxu1 %v2717_v54  ;;  %v2712_v54 = vsel %vm774_vm4, %v15258_v27, %v11638_v25  ;;  %v15259_v6 = vld [vmem:[#allocation27_spill] sm:$0xff]  ;;  %v2464_v50 = vsel %vm601_vm3, %v15261_v57, %v11644_v14 }
 0x350   :  { %10114 = vmatmul.mubr.msk.f32.gmra.mxu1 %vm1889_vm9, %v2170_v34  ;;  %2543 = vmatprep.subr.mxu0 %v2470_v60  ;;  %v11639_v34 = vunpack.i.h.bf16 %v15253_v46  ;;  %v11648_v32 = vunpack.i.l.bf16 %v15259_v6  ;;  %v2711_v60 = vsel %vm774_vm4, %v15260_v39, %v15258_v27  ;;  %v14161_v14 = vpop.permute.xlu0 %11706  ;;  %v15266_v46 = vld [vmem:[#allocation34_spill] sm:$0xff] }
 0x351   :  { %2781 = vmatprep.subr.mxu1 %v2716_v51  ;;  %2544 = vmatpush1.msra.mxu0 %v2469_v44  ;;  %v14117_v4 = vpop.permute.xlu1 %3663  ;;  %v2172_v51 = vld [vmem:[#allocation4 + $0xb8] sm:$0xff]  ;;  %v11649_v44 = vunpack.i.h.bf16 %v15259_v6  ;;  %v2650_v27 = vld [vmem:[#allocation4 + $0x108] sm:$0xff] }
 0x352   :  { %2782 = vmatpush1.msra.mxu1 %v2715_v31  ;;  %2545 = vmatprep.subr.mxu0 %v2468_v28  ;;  %v2710_v15 = vsel %vm774_vm4, %v15262_v7, %v11639_v34  ;;  %v2463_v31 = vsel %vm601_vm3, %v15263_v26, %v15261_v57  ;;  %v2709_v28 = vsel %vm774_vm4, %v15264_v30, %v15262_v7  ;;  %v2410_v6 = vld [vmem:[#allocation4 + $0xd8] sm:$0xff]  ;;  %v15270_v7 = vld [vmem:[#allocation67_spill] sm:$0xff]  ;;  %v15271_v26 = vld [vmem:[#allocation25_spill] sm:$0xff] }
 0x353   :  { %2783 = vmatprep.subr.mxu1 %v2714_v45  ;;  %2377 = vmatprep.mubr.f32.mxu1 %v15200_v24  ;;  %v15265_v45 = vld [vmem:[#allocation22_spill] sm:$0xff]  ;;  %v2652_v30 = vld [vmem:[#allocation4 + $0x118] sm:$0xff] }
 0x354   :  { %2546 = vmatpush1.msra.mxu0 %v2467_v2  ;;  %2784 = vmatpush1.msra.mxu1 %v2713_v11  ;;  %v2707_v25 = vsel %vm774_vm4, %v15266_v46, %v15265_v45  ;;  %v15267_v2 = vld [vmem:[#allocation32_spill] sm:$0xff]  ;;  %v2649_v11 = vld [vmem:[#allocation4 + $0x100] sm:$0xff]  ;;  %v14182_v49 = vpop.permute.xlu0 %3655 }
 0x355   :  { %10115 = vmatmul.mubr.msk.f32.gmra.mxu1 %vm1889_vm9, %v2171_v56  ;;  %2547 = vmatprep.subr.mxu0 %v2466_v43  ;;  %v14143_v41 = vpop.permute.xlu1 %3661  ;;  %v2708_v56 = vsel %vm774_vm4, %v15265_v45, %v11648_v32  ;;  %v2706_v8 = vsel %vm774_vm4, %v15267_v2, %v11649_v44  ;;  %v2705_v43 = vsel %vm774_vm4, %v15268_v20, %v15267_v2  ;;  %v15269_v32 = vld [vmem:[#allocation29_spill] sm:$0xff]  ;;  %v15272_v45 = vld [vmem:[#allocation58_spill] sm:$0xff]  ;;  %v15273_v46 = vld [vmem:[#allocation28_spill] sm:$0xff] }
 0x356   :  { %2785 = vmatprep.subr.mxu1 %v2712_v54  ;;  %2548 = vmatpush1.msra.mxu0 %v2465_v59  ;;  %v2409_v59 = vld [vmem:[#allocation4 + $0xd0] sm:$0xff]  ;;  %v11653_v39 = vunpack.i.l.bf16 %v15269_v32  ;;  %v2411_v44 = vld [vmem:[#allocation4 + $0xe0] sm:$0xff] }
 0x357   :  { %2786 = vmatpush1.msra.mxu1 %v2711_v60  ;;  %2549 = vmatprep.subr.mxu0 %v2464_v50  ;;  %v2651_v60 = vld [vmem:[#allocation4 + $0x110] sm:$0xff]  ;;  %v15275_v20 = vld [vmem:[#allocation61_spill] sm:$0xff] }
 0x358   :  { %2787 = vmatprep.subr.mxu1 %v2710_v15  ;;  %2383 = vmatprep.mubr.f32.mxu1 %v15200_v24  ;;  %v14194_v57 = vpop.permute.xlu0 %11711  ;;  %v15274_v2 = vld [vmem:[#allocation59_spill] sm:$0xff] }
 0x359   :  { %2550 = vmatpush1.msra.mxu0 %v2463_v31  ;;  %2788 = vmatpush1.msra.mxu1 %v2709_v28  ;;  %v14163_v33 = vpop.permute.xlu1 %3657  ;;  %v11658_v31 = vunpack.i.l.bf16 %v15271_v26 }
 0x35a   :  { %10116 = vmatmul.mubr.msk.f32.gmra.mxu1 %vm1889_vm9, %v2172_v51  ;;  %10117 = vmatmul.mubr.msk.f32.vlgmr.msra.gmra.mxu0 %vm1889_vm9, %v2407_v42  ;;  %v11654_v42 = vunpack.i.h.bf16 %v15269_v32 }
 0x35b   :  { %2789 = vmatprep.subr.mxu1 %v2708_v56  ;;  %2589 = vmatprep.mubr.f32.mxu0 %v15200_v24 }
 0x35c   :  { %2790 = vmatpush1.msra.mxu1 %v2707_v25  ;;  %2825 = vmatprep.mubr.f32.mxu1 %v15200_v24  ;;  %v2960_v56 = vsel %vm947_vm5, %v15272_v45, %v11654_v42  ;;  %v11663_v25 = vunpack.i.l.bf16 %v15273_v46 }
 0x35d   :  { %2791 = vmatprep.subr.mxu1 %v2706_v8  ;;  %v14179_v34 = vpop.permute.xlu1 %3407  ;;  %v2959_v8 = vsel %vm947_vm5, %v15274_v2, %v15272_v45  ;;  %v15282_v2 = vld [vmem:[#allocation64_spill] sm:$0xff] }
 0x35e   :  { %2792 = vmatpush1.msra.mxu1 %v2705_v43  ;;  %10118 = vmatmul.mubr.msk.f32.gmra.mxu0 %vm1889_vm9, %v2408_v55 }
 0x35f   :  { %10125 = vmatmul.mubr.msk.f32.vlgmr.msra.gmra.mxu1 %vm1889_vm9, %v2649_v11  ;;  %2595 = vmatprep.mubr.f32.mxu0 %v15200_v24  ;;  %v14213_v11 = vpop.permute.xlu0 %3401 }
 0x360   :  { %2831 = vmatprep.mubr.f32.mxu1 %v15200_v24 }
 0x361   :  { %v14187_v54 = vpop.permute.xlu1 %3403 }
 0x362   :  { %10119 = vmatmul.mubr.msk.f32.gmra.mxu0 %vm1889_vm9, %v2409_v59  ;;  %v2412_v59 = vld [vmem:[#allocation4 + $0xe8] sm:$0xff] }
 0x363   :  { %10126 = vmatmul.mubr.msk.f32.gmra.mxu1 %vm1889_vm9, %v2650_v27  ;;  %2601 = vmatprep.mubr.f32.mxu0 %v15200_v24  ;;  %v2653_v27 = vld [vmem:[#allocation4 + $0x120] sm:$0xff] }
 0x364   :  { %2837 = vmatprep.mubr.f32.mxu1 %v15200_v24 }
 0x365   :  { %v2944_v50 = vpop.permute.xlu1 %2943 }
 0x366   :  { %10120 = vmatmul.mubr.msk.f32.gmra.mxu0 %vm1889_vm9, %v2410_v6  ;;  %v2961_v15 = vsel %vm947_vm5, %v15270_v7, %v2944_v50  ;;  %v2962_v51 = vsel %vm947_vm5, %v2944_v50, %v11653_v39  ;;  %v15276_v6 = vld [vmem:[#allocation48_spill] sm:$0xff]  ;;  %v11659_v39 = vunpack.i.h.bf16 %v15271_v26  ;;  %v15277_v7 = vld [vmem:[#allocation53_spill] sm:$0xff] }
 0x367   :  { %10127 = vmatmul.mubr.msk.f32.gmra.mxu1 %vm1889_vm9, %v2651_v60  ;;  %2607 = vmatprep.mubr.f32.mxu0 %v15200_v24  ;;  %v2958_v32 = vsel %vm947_vm5, %v15276_v6, %v11663_v25  ;;  %v11664_v60 = vunpack.i.h.bf16 %v15273_v46  ;;  %v14239_v25 = vpop.permute.xlu0 %3397 }
 0x368   :  { %2843 = vmatprep.mubr.f32.mxu1 %v15200_v24  ;;  %3019 = vmatprep.subr.mxu0 %v2962_v51  ;;  %v15278_v51 = vld [vmem:[#allocation47_spill] sm:$0xff] }
 0x369   :  { %3020 = vmatpush1.msra.mxu0 %v2961_v15  ;;  %v3186_v28 = vpop.permute.xlu1 %3185  ;;  %v2957_v15 = vsel %vm947_vm5, %v15277_v7, %v15276_v6  ;;  %v2956_v42 = vsel %vm947_vm5, %v15278_v51, %v11664_v60  ;;  %v11678_v6 = vunpack.i.l.bf16 %v13841_v62  ;;  %v15285_v7 = vld [vmem:[#allocation65_spill] sm:$0xff] }
 0x36a   :  { %10121 = vmatmul.mubr.msk.f32.gmra.mxu0 %vm1889_vm9, %v2411_v44  ;;  %3021 = vmatprep.subr.mxu0 %v2960_v56  ;;  %v3204_v55 = vsel %vm1120_vm6, %v3186_v28, %v11658_v31  ;;  %v3203_v43 = vsel %vm1120_vm6, %v15275_v20, %v3186_v28  ;;  %v15279_v44 = vld [vmem:[#allocation63_spill] sm:$0xff]  ;;  %v15283_v20 = vld [vmem:[#allocation56_spill] sm:$0xff] }
 0x36b   :  { %10128 = vmatmul.mubr.msk.f32.gmra.mxu1 %vm1889_vm9, %v2652_v30  ;;  %2613 = vmatprep.mubr.f32.mxu0 %v15200_v24  ;;  %v3202_v26 = vsel %vm1120_vm6, %v15279_v44, %v11659_v39  ;;  %v2413_v31 = vld [vmem:[#allocation4 + $0xf0] sm:$0xff]  ;;  %v2654_v30 = vld [vmem:[#allocation4 + $0x128] sm:$0xff] }
 0x36c   :  { %2849 = vmatprep.mubr.f32.mxu1 %v15200_v24  ;;  %3022 = vmatpush1.msra.mxu0 %v2959_v8  ;;  %v15280_v28 = vld [vmem:[#allocation19_spill] sm:$0xff] }
 0x36d   :  { %3023 = vmatprep.subr.mxu0 %v2958_v32  ;;  %3261 = vmatprep.subr.mxu1 %v3204_v55  ;;  %v14224_v50 = vpop.permute.xlu1 %3651  ;;  %v11668_v45 = vunpack.i.l.bf16 %v15280_v28  ;;  %v15281_v56 = vld [vmem:[#allocation43_spill] sm:$0xff]  ;;  %v11669_v8 = vunpack.i.h.bf16 %v15280_v28  ;;  %v11683_v32 = vunpack.i.l.bf16 %v13865_v3 }
 0x36e   :  { %10122 = vmatmul.mubr.msk.f32.gmra.mxu0 %vm1889_vm9, %v2412_v59  ;;  %3262 = vmatpush1.msra.mxu1 %v3203_v43  ;;  %v2955_v46 = vsel %vm947_vm5, %v15281_v56, %v15278_v51  ;;  %v15284_v59 = vld [vmem:[#allocation51_spill] sm:$0xff]  ;;  %v11684_v51 = vunpack.i.h.bf16 %v13865_v3  ;;  %v3196_v3 = vsel %vm1120_vm6, %v13929_v35, %v11678_v6  ;;  %v3189_v56 = vsel %vm1120_vm6, %v13968_v63, %v14037_v61 }
 0x36f   :  { %10129 = vmatmul.mubr.msk.f32.gmra.mxu1 %vm1889_vm9, %v2653_v27  ;;  %3024 = vmatpush1.msra.mxu0 %v2957_v15  ;;  %v3200_v43 = vsel %vm1120_vm6, %v15283_v20, %v11668_v45  ;;  %v3199_v27 = vsel %vm1120_vm6, %v15284_v59, %v15283_v20  ;;  %v3198_v39 = vsel %vm1120_vm6, %v13894_v53, %v11669_v8  ;;  %v2655_v15 = vld [vmem:[#allocation4 + $0x130] sm:$0xff]  ;;  %v15286_v53 = vld [vmem:[#allocation66_spill] sm:$0xff]  ;;  %v2894_v59 = vld [vmem:[#allocation4 + $0x158] sm:$0xff] }
 0x370   :  { %3025 = vmatprep.subr.mxu0 %v2956_v42  ;;  %3263 = vmatprep.subr.mxu1 %v3202_v26  ;;  %v14264_v42 = vpop.permute.xlu0 %11716  ;;  %v2950_v62 = vsel %vm947_vm5, %v13948_v37, %v11683_v32  ;;  %v3195_v44 = vsel %vm1120_vm6, %v15286_v53, %v13929_v35  ;;  %v2948_v26 = vsel %vm947_vm5, %v13920_v21, %v11684_v51  ;;  %v2656_v35 = vld [vmem:[#allocation4 + $0x138] sm:$0xff]  ;;  %v3134_v8 = vld [vmem:[#allocation4 + $0x188] sm:$0xff]  ;;  %v3135_v6 = vld [vmem:[#allocation4 + $0x190] sm:$0xff]  ;;  %v11708_v53 = vunpack.i.l.bf16 %v14161_v14 }
 0x371   :  { %2619 = vmatprep.mubr.f32.mxu0 %v15200_v24  ;;  %2855 = vmatprep.mubr.f32.mxu1 %v15200_v24  ;;  %v14243_v55 = vpop.permute.xlu1 %3649  ;;  %v2895_v51 = vld [vmem:[#allocation4 + $0x160] sm:$0xff] }
 0x372   :  { %3026 = vmatpush1.msra.mxu0 %v2955_v46  ;;  %3264 = vmatpush1.msra.mxu1 %v15282_v2  ;;  %v11694_v2 = vunpack.i.h.bf16 %v13989_v29 }
 0x373   :  { %10123 = vmatmul.mubr.msk.f32.gmra.mxu0 %vm1889_vm9, %v2413_v31  ;;  %10130 = vmatmul.mubr.msk.f32.gmra.mxu1 %vm1889_vm9, %v2654_v30  ;;  %v2947_v31 = vsel %vm947_vm5, %v14022_v40, %v13920_v21  ;;  %v2891_v30 = vld [vmem:[#allocation4 + $0x140] sm:$0xff] }
 0x374   :  { %3027 = vmatprep.subr.mxu0 %v13882_v22  ;;  %3265 = vmatprep.subr.mxu1 %v3200_v43  ;;  %v2414_v22 = vld [vmem:[#allocation4 + $0xf8] sm:$0xff]  ;;  %v11698_v43 = vunpack.i.l.bf16 %v14045_v58  ;;  %v3444_v32 = vsel %vm1293_vm7, %v14020_v52, %v11694_v2 }
 0x375   :  { %3028 = vmatpush1.msra.mxu0 %v13877_v12  ;;  %3266 = vmatpush1.msra.mxu1 %v3199_v27  ;;  %v14260_v60 = vpop.permute.xlu1 %3645 }
 0x376   :  { %3029 = vmatprep.subr.mxu0 %v15285_v7  ;;  %3267 = vmatprep.subr.mxu1 %v3198_v39  ;;  %v11699_v39 = vunpack.i.h.bf16 %v14045_v58  ;;  %v11704_v58 = vunpack.i.h.bf16 %v14064_v10 }
 0x377   :  { %2625 = vmatprep.mubr.f32.mxu0 %v15200_v24  ;;  %2861 = vmatprep.mubr.f32.mxu1 %v15200_v24 }
 0x378   :  { %3030 = vmatpush1.msra.mxu0 %v13942_v19  ;;  %3268 = vmatpush1.msra.mxu1 %v13916_v47  ;;  %v2949_v47 = vsel %vm947_vm5, %v13892_v16, %v13948_v37  ;;  %v11688_v19 = vunpack.i.l.bf16 %v13938_v48  ;;  %v11689_v16 = vunpack.i.h.bf16 %v13938_v48  ;;  %v14292_v37 = vpop.permute.xlu0 %3643  ;;  %v3191_v48 = vsel %vm1120_vm6, %v13951_v17, %v14001_v1 }
 0x379   :  { %10124 = vmatmul.mubr.msk.f32.gmra.mxu0 %vm1889_vm9, %v2414_v22  ;;  %10131 = vmatmul.mubr.msk.f32.gmra.mxu1 %vm1889_vm9, %v2655_v15  ;;  %v14276_v12 = vpop.permute.xlu1 %3395  ;;  %v11693_v17 = vunpack.i.l.bf16 %v13989_v29  ;;  %v11703_v29 = vunpack.i.l.bf16 %v14064_v10  ;;  %v3443_v15 = vsel %vm1293_vm7, %v14054_v38, %v14020_v52  ;;  %v3686_v52 = vsel %vm1466_vm8, %v14117_v4, %v11699_v39  ;;  %v3378_v39 = vld [vmem:[#allocation4 + $0x1d8] sm:$0xff] }
 0x37a   :  { %3031 = vmatprep.subr.mxu0 %v2950_v62  ;;  %3269 = vmatprep.subr.mxu1 %v3196_v3  ;;  %v3192_v21 = vsel %vm1120_vm6, %v14001_v1, %v11688_v19  ;;  %v3190_v40 = vsel %vm1120_vm6, %v14037_v61, %v11689_v16  ;;  %v2893_v1 = vld [vmem:[#allocation4 + $0x150] sm:$0xff]  ;;  %v3136_v62 = vld [vmem:[#allocation4 + $0x198] sm:$0xff]  ;;  %v3441_v10 = vsel %vm1293_vm7, %v14089_v13, %v14091_v23  ;;  %v11709_v13 = vunpack.i.h.bf16 %v14161_v14 }
 0x37b   :  { %3032 = vmatpush1.msra.mxu0 %v2949_v47  ;;  %3270 = vmatpush1.msra.mxu1 %v3195_v44  ;;  %v3442_v3 = vsel %vm1293_vm7, %v14091_v23, %v11703_v29  ;;  %v2896_v44 = vld [vmem:[#allocation4 + $0x168] sm:$0xff]  ;;  %v11713_v47 = vunpack.i.l.bf16 %v14194_v57  ;;  %v3685_v19 = vsel %vm1466_vm8, %v14143_v41, %v14117_v4  ;;  %v3684_v23 = vsel %vm1466_vm8, %v14163_v33, %v11708_v53  ;;  %v2897_v14 = vld [vmem:[#allocation4 + $0x170] sm:$0xff] }
 0x37c   :  { %3033 = vmatprep.subr.mxu0 %v2948_v26  ;;  %3271 = vmatprep.subr.mxu1 %v13958_v0  ;;  %v2892_v0 = vld [vmem:[#allocation4 + $0x148] sm:$0xff]  ;;  %v14315_v46 = vpop.permute.xlu0 %11721  ;;  %v3137_v26 = vld [vmem:[#allocation4 + $0x1a0] sm:$0xff]  ;;  %v11714_v4 = vunpack.i.h.bf16 %v14194_v57  ;;  %v3439_v41 = vsel %vm1293_vm7, %v14179_v34, %v14125_v9  ;;  %v3623_v53 = vld [vmem:[#allocation4 + $0x230] sm:$0xff] }
 0x37d   :  { %2867 = vmatprep.mubr.f32.mxu1 %v15200_v24  ;;  %3034 = vmatpush1.msra.mxu0 %v2947_v31  ;;  %v14295_v28 = vpop.permute.xlu1 %3391  ;;  %v3440_v31 = vsel %vm1293_vm7, %v14125_v9, %v11704_v58  ;;  %v3438_v57 = vsel %vm1293_vm7, %v14187_v54, %v11713_v47  ;;  %v3682_v9 = vsel %vm1466_vm8, %v14224_v50, %v11709_v13  ;;  %v11723_v34 = vunpack.i.l.bf16 %v14315_v46  ;;  %v3621_v58 = vld [vmem:[#allocation4 + $0x220] sm:$0xff]  ;;  %v11731_v47 = vld [vmem:[#allocation7 + $0x38] sm:$0xff]  }
 0x37e   :  { %3067 = vmatprep.mubr.f32.mxu0 %v15200_v24  ;;  %3272 = vmatpush1.msra.mxu1 %v13986_v36  ;;  %v3133_v36 = vld [vmem:[#allocation4 + $0x180] sm:$0xff] }
 0x37f   :  { %10132 = vmatmul.mubr.msk.f32.gmra.mxu1 %vm1889_vm9, %v2656_v35  ;;  %10133 = vmatmul.mubr.msk.f32.vlgmr.msra.gmra.mxu0 %vm1889_vm9, %v2891_v30  ;;  %v3683_v30 = vsel %vm1466_vm8, %v14182_v49, %v14163_v33  ;;  %v11718_v33 = vunpack.i.l.bf16 %v14264_v42  ;;  %v3436_v49 = vsel %vm1293_vm7, %v14239_v25, %v11714_v4  ;;  %v11735_v4 = vld [vmem:[#allocation7 + $0x30] sm:$0xff]  }
 0x380   :  { %3273 = vmatprep.subr.mxu1 %v3192_v21  ;;  %3309 = vmatprep.mubr.f32.mxu1 %v15200_v24  ;;  %v14331_v27 = vpop.permute.xlu0 %3389  ;;  %v3138_v21 = vld [vmem:[#allocation4 + $0x1a8] sm:$0xff] }
 0x381   :  { %3274 = vmatpush1.msra.mxu1 %v3191_v48  ;;  %3073 = vmatprep.mubr.f32.mxu0 %v15200_v24  ;;  %v14310_v45 = vpop.permute.xlu1 %3639  ;;  %v3437_v48 = vsel %vm1293_vm7, %v14213_v11, %v14187_v54  ;;  %v3139_v54 = vld [vmem:[#allocation4 + $0x1b0] sm:$0xff]  ;;  %v11719_v11 = vunpack.i.h.bf16 %v14264_v42  ;;  %v3679_v42 = vsel %vm1466_vm8, %v14292_v37, %v14260_v60  ;;  %v3375_v37 = vld [vmem:[#allocation4 + $0x1c0] sm:$0xff] }
 0x382   :  { %3275 = vmatprep.subr.mxu1 %v3190_v40 }
 0x383   :  { %3276 = vmatpush1.msra.mxu1 %v3189_v56  ;;  %10134 = vmatmul.mubr.msk.f32.gmra.mxu0 %vm1889_vm9, %v2892_v0  ;;  %v2898_v0 = vld [vmem:[#allocation4 + $0x178] sm:$0xff]  ;;  %v3435_v56 = vsel %vm1293_vm7, %v14276_v12, %v14239_v25  ;;  %v3434_v25 = vsel %vm1293_vm7, %v14295_v28, %v11723_v34  ;;  %v3433_v12 = vsel %vm1293_vm7, %v14331_v27, %v14295_v28  ;;  %v3376_v27 = vld [vmem:[#allocation4 + $0x1c8] sm:$0xff] }
 0x384   :  { %10141 = vmatmul.mubr.msk.f32.vlgmr.msra.gmra.mxu1 %vm1889_vm9, %v3133_v36  ;;  %3079 = vmatprep.mubr.f32.mxu0 %v15200_v24  ;;  %v14355_v38 = vpop.permute.xlu0 %3385  ;;  %v11724_v36 = vunpack.i.h.bf16 %v14315_v46  ;;  %v3678_v28 = vsel %vm1466_vm8, %v14310_v45, %v11719_v11  ;;  %v11745_v11 = vld [vmem:[#allocation7 + $0xa0] sm:$0xff]  }
 0x385   :  { %3315 = vmatprep.mubr.f32.mxu1 %v15200_v24  ;;  %v3428_v20 = vpop.permute.xlu1 %3427 }
 0x386   :  { %v3445_v63 = vsel %vm1293_vm7, %v14048_v5, %v3428_v20  ;;  %v3446_v61 = vsel %vm1293_vm7, %v3428_v20, %v11693_v17  ;;  %v3681_v17 = vsel %vm1466_vm8, %v14243_v55, %v14224_v50  ;;  %v3680_v50 = vsel %vm1466_vm8, %v14260_v60, %v11718_v33  ;;  %v11741_v33 = vld [vmem:[#allocation7 + $0xa8] sm:$0xff]  }
 0x387   :  { %10135 = vmatmul.mubr.msk.f32.gmra.mxu0 %vm1889_vm9, %v2893_v1  ;;  %3503 = vmatprep.subr.mxu0 %v3446_v61  ;;  %v3432_v2 = vsel %vm1293_vm7, %v14355_v38, %v11724_v36  ;;  %v11743_v36 = vld [vmem:[#allocation7 + $0x20] sm:$0xff]  }
 0x388   :  { %10142 = vmatmul.mubr.msk.f32.gmra.mxu1 %vm1889_vm9, %v3134_v8  ;;  %3085 = vmatprep.mubr.f32.mxu0 %v15200_v24  ;;  %v11727_v16 = vpop.permute.xlu0 %11726  ;;  %v3140_v8 = vld [vmem:[#allocation4 + $0x1b8] sm:$0xff] }
 0x389   :  { %3321 = vmatprep.mubr.f32.mxu1 %v15200_v24  ;;  %3504 = vmatpush1.msra.mxu0 %v3445_v63  ;;  %v3670_v5 = vpop.permute.xlu1 %3669  ;;  %v11728_v55 = vunpack.i.l.bf16 %v11727_v16  ;;  %v11729_v63 = vunpack.i.h.bf16 %v11727_v16 }
 0x38a   :  { %3505 = vmatprep.subr.mxu0 %v3444_v32  ;;  %v3688_v7 = vsel %vm1466_vm8, %v3670_v5, %v11698_v43  ;;  %v3687_v22 = vsel %vm1466_vm8, %v14052_v18, %v3670_v5  ;;  %v3377_v5 = vld [vmem:[#allocation4 + $0x1d0] sm:$0xff]  ;;  %v3618_v32 = vld [vmem:[#allocation4 + $0x208] sm:$0xff] }
 0x38b   :  { %10136 = vmatmul.mubr.msk.f32.gmra.mxu0 %vm1889_vm9, %v2894_v59  ;;  %3745 = vmatprep.subr.mxu1 %v3688_v7  ;;  %v3619_v7 = vld [vmem:[#allocation4 + $0x210] sm:$0xff] }
 0x38c   :  { %10143 = vmatmul.mubr.msk.f32.gmra.mxu1 %vm1889_vm9, %v3135_v6  ;;  %3091 = vmatprep.mubr.f32.mxu0 %v15200_v24  ;;  %v3632_v1 = vpop.permute.xlu0 %3631  ;;  %v3617_v6 = vld [vmem:[#allocation4 + $0x200] sm:$0xff] }
 0x38d   :  { %3327 = vmatprep.mubr.f32.mxu1 %v15200_v24  ;;  %3506 = vmatpush1.msra.mxu0 %v3443_v15  ;;  %v14350_v18 = vpop.permute.xlu1 %3637  ;;  %v3620_v15 = vld [vmem:[#allocation4 + $0x218] sm:$0xff] }
 0x38e   :  { %3507 = vmatprep.subr.mxu0 %v3442_v3  ;;  %3746 = vmatpush1.msra.mxu1 %v3687_v22  ;;  %v3677_v60 = vsel %vm1466_vm8, %v14350_v18, %v14310_v45  ;;  %v3379_v22 = vld [vmem:[#allocation4 + $0x1e0] sm:$0xff]  ;;  %v3622_v3 = vld [vmem:[#allocation4 + $0x228] sm:$0xff]  ;;  %v3382_v18 = vld [vmem:[#allocation4 + $0x1f8] sm:$0xff] }
 0x38f   :  { %10137 = vmatmul.mubr.msk.f32.gmra.mxu0 %vm1889_vm9, %v2895_v51  ;;  %3747 = vmatprep.subr.mxu1 %v3686_v52  ;;  %v3380_v51 = vld [vmem:[#allocation4 + $0x1e8] sm:$0xff]  ;;  %v3624_v52 = vld [vmem:[#allocation4 + $0x238] sm:$0xff] }
 0x390   :  { %10144 = vmatmul.mubr.msk.f32.gmra.mxu1 %vm1889_vm9, %v3136_v62  ;;  %3097 = vmatprep.mubr.f32.mxu0 %v15200_v24  ;;  %v3626_v61 = vpop.permute.xlu0 %3625  ;;  %v3381_v62 = vld [vmem:[#allocation4 + $0x1f0] sm:$0xff] }
 0x391   :  { %3333 = vmatprep.mubr.f32.mxu1 %v15200_v24  ;;  %3508 = vmatpush1.msra.mxu0 %v3441_v10  ;;  %v14373_v35 = vpop.permute.xlu1 %3633  ;;  %v11730_v10 = vld [vmem:[#allocation7 + $0x78] sm:$0xff]  }
 0x392   :  { %3509 = vmatprep.subr.mxu0 %v3440_v31  ;;  %3748 = vmatpush1.msra.mxu1 %v3685_v19  ;;  %v3676_v43 = vsel %vm1466_vm8, %v14373_v35, %v11728_v55  ;;  %v3675_v29 = vsel %vm1466_vm8, %v3632_v1, %v14373_v35  ;;  %v11733_v31 = vld [vmem:[#allocation7 + $0xb8] sm:$0xff]  }
 0x393   :  { %10138 = vmatmul.mubr.msk.f32.gmra.mxu0 %vm1889_vm9, %v2896_v44  ;;  %3749 = vmatprep.subr.mxu1 %v3684_v23  ;;  %v14472_v44 = vpop.f32.mrf.mxu0  ;;  %v11734_v23 = vld [vmem:[#allocation7 + $0x70] sm:$0xff]   ;;  %v11746_v1 = vld [vmem:[#allocation7 + $0x58] sm:$0xff]  }
 0x394   :  { %10145 = vmatmul.mubr.msk.f32.gmra.mxu1 %vm1889_vm9, %v3137_v26  ;;  %3103 = vmatprep.mubr.f32.mxu0 %v15200_v24  ;;  %v11732_v26 = vld [vmem:[#allocation7 + $0xf8] sm:$0xff]  }
 0x395   :  { %3339 = vmatprep.mubr.f32.mxu1 %v15200_v24  ;;  %3510 = vmatpush1.msra.mxu0 %v3439_v41  ;;  %v3384_v40 = vpop.permute.xlu1 %3383  ;;  %v14478_v35 = vpop.f32.mrf.mxu0  ;;  %v11748_v55 = vld [vmem:[#allocation7 + $0xd8] sm:$0xff]  }
 0x396   :  { %3511 = vmatprep.subr.mxu0 %v3438_v57  ;;  %3750 = vmatpush1.msra.mxu1 %v3683_v30  ;;  %v3431_v46 = vsel %vm1293_vm7, %v3384_v40, %v14355_v38  ;;  %v11737_v30 = vld [vmem:[#allocation7 + $0xb0] sm:$0xff]  }
 0x397   :  { %10139 = vmatmul.mubr.msk.f32.gmra.mxu0 %vm1889_vm9, %v2897_v14  ;;  %3751 = vmatprep.subr.mxu1 %v3682_v9  ;;  %v11736_v14 = vld [vmem:[#allocation7 + $0xf0] sm:$0xff]   ;;  %v14484_v57 = vpop.f32.mrf.mxu0  ;;  %v11739_v9 = vld [vmem:[#allocation7 + $0x28] sm:$0xff]  }
 0x398   :  { %10146 = vmatmul.mubr.msk.f32.gmra.mxu1 %vm1889_vm9, %v3138_v21  ;;  %3512 = vmatpush1.msra.mxu0 %v3437_v48  ;;  %v11738_v21 = vld [vmem:[#allocation7 + $0x68] sm:$0xff]  }
 0x399   :  { %3513 = vmatprep.subr.mxu0 %v3436_v49  ;;  %3109 = vmatprep.mubr.f32.mxu0 %v15200_v24  ;;  %v3628_v20 = vpop.permute.xlu1 %3627  ;;  %v11740_v48 = vld [vmem:[#allocation7 + $0xe8] sm:$0xff]   ;;  %v14490_v40 = vpop.f32.mrf.mxu0 }
 0x39a   :  { %3345 = vmatprep.mubr.f32.mxu1 %v15200_v24  ;;  %3514 = vmatpush1.msra.mxu0 %v3435_v56  ;;  %v3674_v59 = vsel %vm1466_vm8, %v3628_v20, %v11729_v63  ;;  %v3673_v45 = vsel %vm1466_vm8, %v3626_v61, %v3628_v20  ;;  %v11752_v20 = vld [vmem:[#allocation7 + $0xd0] sm:$0xff]  }
 0x39b   :  { %3752 = vmatpush1.msra.mxu1 %v3681_v17  ;;  %10140 = vmatmul.mubr.msk.f32.gmra.mxu0 %vm1889_vm9, %v2898_v0  ;;  %v11742_v0 = vld [vmem:[#allocation7 + $0x60] sm:$0xff]  }
 0x39c   :  { %10147 = vmatmul.mubr.msk.f32.gmra.mxu1 %vm1889_vm9, %v3139_v54  ;;  %3515 = vmatprep.subr.mxu0 %v3434_v25  ;;  %v11744_v54 = vld [vmem:[#allocation7 + $0xe0] sm:$0xff]   ;;  %v2129_v25 = vpop.f32.mrf.mxu0 }
 0x39d   :  { %3753 = vmatprep.subr.mxu1 %v3680_v50  ;;  %3516 = vmatpush1.msra.mxu0 %v3433_v12  ;;  %v11747_v12 = vld [vmem:[#allocation7 + $0x18] sm:$0xff]  }
 0x39e   :  { %3754 = vmatpush1.msra.mxu1 %v3679_v42  ;;  %3517 = vmatprep.subr.mxu0 %v3432_v2  ;;  %v11749_v42 = vld [vmem:[#allocation7 + $0x98] sm:$0xff]  }
 0x39f   :  { %3755 = vmatprep.subr.mxu1 %v3678_v28  ;;  %3351 = vmatprep.mubr.f32.mxu1 %v15200_v24  ;;  %v2131_v28 = vpop.f32.mrf.mxu0 }
 0x3a0   :  { %3756 = vmatpush1.msra.mxu1 %v3677_v60  ;;  %3518 = vmatpush1.msra.mxu0 %v3431_v46  ;;  %v11750_v46 = vld [vmem:[#allocation7 + $0x50] sm:$0xff]  }
 0x3a1   :  { %10148 = vmatmul.mubr.msk.f32.gmra.mxu1 %vm1889_vm9, %v3140_v8  ;;  %3551 = vmatprep.mubr.f32.mxu0 %v15200_v24  ;;  %v11751_v8 = vld [vmem:[#allocation7 + $0x10] sm:$0xff]  }
 0x3a2   :  { %3757 = vmatprep.subr.mxu1 %v3676_v43  ;;  %10149 = vmatmul.mubr.msk.f32.vlgmr.msra.gmra.mxu0 %vm1889_vm9, %v3375_v37  ;;  %v11753_v60 = vld [vmem:[#allocation7 + $0x90] sm:$0xff]   ;;  %v11754_v37 = vld [vmem:[#allocation7 + $0x48] sm:$0xff]   ;;  %v2135_v43 = vpop.f32.mrf.mxu0 }
 0x3a3   :  { %3758 = vmatpush1.msra.mxu1 %v3675_v29  ;;  %3557 = vmatprep.mubr.f32.mxu0 %v15200_v24  ;;  %v11756_v29 = vld [vmem:[#allocation7 + $0xc8] sm:$0xff]  }
 0x3a4   :  { %3759 = vmatprep.subr.mxu1 %v3674_v59  ;;  %3793 = vmatprep.mubr.f32.mxu1 %v15200_v24  ;;  %v11755_v59 = vld [vmem:[#allocation7 + $0x8] sm:$0xff]  }
 0x3a5   :  { %3760 = vmatpush1.msra.mxu1 %v3673_v45  ;;  %10761 = vmatprep.subr.bf16.mxu0 %v11732_v26 }
 0x3a6   :  { %10150 = vmatmul.mubr.msk.f32.gmra.mxu0 %vm1889_vm9, %v3376_v27  ;;  %10157 = vmatmul.mubr.msk.f32.vlgmr.msra.gmra.mxu1 %vm1889_vm9, %v3617_v6  ;;  %v11757_v27 = vld [vmem:[#allocation7 + $0x88] sm:$0xff]   ;;  %v11758_v6 = vld [vmem:[#allocation7 + $0x40] sm:$0xff]  }
 0x3a7   :  { %3563 = vmatprep.mubr.f32.mxu0 %v15200_v24  ;;  %3799 = vmatprep.mubr.f32.mxu1 %v15200_v24 }
 0x3a8   :  { %10783 = vmatprep.subr.bf16.mxu1 %v11730_v10  ;;  %10762 = vmatpush3.bf16.msra.mxu0 %v11733_v31 }
 0x3a9   :  { %10784 = vmatpush3.bf16.msra.mxu1 %v11731_v47  ;;  %10763 = vmatprep.subr.bf16.mxu0 %v11736_v14 }
 0x3aa   :  { %10151 = vmatmul.mubr.msk.f32.gmra.mxu0 %vm1889_vm9, %v3377_v5  ;;  %10158 = vmatmul.mubr.msk.f32.gmra.mxu1 %vm1889_vm9, %v3618_v32  ;;  %v14502_v32 = vpop.f32.mrf.mxu0 }
 0x3ab   :  { %3569 = vmatprep.mubr.f32.mxu0 %v15200_v24  ;;  %3805 = vmatprep.mubr.f32.mxu1 %v15200_v24 }
 0x3ac   :  { %10785 = vmatprep.subr.bf16.mxu1 %v11734_v23  ;;  %10764 = vmatpush3.bf16.msra.mxu0 %v11737_v30 }
 0x3ad   :  { %10786 = vmatpush3.bf16.msra.mxu1 %v11735_v4  ;;  %10765 = vmatprep.subr.bf16.mxu0 %v11740_v48 }
 0x3ae   :  { %10152 = vmatmul.mubr.msk.f32.gmra.mxu0 %vm1889_vm9, %v3378_v39  ;;  %10159 = vmatmul.mubr.msk.f32.gmra.mxu1 %vm1889_vm9, %v3619_v7  ;;  %v11759_v39 = vld [vmem:[#allocation7] sm:$0xff]  }
 0x3af   :  { %3575 = vmatprep.mubr.f32.mxu0 %v15200_v24  ;;  %3811 = vmatprep.mubr.f32.mxu1 %v15200_v24  ;;  %v11760_v7 = vld [vmem:[#allocation7 + $0xc0] sm:$0xff]  }
 0x3b0   :  { %10787 = vmatprep.subr.bf16.mxu1 %v11738_v21  ;;  %10766 = vmatpush3.bf16.msra.mxu0 %v11741_v33 }
 0x3b1   :  { %10788 = vmatpush3.bf16.msra.mxu1 %v11739_v9  ;;  %10767 = vmatprep.subr.bf16.mxu0 %v11744_v54 }
 0x3b2   :  { %10153 = vmatmul.mubr.msk.f32.gmra.mxu0 %vm1889_vm9, %v3379_v22  ;;  %10160 = vmatmul.mubr.msk.f32.gmra.mxu1 %vm1889_vm9, %v3620_v15  ;;  %v11761_v15 = vld [vmem:[#allocation7 + $0x80] sm:$0xff]  }
 0x3b3   :  { %3581 = vmatprep.mubr.f32.mxu0 %v15200_v24  ;;  %3817 = vmatprep.mubr.f32.mxu1 %v15200_v24 }
 0x3b4   :  { %10789 = vmatprep.subr.bf16.mxu1 %v11742_v0  ;;  %10768 = vmatpush3.bf16.msra.mxu0 %v11745_v11 }
 0x3b5   :  { %10790 = vmatpush3.bf16.msra.mxu1 %v11743_v36  ;;  %10769 = vmatprep.subr.bf16.mxu0 %v11748_v55 }
 0x3b6   :  { %10154 = vmatmul.mubr.msk.f32.gmra.mxu0 %vm1889_vm9, %v3380_v51  ;;  %10161 = vmatmul.mubr.msk.f32.gmra.mxu1 %vm1889_vm9, %v3621_v58  ;;  %v11764_v58 = vld [vmem:[#allocation7 + $0x1f8] sm:$0xff]  }
 0x3b7   :  { %3587 = vmatprep.mubr.f32.mxu0 %v15200_v24  ;;  %3823 = vmatprep.mubr.f32.mxu1 %v15200_v24 }
 0x3b8   :  { %10791 = vmatprep.subr.bf16.mxu1 %v11746_v1  ;;  %10770 = vmatpush3.bf16.msra.mxu0 %v11749_v42 }
 0x3b9   :  { %10792 = vmatpush3.bf16.msra.mxu1 %v11747_v12  ;;  %10771 = vmatprep.subr.bf16.mxu0 %v11752_v20 }
 0x3ba   :  { %10155 = vmatmul.mubr.msk.f32.gmra.mxu0 %vm1889_vm9, %v3381_v62  ;;  %10162 = vmatmul.mubr.msk.f32.gmra.mxu1 %vm1889_vm9, %v3622_v3  ;;  %v2141_v62 = vpop.f32.mrf.mxu0 }
 0x3bb   :  { %3593 = vmatprep.mubr.f32.mxu0 %v15200_v24  ;;  %3829 = vmatprep.mubr.f32.mxu1 %v15200_v24 }
 0x3bc   :  { %10793 = vmatprep.subr.bf16.mxu1 %v11750_v46  ;;  %10772 = vmatpush3.bf16.msra.mxu0 %v11753_v60 }
 0x3bd   :  { %10794 = vmatpush3.bf16.msra.mxu1 %v11751_v8  ;;  %10773 = vmatprep.subr.bf16.mxu0 %v11756_v29 }
 0x3be   :  { %10156 = vmatmul.mubr.msk.f32.gmra.mxu0 %vm1889_vm9, %v3382_v18  ;;  %10163 = vmatmul.mubr.msk.f32.gmra.mxu1 %vm1889_vm9, %v3623_v53 }
 0x3bf   :  { %3835 = vmatprep.mubr.f32.mxu1 %v15200_v24  ;;  %10795 = vmatprep.subr.bf16.mxu1 %v11754_v37 }
 0x3c0   :  { %10774 = vmatpush3.bf16.msra.mxu0 %v11757_v27 }
 0x3c1   :  { %10796 = vmatpush3.bf16.msra.mxu1 %v11755_v59  ;;  %10775 = vmatprep.subr.bf16.mxu0 %v11760_v7 }
 0x3c2   :  { %10164 = vmatmul.mubr.msk.f32.gmra.mxu1 %vm1889_vm9, %v3624_v52  ;;  %10797 = vmatprep.subr.bf16.mxu1 %v11758_v6  ;;  %v11768_v52 = vld [vmem:[#allocation7 + $0x178] sm:$0xff]  }
 0x3c4   :  { %10776 = vmatpush3.bf16.msra.mxu0 %v11761_v15 }
 0x3c5   :  { %10798 = vmatpush3.bf16.msra.mxu1 %v11759_v39  ;;  %10805 = vmatprep.subr.bf16.mxu0 %v11768_v52 }
 0x3c6   :  { %10827 = vmatprep.subr.bf16.mxu1 %v11764_v58 }
 0x3db   :  { %v14470_v38 = vpop.f32.mrf.mxu1 }
 0x3dc   :  { %v2118_v51 = vadd.f32 %v14472_v44, %v14470_v38  ;;  %v2143_v38 = vpop.f32.mrf.mxu0 }
 0x3dd   :  { %v14474_v19 = vpop.f32.mrf.mxu1 }
 0x3de   :  { %v2120_v18 = vadd.f32 %v14478_v35, %v14474_v19  ;;  %v2147_v19 = vpop.f32.mrf.mxu0 }
 0x3df   :  { %v14476_v13 = vpop.f32.mrf.mxu1 }
 0x3e0   :  { %v2124_v47 = vadd.f32 %v14484_v57, %v14476_v13  ;;  %v14527_v9 = vpop.f32.mrf.mxu0 }
 0x3e1   :  { %v14480_v41 = vpop.f32.mrf.mxu1 }
 0x3e2   :  { %v2153_v36 = vpop.f32.mrf.mxu0 }
 0x3e3   :  { %v14482_v16 = vpop.f32.mrf.mxu1 }
 0x3e4   :  { %v2130_v4 = vadd.f32 %v2129_v25, %v14482_v16  ;;  %v2155_v12 = vpop.f32.mrf.mxu0 }
 0x3e5   :  { %v14486_v34 = vpop.f32.mrf.mxu1 }
 0x3e6   :  { %v2132_v14 = vadd.f32 %v2131_v28, %v14486_v34  ;;  %v2159_v8 = vpop.f32.mrf.mxu0 }
 0x3e7   :  { %v14488_v49 = vpop.f32.mrf.mxu1 }
 0x3e8   :  { %v2136_v13 = vadd.f32 %v2135_v43, %v14488_v49  ;;  %v14546_v37 = vpop.f32.mrf.mxu0 }
 0x3e9   :  { %v14492_v56 = vpop.f32.mrf.mxu1 }
 0x3eb   :  { %v14494_v17 = vpop.f32.mrf.mxu1 }
 0x3ec   :  { %v2142_v16 = vadd.f32 %v2141_v62, %v14494_v17 }
 0x3ed   :  { %v14496_v50 = vpop.f32.mrf.mxu1 }
 0x3ee   :  { %v2144_v34 = vadd.f32 %v2143_v38, %v14496_v50 }
 0x3f0   :  { %v14498_v2 = vpop.f32.mrf.mxu1 }
 0x3f1   :  { %v2148_v49 = vadd.f32 %v2147_v19, %v14498_v2 }
 0x3f2   :  { %v14500_v63 = vpop.f32.mrf.mxu1 }
 0x3f4   :  { %v2016_v61 = vpop.f32.mrf.mxu1 }
 0x3f5   :  { %v2154_v28 = vadd.f32 %v2153_v36, %v2016_v61 }
 0x3f6   :  { %v2018_v45 = vpop.f32.mrf.mxu1 }
 0x3f7   :  { %v2156_v20 = vadd.f32 %v2155_v12, %v2018_v45 }
 0x3f8   :  { %v2022_v5 = vpop.f32.mrf.mxu1 }
 0x3f9   :  { %v2160_v2 = vadd.f32 %v2159_v8, %v2022_v5 }
 0x3fa   :  { %v14504_v22 = vpop.f32.mrf.mxu1 }
 0x3fc   :  { %v2343_v3 = vpop.f32.mrf.mxu1 }
 0x3fd   :  { %v14510_v53 = vadd.f32 %v2343_v3, %v2118_v51 }
 0x3fe   :  { %v2345_v10 = vpop.f32.mrf.mxu1 }
 0x3ff   :  { %v14514_v26 = vadd.f32 %v2345_v10, %v2120_v18 }
 0x400   :  { %v2349_v44 = vpop.f32.mrf.mxu1 }
 0x401   :  { %v14516_v31 = vadd.f32 %v2349_v44, %v2124_v47 }
 0x402   :  { %v14518_v23 = vpop.f32.mrf.mxu1 }
 0x404   :  { %v2355_v35 = vpop.f32.mrf.mxu1 }
 0x405   :  { %v14522_v30 = vadd.f32 %v2355_v35, %v2130_v4 }
 0x406   :  { %v2357_v21 = vpop.f32.mrf.mxu1 }
 0x407   :  { %v14525_v57 = vadd.f32 %v2357_v21, %v2132_v14 }
 0x408   :  { %v2361_v48 = vpop.f32.mrf.mxu1 }
 0x409   :  { %v14529_v33 = vadd.f32 %v2361_v48, %v2136_v13 }
 0x40a   :  { %v14531_v0 = vpop.f32.mrf.mxu1 }
 0x40c   :  { %v2367_v54 = vpop.f32.mrf.mxu1 }
 0x40d   :  { %v14535_v11 = vadd.f32 %v2367_v54, %v2142_v16 }
 0x40e   :  { %v2369_v1 = vpop.f32.mrf.mxu1 }
 0x40f   :  { %v14538_v25 = vadd.f32 %v2369_v1, %v2144_v34 }
 0x410   :  { %v2373_v55 = vpop.f32.mrf.mxu1 }
 0x411   :  { %v14540_v42 = vadd.f32 %v2373_v55, %v2148_v49 }
 0x412   :  { %v14542_v46 = vpop.f32.mrf.mxu1 }
 0x415   :  { %v2379_v17 = vpop.f32.mrf.mxu1 }
 0x416   :  { %v14544_v60 = vadd.f32 %v2379_v17, %v2154_v28 }
 0x417   :  { %v2381_v50 = vpop.f32.mrf.mxu1 }
 0x418   :  { %v14548_v43 = vadd.f32 %v2381_v50, %v2156_v20 }
 0x41a   :  { %15287 = vst [vmem:[#allocation60_spill] sm:$0xff] %v14548_v43  ;;  %v2385_v59 = vpop.f32.mrf.mxu1  ;;  %v14550_v29 = vpop.f32.mrf.mxu0 }
 0x41b   :  { %v14552_v27 = vadd.f32 %v2385_v59, %v2160_v2 }
 0x41c   :  { %v14554_v6 = vpop.f32.mrf.mxu1  ;;  %v14556_v39 = vpop.f32.mrf.mxu0 }
 0x41d   :  { %15288 = vst [vmem:[#allocation55_spill] sm:$0xff] %v14552_v27 }
 0x41e   :  { %v14558_v61 = vpop.f32.mrf.mxu0 }
 0x41f   :  { %v14560_v45 = vpop.f32.mrf.mxu1 }
 0x420   :  { %v14562_v7 = vpop.f32.mrf.mxu0 }
 0x421   :  { %v14564_v15 = vpop.f32.mrf.mxu1 }
 0x422   :  { %v14566_v51 = vpop.f32.mrf.mxu0 }
 0x423   :  { %v14568_v5 = vpop.f32.mrf.mxu1 }
 0x424   :  { %v14570_v58 = vpop.f32.mrf.mxu0 }
 0x425   :  { %v14572_v62 = vpop.f32.mrf.mxu1 }
 0x426   :  { %v14574_v3 = vpop.f32.mrf.mxu0 }
 0x427   :  { %v14576_v18 = vpop.f32.mrf.mxu1 }
 0x428   :  { %v14578_v52 = vpop.f32.mrf.mxu0 }
 0x429   :  { %v14580_v10 = vpop.f32.mrf.mxu1 }
 0x42a   :  { %v14582_v47 = vpop.f32.mrf.mxu0 }
 0x42b   :  { %v14584_v38 = vpop.f32.mrf.mxu1 }
 0x42c   :  { %v14586_v44 = vpop.f32.mrf.mxu0 }
 0x42d   :  { %v14588_v4 = vpop.f32.mrf.mxu1 }
 0x42e   :  { %v14590_v19 = vpop.f32.mrf.mxu0 }
 0x42f   :  { %v14592_v35 = vpop.f32.mrf.mxu1 }
 0x430   :  { %v14594_v14 = vpop.f32.mrf.mxu0 }
 0x431   :  { %v14596_v21 = vpop.f32.mrf.mxu1 }
 0x433   :  { %v14598_v13 = vpop.f32.mrf.mxu0  ;;  %v14600_v48 = vpop.f32.mrf.mxu1 }
 0x435   :  { %v14602_v16 = vpop.f32.mrf.mxu0  ;;  %v14604_v36 = vpop.f32.mrf.mxu1 }
 0x436   :  { %15289 = vst [vmem:[#allocation45_spill] sm:$0xff] %v14602_v16  ;;  %15290 = vst [vmem:[#allocation50_spill] sm:$0xff] %v14604_v36 }
 0x439   :  { %v14606_v54 = vpop.f32.mrf.mxu0  ;;  %v14608_v34 = vpop.f32.mrf.mxu1 }
 0x43a   :  { %15291 = vst [vmem:[#allocation20_spill] sm:$0xff] %v14606_v54  ;;  %15292 = vst [vmem:[#allocation62_spill] sm:$0xff] %v14608_v34 }
 0x43b   :  { %v14610_v1 = vpop.f32.mrf.mxu0  ;;  %v14612_v49 = vpop.f32.mrf.mxu1 }
 0x43c   :  { %15293 = vst [vmem:[#allocation18_spill] sm:$0xff] %v14610_v1  ;;  %15294 = vst [vmem:[#allocation57_spill] sm:$0xff] %v14612_v49 }
 0x43f   :  { %v14614_v12 = vpop.f32.mrf.mxu1  ;;  %v3069_v55 = vpop.f32.mrf.mxu0 }
 0x440   :  { %15295 = vst [vmem:[#allocation49_spill] sm:$0xff] %v14614_v12 }
 0x441   :  { %v14616_v28 = vpop.f32.mrf.mxu1  ;;  %v3071_v8 = vpop.f32.mrf.mxu0 }
 0x442   :  { %15296 = vst [vmem:[#allocation35_spill] sm:$0xff] %v14616_v28 }
 0x443   :  { %v3075_v17 = vpop.f32.mrf.mxu0 }
 0x444   :  { %v3311_v20 = vpop.f32.mrf.mxu1 }
 0x445   :  { %v14618_v50 = vpop.f32.mrf.mxu0 }
 0x446   :  { %v3313_v2 = vpop.f32.mrf.mxu1 }
 0x447   :  { %v14620_v59 = vpop.f32.mrf.mxu0 }
 0x448   :  { %15297 = vst [vmem:[#allocation23_spill] sm:$0xff] %v14620_v59  ;;  %v14622_v24 = vpop.f32.mrf.mxu1 }
 0x449   :  { %v14624_v34 = vpop.f32.mrf.mxu0 }
 0x44a   :  { %15298 = vst [vmem:[#allocation54_spill] sm:$0xff] %v14624_v34  ;;  %v14626_v1 = vpop.f32.mrf.mxu1 }
 0x44b   :  { %15299 = vst [vmem:[#allocation52_spill] sm:$0xff] %v14626_v1  ;;  %v14628_v49 = vpop.f32.mrf.mxu0 }
 0x44c   :  { %15300 = vst [vmem:[#allocation44_spill] sm:$0xff] %v14628_v49  ;;  %v14630_v12 = vpop.f32.mrf.mxu1 }
 0x44d   :  { %15301 = vst [vmem:[#allocation42_spill] sm:$0xff] %v14630_v12  ;;  %v14632_v54 = vpop.f32.mrf.mxu0 }
 0x44e   :  { %15302 = vst [vmem:[#allocation41_spill] sm:$0xff] %v14632_v54  ;;  %v14634_v28 = vpop.f32.mrf.mxu1 }
 0x44f   :  { %15303 = vst [vmem:[#allocation21_spill] sm:$0xff] %v14634_v28  ;;  %v14636_v27 = vpop.f32.mrf.mxu0 }
 0x450   :  { %15304 = vst [vmem:[#allocation36_spill] sm:$0xff] %v14636_v27  ;;  %v14638_v36 = vpop.f32.mrf.mxu1 }
 0x451   :  { %15305 = vst [vmem:[#allocation46_spill] sm:$0xff] %v14638_v36  ;;  %v14640_v16 = vpop.f32.mrf.mxu0 }
 0x452   :  { %15306 = vst [vmem:[#allocation40_spill] sm:$0xff] %v14640_v16  ;;  %v14642_v59 = vpop.f32.mrf.mxu1 }
 0x453   :  { %v14644_v43 = vpop.f32.mrf.mxu0 }
 0x454   :  { %15307 = vst [vmem:[#allocation33_spill] sm:$0xff] %v14644_v43  ;;  %v14646_v34 = vpop.f32.mrf.mxu1  ;;  %v2126_v43 = vadd.f32 %v14490_v40, %v14480_v41  ;;  %v2162_v40 = vadd.f32 %v14546_v37, %v14504_v22  ;;  %v2638_v37 = vadd.f32 %v14574_v3, %v14529_v33  ;;  %v2641_v33 = vadd.f32 %v14586_v44, %v14538_v25 }
 0x455   :  { %v14648_v1 = vpop.f32.mrf.mxu0  ;;  %v2642_v3 = vadd.f32 %v14590_v19, %v14540_v42  ;;  %v2644_v44 = vadd.f32 %v14598_v13, %v14544_v60  ;;  %v3874_v13 = vpop.permute.xlu0 %3873 }
 0x456   :  { %15308 = vst [vmem:[#allocation39_spill] sm:$0xff] %v14648_v1  ;;  %v14650_v49 = vpop.f32.mrf.mxu1  ;;  %v2632_v1 = vadd.f32 %v14550_v29, %v14510_v53  ;;  %v2883_v25 = vadd.f32 %v14596_v21, %v2641_v33  ;;  %v15320_v21 = vld [vmem:[#allocation54_spill] sm:$0xff] }
 0x457   :  { %15309 = vst [vmem:[#allocation27_spill] sm:$0xff] %v14650_v49  ;;  %v14652_v12 = vpop.f32.mrf.mxu0  ;;  %v2138_v49 = vadd.f32 %v14502_v32, %v14492_v56  ;;  %v2634_v56 = vadd.f32 %v14558_v61, %v14516_v31  ;;  %v2884_v42 = vadd.f32 %v14600_v48, %v2642_v3  ;;  %v15321_v48 = vld [vmem:[#allocation55_spill] sm:$0xff]  ;;  %v15328_v3 = vld [vmem:[#allocation57_spill] sm:$0xff] }
 0x458   :  { %15310 = vst [vmem:[#allocation24_spill] sm:$0xff] %v14652_v12  ;;  %v14654_v54 = vpop.f32.mrf.mxu1  ;;  %v2874_v41 = vadd.f32 %v14560_v45, %v2632_v1 }
 0x459   :  { %15311 = vst [vmem:[#allocation38_spill] sm:$0xff] %v14654_v54  ;;  %v14656_v28 = vpop.f32.mrf.mxu0  ;;  %v2397_v53 = vadd.f32 %v14531_v0, %v2138_v49  ;;  %v2876_v22 = vadd.f32 %v14568_v5, %v2634_v56  ;;  %v2637_v0 = vadd.f32 %v14570_v58, %v14525_v57 }
 0x45a   :  { %v14658_v27 = vpop.f32.mrf.mxu1 }
 0x45b   :  { %15312 = vst [vmem:[#allocation37_spill] sm:$0xff] %v14658_v27  ;;  %v14660_v36 = vpop.f32.mrf.mxu0  ;;  %v2150_v27 = vadd.f32 %v14527_v9, %v14500_v63  ;;  %v2879_v45 = vadd.f32 %v14580_v10, %v2637_v0  ;;  %v3869_v10 = vpop.permute.xlu1 %3868 }
 0x45c   :  { %15313 = vst [vmem:[#allocation30_spill] sm:$0xff] %v14660_v36  ;;  %v14662_v16 = vpop.f32.mrf.mxu1  ;;  %v2393_v36 = vadd.f32 %v14518_v23, %v2126_v43  ;;  %v3116_v23 = vadd.f32 %v3069_v55, %v2874_v41  ;;  %v2636_v43 = vadd.f32 %v14566_v51, %v14522_v30  ;;  %v2640_v30 = vadd.f32 %v14582_v47, %v14535_v11 }
 0x45d   :  { %15314 = vst [vmem:[#allocation26_spill] sm:$0xff] %v14662_v16  ;;  %v14670_v12 = vpop.f32.mrf.mxu0  ;;  %v2633_v16 = vadd.f32 %v14556_v39, %v14514_v26  ;;  %v2401_v32 = vadd.f32 %v14542_v46, %v2150_v27  ;;  %v2405_v26 = vadd.f32 %v14554_v6, %v2162_v40  ;;  %v2639_v6 = vadd.f32 %v14578_v52, %v2397_v53 }
 0x45e   :  { %v14672_v54 = vpop.f32.mrf.mxu1  ;;  %v2635_v29 = vadd.f32 %v14562_v7, %v2393_v36  ;;  %v3358_v39 = vadd.f32 %v3311_v20, %v3116_v23  ;;  %v2878_v61 = vadd.f32 %v14576_v18, %v2636_v43  ;;  %v3118_v51 = vadd.f32 %v3075_v17, %v2876_v22  ;;  %v15316_v20 = vld [vmem:[#allocation60_spill] sm:$0xff]  ;;  %v15323_v22 = vld [vmem:[#allocation62_spill] sm:$0xff] }
 0x45f   :  { %v2875_v63 = vadd.f32 %v14564_v15, %v2633_v16  ;;  %v2880_v15 = vadd.f32 %v14584_v38, %v2638_v37  ;;  %v2882_v18 = vadd.f32 %v14592_v35, %v2640_v30  ;;  %v2643_v1 = vadd.f32 %v14594_v14, %v2401_v32  ;;  %v15315_v35 = vld [vmem:[#allocation52_spill] sm:$0xff]  ;;  %v15319_v14 = vld [vmem:[#allocation23_spill] sm:$0xff]  ;;  %v15325_v37 = vld [vmem:[#allocation42_spill] sm:$0xff] }
 0x460   :  { %v2877_v46 = vadd.f32 %v14572_v62, %v2635_v29  ;;  %v2881_v62 = vadd.f32 %v14588_v4, %v2639_v6  ;;  %v3360_v38 = vadd.f32 %v14622_v24, %v3118_v51  ;;  %v15317_v24 = vld [vmem:[#allocation45_spill] sm:$0xff]  ;;  %v3120_v40 = vadd.f32 %v15319_v14, %v2878_v61  ;;  %v15322_v32 = vld [vmem:[#allocation20_spill] sm:$0xff] }
 0x461   :  { %v14688_v9 = vpop.f32.mrf.mxu1  ;;  %v3117_v27 = vadd.f32 %v3071_v8, %v2875_v63  ;;  %v3121_v53 = vadd.f32 %v15320_v21, %v2879_v45  ;;  %v2646_v29 = vadd.f32 %v15322_v32, %v15321_v48  ;;  %v2886_v0 = vadd.f32 %v15323_v22, %v2644_v44 }
 0x462   :  { %v3553_v31 = vpop.f32.mrf.mxu0  ;;  %v3119_v47 = vadd.f32 %v14618_v50, %v2877_v46  ;;  %v2645_v50 = vadd.f32 %v15317_v24, %v15316_v20  ;;  %v3879_v24 = vpop.permute.xlu1 %3878 }
 0x463   :  { %v14704_v7 = vpop.f32.mrf.mxu1  ;;  %v3359_v5 = vadd.f32 %v3313_v2, %v3117_v27  ;;  %v3600_v58 = vadd.f32 %v3553_v31, %v3358_v39  ;;  %v15318_v2 = vld [vmem:[#allocation50_spill] sm:$0xff]  ;;  %v15324_v31 = vld [vmem:[#allocation44_spill] sm:$0xff]  ;;  %v3362_v27 = vadd.f32 %v15325_v37, %v3120_v40  ;;  %v15326_v39 = vld [vmem:[#allocation21_spill] sm:$0xff] }
 0x464   :  { %v3555_v57 = vpop.f32.mrf.mxu0  ;;  %v3361_v49 = vadd.f32 %v15315_v35, %v3119_v47  ;;  %v2885_v41 = vadd.f32 %v15318_v2, %v2643_v1  ;;  %v3122_v46 = vadd.f32 %v15324_v31, %v2880_v15  ;;  %v3363_v6 = vadd.f32 %v15326_v39, %v3121_v53  ;;  %v15330_v15 = vld [vmem:[#allocation46_spill] sm:$0xff]  ;;  %v15333_v40 = vld [vmem:[#allocation36_spill] sm:$0xff] }
 0x465   :  { %v3601_v16 = vadd.f32 %v3555_v57, %v3359_v5  ;;  %v3124_v21 = vadd.f32 %v15333_v40, %v2882_v18  ;;  %v15334_v53 = vld [vmem:[#allocation40_spill] sm:$0xff] }
 0x466   :  { %v3559_v52 = vpop.f32.mrf.mxu0  ;;  %v3795_v11 = vpop.f32.mrf.mxu1 }
 0x467   :  { %v3842_v36 = vadd.f32 %v3795_v11, %v3600_v58  ;;  %v3602_v55 = vadd.f32 %v3559_v52, %v3360_v38  ;;  %v15327_v58 = vld [vmem:[#allocation18_spill] sm:$0xff]  ;;  %v2887_v52 = vadd.f32 %v15328_v3, %v2645_v50  ;;  %v15329_v11 = vld [vmem:[#allocation41_spill] sm:$0xff]  ;;  %v3366_v31 = vadd.f32 %v14646_v34, %v3124_v21 }
 0x468   :  { %v3561_v4 = vpop.f32.mrf.mxu0  ;;  %v3797_v19 = vpop.f32.mrf.mxu1  ;;  %v2647_v33 = vadd.f32 %v15327_v58, %v2405_v26 }
 0x469   :  { %v3906_v8 = vadd.f32 %v3869_v10, %v3842_v36  ;;  %v3843_v17 = vadd.f32 %v3797_v19, %v3601_v16  ;;  %v3603_v63 = vadd.f32 %v3561_v4, %v3361_v49  ;;  %v3364_v36 = vadd.f32 %v15330_v15, %v3122_v46  ;;  %v15331_v19 = vld [vmem:[#allocation49_spill] sm:$0xff]  ;;  %v15332_v49 = vld [vmem:[#allocation35_spill] sm:$0xff]  ;;  %v15342_v15 = vld [vmem:[#allocation26_spill] sm:$0xff] }
 0x46a   :  { %v3565_v56 = vpop.f32.mrf.mxu0  ;;  %v3801_v60 = vpop.f32.mrf.mxu1  ;;  %v2888_v35 = vadd.f32 %v15331_v19, %v2646_v29  ;;  %v15336_v46 = vld [vmem:[#allocation39_spill] sm:$0xff]  ;;  %v3129_v58 = vadd.f32 %v14656_v28, %v2887_v52 }
 0x46b   :  { %v3907_v23 = vadd.f32 %v3869_v10, %v3843_v17  ;;  %v3844_v43 = vadd.f32 %v3801_v60, %v3602_v55  ;;  %v3922_v45 = vmax.f32 %v3906_v8, 0.0  ;;  %v3123_v10 = vadd.f32 %v15329_v11, %v2881_v62  ;;  %v15335_v60 = vld [vmem:[#allocation33_spill] sm:$0xff]  ;;  %v3889_v52 = vpop.permute.xlu1 %3888 }
 0x46c   :  { %v3567_v61 = vpop.f32.mrf.mxu0  ;;  %v3803_v30 = vpop.f32.mrf.mxu1  ;;  %v3604_v47 = vadd.f32 %v3565_v56, %v3362_v27  ;;  %v2889_v55 = vadd.f32 %v15332_v49, %v2647_v33  ;;  %v3125_v56 = vadd.f32 %v15334_v53, %v2883_v25  ;;  %v3127_v37 = vadd.f32 %v15336_v46, %v2885_v41  ;;  %v15337_v27 = vld [vmem:[#allocation27_spill] sm:$0xff]  ;;  %v15340_v33 = vld [vmem:[#allocation37_spill] sm:$0xff] }
 0x46d   :  { %v3923_v57 = vmax.f32 %v3907_v23, 0.0  ;;  %v3908_v51 = vadd.f32 %v3874_v13, %v3844_v43  ;;  %v3845_v5 = vadd.f32 %v3803_v30, %v3603_v63  ;;  %v3605_v44 = vadd.f32 %v3567_v61, %v3363_v6  ;;  %v3884_v63 = vpop.permute.xlu0 %3883  ;;  %v15338_v6 = vld [vmem:[#allocation24_spill] sm:$0xff] }
 0x46e   :  { %v3571_v38 = vpop.f32.mrf.mxu0  ;;  %v3807_v16 = vpop.f32.mrf.mxu1  ;;  %v3365_v8 = vadd.f32 %v14642_v59, %v3123_v10  ;;  %v3367_v39 = vadd.f32 %v15337_v27, %v3125_v56  ;;  %v3128_v18 = vadd.f32 %v15338_v6, %v2886_v0  ;;  %v3369_v3 = vadd.f32 %v15340_v33, %v3127_v37  ;;  %v15341_v10 = vld [vmem:[#allocation30_spill] sm:$0xff]  ;;  %v11776_v6 = vld [vmem:[#allocation7 + $0x170] sm:$0xff]  }
 0x46f   :  { %v10753_v1 = vpack.c.bf16 %v3923_v57, %v3922_v45  ;;  %v3909_v4 = vadd.f32 %v3874_v13, %v3845_v5  ;;  %v3846_v17 = vadd.f32 %v3807_v16, %v3604_v47  ;;  %v3924_v62 = vmax.f32 %v3908_v51, 0.0  ;;  %v15339_v51 = vld [vmem:[#allocation38_spill] sm:$0xff] }
 0x470   :  { %v3573_v26 = vpop.f32.mrf.mxu0  ;;  %v3809_v20 = vpop.f32.mrf.mxu1  ;;  %v3606_v2 = vadd.f32 %v3571_v38, %v3364_v36  ;;  %v3126_v13 = vadd.f32 %v15335_v60, %v2884_v42  ;;  %v3130_v47 = vadd.f32 %v15341_v10, %v2888_v35  ;;  %v3370_v36 = vadd.f32 %v15342_v15, %v3128_v18  ;;  %v11780_v15 = vld [vmem:[#allocation7 + $0x168] sm:$0xff]  }
 0x471   :  { %3986 = vst [vmem:[#allocation3 + $0x30] sm:$0xff] %v10753_v1  ;;  %v3925_v50 = vmax.f32 %v3909_v4, 0.0  ;;  %v3847_v14 = vadd.f32 %v3809_v20, %v3605_v44  ;;  %v3910_v48 = vadd.f32 %v3879_v24, %v3846_v17  ;;  %v3607_v23 = vadd.f32 %v3573_v26, %v3365_v8  ;;  %v3899_v10 = vpop.permute.xlu1 %3898 }
 0x472   :  { %v3577_v32 = vpop.f32.mrf.mxu0  ;;  %v3813_v29 = vpop.f32.mrf.mxu1  ;;  %v3368_v5 = vadd.f32 %v15339_v51, %v3126_v13  ;;  %v3131_v1 = vadd.f32 %v14670_v12, %v2889_v55 }
 0x473   :  { %v10754_v59 = vpack.c.bf16 %v3925_v50, %v3924_v62  ;;  %v3911_v43 = vadd.f32 %v3879_v24, %v3847_v14  ;;  %v3848_v22 = vadd.f32 %v3813_v29, %v3606_v2  ;;  %v3926_v42 = vmax.f32 %v3910_v48, 0.0  ;;  %v11765_v14 = vld [vmem:[#allocation7 + $0x1b8] sm:$0xff]   ;;  %v3894_v12 = vpop.permute.xlu0 %3893 }
 0x474   :  { %v3579_v61 = vpop.f32.mrf.mxu0  ;;  %v3815_v25 = vpop.f32.mrf.mxu1  ;;  %v3608_v34 = vadd.f32 %v3577_v32, %v3366_v31  ;;  %v11774_v32 = vld [vmem:[#allocation7 + $0x1f0] sm:$0xff]   ;;  %v3371_v29 = vadd.f32 %v14672_v54, %v3129_v58  ;;  %v11771_v31 = vld [vmem:[#allocation7 + $0x138] sm:$0xff]   ;;  %v3373_v51 = vadd.f32 %v14704_v7, %v3131_v1 }
 0x475   :  { %3987 = vst [vmem:[#allocation3] sm:$0xff] %v10754_v59  ;;  %v3927_v30 = vmax.f32 %v3911_v43, 0.0  ;;  %v3912_v45 = vadd.f32 %v3884_v63, %v3848_v22  ;;  %v3849_v57 = vadd.f32 %v3815_v25, %v3607_v23  ;;  %v3609_v0 = vadd.f32 %v3579_v61, %v3367_v39 }
 0x476   :  { %v3583_v11 = vpop.f32.mrf.mxu0  ;;  %v3819_v41 = vpop.f32.mrf.mxu1 }
 0x477   :  { %v10755_v38 = vpack.c.bf16 %v3927_v30, %v3926_v42  ;;  %v3913_v16 = vadd.f32 %v3884_v63, %v3849_v57  ;;  %v3928_v44 = vmax.f32 %v3912_v45, 0.0  ;;  %v3850_v4 = vadd.f32 %v3819_v41, %v3608_v34  ;;  %v11775_v57 = vld [vmem:[#allocation7 + $0x1b0] sm:$0xff]   ;;  %v11778_v41 = vld [vmem:[#allocation7 + $0x1e8] sm:$0xff]  }
 0x478   :  { %v3585_v19 = vpop.f32.mrf.mxu0  ;;  %v3821_v49 = vpop.f32.mrf.mxu1  ;;  %v3994_v8 = vld [vmem:[#allocation3 + $0x30] sm:$0x11]  ;;  %v4027_v28 = vld [vmem:[#allocation3 + $0x30] sm:$0x22]  ;;  %v3610_v26 = vadd.f32 %v3583_v11, %v3368_v5  ;;  %v14752_v13 = vld [vmem:[#allocation3 + $0x30] sm:$0x88]  ;;  %v3372_v63 = vadd.f32 %v14688_v9, %v3130_v47 }
 0x479   :  { %3988 = vst [vmem:[#allocation3 + $0x18] sm:$0xff] %v10755_v38  ;;  %v3929_v17 = vmax.f32 %v3913_v16, 0.0  ;;  %v3851_v20 = vadd.f32 %v3821_v49, %v3609_v0  ;;  %v10191_v24 = vcombine.low %v3994_v8, %v3994_v8  ;;  %v3914_v35 = vadd.f32 %v3889_v52, %v3850_v4  ;;  %v14754_v48 = vld [vmem:[#allocation3 + $0x30] sm:$0x44]  ;;  %v11779_v49 = vld [vmem:[#allocation7 + $0x1a8] sm:$0xff]  }
 0x47a   :  { %v3589_v62 = vpop.f32.mrf.mxu0  ;;  %v3825_v50 = vpop.f32.mrf.mxu1  ;;  %v10192_v2 = vcombine.high %v3994_v8, %v3994_v8  ;;  %v10173_v40 = vcombine.low %v4027_v28, %v4027_v28  ;;  %v10174_v21 = vcombine.high %v4027_v28, %v4027_v28  ;;  %v3611_v53 = vadd.f32 %v3585_v19, %v3369_v3  ;;  %v11777_v11 = vld [vmem:[#allocation7 + $0x130] sm:$0xff]  }
 0x47b   :  { %v10756_v55 = vpack.c.bf16 %v3929_v17, %v3928_v44  ;;  %v3915_v56 = vadd.f32 %v3889_v52, %v3851_v20  ;;  %v3852_v60 = vadd.f32 %v3825_v50, %v3610_v26  ;;  %v3930_v46 = vmax.f32 %v3914_v35, 0.0  ;;  %v3904_v8 = vpop.permute.xlu0 %3903  ;;  %v11781_v52 = vld [vmem:[#allocation7 + $0x128] sm:$0xff]   ;;  %v11782_v17 = vld [vmem:[#allocation7 + $0x1e0] sm:$0xff]  }
 0x47c   :  { %v3591_v59 = vpop.f32.mrf.mxu0  ;;  %4341 = vmatprep.mubr.bf16.mxu1 %v10192_v2  ;;  %v3827_v23 = vpop.f32.mrf.mxu1  ;;  %v4066_v43 = vrot.slane %v10173_v40, 1  ;;  %v4067_v22 = vrot.slane %v10174_v21, 1  ;;  %v3612_v18 = vadd.f32 %v3589_v62, %v3370_v36  ;;  %v10228_v54 = vcombine.high %v14752_v13, %v14752_v13  ;;  %v11784_v62 = vld [vmem:[#allocation7 + $0x160] sm:$0xff]   ;;  %v11786_v21 = vld [vmem:[#allocation7 + $0x1d8] sm:$0xff]  }
 0x47d   :  { %3989 = vst [vmem:[#allocation3 + $0x10] sm:$0xff] %v10756_v55  ;;  %v3931_v37 = vmax.f32 %v3915_v56, 0.0  ;;  %v3916_v27 = vadd.f32 %v3894_v12, %v3852_v60  ;;  %v3853_v39 = vadd.f32 %v3827_v23, %v3611_v53  ;;  %4342 = vmatmul.mubr.bf16.vlgmr.msra.gmra.mxu1 %v10191_v24  ;;  %v10210_v25 = vcombine.high %v14754_v48, %v14754_v48  ;;  %v11785_v40 = vld [vmem:[#allocation7 + $0x120] sm:$0xff]   ;;  %v11788_v53 = vld [vmem:[#allocation7 + $0x158] sm:$0xff]   ;;  %v11793_v23 = vld [vmem:[#allocation7 + $0x110] sm:$0xff]  }
 0x47e   :  { %10828 = vmatpush3.bf16.msra.mxu1 %v11765_v14  ;;  %v3595_v61 = vpop.f32.mrf.mxu0  ;;  %4198 = vmatprep.mubr.bf16.mxu0 %v4067_v22  ;;  %v3831_v9 = vpop.f32.mrf.mxu1  ;;  %v3613_v30 = vadd.f32 %v3591_v59, %v3371_v29  ;;  %v4569_v5 = vrot.slane %v10228_v54, 3  ;;  %v11783_v14 = vld [vmem:[#allocation7 + $0x1a0] sm:$0xff]   ;;  %v11787_v60 = vld [vmem:[#allocation7 + $0x198] sm:$0xff]   ;;  %v11790_v29 = vld [vmem:[#allocation7 + $0x1d0] sm:$0xff]  }
 0x47f   :  { %v10757_v42 = vpack.c.bf16 %v3931_v37, %v3930_v46  ;;  %v3917_v45 = vadd.f32 %v3894_v12, %v3853_v39  ;;  %4199 = vmatmul.mubr.bf16.vlgmr.msra.gmra.mxu0 %v4066_v43  ;;  %10829 = vmatprep.subr.bf16.mxu1 %v11774_v32  ;;  %v3854_v58 = vadd.f32 %v3831_v9, %v3612_v18  ;;  %v4389_v3 = vrot.slane %v10210_v25, 2  ;;  %v11789_v32 = vld [vmem:[#allocation7 + $0x118] sm:$0xff]   ;;  %v11791_v59 = vld [vmem:[#allocation7 + $0x190] sm:$0xff]   ;;  %v11794_v43 = vld [vmem:[#allocation7 + $0x1c8] sm:$0xff]  }
 0x480   :  { %10806 = vmatpush3.bf16.msra.mxu0 %v11771_v31  ;;  %v3597_v33 = vpop.f32.mrf.mxu0  ;;  %v3833_v34 = vpop.f32.mrf.mxu1  ;;  %v3932_v47 = vmax.f32 %v3916_v27, 0.0  ;;  %v3614_v0 = vadd.f32 %v3595_v61, %v3372_v63  ;;  %4700 = vmatprep.mubr.bf16.mxu1 %v4569_v5  ;;  %v11792_v63 = vld [vmem:[#allocation7 + $0x150] sm:$0xff]   ;;  %v11796_v22 = vld [vmem:[#allocation7 + $0x148] sm:$0xff]   ;;  %v11798_v37 = vld [vmem:[#allocation7 + $0x1c0] sm:$0xff]   ;;  %v10227_v18 = vcombine.low %v14752_v13, %v14752_v13 }
 0x481   :  { %3990 = vst [vmem:[#allocation3 + $0x8] sm:$0xff] %v10757_v42  ;;  %v3933_v38 = vmax.f32 %v3917_v45, 0.0  ;;  %v3855_v16 = vadd.f32 %v3833_v34, %v3613_v30  ;;  %10807 = vmatprep.subr.bf16.mxu0 %v11776_v6  ;;  %v3918_v36 = vadd.f32 %v3899_v10, %v3854_v58  ;;  %4520 = vmatprep.mubr.bf16.mxu0 %v4389_v3  ;;  %v11795_v31 = vld [vmem:[#allocation7 + $0x188] sm:$0xff]   ;;  %v11800_v27 = vld [vmem:[#allocation7 + $0x140] sm:$0xff]   ;;  %v11802_v54 = vld [vmem:[#allocation7 + $0x2f8] sm:$0xff]  }
 0x482   :  { %v3837_v7 = vpop.f32.mrf.mxu1  ;;  %v3615_v44 = vadd.f32 %v3597_v33, %v3373_v51  ;;  %10830 = vmatpush3.bf16.msra.mxu1 %v11775_v57  ;;  %v11797_v46 = vld [vmem:[#allocation7 + $0x108] sm:$0xff]   ;;  %v14763_v39 = vld [vmem:[#allocation3] sm:$0x22]  ;;  %v11806_v25 = vld [vmem:[#allocation7 + $0x278] sm:$0xff]   ;;  %v10209_v42 = vcombine.low %v14754_v48, %v14754_v48  ;;  %v4568_v45 = vrot.slane %v10227_v18, 3 }
 0x483   :  { %v10758_v1 = vpack.c.bf16 %v3933_v38, %v3932_v47  ;;  %v3919_v4 = vadd.f32 %v3899_v10, %v3855_v16  ;;  %v3856_v19 = vadd.f32 %v3837_v7, %v3614_v0  ;;  %10831 = vmatprep.subr.bf16.mxu1 %v11778_v41  ;;  %v3934_v26 = vmax.f32 %v3918_v36, 0.0  ;;  %v11799_v6 = vld [vmem:[#allocation7 + $0x180] sm:$0xff]   ;;  %v11803_v30 = vld [vmem:[#allocation7 + $0x2b8] sm:$0xff]   ;;  %v11810_v13 = vld [vmem:[#allocation7 + $0x2f0] sm:$0xff]  }
 0x484   :  { %10808 = vmatpush3.bf16.msra.mxu0 %v11777_v11  ;;  %v3839_v28 = vpop.f32.mrf.mxu1  ;;  %v11801_v61 = vld [vmem:[#allocation7 + $0x100] sm:$0xff]   ;;  %v10264_v9 = vcombine.high %v14763_v39, %v14763_v39  ;;  %v11807_v5 = vld [vmem:[#allocation7 + $0x238] sm:$0xff]   ;;  %v4388_v58 = vrot.slane %v10209_v42, 2  ;;  %v11812_v33 = vld [vmem:[#allocation7 + $0x270] sm:$0xff]  }
 0x485   :  { %3991 = vst [vmem:[#allocation3 + $0x20] sm:$0xff] %v10758_v1  ;;  %v3935_v20 = vmax.f32 %v3919_v4, 0.0  ;;  %v3920_v24 = vadd.f32 %v3904_v8, %v3856_v19  ;;  %v3857_v35 = vadd.f32 %v3839_v28, %v3615_v44  ;;  %10809 = vmatprep.subr.bf16.mxu0 %v11780_v15  ;;  %v14771_v57 = vld [vmem:[#allocation3] sm:$0x11]  ;;  %v11811_v48 = vld [vmem:[#allocation7 + $0x2b0] sm:$0xff]   ;;  %v11814_v34 = vld [vmem:[#allocation7 + $0x2e8] sm:$0xff]  }
 0x486   :  { %10832 = vmatpush3.bf16.msra.mxu1 %v11779_v49  ;;  %v4927_v51 = vrot.slane %v10264_v9, 1  ;;  %v10246_v3 = vcombine.high %v14771_v57, %v14771_v57  ;;  %v11813_v11 = vld [vmem:[#allocation7 + $0x230] sm:$0xff]   ;;  %v11816_v41 = vld [vmem:[#allocation7 + $0x268] sm:$0xff]   ;;  %v11818_v47 = vld [vmem:[#allocation7 + $0x2e0] sm:$0xff]  }
 0x487   :  { %v10759_v50 = vpack.c.bf16 %v3935_v20, %v3934_v26  ;;  %v3921_v2 = vadd.f32 %v3904_v8, %v3857_v35  ;;  %10833 = vmatprep.subr.bf16.mxu1 %v11782_v17  ;;  %v3936_v12 = vmax.f32 %v3920_v24, 0.0  ;;  %v11815_v10 = vld [vmem:[#allocation7 + $0x2a8] sm:$0xff]   ;;  %v11820_v0 = vld [vmem:[#allocation7 + $0x260] sm:$0xff]   ;;  %v11822_v15 = vld [vmem:[#allocation7 + $0x2d8] sm:$0xff]  }
 0x488   :  { %10810 = vmatpush3.bf16.msra.mxu0 %v11781_v52  ;;  %v11817_v38 = vld [vmem:[#allocation7 + $0x228] sm:$0xff]   ;;  %v11819_v16 = vld [vmem:[#allocation7 + $0x2a0] sm:$0xff]   ;;  %v11824_v7 = vld [vmem:[#allocation7 + $0x258] sm:$0xff]  }
 0x489   :  { %3992 = vst [vmem:[#allocation3 + $0x28] sm:$0xff] %v10759_v50  ;;  %v3937_v55 = vmax.f32 %v3921_v2, 0.0  ;;  %10811 = vmatprep.subr.bf16.mxu0 %v11784_v62  ;;  %v11821_v36 = vld [vmem:[#allocation7 + $0x220] sm:$0xff]   ;;  %v11823_v1 = vld [vmem:[#allocation7 + $0x298] sm:$0xff]   ;;  %v11826_v44 = vld [vmem:[#allocation7 + $0x2d0] sm:$0xff]   ;;  %v10263_v50 = vcombine.low %v14763_v39, %v14763_v39 }
 0x48a   :  { %10834 = vmatpush3.bf16.msra.mxu1 %v11783_v14  ;;  %v11825_v4 = vld [vmem:[#allocation7 + $0x218] sm:$0xff]   ;;  %v11828_v19 = vld [vmem:[#allocation7 + $0x250] sm:$0xff]   ;;  %v11830_v8 = vld [vmem:[#allocation7 + $0x2c8] sm:$0xff]  }
 0x48b   :  { %v10760_v56 = vpack.c.bf16 %v3937_v55, %v3936_v12  ;;  %10835 = vmatprep.subr.bf16.mxu1 %v11786_v21  ;;  %v11827_v49 = vld [vmem:[#allocation7 + $0x290] sm:$0xff]   ;;  %v11832_v52 = vld [vmem:[#allocation7 + $0x248] sm:$0xff]   ;;  %v11834_v26 = vld [vmem:[#allocation7 + $0x2c0] sm:$0xff]  }
 0x48c   :  { %10812 = vmatpush3.bf16.msra.mxu0 %v11785_v40  ;;  %v11829_v28 = vld [vmem:[#allocation7 + $0x210] sm:$0xff]   ;;  %v11831_v17 = vld [vmem:[#allocation7 + $0x288] sm:$0xff]   ;;  %v11836_v24 = vld [vmem:[#allocation7 + $0x240] sm:$0xff]  }
 0x48d   :  { %3993 = vst [vmem:[#allocation3 + $0x38] sm:$0xff] %v10760_v56  ;;  %10813 = vmatprep.subr.bf16.mxu0 %v11788_v53  ;;  %v11833_v20 = vld [vmem:[#allocation7 + $0x208] sm:$0xff]   ;;  %v14775_v35 = vld [vmem:[#allocation3] sm:$0x88]  ;;  %v11838_v2 = vld [vmem:[#allocation7 + $0x3f8] sm:$0xff]   ;;  %v4926_v56 = vrot.slane %v10263_v50, 1 }
 0x48e   :  { %10836 = vmatpush3.bf16.msra.mxu1 %v11787_v60  ;;  %v11835_v62 = vld [vmem:[#allocation7 + $0x280] sm:$0xff]   ;;  %v10300_v21 = vcombine.high %v14775_v35, %v14775_v35  ;;  %v11842_v12 = vld [vmem:[#allocation7 + $0x378] sm:$0xff]   ;;  %v11846_v60 = vld [vmem:[#allocation7 + $0x3f0] sm:$0xff]  }
 0x48f   :  { %10837 = vmatprep.subr.bf16.mxu1 %v11790_v29  ;;  %v14779_v14 = vld [vmem:[#allocation3] sm:$0x44]  ;;  %v11839_v55 = vld [vmem:[#allocation7 + $0x3b8] sm:$0xff]   ;;  %v11853_v39 = vld [vmem:[#allocation7 + $0x328] sm:$0xff]  }
 0x490   :  { %10814 = vmatpush3.bf16.msra.mxu0 %v11789_v32  ;;  %v11837_v40 = vld [vmem:[#allocation7 + $0x200] sm:$0xff]   ;;  %v10282_v53 = vcombine.high %v14779_v14, %v14779_v14  ;;  %v5287_v32 = vrot.slane %v10300_v21, 3  ;;  %v11843_v29 = vld [vmem:[#allocation7 + $0x338] sm:$0xff]   ;;  %v11862_v42 = vld [vmem:[#allocation7 + $0x3d0] sm:$0xff]  }
 0x491   :  { %10815 = vmatprep.subr.bf16.mxu0 %v11792_v63  ;;  %v10245_v63 = vcombine.low %v14771_v57, %v14771_v57  ;;  %v11855_v18 = vld [vmem:[#allocation7 + $0x3a0] sm:$0xff]   ;;  %v11860_v9 = vld [vmem:[#allocation7 + $0x358] sm:$0xff]   ;;  %v11863_v57 = vld [vmem:[#allocation7 + $0x390] sm:$0xff]  }
 0x492   :  { %10838 = vmatpush3.bf16.msra.mxu1 %v11791_v59  ;;  %v11848_v59 = vld [vmem:[#allocation7 + $0x370] sm:$0xff]   ;;  %v11891_v50 = vld [vmem:[#allocation7 + $0x4a0] sm:$0xff]   ;;  %v11895_v21 = vld [vmem:[#allocation7 + $0x498] sm:$0xff]  }
 0x493   :  { %10839 = vmatprep.subr.bf16.mxu1 %v11794_v43  ;;  %v11847_v43 = vld [vmem:[#allocation7 + $0x3b0] sm:$0xff]  }
 0x494   :  { %10816 = vmatpush3.bf16.msra.mxu0 %v11793_v23  ;;  %v5107_v23 = vrot.slane %v10282_v53, 2  ;;  %v11900_v53 = vld [vmem:[#allocation7 + $0x450] sm:$0xff]  }
 0x495   :  { %10817 = vmatprep.subr.bf16.mxu0 %v11796_v22  ;;  %v11850_v22 = vld [vmem:[#allocation7 + $0x3e8] sm:$0xff]  }
 0x496   :  { %10840 = vmatpush3.bf16.msra.mxu1 %v11795_v31  ;;  %v11849_v31 = vld [vmem:[#allocation7 + $0x330] sm:$0xff]  }
 0x497   :  { %10841 = vmatprep.subr.bf16.mxu1 %v11798_v37  ;;  %v11851_v37 = vld [vmem:[#allocation7 + $0x3a8] sm:$0xff]  }
 0x498   :  { %10818 = vmatpush3.bf16.msra.mxu0 %v11797_v46  ;;  %v11852_v46 = vld [vmem:[#allocation7 + $0x368] sm:$0xff]  }
 0x499   :  { %10819 = vmatprep.subr.bf16.mxu0 %v11800_v27  ;;  %v11854_v27 = vld [vmem:[#allocation7 + $0x3e0] sm:$0xff]  }
 0x49a   :  { %10842 = vmatpush3.bf16.msra.mxu1 %v11799_v6  ;;  %v11856_v6 = vld [vmem:[#allocation7 + $0x360] sm:$0xff]  }
 0x49b   :  { %10871 = vmatprep.subr.bf16.mxu1 %v11802_v54  ;;  %v11857_v54 = vld [vmem:[#allocation7 + $0x320] sm:$0xff]  }
 0x49c   :  { %10820 = vmatpush3.bf16.msra.mxu0 %v11801_v61  ;;  %v11858_v61 = vld [vmem:[#allocation7 + $0x3d8] sm:$0xff]  }
 0x49d   :  { %10849 = vmatprep.subr.bf16.mxu0 %v11806_v25  ;;  %4701 = vmatmul.mubr.bf16.vlgmr.msra.gmra.mxu1 %v4568_v45  ;;  %v11859_v25 = vld [vmem:[#allocation7 + $0x398] sm:$0xff]   ;;  %v11864_v45 = vld [vmem:[#allocation7 + $0x350] sm:$0xff]  }
 0x49e   :  { %10872 = vmatpush3.bf16.msra.mxu1 %v11803_v30  ;;  %5058 = vmatprep.mubr.bf16.mxu1 %v4927_v51  ;;  %v11861_v30 = vld [vmem:[#allocation7 + $0x318] sm:$0xff]   ;;  %v11865_v51 = vld [vmem:[#allocation7 + $0x310] sm:$0xff]  }
 0x49f   :  { %4521 = vmatmul.mubr.bf16.vlgmr.msra.gmra.mxu0 %v4388_v58  ;;  %10873 = vmatprep.subr.bf16.mxu1 %v11810_v13  ;;  %v11866_v13 = vld [vmem:[#allocation7 + $0x3c8] sm:$0xff]  }
 0x4a0   :  { %10850 = vmatpush3.bf16.msra.mxu0 %v11807_v5  ;;  %4878 = vmatprep.mubr.bf16.mxu0 %v10246_v3  ;;  %v11868_v5 = vld [vmem:[#allocation7 + $0x348] sm:$0xff]  }
 0x4a1   :  { %10851 = vmatprep.subr.bf16.mxu0 %v11812_v33  ;;  %v11867_v58 = vld [vmem:[#allocation7 + $0x388] sm:$0xff]   ;;  %v11870_v33 = vld [vmem:[#allocation7 + $0x3c0] sm:$0xff]  }
 0x4a2   :  { %10874 = vmatpush3.bf16.msra.mxu1 %v11811_v48  ;;  %v11869_v3 = vld [vmem:[#allocation7 + $0x308] sm:$0xff]   ;;  %v11872_v48 = vld [vmem:[#allocation7 + $0x340] sm:$0xff]  }
 0x4a3   :  { %10875 = vmatprep.subr.bf16.mxu1 %v11814_v34  ;;  %v14787_v34 = vld [vmem:[#allocation3 + $0x18] sm:$0x22] }
 0x4a4   :  { %10852 = vmatpush3.bf16.msra.mxu0 %v11813_v11  ;;  %v11871_v11 = vld [vmem:[#allocation7 + $0x380] sm:$0xff]  }
 0x4a5   :  { %10853 = vmatprep.subr.bf16.mxu0 %v11816_v41  ;;  %v10299_v41 = vcombine.low %v14775_v35, %v14775_v35  ;;  %v11889_v35 = vld [vmem:[#allocation7 + $0x428] sm:$0xff]  }
 0x4a6   :  { %10876 = vmatpush3.bf16.msra.mxu1 %v11815_v10  ;;  %v11874_v10 = vld [vmem:[#allocation7 + $0x4f8] sm:$0xff]  }
 0x4a7   :  { %10877 = vmatprep.subr.bf16.mxu1 %v11818_v47  ;;  %v11873_v47 = vld [vmem:[#allocation7 + $0x300] sm:$0xff]  }
 0x4a8   :  { %10854 = vmatpush3.bf16.msra.mxu0 %v11817_v38  ;;  %v10336_v38 = vcombine.high %v14787_v34, %v14787_v34 }
 0x4a9   :  { %10855 = vmatprep.subr.bf16.mxu0 %v11820_v0  ;;  %v10281_v0 = vcombine.low %v14779_v14, %v14779_v14  ;;  %v11893_v14 = vld [vmem:[#allocation7 + $0x420] sm:$0xff]  }
 0x4aa   :  { %10878 = vmatpush3.bf16.msra.mxu1 %v11819_v16  ;;  %v11878_v16 = vld [vmem:[#allocation7 + $0x478] sm:$0xff]  }
 0x4ab   :  { %10879 = vmatprep.subr.bf16.mxu1 %v11822_v15  ;;  %v11875_v15 = vld [vmem:[#allocation7 + $0x4b8] sm:$0xff]  }
 0x4ac   :  { %10856 = vmatpush3.bf16.msra.mxu0 %v11821_v36  ;;  %v5286_v36 = vrot.slane %v10299_v41, 3  ;;  %v11927_v41 = vld [vmem:[#allocation7 + $0x5a0] sm:$0xff]  }
 0x4ad   :  { %10857 = vmatprep.subr.bf16.mxu0 %v11824_v7  ;;  %v14795_v7 = vld [vmem:[#allocation3 + $0x18] sm:$0x11] }
 0x4ae   :  { %10880 = vmatpush3.bf16.msra.mxu1 %v11823_v1  ;;  %v11882_v1 = vld [vmem:[#allocation7 + $0x4f0] sm:$0xff]  }
 0x4af   :  { %10881 = vmatprep.subr.bf16.mxu1 %v11826_v44  ;;  %v5645_v44 = vrot.slane %v10336_v38, 1  ;;  %v11932_v38 = vld [vmem:[#allocation7 + $0x558] sm:$0xff]  }
 0x4b0   :  { %10858 = vmatpush3.bf16.msra.mxu0 %v11825_v4  ;;  %v11879_v4 = vld [vmem:[#allocation7 + $0x438] sm:$0xff]  }
 0x4b1   :  { %10859 = vmatprep.subr.bf16.mxu0 %v11828_v19  ;;  %v5106_v19 = vrot.slane %v10281_v0, 2  ;;  %v11931_v0 = vld [vmem:[#allocation7 + $0x598] sm:$0xff]  }
 0x4b2   :  { %10882 = vmatpush3.bf16.msra.mxu1 %v11827_v49  ;;  %v11884_v49 = vld [vmem:[#allocation7 + $0x470] sm:$0xff]  }
 0x4b3   :  { %10883 = vmatprep.subr.bf16.mxu1 %v11830_v8  ;;  %v10318_v8 = vcombine.high %v14795_v7, %v14795_v7 }
 0x4b4   :  { %10860 = vmatpush3.bf16.msra.mxu0 %v11829_v28  ;;  %v11883_v28 = vld [vmem:[#allocation7 + $0x4b0] sm:$0xff]  }
 0x4b5   :  { %10861 = vmatprep.subr.bf16.mxu0 %v11832_v52  ;;  %v11886_v52 = vld [vmem:[#allocation7 + $0x4e8] sm:$0xff]  }
 0x4b6   :  { %10884 = vmatpush3.bf16.msra.mxu1 %v11831_v17  ;;  %v11885_v17 = vld [vmem:[#allocation7 + $0x430] sm:$0xff]  }
 0x4b7   :  { %10885 = vmatprep.subr.bf16.mxu1 %v11834_v26  ;;  %v11888_v26 = vld [vmem:[#allocation7 + $0x468] sm:$0xff]  }
 0x4b8   :  { %10862 = vmatpush3.bf16.msra.mxu0 %v11833_v20  ;;  %v11887_v20 = vld [vmem:[#allocation7 + $0x4a8] sm:$0xff]  }
 0x4b9   :  { %10863 = vmatprep.subr.bf16.mxu0 %v11836_v24  ;;  %v11890_v24 = vld [vmem:[#allocation7 + $0x4e0] sm:$0xff]  }
 0x4ba   :  { %10886 = vmatpush3.bf16.msra.mxu1 %v11835_v62  ;;  %v11892_v62 = vld [vmem:[#allocation7 + $0x460] sm:$0xff]  }
 0x4bb   :  { %10915 = vmatprep.subr.bf16.mxu1 %v11838_v2  ;;  %v11894_v2 = vld [vmem:[#allocation7 + $0x4d8] sm:$0xff]  }
 0x4bc   :  { %10864 = vmatpush3.bf16.msra.mxu0 %v11837_v40  ;;  %v11896_v40 = vld [vmem:[#allocation7 + $0x458] sm:$0xff]  }
 0x4bd   :  { %5059 = vmatmul.mubr.bf16.vlgmr.msra.gmra.mxu1 %v4926_v56  ;;  %10893 = vmatprep.subr.bf16.mxu0 %v11842_v12  ;;  %v11898_v12 = vld [vmem:[#allocation7 + $0x4d0] sm:$0xff]  }
 0x4be   :  { %10916 = vmatpush3.bf16.msra.mxu1 %v11839_v55  ;;  %5418 = vmatprep.mubr.bf16.mxu1 %v5287_v32  ;;  %v11897_v55 = vld [vmem:[#allocation7 + $0x418] sm:$0xff]   ;;  %v11899_v56 = vld [vmem:[#allocation7 + $0x490] sm:$0xff]  }
 0x4bf   :  { %4879 = vmatmul.mubr.bf16.vlgmr.msra.gmra.mxu0 %v10245_v63  ;;  %10917 = vmatprep.subr.bf16.mxu1 %v11846_v60  ;;  %v11902_v60 = vld [vmem:[#allocation7 + $0x4c8] sm:$0xff]   ;;  %v11901_v32 = vld [vmem:[#allocation7 + $0x410] sm:$0xff]  }
 0x4c0   :  { %10894 = vmatpush3.bf16.msra.mxu0 %v11843_v29  ;;  %5238 = vmatprep.mubr.bf16.mxu0 %v5107_v23  ;;  %v11904_v29 = vld [vmem:[#allocation7 + $0x448] sm:$0xff]  }
 0x4c1   :  { %10895 = vmatprep.subr.bf16.mxu0 %v11848_v59  ;;  %v11903_v63 = vld [vmem:[#allocation7 + $0x488] sm:$0xff]   ;;  %v11906_v59 = vld [vmem:[#allocation7 + $0x4c0] sm:$0xff]  }
 0x4c2   :  { %10918 = vmatpush3.bf16.msra.mxu1 %v11847_v43  ;;  %v11905_v23 = vld [vmem:[#allocation7 + $0x408] sm:$0xff]   ;;  %v11908_v43 = vld [vmem:[#allocation7 + $0x440] sm:$0xff]  }
 0x4c3   :  { %10919 = vmatprep.subr.bf16.mxu1 %v11850_v22  ;;  %v14799_v22 = vld [vmem:[#allocation3 + $0x18] sm:$0x88] }
 0x4c4   :  { %10896 = vmatpush3.bf16.msra.mxu0 %v11849_v31  ;;  %v11907_v31 = vld [vmem:[#allocation7 + $0x480] sm:$0xff]  }
 0x4c5   :  { %10897 = vmatprep.subr.bf16.mxu0 %v11852_v46  ;;  %v10335_v46 = vcombine.low %v14787_v34, %v14787_v34  ;;  %v11925_v34 = vld [vmem:[#allocation7 + $0x528] sm:$0xff]  }
 0x4c6   :  { %10920 = vmatpush3.bf16.msra.mxu1 %v11851_v37  ;;  %v11910_v37 = vld [vmem:[#allocation7 + $0x5f8] sm:$0xff]  }
 0x4c7   :  { %10921 = vmatprep.subr.bf16.mxu1 %v11854_v27  ;;  %v14803_v27 = vld [vmem:[#allocation3 + $0x18] sm:$0x44] }
 0x4c8   :  { %10898 = vmatpush3.bf16.msra.mxu0 %v11853_v39  ;;  %v11909_v39 = vld [vmem:[#allocation7 + $0x400] sm:$0xff]  }
 0x4c9   :  { %10899 = vmatprep.subr.bf16.mxu0 %v11856_v6  ;;  %v10372_v6 = vcombine.high %v14799_v22, %v14799_v22 }
 0x4ca   :  { %10922 = vmatpush3.bf16.msra.mxu1 %v11855_v18  ;;  %v11914_v18 = vld [vmem:[#allocation7 + $0x578] sm:$0xff]  }
 0x4cb   :  { %10923 = vmatprep.subr.bf16.mxu1 %v11858_v61  ;;  %v11911_v61 = vld [vmem:[#allocation7 + $0x5b8] sm:$0xff]  }
 0x4cc   :  { %10900 = vmatpush3.bf16.msra.mxu0 %v11857_v54  ;;  %v10354_v54 = vcombine.high %v14803_v27, %v14803_v27 }
 0x4cd   :  { %10901 = vmatprep.subr.bf16.mxu0 %v11860_v9  ;;  %v5644_v9 = vrot.slane %v10335_v46, 1  ;;  %v11963_v46 = vld [vmem:[#allocation7 + $0x6a0] sm:$0xff]  }
 0x4ce   :  { %10924 = vmatpush3.bf16.msra.mxu1 %v11859_v25  ;;  %v11918_v25 = vld [vmem:[#allocation7 + $0x5f0] sm:$0xff]  }
 0x4cf   :  { %10925 = vmatprep.subr.bf16.mxu1 %v11862_v42  ;;  %v6005_v42 = vrot.slane %v10372_v6, 3  ;;  %v11967_v6 = vld [vmem:[#allocation7 + $0x698] sm:$0xff]  }
 0x4d0   :  { %10902 = vmatpush3.bf16.msra.mxu0 %v11861_v30  ;;  %v11915_v30 = vld [vmem:[#allocation7 + $0x538] sm:$0xff]  }
 0x4d1   :  { %10903 = vmatprep.subr.bf16.mxu0 %v11864_v45  ;;  %v10317_v45 = vcombine.low %v14795_v7, %v14795_v7  ;;  %v11935_v7 = vld [vmem:[#allocation7 + $0x590] sm:$0xff]  }
 0x4d2   :  { %10926 = vmatpush3.bf16.msra.mxu1 %v11863_v57  ;;  %v11920_v57 = vld [vmem:[#allocation7 + $0x570] sm:$0xff]  }
 0x4d3   :  { %10927 = vmatprep.subr.bf16.mxu1 %v11866_v13  ;;  %v5825_v13 = vrot.slane %v10354_v54, 2  ;;  %v11972_v54 = vld [vmem:[#allocation7 + $0x650] sm:$0xff]  }
 0x4d4   :  { %10904 = vmatpush3.bf16.msra.mxu0 %v11865_v51  ;;  %v11919_v51 = vld [vmem:[#allocation7 + $0x5b0] sm:$0xff]  }
 0x4d5   :  { %10905 = vmatprep.subr.bf16.mxu0 %v11868_v5  ;;  %v11922_v5 = vld [vmem:[#allocation7 + $0x5e8] sm:$0xff]  }
 0x4d6   :  { %10928 = vmatpush3.bf16.msra.mxu1 %v11867_v58  ;;  %v11921_v58 = vld [vmem:[#allocation7 + $0x530] sm:$0xff]  }
 0x4d7   :  { %10929 = vmatprep.subr.bf16.mxu1 %v11870_v33  ;;  %v11924_v33 = vld [vmem:[#allocation7 + $0x568] sm:$0xff]  }
 0x4d8   :  { %10906 = vmatpush3.bf16.msra.mxu0 %v11869_v3  ;;  %v11923_v3 = vld [vmem:[#allocation7 + $0x5a8] sm:$0xff]  }
 0x4d9   :  { %10907 = vmatprep.subr.bf16.mxu0 %v11872_v48  ;;  %v11926_v48 = vld [vmem:[#allocation7 + $0x5e0] sm:$0xff]  }
 0x4da   :  { %10930 = vmatpush3.bf16.msra.mxu1 %v11871_v11  ;;  %v11928_v11 = vld [vmem:[#allocation7 + $0x560] sm:$0xff]  }
 0x4db   :  { %10959 = vmatprep.subr.bf16.mxu1 %v11874_v10  ;;  %v11930_v10 = vld [vmem:[#allocation7 + $0x5d8] sm:$0xff]  }
 0x4dc   :  { %10908 = vmatpush3.bf16.msra.mxu0 %v11873_v47  ;;  %v11929_v47 = vld [vmem:[#allocation7 + $0x520] sm:$0xff]  }
 0x4dd   :  { %5419 = vmatmul.mubr.bf16.vlgmr.msra.gmra.mxu1 %v5286_v36  ;;  %10937 = vmatprep.subr.bf16.mxu0 %v11878_v16  ;;  %v11934_v16 = vld [vmem:[#allocation7 + $0x5d0] sm:$0xff]  }
 0x4de   :  { %10960 = vmatpush3.bf16.msra.mxu1 %v11875_v15  ;;  %5776 = vmatprep.mubr.bf16.mxu1 %v5645_v44  ;;  %v11933_v15 = vld [vmem:[#allocation7 + $0x518] sm:$0xff]   ;;  %v11936_v36 = vld [vmem:[#allocation7 + $0x550] sm:$0xff]  }
 0x4df   :  { %5239 = vmatmul.mubr.bf16.vlgmr.msra.gmra.mxu0 %v5106_v19  ;;  %10961 = vmatprep.subr.bf16.mxu1 %v11882_v1  ;;  %v11938_v1 = vld [vmem:[#allocation7 + $0x5c8] sm:$0xff]   ;;  %v11937_v44 = vld [vmem:[#allocation7 + $0x510] sm:$0xff]  }
 0x4e0   :  { %10938 = vmatpush3.bf16.msra.mxu0 %v11879_v4  ;;  %5596 = vmatprep.mubr.bf16.mxu0 %v10318_v8  ;;  %v11940_v4 = vld [vmem:[#allocation7 + $0x548] sm:$0xff]  }
 0x4e1   :  { %10939 = vmatprep.subr.bf16.mxu0 %v11884_v49  ;;  %v11939_v19 = vld [vmem:[#allocation7 + $0x588] sm:$0xff]   ;;  %v11942_v49 = vld [vmem:[#allocation7 + $0x5c0] sm:$0xff]  }
 0x4e2   :  { %10962 = vmatpush3.bf16.msra.mxu1 %v11883_v28  ;;  %v11941_v8 = vld [vmem:[#allocation7 + $0x508] sm:$0xff]   ;;  %v11944_v28 = vld [vmem:[#allocation7 + $0x540] sm:$0xff]  }
 0x4e3   :  { %10963 = vmatprep.subr.bf16.mxu1 %v11886_v52  ;;  %v14811_v52 = vld [vmem:[#allocation3 + $0x10] sm:$0x22] }
 0x4e4   :  { %10940 = vmatpush3.bf16.msra.mxu0 %v11885_v17  ;;  %v11943_v17 = vld [vmem:[#allocation7 + $0x580] sm:$0xff]  }
 0x4e5   :  { %10941 = vmatprep.subr.bf16.mxu0 %v11888_v26  ;;  %v10371_v26 = vcombine.low %v14799_v22, %v14799_v22  ;;  %v11961_v22 = vld [vmem:[#allocation7 + $0x628] sm:$0xff]  }
 0x4e6   :  { %10964 = vmatpush3.bf16.msra.mxu1 %v11887_v20  ;;  %v11946_v20 = vld [vmem:[#allocation7 + $0x6f8] sm:$0xff]  }
 0x4e7   :  { %10965 = vmatprep.subr.bf16.mxu1 %v11890_v24  ;;  %v11945_v24 = vld [vmem:[#allocation7 + $0x500] sm:$0xff]  }
 0x4e8   :  { %10942 = vmatpush3.bf16.msra.mxu0 %v11889_v35  ;;  %v10408_v35 = vcombine.high %v14811_v52, %v14811_v52 }
 0x4e9   :  { %10943 = vmatprep.subr.bf16.mxu0 %v11892_v62  ;;  %v10353_v62 = vcombine.low %v14803_v27, %v14803_v27  ;;  %v11965_v27 = vld [vmem:[#allocation7 + $0x620] sm:$0xff]  }
 0x4ea   :  { %10966 = vmatpush3.bf16.msra.mxu1 %v11891_v50  ;;  %v11950_v50 = vld [vmem:[#allocation7 + $0x678] sm:$0xff]  }
 0x4eb   :  { %10967 = vmatprep.subr.bf16.mxu1 %v11894_v2  ;;  %v11947_v2 = vld [vmem:[#allocation7 + $0x6b8] sm:$0xff]  }
 0x4ec   :  { %10944 = vmatpush3.bf16.msra.mxu0 %v11893_v14  ;;  %v6004_v14 = vrot.slane %v10371_v26, 3  ;;  %v11993_v26 = vld [vmem:[#allocation7 + $0x730] sm:$0xff]  }
 0x4ed   :  { %10945 = vmatprep.subr.bf16.mxu0 %v11896_v40  ;;  %v14819_v40 = vld [vmem:[#allocation3 + $0x10] sm:$0x11] }
 0x4ee   :  { %10968 = vmatpush3.bf16.msra.mxu1 %v11895_v21  ;;  %v11954_v21 = vld [vmem:[#allocation7 + $0x6f0] sm:$0xff]  }
 0x4ef   :  { %10969 = vmatprep.subr.bf16.mxu1 %v11898_v12  ;;  %v6363_v12 = vrot.slane %v10408_v35, 1 }
 0x4f0   :  { %10946 = vmatpush3.bf16.msra.mxu0 %v11897_v55  ;;  %v11951_v55 = vld [vmem:[#allocation7 + $0x638] sm:$0xff]  }
 0x4f1   :  { %10947 = vmatprep.subr.bf16.mxu0 %v11900_v53  ;;  %v5824_v53 = vrot.slane %v10353_v62, 2 }
 0x4f2   :  { %10970 = vmatpush3.bf16.msra.mxu1 %v11899_v56  ;;  %v11956_v56 = vld [vmem:[#allocation7 + $0x670] sm:$0xff]  }
 0x4f3   :  { %10971 = vmatprep.subr.bf16.mxu1 %v11902_v60  ;;  %v10390_v60 = vcombine.high %v14819_v40, %v14819_v40 }
 0x4f4   :  { %10948 = vmatpush3.bf16.msra.mxu0 %v11901_v32  ;;  %v11955_v32 = vld [vmem:[#allocation7 + $0x6b0] sm:$0xff]  }
 0x4f5   :  { %10949 = vmatprep.subr.bf16.mxu0 %v11904_v29  ;;  %v11958_v29 = vld [vmem:[#allocation7 + $0x6e8] sm:$0xff]  }
 0x4f6   :  { %10972 = vmatpush3.bf16.msra.mxu1 %v11903_v63  ;;  %v11957_v63 = vld [vmem:[#allocation7 + $0x630] sm:$0xff]  }
 0x4f7   :  { %10973 = vmatprep.subr.bf16.mxu1 %v11906_v59  ;;  %v11960_v59 = vld [vmem:[#allocation7 + $0x668] sm:$0xff]  }
 0x4f8   :  { %10950 = vmatpush3.bf16.msra.mxu0 %v11905_v23  ;;  %v11959_v23 = vld [vmem:[#allocation7 + $0x6a8] sm:$0xff]  }
 0x4f9   :  { %10951 = vmatprep.subr.bf16.mxu0 %v11908_v43  ;;  %v11962_v43 = vld [vmem:[#allocation7 + $0x6e0] sm:$0xff]  }
 0x4fa   :  { %10974 = vmatpush3.bf16.msra.mxu1 %v11907_v31  ;;  %v11964_v31 = vld [vmem:[#allocation7 + $0x660] sm:$0xff]  }
 0x4fb   :  { %11003 = vmatprep.subr.bf16.mxu1 %v11910_v37  ;;  %v11966_v37 = vld [vmem:[#allocation7 + $0x6d8] sm:$0xff]  }
 0x4fc   :  { %10952 = vmatpush3.bf16.msra.mxu0 %v11909_v39  ;;  %v11968_v39 = vld [vmem:[#allocation7 + $0x658] sm:$0xff]  }
 0x4fd   :  { %5777 = vmatmul.mubr.bf16.vlgmr.msra.gmra.mxu1 %v5644_v9  ;;  %10981 = vmatprep.subr.bf16.mxu0 %v11914_v18  ;;  %v11970_v18 = vld [vmem:[#allocation7 + $0x6d0] sm:$0xff]  }
 0x4fe   :  { %11004 = vmatpush3.bf16.msra.mxu1 %v11911_v61  ;;  %6136 = vmatprep.mubr.bf16.mxu1 %v6005_v42  ;;  %v11969_v61 = vld [vmem:[#allocation7 + $0x618] sm:$0xff]   ;;  %v11971_v9 = vld [vmem:[#allocation7 + $0x690] sm:$0xff]  }
 0x4ff   :  { %5597 = vmatmul.mubr.bf16.vlgmr.msra.gmra.mxu0 %v10317_v45  ;;  %11005 = vmatprep.subr.bf16.mxu1 %v11918_v25  ;;  %v11974_v25 = vld [vmem:[#allocation7 + $0x6c8] sm:$0xff]   ;;  %v11973_v42 = vld [vmem:[#allocation7 + $0x610] sm:$0xff]  }
 0x500   :  { %10982 = vmatpush3.bf16.msra.mxu0 %v11915_v30  ;;  %5956 = vmatprep.mubr.bf16.mxu0 %v5825_v13  ;;  %v11976_v30 = vld [vmem:[#allocation7 + $0x648] sm:$0xff]  }
 0x501   :  { %10983 = vmatprep.subr.bf16.mxu0 %v11920_v57  ;;  %v11975_v45 = vld [vmem:[#allocation7 + $0x688] sm:$0xff]   ;;  %v11978_v57 = vld [vmem:[#allocation7 + $0x6c0] sm:$0xff]  }
 0x502   :  { %11006 = vmatpush3.bf16.msra.mxu1 %v11919_v51  ;;  %v11977_v13 = vld [vmem:[#allocation7 + $0x608] sm:$0xff]   ;;  %v11980_v51 = vld [vmem:[#allocation7 + $0x640] sm:$0xff]  }
 0x503   :  { %11007 = vmatprep.subr.bf16.mxu1 %v11922_v5  ;;  %v14823_v5 = vld [vmem:[#allocation3 + $0x10] sm:$0x88] }
 0x504   :  { %10984 = vmatpush3.bf16.msra.mxu0 %v11921_v58  ;;  %v11979_v58 = vld [vmem:[#allocation7 + $0x680] sm:$0xff]  }
 0x505   :  { %10985 = vmatprep.subr.bf16.mxu0 %v11924_v33  ;;  %v10407_v33 = vcombine.low %v14811_v52, %v14811_v52 }
 0x506   :  { %11008 = vmatpush3.bf16.msra.mxu1 %v11923_v3  ;;  %v11982_v3 = vld [vmem:[#allocation7 + $0x7f8] sm:$0xff]  }
 0x507   :  { %11009 = vmatprep.subr.bf16.mxu1 %v11926_v48  ;;  %v14827_v48 = vld [vmem:[#allocation3 + $0x10] sm:$0x44] }
 0x508   :  { %10986 = vmatpush3.bf16.msra.mxu0 %v11925_v34  ;;  %v11981_v34 = vld [vmem:[#allocation7 + $0x600] sm:$0xff]  }
 0x509   :  { %10987 = vmatprep.subr.bf16.mxu0 %v11928_v11  ;;  %v10444_v11 = vcombine.high %v14823_v5, %v14823_v5 }
 0x50a   :  { %11010 = vmatpush3.bf16.msra.mxu1 %v11927_v41  ;;  %v11986_v41 = vld [vmem:[#allocation7 + $0x778] sm:$0xff]  }
 0x50b   :  { %11011 = vmatprep.subr.bf16.mxu1 %v11930_v10  ;;  %v11983_v10 = vld [vmem:[#allocation7 + $0x7b8] sm:$0xff]  }
 0x50c   :  { %10988 = vmatpush3.bf16.msra.mxu0 %v11929_v47  ;;  %v10426_v47 = vcombine.high %v14827_v48, %v14827_v48 }
 0x50d   :  { %10989 = vmatprep.subr.bf16.mxu0 %v11932_v38  ;;  %v6362_v38 = vrot.slane %v10407_v33, 1 }
 0x50e   :  { %11012 = vmatpush3.bf16.msra.mxu1 %v11931_v0  ;;  %v11990_v0 = vld [vmem:[#allocation7 + $0x7f0] sm:$0xff]  }
 0x50f   :  { %11013 = vmatprep.subr.bf16.mxu1 %v11934_v16 }
 0x510   :  { %10990 = vmatpush3.bf16.msra.mxu0 %v11933_v15  ;;  %v6723_v15 = vrot.slane %v10444_v11, 3  ;;  %v12027_v11 = vld [vmem:[#allocation7 + $0x8b0] sm:$0xff]  }
 0x511   :  { %10991 = vmatprep.subr.bf16.mxu0 %v11936_v36  ;;  %v11987_v36 = vld [vmem:[#allocation7 + $0x738] sm:$0xff]  }
 0x512   :  { %11014 = vmatpush3.bf16.msra.mxu1 %v11935_v7  ;;  %v10389_v7 = vcombine.low %v14819_v40, %v14819_v40 }
 0x513   :  { %11015 = vmatprep.subr.bf16.mxu1 %v11938_v1  ;;  %v11992_v1 = vld [vmem:[#allocation7 + $0x770] sm:$0xff]  }
 0x514   :  { %10992 = vmatpush3.bf16.msra.mxu0 %v11937_v44 }
 0x515   :  { %10993 = vmatprep.subr.bf16.mxu0 %v11940_v4 }
 0x516   :  { %11016 = vmatpush3.bf16.msra.mxu1 %v11939_v19  ;;  %v6543_v19 = vrot.slane %v10426_v47, 2  ;;  %v12030_v47 = vld [vmem:[#allocation7 + $0x8e8] sm:$0xff]  }
 0x517   :  { %11017 = vmatprep.subr.bf16.mxu1 %v11942_v49  ;;  %v11991_v49 = vld [vmem:[#allocation7 + $0x7b0] sm:$0xff]  }
 0x518   :  { %10994 = vmatpush3.bf16.msra.mxu0 %v11941_v8 }
 0x519   :  { %10995 = vmatprep.subr.bf16.mxu0 %v11944_v28  ;;  %v11994_v28 = vld [vmem:[#allocation7 + $0x7e8] sm:$0xff]  }
 0x51a   :  { %11018 = vmatpush3.bf16.msra.mxu1 %v11943_v17 }
 0x51b   :  { %11047 = vmatprep.subr.bf16.mxu1 %v11946_v20 }
 0x51c   :  { %10996 = vmatpush3.bf16.msra.mxu0 %v11945_v24  ;;  %v11996_v24 = vld [vmem:[#allocation7 + $0x768] sm:$0xff]  }
 0x51d   :  { %6137 = vmatmul.mubr.bf16.vlgmr.msra.gmra.mxu1 %v6004_v14  ;;  %11025 = vmatprep.subr.bf16.mxu0 %v11950_v50  ;;  %v11995_v50 = vld [vmem:[#allocation7 + $0x7a8] sm:$0xff]   ;;  %v11998_v14 = vld [vmem:[#allocation7 + $0x7e0] sm:$0xff]  }
 0x51e   :  { %11048 = vmatpush3.bf16.msra.mxu1 %v11947_v2  ;;  %6494 = vmatprep.mubr.bf16.mxu1 %v6363_v12  ;;  %v12000_v12 = vld [vmem:[#allocation7 + $0x760] sm:$0xff]  }
 0x51f   :  { %5957 = vmatmul.mubr.bf16.vlgmr.msra.gmra.mxu0 %v5824_v53  ;;  %11049 = vmatprep.subr.bf16.mxu1 %v11954_v21  ;;  %v11997_v21 = vld [vmem:[#allocation7 + $0x728] sm:$0xff]   ;;  %v12002_v53 = vld [vmem:[#allocation7 + $0x7d8] sm:$0xff]  }
 0x520   :  { %11026 = vmatpush3.bf16.msra.mxu0 %v11951_v55  ;;  %6314 = vmatprep.mubr.bf16.mxu0 %v10390_v60  ;;  %v11999_v55 = vld [vmem:[#allocation7 + $0x7a0] sm:$0xff]   ;;  %v12004_v60 = vld [vmem:[#allocation7 + $0x758] sm:$0xff]  }
 0x521   :  { %11027 = vmatprep.subr.bf16.mxu0 %v11956_v56  ;;  %v12001_v56 = vld [vmem:[#allocation7 + $0x720] sm:$0xff]  }
 0x522   :  { %11050 = vmatpush3.bf16.msra.mxu1 %v11955_v32  ;;  %v12003_v32 = vld [vmem:[#allocation7 + $0x798] sm:$0xff]  }
 0x523   :  { %11051 = vmatprep.subr.bf16.mxu1 %v11958_v29  ;;  %v12006_v29 = vld [vmem:[#allocation7 + $0x7d0] sm:$0xff]  }
 0x524   :  { %11028 = vmatpush3.bf16.msra.mxu0 %v11957_v63  ;;  %v12005_v63 = vld [vmem:[#allocation7 + $0x718] sm:$0xff]  }
 0x525   :  { %11029 = vmatprep.subr.bf16.mxu0 %v11960_v59  ;;  %v12008_v59 = vld [vmem:[#allocation7 + $0x750] sm:$0xff]  }
 0x526   :  { %11052 = vmatpush3.bf16.msra.mxu1 %v11959_v23  ;;  %v12007_v23 = vld [vmem:[#allocation7 + $0x790] sm:$0xff]  }
 0x527   :  { %11053 = vmatprep.subr.bf16.mxu1 %v11962_v43  ;;  %v12010_v43 = vld [vmem:[#allocation7 + $0x7c8] sm:$0xff]  }
 0x528   :  { %11030 = vmatpush3.bf16.msra.mxu0 %v11961_v22  ;;  %v12009_v22 = vld [vmem:[#allocation7 + $0x710] sm:$0xff]  }
 0x529   :  { %11031 = vmatprep.subr.bf16.mxu0 %v11964_v31  ;;  %v12012_v31 = vld [vmem:[#allocation7 + $0x748] sm:$0xff]  }
 0x52a   :  { %11054 = vmatpush3.bf16.msra.mxu1 %v11963_v46  ;;  %v12011_v46 = vld [vmem:[#allocation7 + $0x788] sm:$0xff]  }
 0x52b   :  { %11055 = vmatprep.subr.bf16.mxu1 %v11966_v37  ;;  %v12014_v37 = vld [vmem:[#allocation7 + $0x7c0] sm:$0xff]  }
 0x52c   :  { %11032 = vmatpush3.bf16.msra.mxu0 %v11965_v27  ;;  %v12013_v27 = vld [vmem:[#allocation7 + $0x708] sm:$0xff]  }
 0x52d   :  { %11033 = vmatprep.subr.bf16.mxu0 %v11968_v39  ;;  %v12016_v39 = vld [vmem:[#allocation7 + $0x740] sm:$0xff]  }
 0x52e   :  { %11056 = vmatpush3.bf16.msra.mxu1 %v11967_v6  ;;  %v14837_v6 = vld [vmem:[#allocation3 + $0x8] sm:$0x22] }
 0x52f   :  { %11057 = vmatprep.subr.bf16.mxu1 %v11970_v18  ;;  %v12015_v18 = vld [vmem:[#allocation7 + $0x780] sm:$0xff]  }
 0x530   :  { %11034 = vmatpush3.bf16.msra.mxu0 %v11969_v61  ;;  %v10443_v61 = vcombine.low %v14823_v5, %v14823_v5 }
 0x531   :  { %11035 = vmatprep.subr.bf16.mxu0 %v11972_v54  ;;  %v12018_v54 = vld [vmem:[#allocation7 + $0x8f8] sm:$0xff]  }
 0x532   :  { %11058 = vmatpush3.bf16.msra.mxu1 %v11971_v9  ;;  %v12017_v9 = vld [vmem:[#allocation7 + $0x700] sm:$0xff]  }
 0x533   :  { %11059 = vmatprep.subr.bf16.mxu1 %v11974_v25  ;;  %v10480_v25 = vcombine.high %v14837_v6, %v14837_v6 }
 0x534   :  { %11036 = vmatpush3.bf16.msra.mxu0 %v11973_v42  ;;  %v10425_v42 = vcombine.low %v14827_v48, %v14827_v48 }
 0x535   :  { %11037 = vmatprep.subr.bf16.mxu0 %v11976_v30  ;;  %v12022_v30 = vld [vmem:[#allocation7 + $0x878] sm:$0xff]   ;;  %v7081_v5 = vrot.slane %v10480_v25, 1  ;;  %v12064_v25 = vld [vmem:[#allocation7 + $0x970] sm:$0xff]  }
 0x536   :  { %11060 = vmatpush3.bf16.msra.mxu1 %v11975_v45  ;;  %v12019_v45 = vld [vmem:[#allocation7 + $0x8b8] sm:$0xff]   ;;  %v6542_v33 = vrot.slane %v10425_v42, 2 }
 0x537   :  { %11061 = vmatprep.subr.bf16.mxu1 %v11978_v57  ;;  %v6722_v57 = vrot.slane %v10443_v61, 3  ;;  %v12059_v61 = vld [vmem:[#allocation7 + $0x938] sm:$0xff]  }
 0x538   :  { %11038 = vmatpush3.bf16.msra.mxu0 %v11977_v13  ;;  %v14845_v13 = vld [vmem:[#allocation3 + $0x8] sm:$0x11] }
 0x539   :  { %11039 = vmatprep.subr.bf16.mxu0 %v11980_v51  ;;  %v12026_v51 = vld [vmem:[#allocation7 + $0x8f0] sm:$0xff]   ;;  %v10462_v48 = vcombine.high %v14845_v13, %v14845_v13 }
 0x53a   :  { %11062 = vmatpush3.bf16.msra.mxu1 %v11979_v58  ;;  %v12023_v58 = vld [vmem:[#allocation7 + $0x838] sm:$0xff]  }
 0x53b   :  { %11091 = vmatprep.subr.bf16.mxu1 %v11982_v3 }
 0x53c   :  { %11040 = vmatpush3.bf16.msra.mxu0 %v11981_v34  ;;  %v12028_v34 = vld [vmem:[#allocation7 + $0x870] sm:$0xff]  }
 0x53d   :  { %v10799_v16 = vpop.f32.mrf.mxu1  ;;  %6495 = vmatmul.mubr.bf16.vlgmr.msra.gmra.mxu1 %v6362_v38  ;;  %11069 = vmatprep.subr.bf16.mxu0 %v11986_v41 }
 0x53e   :  { %11092 = vmatpush3.bf16.msra.mxu1 %v11983_v10  ;;  %6854 = vmatprep.mubr.bf16.mxu1 %v6723_v15 }
 0x53f   :  { %v10777_v44 = vpop.f32.mrf.mxu0  ;;  %v10800_v4 = vpop.f32.mrf.mxu1  ;;  %6315 = vmatmul.mubr.bf16.vlgmr.msra.gmra.mxu0 %v10389_v7  ;;  %11093 = vmatprep.subr.bf16.mxu1 %v11990_v0  ;;  %v12029_v0 = vld [vmem:[#allocation7 + $0x830] sm:$0xff]  }
 0x540   :  { %v10801_v8 = vadd.f32 %v10800_v4, %v10799_v16  ;;  %11070 = vmatpush3.bf16.msra.mxu0 %v11987_v36  ;;  %6674 = vmatprep.mubr.bf16.mxu0 %v6543_v19  ;;  %v12032_v36 = vld [vmem:[#allocation7 + $0x868] sm:$0xff]   ;;  %v12034_v19 = vld [vmem:[#allocation7 + $0x8e0] sm:$0xff]  }
 0x541   :  { %v10778_v52 = vpop.f32.mrf.mxu0  ;;  %v10802_v17 = vpop.f32.mrf.mxu1  ;;  %11071 = vmatprep.subr.bf16.mxu0 %v11992_v1  ;;  %v12031_v1 = vld [vmem:[#allocation7 + $0x8a8] sm:$0xff]  }
 0x542   :  { %v10779_v20 = vadd.f32 %v10778_v52, %v10777_v44  ;;  %11094 = vmatpush3.bf16.msra.mxu1 %v11991_v49  ;;  %v12036_v52 = vld [vmem:[#allocation7 + $0x860] sm:$0xff]  }
 0x543   :  { %v10780_v35 = vpop.f32.mrf.mxu0  ;;  %v10803_v62 = vpop.f32.mrf.mxu1  ;;  %11095 = vmatprep.subr.bf16.mxu1 %v11994_v28  ;;  %v12035_v17 = vld [vmem:[#allocation7 + $0x8a0] sm:$0xff]  }
 0x544   :  { %v14835_v2 = vadd.f32 %v10801_v8, %v10779_v20  ;;  %11072 = vmatpush3.bf16.msra.mxu0 %v11993_v26  ;;  %v12033_v8 = vld [vmem:[#allocation7 + $0x828] sm:$0xff]   ;;  %v12038_v20 = vld [vmem:[#allocation7 + $0x8d8] sm:$0xff]  }
 0x545   :  { %v10781_v40 = vpop.f32.mrf.mxu0  ;;  %11073 = vmatprep.subr.bf16.mxu0 %v11996_v24  ;;  %v12037_v24 = vld [vmem:[#allocation7 + $0x820] sm:$0xff]   ;;  %v12040_v35 = vld [vmem:[#allocation7 + $0x858] sm:$0xff]  }
 0x546   :  { %11096 = vmatpush3.bf16.msra.mxu1 %v11995_v50  ;;  %v12039_v62 = vld [vmem:[#allocation7 + $0x898] sm:$0xff]   ;;  %v12042_v50 = vld [vmem:[#allocation7 + $0x8d0] sm:$0xff]  }
 0x547   :  { %11097 = vmatprep.subr.bf16.mxu1 %v11998_v14  ;;  %v12044_v14 = vld [vmem:[#allocation7 + $0x850] sm:$0xff]  }
 0x548   :  { %11074 = vmatpush3.bf16.msra.mxu0 %v11997_v21  ;;  %v12043_v40 = vld [vmem:[#allocation7 + $0x890] sm:$0xff]   ;;  %v12046_v21 = vld [vmem:[#allocation7 + $0x8c8] sm:$0xff]  }
 0x549   :  { %11075 = vmatprep.subr.bf16.mxu0 %v12000_v12  ;;  %v12045_v12 = vld [vmem:[#allocation7 + $0x810] sm:$0xff]  }
 0x54a   :  { %11098 = vmatpush3.bf16.msra.mxu1 %v11999_v55  ;;  %v12048_v55 = vld [vmem:[#allocation7 + $0x848] sm:$0xff]  }
 0x54b   :  { %11099 = vmatprep.subr.bf16.mxu1 %v12002_v53  ;;  %v12047_v53 = vld [vmem:[#allocation7 + $0x888] sm:$0xff]  }
 0x54c   :  { %11076 = vmatpush3.bf16.msra.mxu0 %v12001_v56  ;;  %v12050_v56 = vld [vmem:[#allocation7 + $0x8c0] sm:$0xff]  }
 0x54d   :  { %11077 = vmatprep.subr.bf16.mxu0 %v12004_v60  ;;  %v12049_v60 = vld [vmem:[#allocation7 + $0x808] sm:$0xff]  }
 0x54e   :  { %11100 = vmatpush3.bf16.msra.mxu1 %v12003_v32  ;;  %v12052_v32 = vld [vmem:[#allocation7 + $0x840] sm:$0xff]  }
 0x54f   :  { %11101 = vmatprep.subr.bf16.mxu1 %v12006_v29  ;;  %v14852_v29 = vld [vmem:[#allocation3 + $0x8] sm:$0x88] }
 0x550   :  { %11078 = vmatpush3.bf16.msra.mxu0 %v12005_v63  ;;  %v12051_v63 = vld [vmem:[#allocation7 + $0x880] sm:$0xff]  }
 0x551   :  { %11079 = vmatprep.subr.bf16.mxu0 %v12008_v59  ;;  %v10479_v59 = vcombine.low %v14837_v6, %v14837_v6 }
 0x552   :  { %11102 = vmatpush3.bf16.msra.mxu1 %v12007_v23  ;;  %v12054_v23 = vld [vmem:[#allocation7 + $0x9f8] sm:$0xff]  }
 0x553   :  { %11103 = vmatprep.subr.bf16.mxu1 %v12010_v43  ;;  %v14856_v43 = vld [vmem:[#allocation3 + $0x8] sm:$0x44] }
 0x554   :  { %11080 = vmatpush3.bf16.msra.mxu0 %v12009_v22  ;;  %v12053_v22 = vld [vmem:[#allocation7 + $0x800] sm:$0xff]  }
 0x555   :  { %11081 = vmatprep.subr.bf16.mxu0 %v12012_v31  ;;  %v10516_v31 = vcombine.high %v14852_v29, %v14852_v29 }
 0x556   :  { %11104 = vmatpush3.bf16.msra.mxu1 %v12011_v46  ;;  %v12058_v46 = vld [vmem:[#allocation7 + $0x978] sm:$0xff]  }
 0x557   :  { %11105 = vmatprep.subr.bf16.mxu1 %v12014_v37  ;;  %v12055_v37 = vld [vmem:[#allocation7 + $0x9b8] sm:$0xff]   ;;  %v7441_v6 = vrot.slane %v10516_v31, 3  ;;  %v12100_v31 = vld [vmem:[#allocation7 + $0xa70] sm:$0xff]  }
 0x558   :  { %11082 = vmatpush3.bf16.msra.mxu0 %v12013_v27  ;;  %v10498_v27 = vcombine.high %v14856_v43, %v14856_v43 }
 0x559   :  { %11083 = vmatprep.subr.bf16.mxu0 %v12016_v39  ;;  %v7080_v39 = vrot.slane %v10479_v59, 1  ;;  %v12095_v59 = vld [vmem:[#allocation7 + $0xa38] sm:$0xff]  }
 0x55a   :  { %11106 = vmatpush3.bf16.msra.mxu1 %v12015_v18  ;;  %v12062_v18 = vld [vmem:[#allocation7 + $0x9f0] sm:$0xff]   ;;  %v7261_v42 = vrot.slane %v10498_v27, 2 }
 0x55b   :  { %11135 = vmatprep.subr.bf16.mxu1 %v12018_v54  ;;  %v10461_v54 = vcombine.low %v14845_v13, %v14845_v13  ;;  %v12068_v13 = vld [vmem:[#allocation7 + $0x968] sm:$0xff]  }
 0x55c   :  { %11084 = vmatpush3.bf16.msra.mxu0 %v12017_v9 }
 0x55d   :  { %v10843_v3 = vpop.f32.mrf.mxu1  ;;  %6855 = vmatmul.mubr.bf16.vlgmr.msra.gmra.mxu1 %v6722_v57  ;;  %11113 = vmatprep.subr.bf16.mxu0 %v12022_v30  ;;  %v12063_v30 = vld [vmem:[#allocation7 + $0x9b0] sm:$0xff]  }
 0x55e   :  { %11136 = vmatpush3.bf16.msra.mxu1 %v12019_v45  ;;  %7212 = vmatprep.mubr.bf16.mxu1 %v7081_v5 }
 0x55f   :  { %v10821_v41 = vpop.f32.mrf.mxu0  ;;  %v10844_v10 = vpop.f32.mrf.mxu1  ;;  %6675 = vmatmul.mubr.bf16.vlgmr.msra.gmra.mxu0 %v6542_v33  ;;  %11137 = vmatprep.subr.bf16.mxu1 %v12026_v51  ;;  %v12066_v51 = vld [vmem:[#allocation7 + $0x9e8] sm:$0xff]  }
 0x560   :  { %v10845_v38 = vadd.f32 %v10844_v10, %v10843_v3  ;;  %11114 = vmatpush3.bf16.msra.mxu0 %v12023_v58  ;;  %7032 = vmatprep.mubr.bf16.mxu0 %v10462_v48  ;;  %v12065_v58 = vld [vmem:[#allocation7 + $0x930] sm:$0xff]   ;;  %v12067_v48 = vld [vmem:[#allocation7 + $0x9a8] sm:$0xff]   ;;  %v12070_v10 = vld [vmem:[#allocation7 + $0x9e0] sm:$0xff]  }
 0x561   :  { %v10822_v16 = vpop.f32.mrf.mxu0  ;;  %v10846_v15 = vpop.f32.mrf.mxu1  ;;  %11115 = vmatprep.subr.bf16.mxu0 %v12028_v34 }
 0x562   :  { %v10823_v7 = vadd.f32 %v10822_v16, %v10821_v41  ;;  %11138 = vmatpush3.bf16.msra.mxu1 %v12027_v11  ;;  %v12072_v16 = vld [vmem:[#allocation7 + $0x960] sm:$0xff]  }
 0x563   :  { %v10824_v44 = vpop.f32.mrf.mxu0  ;;  %v10847_v4 = vpop.f32.mrf.mxu1  ;;  %11139 = vmatprep.subr.bf16.mxu1 %v12030_v47  ;;  %v12071_v15 = vld [vmem:[#allocation7 + $0x9a0] sm:$0xff]  }
 0x564   :  { %v4528_v49 = vadd.f32 %v10823_v7, %v14835_v2  ;;  %11116 = vmatpush3.bf16.msra.mxu0 %v12029_v0  ;;  %v12041_v2 = vld [vmem:[#allocation7 + $0x818] sm:$0xff]  }
 0x565   :  { %v10825_v28 = vpop.f32.mrf.mxu0  ;;  %11117 = vmatprep.subr.bf16.mxu0 %v12032_v36  ;;  %v12074_v7 = vld [vmem:[#allocation7 + $0x9d8] sm:$0xff]  }
 0x566   :  { %11140 = vmatpush3.bf16.msra.mxu1 %v12031_v1  ;;  %v14850_v26 = vadd.f32 %v10845_v38, %v4528_v49  ;;  %v12069_v38 = vld [vmem:[#allocation7 + $0x928] sm:$0xff]   ;;  %v12073_v1 = vld [vmem:[#allocation7 + $0x920] sm:$0xff]   ;;  %v12076_v44 = vld [vmem:[#allocation7 + $0x958] sm:$0xff]  }
 0x567   :  { %11141 = vmatprep.subr.bf16.mxu1 %v12034_v19  ;;  %v12075_v4 = vld [vmem:[#allocation7 + $0x998] sm:$0xff]   ;;  %v12078_v19 = vld [vmem:[#allocation7 + $0x9d0] sm:$0xff]  }
 0x568   :  { %11118 = vmatpush3.bf16.msra.mxu0 %v12033_v8  ;;  %v12077_v49 = vld [vmem:[#allocation7 + $0x918] sm:$0xff]   ;;  %v12080_v8 = vld [vmem:[#allocation7 + $0x950] sm:$0xff]  }
 0x569   :  { %11119 = vmatprep.subr.bf16.mxu0 %v12036_v52  ;;  %v12079_v28 = vld [vmem:[#allocation7 + $0x990] sm:$0xff]   ;;  %v12082_v52 = vld [vmem:[#allocation7 + $0x9c8] sm:$0xff]  }
 0x56a   :  { %11142 = vmatpush3.bf16.msra.mxu1 %v12035_v17  ;;  %v12081_v17 = vld [vmem:[#allocation7 + $0x910] sm:$0xff]  }
 0x56b   :  { %11143 = vmatprep.subr.bf16.mxu1 %v12038_v20  ;;  %v12083_v20 = vld [vmem:[#allocation7 + $0x988] sm:$0xff]  }
 0x56c   :  { %11120 = vmatpush3.bf16.msra.mxu0 %v12037_v24  ;;  %v12086_v24 = vld [vmem:[#allocation7 + $0x9c0] sm:$0xff]  }
 0x56d   :  { %11121 = vmatprep.subr.bf16.mxu0 %v12040_v35  ;;  %v12085_v35 = vld [vmem:[#allocation7 + $0x908] sm:$0xff]  }
 0x56e   :  { %11144 = vmatpush3.bf16.msra.mxu1 %v12039_v62  ;;  %v12088_v62 = vld [vmem:[#allocation7 + $0x940] sm:$0xff]  }
 0x56f   :  { %11145 = vmatprep.subr.bf16.mxu1 %v12042_v50  ;;  %v14867_v50 = vld [vmem:[#allocation3 + $0x20] sm:$0x22] }
 0x570   :  { %11122 = vmatpush3.bf16.msra.mxu0 %v12041_v2  ;;  %v12087_v2 = vld [vmem:[#allocation7 + $0x980] sm:$0xff]  }
 0x571   :  { %11123 = vmatprep.subr.bf16.mxu0 %v12044_v14  ;;  %v10515_v14 = vcombine.low %v14852_v29, %v14852_v29 }
 0x572   :  { %11146 = vmatpush3.bf16.msra.mxu1 %v12043_v40  ;;  %v12090_v40 = vld [vmem:[#allocation7 + $0xaf8] sm:$0xff]  }
 0x573   :  { %11147 = vmatprep.subr.bf16.mxu1 %v12046_v21  ;;  %v12089_v21 = vld [vmem:[#allocation7 + $0x900] sm:$0xff]  }
 0x574   :  { %11124 = vmatpush3.bf16.msra.mxu0 %v12045_v12  ;;  %v10552_v12 = vcombine.high %v14867_v50, %v14867_v50 }
 0x575   :  { %11125 = vmatprep.subr.bf16.mxu0 %v12048_v55  ;;  %v10497_v55 = vcombine.low %v14856_v43, %v14856_v43 }
 0x576   :  { %11148 = vmatpush3.bf16.msra.mxu1 %v12047_v53  ;;  %v12094_v53 = vld [vmem:[#allocation7 + $0xa78] sm:$0xff]   ;;  %v7799_v29 = vrot.slane %v10552_v12, 1  ;;  %v12136_v12 = vld [vmem:[#allocation7 + $0xb70] sm:$0xff]  }
 0x577   :  { %11149 = vmatprep.subr.bf16.mxu1 %v12050_v56  ;;  %v12091_v56 = vld [vmem:[#allocation7 + $0xab8] sm:$0xff]  }
 0x578   :  { %11126 = vmatpush3.bf16.msra.mxu0 %v12049_v60  ;;  %v7440_v60 = vrot.slane %v10515_v14, 3  ;;  %v12131_v14 = vld [vmem:[#allocation7 + $0xb38] sm:$0xff]  }
 0x579   :  { %11127 = vmatprep.subr.bf16.mxu0 %v12052_v32  ;;  %v14875_v32 = vld [vmem:[#allocation3 + $0x20] sm:$0x11] }
 0x57a   :  { %11150 = vmatpush3.bf16.msra.mxu1 %v12051_v63  ;;  %v12098_v63 = vld [vmem:[#allocation7 + $0xaf0] sm:$0xff]   ;;  %v10534_v43 = vcombine.high %v14875_v32, %v14875_v32 }
 0x57b   :  { %11179 = vmatprep.subr.bf16.mxu1 %v12054_v23  ;;  %v7260_v23 = vrot.slane %v10497_v55, 2 }
 0x57c   :  { %11128 = vmatpush3.bf16.msra.mxu0 %v12053_v22 }
 0x57d   :  { %v10887_v9 = vpop.f32.mrf.mxu1  ;;  %7213 = vmatmul.mubr.bf16.vlgmr.msra.gmra.mxu1 %v7080_v39  ;;  %11157 = vmatprep.subr.bf16.mxu0 %v12058_v46  ;;  %v12099_v46 = vld [vmem:[#allocation7 + $0xab0] sm:$0xff]   ;;  %v12102_v39 = vld [vmem:[#allocation7 + $0xae8] sm:$0xff]  }
 0x57e   :  { %11180 = vmatpush3.bf16.msra.mxu1 %v12055_v37  ;;  %7572 = vmatprep.mubr.bf16.mxu1 %v7441_v6  ;;  %v12101_v6 = vld [vmem:[#allocation7 + $0xa30] sm:$0xff]  }
 0x57f   :  { %v10865_v45 = vpop.f32.mrf.mxu0  ;;  %v10888_v57 = vpop.f32.mrf.mxu1  ;;  %7033 = vmatmul.mubr.bf16.vlgmr.msra.gmra.mxu0 %v10461_v54  ;;  %11181 = vmatprep.subr.bf16.mxu1 %v12062_v18 }
 0x580   :  { %v10889_v5 = vadd.f32 %v10888_v57, %v10887_v9  ;;  %11158 = vmatpush3.bf16.msra.mxu0 %v12059_v61  ;;  %7392 = vmatprep.mubr.bf16.mxu0 %v7261_v42  ;;  %v12104_v9 = vld [vmem:[#allocation7 + $0xa68] sm:$0xff]   ;;  %v12106_v57 = vld [vmem:[#allocation7 + $0xae0] sm:$0xff]  }
 0x581   :  { %v10866_v33 = vpop.f32.mrf.mxu0  ;;  %v10890_v3 = vpop.f32.mrf.mxu1  ;;  %11159 = vmatprep.subr.bf16.mxu0 %v12064_v25  ;;  %v12103_v42 = vld [vmem:[#allocation7 + $0xaa8] sm:$0xff]  }
 0x582   :  { %v10867_v34 = vadd.f32 %v10866_v33, %v10865_v45  ;;  %11182 = vmatpush3.bf16.msra.mxu1 %v12063_v30  ;;  %v12108_v33 = vld [vmem:[#allocation7 + $0xa60] sm:$0xff]  }
 0x583   :  { %v10868_v11 = vpop.f32.mrf.mxu0  ;;  %v10891_v41 = vpop.f32.mrf.mxu1  ;;  %11183 = vmatprep.subr.bf16.mxu1 %v12066_v51  ;;  %v12107_v3 = vld [vmem:[#allocation7 + $0xaa0] sm:$0xff]  }
 0x584   :  { %v4886_v47 = vadd.f32 %v10867_v34, %v14850_v26  ;;  %11160 = vmatpush3.bf16.msra.mxu0 %v12065_v58  ;;  %v12084_v26 = vld [vmem:[#allocation7 + $0x948] sm:$0xff]   ;;  %v12110_v34 = vld [vmem:[#allocation7 + $0xad8] sm:$0xff]  }
 0x585   :  { %v10869_v0 = vpop.f32.mrf.mxu0  ;;  %11161 = vmatprep.subr.bf16.mxu0 %v12068_v13  ;;  %v12112_v11 = vld [vmem:[#allocation7 + $0xa58] sm:$0xff]  }
 0x586   :  { %11184 = vmatpush3.bf16.msra.mxu1 %v12067_v48  ;;  %v14865_v36 = vadd.f32 %v10889_v5, %v4886_v47  ;;  %v12105_v5 = vld [vmem:[#allocation7 + $0xa28] sm:$0xff]   ;;  %v12109_v48 = vld [vmem:[#allocation7 + $0xa20] sm:$0xff]   ;;  %v12111_v41 = vld [vmem:[#allocation7 + $0xa98] sm:$0xff]  }
 0x587   :  { %11185 = vmatprep.subr.bf16.mxu1 %v12070_v10  ;;  %v12114_v10 = vld [vmem:[#allocation7 + $0xad0] sm:$0xff]   ;;  %v12113_v47 = vld [vmem:[#allocation7 + $0xa18] sm:$0xff]  }
 0x588   :  { %11162 = vmatpush3.bf16.msra.mxu0 %v12069_v38  ;;  %v12116_v38 = vld [vmem:[#allocation7 + $0xa50] sm:$0xff]  }
 0x589   :  { %11163 = vmatprep.subr.bf16.mxu0 %v12072_v16  ;;  %v12115_v0 = vld [vmem:[#allocation7 + $0xa90] sm:$0xff]   ;;  %v12118_v16 = vld [vmem:[#allocation7 + $0xac8] sm:$0xff]  }
 0x58a   :  { %11186 = vmatpush3.bf16.msra.mxu1 %v12071_v15  ;;  %v12117_v15 = vld [vmem:[#allocation7 + $0xa10] sm:$0xff]  }
 0x58b   :  { %11187 = vmatprep.subr.bf16.mxu1 %v12074_v7  ;;  %v12119_v7 = vld [vmem:[#allocation7 + $0xa88] sm:$0xff]  }
 0x58c   :  { %11164 = vmatpush3.bf16.msra.mxu0 %v12073_v1  ;;  %v12122_v1 = vld [vmem:[#allocation7 + $0xac0] sm:$0xff]  }
 0x58d   :  { %11165 = vmatprep.subr.bf16.mxu0 %v12076_v44  ;;  %v12121_v44 = vld [vmem:[#allocation7 + $0xa08] sm:$0xff]  }
 0x58e   :  { %11188 = vmatpush3.bf16.msra.mxu1 %v12075_v4  ;;  %v12124_v4 = vld [vmem:[#allocation7 + $0xa40] sm:$0xff]  }
 0x58f   :  { %11189 = vmatprep.subr.bf16.mxu1 %v12078_v19  ;;  %v14882_v19 = vld [vmem:[#allocation3 + $0x20] sm:$0x88] }
 0x590   :  { %11166 = vmatpush3.bf16.msra.mxu0 %v12077_v49  ;;  %v12123_v49 = vld [vmem:[#allocation7 + $0xa80] sm:$0xff]  }
 0x591   :  { %11167 = vmatprep.subr.bf16.mxu0 %v12080_v8  ;;  %v10551_v8 = vcombine.low %v14867_v50, %v14867_v50 }
 0x592   :  { %11190 = vmatpush3.bf16.msra.mxu1 %v12079_v28  ;;  %v12126_v28 = vld [vmem:[#allocation7 + $0xbf8] sm:$0xff]  }
 0x593   :  { %11191 = vmatprep.subr.bf16.mxu1 %v12082_v52  ;;  %v14886_v52 = vld [vmem:[#allocation3 + $0x20] sm:$0x44] }
 0x594   :  { %11168 = vmatpush3.bf16.msra.mxu0 %v12081_v17  ;;  %v12125_v17 = vld [vmem:[#allocation7 + $0xa00] sm:$0xff]  }
 0x595   :  { %11169 = vmatprep.subr.bf16.mxu0 %v12084_v26  ;;  %v10588_v26 = vcombine.high %v14882_v19, %v14882_v19 }
 0x596   :  { %11192 = vmatpush3.bf16.msra.mxu1 %v12083_v20  ;;  %v12130_v20 = vld [vmem:[#allocation7 + $0xb78] sm:$0xff]  }
 0x597   :  { %11193 = vmatprep.subr.bf16.mxu1 %v12086_v24  ;;  %v12127_v24 = vld [vmem:[#allocation7 + $0xbb8] sm:$0xff]   ;;  %v8159_v50 = vrot.slane %v10588_v26, 3  ;;  %v12172_v26 = vld [vmem:[#allocation7 + $0xc70] sm:$0xff]  }
 0x598   :  { %11170 = vmatpush3.bf16.msra.mxu0 %v12085_v35  ;;  %v10570_v35 = vcombine.high %v14886_v52, %v14886_v52 }
 0x599   :  { %11171 = vmatprep.subr.bf16.mxu0 %v12088_v62  ;;  %v7798_v62 = vrot.slane %v10551_v8, 1  ;;  %v12167_v8 = vld [vmem:[#allocation7 + $0xc38] sm:$0xff]  }
 0x59a   :  { %11194 = vmatpush3.bf16.msra.mxu1 %v12087_v2  ;;  %v12134_v2 = vld [vmem:[#allocation7 + $0xbf0] sm:$0xff]   ;;  %v7979_v55 = vrot.slane %v10570_v35, 2 }
 0x59b   :  { %11223 = vmatprep.subr.bf16.mxu1 %v12090_v40  ;;  %v10533_v40 = vcombine.low %v14875_v32, %v14875_v32  ;;  %v12140_v32 = vld [vmem:[#allocation7 + $0xb68] sm:$0xff]  }
 0x59c   :  { %11172 = vmatpush3.bf16.msra.mxu0 %v12089_v21 }
 0x59d   :  { %v10931_v22 = vpop.f32.mrf.mxu1  ;;  %7573 = vmatmul.mubr.bf16.vlgmr.msra.gmra.mxu1 %v7440_v60  ;;  %11201 = vmatprep.subr.bf16.mxu0 %v12094_v53  ;;  %v12135_v53 = vld [vmem:[#allocation7 + $0xbb0] sm:$0xff]  }
 0x59e   :  { %11224 = vmatpush3.bf16.msra.mxu1 %v12091_v56  ;;  %7930 = vmatprep.mubr.bf16.mxu1 %v7799_v29 }
 0x59f   :  { %v10909_v37 = vpop.f32.mrf.mxu0  ;;  %v10932_v27 = vpop.f32.mrf.mxu1  ;;  %7393 = vmatmul.mubr.bf16.vlgmr.msra.gmra.mxu0 %v7260_v23  ;;  %11225 = vmatprep.subr.bf16.mxu1 %v12098_v63  ;;  %v12138_v63 = vld [vmem:[#allocation7 + $0xbe8] sm:$0xff]  }
 0x5a0   :  { %v10933_v18 = vadd.f32 %v10932_v27, %v10931_v22  ;;  %11202 = vmatpush3.bf16.msra.mxu0 %v12095_v59  ;;  %7750 = vmatprep.mubr.bf16.mxu0 %v10534_v43  ;;  %v12137_v59 = vld [vmem:[#allocation7 + $0xb30] sm:$0xff]   ;;  %v12139_v43 = vld [vmem:[#allocation7 + $0xba8] sm:$0xff]   ;;  %v12142_v27 = vld [vmem:[#allocation7 + $0xbe0] sm:$0xff]  }
 0x5a1   :  { %v10910_v61 = vpop.f32.mrf.mxu0  ;;  %v10934_v54 = vpop.f32.mrf.mxu1  ;;  %11203 = vmatprep.subr.bf16.mxu0 %v12100_v31 }
 0x5a2   :  { %v10911_v25 = vadd.f32 %v10910_v61, %v10909_v37  ;;  %11226 = vmatpush3.bf16.msra.mxu1 %v12099_v46  ;;  %v12144_v61 = vld [vmem:[#allocation7 + $0xb60] sm:$0xff]  }
 0x5a3   :  { %v10912_v30 = vpop.f32.mrf.mxu0  ;;  %v10935_v45 = vpop.f32.mrf.mxu1  ;;  %11227 = vmatprep.subr.bf16.mxu1 %v12102_v39  ;;  %v12143_v54 = vld [vmem:[#allocation7 + $0xba0] sm:$0xff]  }
 0x5a4   :  { %v5246_v51 = vadd.f32 %v10911_v25, %v14865_v36  ;;  %11204 = vmatpush3.bf16.msra.mxu0 %v12101_v6  ;;  %v12120_v36 = vld [vmem:[#allocation7 + $0xa48] sm:$0xff]   ;;  %v12146_v25 = vld [vmem:[#allocation7 + $0xbd8] sm:$0xff]  }
 0x5a5   :  { %v10913_v58 = vpop.f32.mrf.mxu0  ;;  %11205 = vmatprep.subr.bf16.mxu0 %v12104_v9  ;;  %v12148_v30 = vld [vmem:[#allocation7 + $0xb58] sm:$0xff]  }
 0x5a6   :  { %11228 = vmatpush3.bf16.msra.mxu1 %v12103_v42  ;;  %v14880_v13 = vadd.f32 %v10933_v18, %v5246_v51  ;;  %v12141_v18 = vld [vmem:[#allocation7 + $0xb28] sm:$0xff]   ;;  %v12145_v42 = vld [vmem:[#allocation7 + $0xb20] sm:$0xff]   ;;  %v12147_v45 = vld [vmem:[#allocation7 + $0xb98] sm:$0xff]  }
 0x5a7   :  { %11229 = vmatprep.subr.bf16.mxu1 %v12106_v57  ;;  %v12150_v57 = vld [vmem:[#allocation7 + $0xbd0] sm:$0xff]   ;;  %v12149_v51 = vld [vmem:[#allocation7 + $0xb18] sm:$0xff]  }
 0x5a8   :  { %11206 = vmatpush3.bf16.msra.mxu0 %v12105_v5  ;;  %v12152_v5 = vld [vmem:[#allocation7 + $0xb50] sm:$0xff]  }
 0x5a9   :  { %11207 = vmatprep.subr.bf16.mxu0 %v12108_v33  ;;  %v12151_v58 = vld [vmem:[#allocation7 + $0xb90] sm:$0xff]   ;;  %v12154_v33 = vld [vmem:[#allocation7 + $0xbc8] sm:$0xff]  }
 0x5aa   :  { %11230 = vmatpush3.bf16.msra.mxu1 %v12107_v3  ;;  %v12153_v3 = vld [vmem:[#allocation7 + $0xb10] sm:$0xff]  }
 0x5ab   :  { %11231 = vmatprep.subr.bf16.mxu1 %v12110_v34  ;;  %v12155_v34 = vld [vmem:[#allocation7 + $0xb88] sm:$0xff]  }
 0x5ac   :  { %11208 = vmatpush3.bf16.msra.mxu0 %v12109_v48  ;;  %v12158_v48 = vld [vmem:[#allocation7 + $0xbc0] sm:$0xff]  }
 0x5ad   :  { %11209 = vmatprep.subr.bf16.mxu0 %v12112_v11  ;;  %v12157_v11 = vld [vmem:[#allocation7 + $0xb08] sm:$0xff]  }
 0x5ae   :  { %11232 = vmatpush3.bf16.msra.mxu1 %v12111_v41  ;;  %v12160_v41 = vld [vmem:[#allocation7 + $0xb40] sm:$0xff]  }
 0x5af   :  { %11233 = vmatprep.subr.bf16.mxu1 %v12114_v10  ;;  %v14897_v10 = vld [vmem:[#allocation3 + $0x28] sm:$0x22] }
 0x5b0   :  { %11210 = vmatpush3.bf16.msra.mxu0 %v12113_v47  ;;  %v12159_v47 = vld [vmem:[#allocation7 + $0xb80] sm:$0xff]  }
 0x5b1   :  { %11211 = vmatprep.subr.bf16.mxu0 %v12116_v38  ;;  %v10587_v38 = vcombine.low %v14882_v19, %v14882_v19 }
 0x5b2   :  { %11234 = vmatpush3.bf16.msra.mxu1 %v12115_v0  ;;  %v12162_v0 = vld [vmem:[#allocation7 + $0xcf8] sm:$0xff]  }
 0x5b3   :  { %11235 = vmatprep.subr.bf16.mxu1 %v12118_v16  ;;  %v12161_v16 = vld [vmem:[#allocation7 + $0xb00] sm:$0xff]  }
 0x5b4   :  { %11212 = vmatpush3.bf16.msra.mxu0 %v12117_v15  ;;  %v10624_v15 = vcombine.high %v14897_v10, %v14897_v10 }
 0x5b5   :  { %11213 = vmatprep.subr.bf16.mxu0 %v12120_v36  ;;  %v10569_v36 = vcombine.low %v14886_v52, %v14886_v52 }
 0x5b6   :  { %11236 = vmatpush3.bf16.msra.mxu1 %v12119_v7  ;;  %v12166_v7 = vld [vmem:[#allocation7 + $0xc78] sm:$0xff]   ;;  %v8517_v19 = vrot.slane %v10624_v15, 1  ;;  %v12208_v15 = vld [vmem:[#allocation7 + $0xd70] sm:$0xff]  }
 0x5b7   :  { %11237 = vmatprep.subr.bf16.mxu1 %v12122_v1  ;;  %v12163_v1 = vld [vmem:[#allocation7 + $0xcb8] sm:$0xff]  }
 0x5b8   :  { %11214 = vmatpush3.bf16.msra.mxu0 %v12121_v44  ;;  %v8158_v44 = vrot.slane %v10587_v38, 3  ;;  %v12203_v38 = vld [vmem:[#allocation7 + $0xd38] sm:$0xff]  }
 0x5b9   :  { %11215 = vmatprep.subr.bf16.mxu0 %v12124_v4  ;;  %v14905_v4 = vld [vmem:[#allocation3 + $0x28] sm:$0x11] }
 0x5ba   :  { %11238 = vmatpush3.bf16.msra.mxu1 %v12123_v49  ;;  %v12170_v49 = vld [vmem:[#allocation7 + $0xcf0] sm:$0xff]   ;;  %v10606_v52 = vcombine.high %v14905_v4, %v14905_v4 }
 0x5bb   :  { %11267 = vmatprep.subr.bf16.mxu1 %v12126_v28  ;;  %v7978_v28 = vrot.slane %v10569_v36, 2 }
 0x5bc   :  { %11216 = vmatpush3.bf16.msra.mxu0 %v12125_v17 }
 0x5bd   :  { %v10975_v21 = vpop.f32.mrf.mxu1  ;;  %7931 = vmatmul.mubr.bf16.vlgmr.msra.gmra.mxu1 %v7798_v62  ;;  %11245 = vmatprep.subr.bf16.mxu0 %v12130_v20  ;;  %v12171_v20 = vld [vmem:[#allocation7 + $0xcb0] sm:$0xff]   ;;  %v12174_v62 = vld [vmem:[#allocation7 + $0xce8] sm:$0xff]  }
 0x5be   :  { %11268 = vmatpush3.bf16.msra.mxu1 %v12127_v24  ;;  %8290 = vmatprep.mubr.bf16.mxu1 %v8159_v50  ;;  %v12173_v50 = vld [vmem:[#allocation7 + $0xc30] sm:$0xff]  }
 0x5bf   :  { %v10953_v56 = vpop.f32.mrf.mxu0  ;;  %v10976_v60 = vpop.f32.mrf.mxu1  ;;  %7751 = vmatmul.mubr.bf16.vlgmr.msra.gmra.mxu0 %v10533_v40  ;;  %11269 = vmatprep.subr.bf16.mxu1 %v12134_v2 }
 0x5c0   :  { %v10977_v29 = vadd.f32 %v10976_v60, %v10975_v21  ;;  %11246 = vmatpush3.bf16.msra.mxu0 %v12131_v14  ;;  %8110 = vmatprep.mubr.bf16.mxu0 %v7979_v55  ;;  %v12176_v21 = vld [vmem:[#allocation7 + $0xc68] sm:$0xff]   ;;  %v12178_v60 = vld [vmem:[#allocation7 + $0xce0] sm:$0xff]  }
 0x5c1   :  { %v10954_v23 = vpop.f32.mrf.mxu0  ;;  %v10978_v22 = vpop.f32.mrf.mxu1  ;;  %11247 = vmatprep.subr.bf16.mxu0 %v12136_v12  ;;  %v12175_v55 = vld [vmem:[#allocation7 + $0xca8] sm:$0xff]  }
 0x5c2   :  { %v10955_v31 = vadd.f32 %v10954_v23, %v10953_v56  ;;  %11270 = vmatpush3.bf16.msra.mxu1 %v12135_v53  ;;  %v12180_v23 = vld [vmem:[#allocation7 + $0xc60] sm:$0xff]  }
 0x5c3   :  { %v10956_v46 = vpop.f32.mrf.mxu0  ;;  %v10979_v37 = vpop.f32.mrf.mxu1  ;;  %11271 = vmatprep.subr.bf16.mxu1 %v12138_v63  ;;  %v12179_v22 = vld [vmem:[#allocation7 + $0xca0] sm:$0xff]  }
 0x5c4   :  { %v5604_v39 = vadd.f32 %v10955_v31, %v14880_v13  ;;  %11248 = vmatpush3.bf16.msra.mxu0 %v12137_v59  ;;  %v12156_v13 = vld [vmem:[#allocation7 + $0xb48] sm:$0xff]   ;;  %v12182_v31 = vld [vmem:[#allocation7 + $0xcd8] sm:$0xff]  }
 0x5c5   :  { %v10957_v6 = vpop.f32.mrf.mxu0  ;;  %11249 = vmatprep.subr.bf16.mxu0 %v12140_v32  ;;  %v12184_v46 = vld [vmem:[#allocation7 + $0xc58] sm:$0xff]  }
 0x5c6   :  { %11272 = vmatpush3.bf16.msra.mxu1 %v12139_v43  ;;  %v14895_v9 = vadd.f32 %v10977_v29, %v5604_v39  ;;  %v12177_v29 = vld [vmem:[#allocation7 + $0xc28] sm:$0xff]   ;;  %v12181_v43 = vld [vmem:[#allocation7 + $0xc20] sm:$0xff]   ;;  %v12183_v37 = vld [vmem:[#allocation7 + $0xc98] sm:$0xff]  }
 0x5c7   :  { %11273 = vmatprep.subr.bf16.mxu1 %v12142_v27  ;;  %v12186_v27 = vld [vmem:[#allocation7 + $0xcd0] sm:$0xff]   ;;  %v12185_v39 = vld [vmem:[#allocation7 + $0xc18] sm:$0xff]  }
 0x5c8   :  { %11250 = vmatpush3.bf16.msra.mxu0 %v12141_v18  ;;  %v12188_v18 = vld [vmem:[#allocation7 + $0xc50] sm:$0xff]  }
 0x5c9   :  { %11251 = vmatprep.subr.bf16.mxu0 %v12144_v61  ;;  %v12187_v6 = vld [vmem:[#allocation7 + $0xc90] sm:$0xff]   ;;  %v12190_v61 = vld [vmem:[#allocation7 + $0xcc8] sm:$0xff]  }
 0x5ca   :  { %11274 = vmatpush3.bf16.msra.mxu1 %v12143_v54  ;;  %v12189_v54 = vld [vmem:[#allocation7 + $0xc10] sm:$0xff]  }
 0x5cb   :  { %11275 = vmatprep.subr.bf16.mxu1 %v12146_v25  ;;  %v12191_v25 = vld [vmem:[#allocation7 + $0xc88] sm:$0xff]  }
 0x5cc   :  { %11252 = vmatpush3.bf16.msra.mxu0 %v12145_v42  ;;  %v12194_v42 = vld [vmem:[#allocation7 + $0xcc0] sm:$0xff]  }
 0x5cd   :  { %11253 = vmatprep.subr.bf16.mxu0 %v12148_v30  ;;  %v12193_v30 = vld [vmem:[#allocation7 + $0xc08] sm:$0xff]  }
 0x5ce   :  { %11276 = vmatpush3.bf16.msra.mxu1 %v12147_v45  ;;  %v12196_v45 = vld [vmem:[#allocation7 + $0xc40] sm:$0xff]  }
 0x5cf   :  { %11277 = vmatprep.subr.bf16.mxu1 %v12150_v57  ;;  %v14912_v57 = vld [vmem:[#allocation3 + $0x28] sm:$0x88] }
 0x5d0   :  { %11254 = vmatpush3.bf16.msra.mxu0 %v12149_v51  ;;  %v12195_v51 = vld [vmem:[#allocation7 + $0xc80] sm:$0xff]  }
 0x5d1   :  { %11255 = vmatprep.subr.bf16.mxu0 %v12152_v5  ;;  %v10623_v5 = vcombine.low %v14897_v10, %v14897_v10 }
 0x5d2   :  { %11278 = vmatpush3.bf16.msra.mxu1 %v12151_v58  ;;  %v12198_v58 = vld [vmem:[#allocation7 + $0xdf8] sm:$0xff]  }
 0x5d3   :  { %11279 = vmatprep.subr.bf16.mxu1 %v12154_v33  ;;  %v14916_v33 = vld [vmem:[#allocation3 + $0x28] sm:$0x44] }
 0x5d4   :  { %11256 = vmatpush3.bf16.msra.mxu0 %v12153_v3  ;;  %v12197_v3 = vld [vmem:[#allocation7 + $0xc00] sm:$0xff]  }
 0x5d5   :  { %11257 = vmatprep.subr.bf16.mxu0 %v12156_v13  ;;  %v10660_v13 = vcombine.high %v14912_v57, %v14912_v57 }
 0x5d6   :  { %11280 = vmatpush3.bf16.msra.mxu1 %v12155_v34  ;;  %v12202_v34 = vld [vmem:[#allocation7 + $0xd78] sm:$0xff]  }
 0x5d7   :  { %11281 = vmatprep.subr.bf16.mxu1 %v12158_v48  ;;  %v12199_v48 = vld [vmem:[#allocation7 + $0xdb8] sm:$0xff]   ;;  %v8877_v10 = vrot.slane %v10660_v13, 3  ;;  %v12244_v13 = vld [vmem:[#allocation7 + $0xe70] sm:$0xff]  }
 0x5d8   :  { %11258 = vmatpush3.bf16.msra.mxu0 %v12157_v11  ;;  %v10642_v11 = vcombine.high %v14916_v33, %v14916_v33 }
 0x5d9   :  { %11259 = vmatprep.subr.bf16.mxu0 %v12160_v41  ;;  %v8516_v41 = vrot.slane %v10623_v5, 1  ;;  %v12239_v5 = vld [vmem:[#allocation7 + $0xe38] sm:$0xff]  }
 0x5da   :  { %11282 = vmatpush3.bf16.msra.mxu1 %v12159_v47  ;;  %v12206_v47 = vld [vmem:[#allocation7 + $0xdf0] sm:$0xff]   ;;  %v8697_v36 = vrot.slane %v10642_v11, 2 }
 0x5db   :  { %11311 = vmatprep.subr.bf16.mxu1 %v12162_v0  ;;  %v10605_v0 = vcombine.low %v14905_v4, %v14905_v4  ;;  %v12212_v4 = vld [vmem:[#allocation7 + $0xd68] sm:$0xff]  }
 0x5dc   :  { %11260 = vmatpush3.bf16.msra.mxu0 %v12161_v16 }
 0x5dd   :  { %v11019_v17 = vpop.f32.mrf.mxu1  ;;  %8291 = vmatmul.mubr.bf16.vlgmr.msra.gmra.mxu1 %v8158_v44  ;;  %11289 = vmatprep.subr.bf16.mxu0 %v12166_v7  ;;  %v12207_v7 = vld [vmem:[#allocation7 + $0xdb0] sm:$0xff]  }
 0x5de   :  { %11312 = vmatpush3.bf16.msra.mxu1 %v12163_v1  ;;  %8648 = vmatprep.mubr.bf16.mxu1 %v8517_v19 }
 0x5df   :  { %v10997_v24 = vpop.f32.mrf.mxu0  ;;  %v11020_v35 = vpop.f32.mrf.mxu1  ;;  %8111 = vmatmul.mubr.bf16.vlgmr.msra.gmra.mxu0 %v7978_v28  ;;  %11313 = vmatprep.subr.bf16.mxu1 %v12170_v49  ;;  %v12210_v49 = vld [vmem:[#allocation7 + $0xde8] sm:$0xff]  }
 0x5e0   :  { %v11021_v2 = vadd.f32 %v11020_v35, %v11019_v17  ;;  %11290 = vmatpush3.bf16.msra.mxu0 %v12167_v8  ;;  %8468 = vmatprep.mubr.bf16.mxu0 %v10606_v52  ;;  %v12209_v8 = vld [vmem:[#allocation7 + $0xd30] sm:$0xff]   ;;  %v12211_v52 = vld [vmem:[#allocation7 + $0xda8] sm:$0xff]   ;;  %v12214_v35 = vld [vmem:[#allocation7 + $0xde0] sm:$0xff]  }
 0x5e1   :  { %v10998_v14 = vpop.f32.mrf.mxu0  ;;  %v11022_v40 = vpop.f32.mrf.mxu1  ;;  %11291 = vmatprep.subr.bf16.mxu0 %v12172_v26 }
 0x5e2   :  { %v10999_v12 = vadd.f32 %v10998_v14, %v10997_v24  ;;  %11314 = vmatpush3.bf16.msra.mxu1 %v12171_v20  ;;  %v12216_v14 = vld [vmem:[#allocation7 + $0xd60] sm:$0xff]  }
 0x5e3   :  { %v11000_v53 = vpop.f32.mrf.mxu0  ;;  %v11023_v56 = vpop.f32.mrf.mxu1  ;;  %11315 = vmatprep.subr.bf16.mxu1 %v12174_v62  ;;  %v12215_v40 = vld [vmem:[#allocation7 + $0xda0] sm:$0xff]  }
 0x5e4   :  { %v5964_v63 = vadd.f32 %v10999_v12, %v14895_v9  ;;  %11292 = vmatpush3.bf16.msra.mxu0 %v12173_v50  ;;  %v12192_v9 = vld [vmem:[#allocation7 + $0xc48] sm:$0xff]   ;;  %v12218_v12 = vld [vmem:[#allocation7 + $0xdd8] sm:$0xff]  }
 0x5e5   :  { %v11001_v59 = vpop.f32.mrf.mxu0  ;;  %11293 = vmatprep.subr.bf16.mxu0 %v12176_v21  ;;  %v12220_v53 = vld [vmem:[#allocation7 + $0xd58] sm:$0xff]  }
 0x5e6   :  { %11316 = vmatpush3.bf16.msra.mxu1 %v12175_v55  ;;  %v14910_v32 = vadd.f32 %v11021_v2, %v5964_v63  ;;  %v12213_v2 = vld [vmem:[#allocation7 + $0xd28] sm:$0xff]   ;;  %v12217_v55 = vld [vmem:[#allocation7 + $0xd20] sm:$0xff]   ;;  %v12219_v56 = vld [vmem:[#allocation7 + $0xd98] sm:$0xff]  }
 0x5e7   :  { %11317 = vmatprep.subr.bf16.mxu1 %v12178_v60  ;;  %v12222_v60 = vld [vmem:[#allocation7 + $0xdd0] sm:$0xff]   ;;  %v12221_v63 = vld [vmem:[#allocation7 + $0xd18] sm:$0xff]  }
 0x5e8   :  { %11294 = vmatpush3.bf16.msra.mxu0 %v12177_v29  ;;  %v12224_v29 = vld [vmem:[#allocation7 + $0xd50] sm:$0xff]  }
 0x5e9   :  { %11295 = vmatprep.subr.bf16.mxu0 %v12180_v23  ;;  %v12223_v59 = vld [vmem:[#allocation7 + $0xd90] sm:$0xff]   ;;  %v12226_v23 = vld [vmem:[#allocation7 + $0xdc8] sm:$0xff]  }
 0x5ea   :  { %11318 = vmatpush3.bf16.msra.mxu1 %v12179_v22  ;;  %v12225_v22 = vld [vmem:[#allocation7 + $0xd10] sm:$0xff]  }
 0x5eb   :  { %11319 = vmatprep.subr.bf16.mxu1 %v12182_v31  ;;  %v12227_v31 = vld [vmem:[#allocation7 + $0xd88] sm:$0xff]  }
 0x5ec   :  { %11296 = vmatpush3.bf16.msra.mxu0 %v12181_v43  ;;  %v12230_v43 = vld [vmem:[#allocation7 + $0xdc0] sm:$0xff]  }
 0x5ed   :  { %11297 = vmatprep.subr.bf16.mxu0 %v12184_v46  ;;  %v12229_v46 = vld [vmem:[#allocation7 + $0xd08] sm:$0xff]  }
 0x5ee   :  { %11320 = vmatpush3.bf16.msra.mxu1 %v12183_v37  ;;  %v12232_v37 = vld [vmem:[#allocation7 + $0xd40] sm:$0xff]  }
 0x5ef   :  { %11321 = vmatprep.subr.bf16.mxu1 %v12186_v27  ;;  %v14927_v27 = vld [vmem:[#allocation3 + $0x38] sm:$0x22] }
 0x5f0   :  { %11298 = vmatpush3.bf16.msra.mxu0 %v12185_v39  ;;  %v12231_v39 = vld [vmem:[#allocation7 + $0xd80] sm:$0xff]  }
 0x5f1   :  { %11299 = vmatprep.subr.bf16.mxu0 %v12188_v18  ;;  %v10659_v18 = vcombine.low %v14912_v57, %v14912_v57 }
 0x5f2   :  { %11322 = vmatpush3.bf16.msra.mxu1 %v12187_v6  ;;  %v12234_v6 = vld [vmem:[#allocation7 + $0xef8] sm:$0xff]  }
 0x5f3   :  { %11323 = vmatprep.subr.bf16.mxu1 %v12190_v61  ;;  %v12233_v61 = vld [vmem:[#allocation7 + $0xd00] sm:$0xff]  }
 0x5f4   :  { %11300 = vmatpush3.bf16.msra.mxu0 %v12189_v54  ;;  %v10696_v54 = vcombine.high %v14927_v27, %v14927_v27 }
 0x5f5   :  { %11301 = vmatprep.subr.bf16.mxu0 %v12192_v9  ;;  %v10641_v9 = vcombine.low %v14916_v33, %v14916_v33 }
 0x5f6   :  { %11324 = vmatpush3.bf16.msra.mxu1 %v12191_v25  ;;  %v12238_v25 = vld [vmem:[#allocation7 + $0xe78] sm:$0xff]   ;;  %v9235_v57 = vrot.slane %v10696_v54, 1  ;;  %v12280_v54 = vld [vmem:[#allocation7 + $0xf70] sm:$0xff]  }
 0x5f7   :  { %11325 = vmatprep.subr.bf16.mxu1 %v12194_v42  ;;  %v12235_v42 = vld [vmem:[#allocation7 + $0xeb8] sm:$0xff]  }
 0x5f8   :  { %11302 = vmatpush3.bf16.msra.mxu0 %v12193_v30  ;;  %v8876_v30 = vrot.slane %v10659_v18, 3  ;;  %v12275_v18 = vld [vmem:[#allocation7 + $0xf38] sm:$0xff]  }
 0x5f9   :  { %11303 = vmatprep.subr.bf16.mxu0 %v12196_v45  ;;  %v14935_v45 = vld [vmem:[#allocation3 + $0x38] sm:$0x11] }
 0x5fa   :  { %11326 = vmatpush3.bf16.msra.mxu1 %v12195_v51  ;;  %v12242_v51 = vld [vmem:[#allocation7 + $0xef0] sm:$0xff]   ;;  %v10678_v33 = vcombine.high %v14935_v45, %v14935_v45 }
 0x5fb   :  { %11355 = vmatprep.subr.bf16.mxu1 %v12198_v58  ;;  %v8696_v58 = vrot.slane %v10641_v9, 2 }
 0x5fc   :  { %11304 = vmatpush3.bf16.msra.mxu0 %v12197_v3 }
 0x5fd   :  { %v11063_v16 = vpop.f32.mrf.mxu1  ;;  %8649 = vmatmul.mubr.bf16.vlgmr.msra.gmra.mxu1 %v8516_v41  ;;  %11333 = vmatprep.subr.bf16.mxu0 %v12202_v34  ;;  %v12243_v34 = vld [vmem:[#allocation7 + $0xeb0] sm:$0xff]   ;;  %v12246_v41 = vld [vmem:[#allocation7 + $0xee8] sm:$0xff]  }
 0x5fe   :  { %11356 = vmatpush3.bf16.msra.mxu1 %v12199_v48  ;;  %9008 = vmatprep.mubr.bf16.mxu1 %v8877_v10  ;;  %v12245_v10 = vld [vmem:[#allocation7 + $0xe30] sm:$0xff]  }
 0x5ff   :  { %v11041_v1 = vpop.f32.mrf.mxu0  ;;  %v11064_v44 = vpop.f32.mrf.mxu1  ;;  %8469 = vmatmul.mubr.bf16.vlgmr.msra.gmra.mxu0 %v10605_v0  ;;  %11357 = vmatprep.subr.bf16.mxu1 %v12206_v47 }
 0x600   :  { %v11065_v19 = vadd.f32 %v11064_v44, %v11063_v16  ;;  %11334 = vmatpush3.bf16.msra.mxu0 %v12203_v38  ;;  %8828 = vmatprep.mubr.bf16.mxu0 %v8697_v36  ;;  %v12248_v16 = vld [vmem:[#allocation7 + $0xe68] sm:$0xff]   ;;  %v12250_v44 = vld [vmem:[#allocation7 + $0xee0] sm:$0xff]  }
 0x601   :  { %v11042_v28 = vpop.f32.mrf.mxu0  ;;  %v11066_v17 = vpop.f32.mrf.mxu1  ;;  %11335 = vmatprep.subr.bf16.mxu0 %v12208_v15  ;;  %v12247_v36 = vld [vmem:[#allocation7 + $0xea8] sm:$0xff]  }
 0x602   :  { %v11043_v26 = vadd.f32 %v11042_v28, %v11041_v1  ;;  %11358 = vmatpush3.bf16.msra.mxu1 %v12207_v7  ;;  %v12252_v28 = vld [vmem:[#allocation7 + $0xe60] sm:$0xff]  }
 0x603   :  { %v11044_v20 = vpop.f32.mrf.mxu0  ;;  %v11067_v24 = vpop.f32.mrf.mxu1  ;;  %11359 = vmatprep.subr.bf16.mxu1 %v12210_v49  ;;  %v12251_v17 = vld [vmem:[#allocation7 + $0xea0] sm:$0xff]  }
 0x604   :  { %v6322_v62 = vadd.f32 %v11043_v26, %v14910_v32  ;;  %11336 = vmatpush3.bf16.msra.mxu0 %v12209_v8  ;;  %v12228_v32 = vld [vmem:[#allocation7 + $0xd48] sm:$0xff]   ;;  %v12254_v26 = vld [vmem:[#allocation7 + $0xed8] sm:$0xff]  }
 0x605   :  { %v11045_v50 = vpop.f32.mrf.mxu0  ;;  %11337 = vmatprep.subr.bf16.mxu0 %v12212_v4  ;;  %v12256_v20 = vld [vmem:[#allocation7 + $0xe58] sm:$0xff]  }
 0x606   :  { %11360 = vmatpush3.bf16.msra.mxu1 %v12211_v52  ;;  %v14925_v21 = vadd.f32 %v11065_v19, %v6322_v62  ;;  %v12249_v19 = vld [vmem:[#allocation7 + $0xe28] sm:$0xff]   ;;  %v12253_v52 = vld [vmem:[#allocation7 + $0xe20] sm:$0xff]   ;;  %v12255_v24 = vld [vmem:[#allocation7 + $0xe98] sm:$0xff]  }
 0x607   :  { %11361 = vmatprep.subr.bf16.mxu1 %v12214_v35  ;;  %v12258_v35 = vld [vmem:[#allocation7 + $0xed0] sm:$0xff]   ;;  %v12257_v62 = vld [vmem:[#allocation7 + $0xe18] sm:$0xff]  }
 0x608   :  { %11338 = vmatpush3.bf16.msra.mxu0 %v12213_v2  ;;  %v12260_v2 = vld [vmem:[#allocation7 + $0xe50] sm:$0xff]  }
 0x609   :  { %11339 = vmatprep.subr.bf16.mxu0 %v12216_v14  ;;  %v12259_v50 = vld [vmem:[#allocation7 + $0xe90] sm:$0xff]   ;;  %v12262_v14 = vld [vmem:[#allocation7 + $0xec8] sm:$0xff]  }
 0x60a   :  { %11362 = vmatpush3.bf16.msra.mxu1 %v12215_v40  ;;  %v12261_v40 = vld [vmem:[#allocation7 + $0xe10] sm:$0xff]  }
 0x60b   :  { %11363 = vmatprep.subr.bf16.mxu1 %v12218_v12  ;;  %v12263_v12 = vld [vmem:[#allocation7 + $0xe88] sm:$0xff]  }
 0x60c   :  { %11340 = vmatpush3.bf16.msra.mxu0 %v12217_v55  ;;  %v12266_v55 = vld [vmem:[#allocation7 + $0xec0] sm:$0xff]  }
 0x60d   :  { %11341 = vmatprep.subr.bf16.mxu0 %v12220_v53  ;;  %v12265_v53 = vld [vmem:[#allocation7 + $0xe08] sm:$0xff]  }
 0x60e   :  { %11364 = vmatpush3.bf16.msra.mxu1 %v12219_v56  ;;  %v12268_v56 = vld [vmem:[#allocation7 + $0xe40] sm:$0xff]  }
 0x60f   :  { %11365 = vmatprep.subr.bf16.mxu1 %v12222_v60  ;;  %v14942_v60 = vld [vmem:[#allocation3 + $0x38] sm:$0x88] }
 0x610   :  { %11342 = vmatpush3.bf16.msra.mxu0 %v12221_v63  ;;  %v12267_v63 = vld [vmem:[#allocation7 + $0xe80] sm:$0xff]  }
 0x611   :  { %11343 = vmatprep.subr.bf16.mxu0 %v12224_v29  ;;  %v10695_v29 = vcombine.low %v14927_v27, %v14927_v27 }
 0x612   :  { %11366 = vmatpush3.bf16.msra.mxu1 %v12223_v59  ;;  %v12270_v59 = vld [vmem:[#allocation7 + $0xff8] sm:$0xff]  }
 0x613   :  { %11367 = vmatprep.subr.bf16.mxu1 %v12226_v23  ;;  %v14946_v23 = vld [vmem:[#allocation3 + $0x38] sm:$0x44] }
 0x614   :  { %11344 = vmatpush3.bf16.msra.mxu0 %v12225_v22  ;;  %v12269_v22 = vld [vmem:[#allocation7 + $0xe00] sm:$0xff]  }
 0x615   :  { %11345 = vmatprep.subr.bf16.mxu0 %v12228_v32  ;;  %v10732_v32 = vcombine.high %v14942_v60, %v14942_v60 }
 0x616   :  { %11368 = vmatpush3.bf16.msra.mxu1 %v12227_v31  ;;  %v12274_v31 = vld [vmem:[#allocation7 + $0xf78] sm:$0xff]  }
 0x617   :  { %11369 = vmatprep.subr.bf16.mxu1 %v12230_v43  ;;  %v12271_v43 = vld [vmem:[#allocation7 + $0xfb8] sm:$0xff]   ;;  %v9595_v27 = vrot.slane %v10732_v32, 3 }
 0x618   :  { %11346 = vmatpush3.bf16.msra.mxu0 %v12229_v46  ;;  %v10714_v46 = vcombine.high %v14946_v23, %v14946_v23 }
 0x619   :  { %11347 = vmatprep.subr.bf16.mxu0 %v12232_v37  ;;  %v9234_v37 = vrot.slane %v10695_v29, 1 }
 0x61a   :  { %11370 = vmatpush3.bf16.msra.mxu1 %v12231_v39  ;;  %v12278_v39 = vld [vmem:[#allocation7 + $0xff0] sm:$0xff]   ;;  %v9415_v9 = vrot.slane %v10714_v46, 2 }
 0x61b   :  { %11399 = vmatprep.subr.bf16.mxu1 %v12234_v6  ;;  %v10677_v6 = vcombine.low %v14935_v45, %v14935_v45  ;;  %v12284_v45 = vld [vmem:[#allocation7 + $0xf68] sm:$0xff]  }
 0x61c   :  { %11348 = vmatpush3.bf16.msra.mxu0 %v12233_v61 }
 0x61d   :  { %v11107_v3 = vpop.f32.mrf.mxu1  ;;  %9009 = vmatmul.mubr.bf16.vlgmr.msra.gmra.mxu1 %v8876_v30  ;;  %11377 = vmatprep.subr.bf16.mxu0 %v12238_v25  ;;  %v12279_v25 = vld [vmem:[#allocation7 + $0xfb0] sm:$0xff]  }
 0x61e   :  { %11400 = vmatpush3.bf16.msra.mxu1 %v12235_v42  ;;  %9366 = vmatprep.mubr.bf16.mxu1 %v9235_v57 }
 0x61f   :  { %v11085_v48 = vpop.f32.mrf.mxu0  ;;  %v11108_v11 = vpop.f32.mrf.mxu1  ;;  %8829 = vmatmul.mubr.bf16.vlgmr.msra.gmra.mxu0 %v8696_v58  ;;  %11401 = vmatprep.subr.bf16.mxu1 %v12242_v51  ;;  %v12282_v51 = vld [vmem:[#allocation7 + $0xfe8] sm:$0xff]  }
 0x620   :  { %v11109_v47 = vadd.f32 %v11108_v11, %v11107_v3  ;;  %11378 = vmatpush3.bf16.msra.mxu0 %v12239_v5  ;;  %9186 = vmatprep.mubr.bf16.mxu0 %v10678_v33  ;;  %v12281_v5 = vld [vmem:[#allocation7 + $0xf30] sm:$0xff]   ;;  %v12283_v33 = vld [vmem:[#allocation7 + $0xfa8] sm:$0xff]   ;;  %v12286_v11 = vld [vmem:[#allocation7 + $0xfe0] sm:$0xff]  }
 0x621   :  { %v11086_v38 = vpop.f32.mrf.mxu0  ;;  %v11110_v0 = vpop.f32.mrf.mxu1  ;;  %11379 = vmatprep.subr.bf16.mxu0 %v12244_v13 }
 0x622   :  { %v11087_v15 = vadd.f32 %v11086_v38, %v11085_v48  ;;  %11402 = vmatpush3.bf16.msra.mxu1 %v12243_v34  ;;  %v12288_v38 = vld [vmem:[#allocation7 + $0xf60] sm:$0xff]  }
 0x623   :  { %v11088_v7 = vpop.f32.mrf.mxu0  ;;  %v11111_v1 = vpop.f32.mrf.mxu1  ;;  %11403 = vmatprep.subr.bf16.mxu1 %v12246_v41  ;;  %v12287_v0 = vld [vmem:[#allocation7 + $0xfa0] sm:$0xff]  }
 0x624   :  { %v6682_v49 = vadd.f32 %v11087_v15, %v14925_v21  ;;  %11380 = vmatpush3.bf16.msra.mxu0 %v12245_v10  ;;  %v12264_v21 = vld [vmem:[#allocation7 + $0xe48] sm:$0xff]   ;;  %v12290_v15 = vld [vmem:[#allocation7 + $0xfd8] sm:$0xff]  }
 0x625   :  { %v11089_v8 = vpop.f32.mrf.mxu0  ;;  %11381 = vmatprep.subr.bf16.mxu0 %v12248_v16  ;;  %v12292_v7 = vld [vmem:[#allocation7 + $0xf58] sm:$0xff]  }
 0x626   :  { %11404 = vmatpush3.bf16.msra.mxu1 %v12247_v36  ;;  %v14940_v4 = vadd.f32 %v11109_v47, %v6682_v49  ;;  %v12285_v47 = vld [vmem:[#allocation7 + $0xf28] sm:$0xff]   ;;  %v12289_v36 = vld [vmem:[#allocation7 + $0xf20] sm:$0xff]   ;;  %v12291_v1 = vld [vmem:[#allocation7 + $0xf98] sm:$0xff]  }
 0x627   :  { %11405 = vmatprep.subr.bf16.mxu1 %v12250_v44  ;;  %v12294_v44 = vld [vmem:[#allocation7 + $0xfd0] sm:$0xff]   ;;  %v12293_v49 = vld [vmem:[#allocation7 + $0xf18] sm:$0xff]  }
 0x628   :  { %11382 = vmatpush3.bf16.msra.mxu0 %v12249_v19  ;;  %v12296_v19 = vld [vmem:[#allocation7 + $0xf50] sm:$0xff]  }
 0x629   :  { %11383 = vmatprep.subr.bf16.mxu0 %v12252_v28  ;;  %v12295_v8 = vld [vmem:[#allocation7 + $0xf90] sm:$0xff]   ;;  %v12298_v28 = vld [vmem:[#allocation7 + $0xfc8] sm:$0xff]  }
 0x62a   :  { %11406 = vmatpush3.bf16.msra.mxu1 %v12251_v17  ;;  %v12297_v17 = vld [vmem:[#allocation7 + $0xf10] sm:$0xff]  }
 0x62b   :  { %11407 = vmatprep.subr.bf16.mxu1 %v12254_v26  ;;  %v12299_v26 = vld [vmem:[#allocation7 + $0xf88] sm:$0xff]  }
 0x62c   :  { %11384 = vmatpush3.bf16.msra.mxu0 %v12253_v52  ;;  %v12302_v52 = vld [vmem:[#allocation7 + $0xfc0] sm:$0xff]  }
 0x62d   :  { %11385 = vmatprep.subr.bf16.mxu0 %v12256_v20  ;;  %v12301_v20 = vld [vmem:[#allocation7 + $0xf08] sm:$0xff]  }
 0x62e   :  { %11408 = vmatpush3.bf16.msra.mxu1 %v12255_v24  ;;  %v12304_v24 = vld [vmem:[#allocation7 + $0xf40] sm:$0xff]  }
 0x62f   :  { %11409 = vmatprep.subr.bf16.mxu1 %v12258_v35  ;;  %v12303_v35 = vld [vmem:[#allocation7 + $0xf80] sm:$0xff]  }
 0x630   :  { %11386 = vmatpush3.bf16.msra.mxu0 %v12257_v62  ;;  %v10731_v62 = vcombine.low %v14942_v60, %v14942_v60 }
 0x631   :  { %11387 = vmatprep.subr.bf16.mxu0 %v12260_v2  ;;  %v12305_v2 = vld [vmem:[#allocation7 + $0xf00] sm:$0xff]  }
 0x632   :  { %11410 = vmatpush3.bf16.msra.mxu1 %v12259_v50  ;;  %v10713_v50 = vcombine.low %v14946_v23, %v14946_v23 }
 0x633   :  { %11411 = vmatprep.subr.bf16.mxu1 %v12262_v14  ;;  %v9594_v14 = vrot.slane %v10731_v62, 3 }
 0x634   :  { %11388 = vmatpush3.bf16.msra.mxu0 %v12261_v40  ;;  %v15343_v40 = vmov 0.0  }
 0x635   :  { %11389 = vmatprep.subr.bf16.mxu0 %v12264_v21  ;;  %v9414_v21 = vrot.slane %v10713_v50, 2 }
 0x636   :  { %11412 = vmatpush3.bf16.msra.mxu1 %v12263_v12 }
 0x637   :  { %11413 = vmatprep.subr.bf16.mxu1 %v12266_v55 }
 0x638   :  { %11390 = vmatpush3.bf16.msra.mxu0 %v12265_v53 }
 0x639   :  { %11391 = vmatprep.subr.bf16.mxu0 %v12268_v56 }
 0x63a   :  { %11414 = vmatpush3.bf16.msra.mxu1 %v12267_v63 }
 0x63b   :  { %11443 = vmatprep.subr.bf16.mxu1 %v12270_v59 }
 0x63c   :  { %11392 = vmatpush3.bf16.msra.mxu0 %v12269_v22 }
 0x63d   :  { %v11151_v61 = vpop.f32.mrf.mxu1  ;;  %9367 = vmatmul.mubr.bf16.vlgmr.msra.gmra.mxu1 %v9234_v37  ;;  %11421 = vmatprep.subr.bf16.mxu0 %v12274_v31 }
 0x63e   :  { %11444 = vmatpush3.bf16.msra.mxu1 %v12271_v43  ;;  %9726 = vmatprep.mubr.bf16.mxu1 %v9595_v27 }
 0x63f   :  { %v11129_v42 = vpop.f32.mrf.mxu0  ;;  %v11152_v30 = vpop.f32.mrf.mxu1  ;;  %9187 = vmatmul.mubr.bf16.vlgmr.msra.gmra.mxu0 %v10677_v6  ;;  %11445 = vmatprep.subr.bf16.mxu1 %v12278_v39 }
 0x640   :  { %v11153_v57 = vadd.f32 %v11152_v30, %v11151_v61  ;;  %11422 = vmatpush3.bf16.msra.mxu0 %v12275_v18  ;;  %9546 = vmatprep.mubr.bf16.mxu0 %v9415_v9  ;;  %v9758_v30 = vld [vmem:[%s15071_s7 + $0x70] sm:$0xff] }
 0x641   :  { %v11130_v58 = vpop.f32.mrf.mxu0  ;;  %v11154_v3 = vpop.f32.mrf.mxu1  ;;  %11423 = vmatprep.subr.bf16.mxu0 %v12280_v54 }
 0x642   :  { %v11131_v13 = vadd.f32 %v11130_v58, %v11129_v42  ;;  %11446 = vmatpush3.bf16.msra.mxu1 %v12279_v25  ;;  %v9759_v42 = vld [vmem:[%s15071_s7 + $0x78] sm:$0xff]  ;;  %v9754_v3 = vld [vmem:[%s15071_s7 + $0x50] sm:$0xff] }
 0x643   :  { %v11132_v34 = vpop.f32.mrf.mxu0  ;;  %v11155_v48 = vpop.f32.mrf.mxu1  ;;  %11447 = vmatprep.subr.bf16.mxu1 %v12282_v51  ;;  %v9755_v58 = vld [vmem:[%s15071_s7 + $0x58] sm:$0xff] }
 0x644   :  { %v7040_v41 = vadd.f32 %v11131_v13, %v14940_v4  ;;  %11424 = vmatpush3.bf16.msra.mxu0 %v12281_v5  ;;  %v12300_v4 = vld [vmem:[#allocation7 + $0xf48] sm:$0xff]   ;;  %v9756_v5 = vld [vmem:[%s15071_s7 + $0x60] sm:$0xff]  ;;  %v9751_v34 = vld [vmem:[%s15071_s7 + $0x38] sm:$0xff] }
 0x645   :  { %v11133_v10 = vpop.f32.mrf.mxu0  ;;  %11425 = vmatprep.subr.bf16.mxu0 %v12284_v45  ;;  %v9753_v45 = vld [vmem:[%s15071_s7 + $0x48] sm:$0xff]  ;;  %v9752_v13 = vld [vmem:[%s15071_s7 + $0x40] sm:$0xff] }
 0x646   :  { %11448 = vmatpush3.bf16.msra.mxu1 %v12283_v33  ;;  %v7220_v16 = vadd.f32 %v11153_v57, %v7040_v41  ;;  %v9757_v57 = vld [vmem:[%s15071_s7 + $0x68] sm:$0xff] }
 0x647   :  { %11449 = vmatprep.subr.bf16.mxu1 %v12286_v11 }
 0x648   :  { %11426 = vmatpush3.bf16.msra.mxu0 %v12285_v47  ;;  %v9750_v47 = vld [vmem:[%s15071_s7 + $0x30] sm:$0xff] }
 0x649   :  { %11427 = vmatprep.subr.bf16.mxu0 %v12288_v38 }
 0x64a   :  { %11450 = vmatpush3.bf16.msra.mxu1 %v12287_v0 }
 0x64b   :  { %11451 = vmatprep.subr.bf16.mxu1 %v12290_v15 }
 0x64c   :  { %11428 = vmatpush3.bf16.msra.mxu0 %v12289_v36 }
 0x64d   :  { %11429 = vmatprep.subr.bf16.mxu0 %v12292_v7 }
 0x64e   :  { %11452 = vmatpush3.bf16.msra.mxu1 %v12291_v1 }
 0x64f   :  { %11453 = vmatprep.subr.bf16.mxu1 %v12294_v44  ;;  %v9749_v44 = vld [vmem:[%s15071_s7 + $0x28] sm:$0xff] }
 0x650   :  { %11430 = vmatpush3.bf16.msra.mxu0 %v12293_v49  ;;  %v9748_v49 = vld [vmem:[%s15071_s7 + $0x20] sm:$0xff] }
 0x651   :  { %11431 = vmatprep.subr.bf16.mxu0 %v12296_v19  ;;  %v9747_v19 = vld [vmem:[%s15071_s7 + $0x18] sm:$0xff] }
 0x652   :  { %11454 = vmatpush3.bf16.msra.mxu1 %v12295_v8  ;;  %v9746_v8 = vld [vmem:[%s15071_s7 + $0x10] sm:$0xff] }
 0x653   :  { %11455 = vmatprep.subr.bf16.mxu1 %v12298_v28  ;;  %v9745_v28 = vld [vmem:[%s15071_s7 + $0x8] sm:$0xff] }
 0x654   :  { %11432 = vmatpush3.bf16.msra.mxu0 %v12297_v17  ;;  %v9845_v17 = vld [vmem:[%s15073_s9 + $0x38] sm:$0xff] }
 0x655   :  { %11433 = vmatprep.subr.bf16.mxu0 %v12300_v4  ;;  %v9844_v4 = vld [vmem:[%s15073_s9 + $0x30] sm:$0xff] }
 0x656   :  { %11456 = vmatpush3.bf16.msra.mxu1 %v12299_v26  ;;  %v9744_v26 = vld [vmem:[%s15071_s7] sm:$0xff] }
 0x657   :  { %11457 = vmatprep.subr.bf16.mxu1 %v12302_v52  ;;  %v9843_v52 = vld [vmem:[%s15073_s9 + $0x28] sm:$0xff] }
 0x658   :  { %11434 = vmatpush3.bf16.msra.mxu0 %v12301_v20  ;;  %v9842_v20 = vld [vmem:[%s15073_s9 + $0x20] sm:$0xff] }
 0x659   :  { %11435 = vmatprep.subr.bf16.mxu0 %v12304_v24  ;;  %v9841_v24 = vld [vmem:[%s15073_s9 + $0x18] sm:$0xff] }
 0x65a   :  { %11458 = vmatpush3.bf16.msra.mxu1 %v12303_v35 }
 0x65b   :  { %11526 = vmatprep.subr.mxu1 %v15343_v40 }
 0x65c   :  { %11436 = vmatpush3.bf16.msra.mxu0 %v12305_v2 }
 0x65d   :  { %v11195_v12 = vpop.f32.mrf.mxu1  ;;  %9727 = vmatmul.mubr.bf16.vlgmr.msra.gmra.mxu1 %v9594_v14  ;;  %11491 = vmatprep.subr.mxu0 %v15343_v40 }
 0x65e   :  { %11542 = vmatprep.mubr.msk.f32.mxu1 %vm12457_vm10, %v15343_v40  ;;  %11527 = vmatpush3.msra.mxu1 %v9845_v17 }
 0x65f   :  { %v11173_v55 = vpop.f32.mrf.mxu0  ;;  %v11196_v53 = vpop.f32.mrf.mxu1  ;;  %9547 = vmatmul.mubr.bf16.vlgmr.msra.gmra.mxu0 %v9414_v21  ;;  %11528 = vmatprep.subr.mxu1 %v15343_v40 }
 0x660   :  { %v11197_v56 = vadd.f32 %v11196_v53, %v11195_v12  ;;  %11492 = vmatpush3.msra.mxu0 %v9759_v42  ;;  %11523 = vmatprep.mubr.msk.f32.mxu0 %vm12457_vm10, %v15343_v40 }
 0x661   :  { %v11174_v60 = vpop.f32.mrf.mxu0  ;;  %v11198_v63 = vpop.f32.mrf.mxu1  ;;  %11493 = vmatprep.subr.mxu0 %v15343_v40  ;;  %11529 = vmatpush3.msra.mxu1 %v9844_v4 }
 0x662   :  { %v11175_v29 = vadd.f32 %v11174_v60, %v11173_v55  ;;  %11494 = vmatpush3.msra.mxu0 %v9758_v30  ;;  %11530 = vmatprep.subr.mxu1 %v15343_v40 }
 0x663   :  { %v11176_v59 = vpop.f32.mrf.mxu0  ;;  %v11199_v23 = vpop.f32.mrf.mxu1  ;;  %11495 = vmatprep.subr.mxu0 %v15343_v40  ;;  %11531 = vmatpush3.msra.mxu1 %v9843_v52 }
 0x664   :  { %v7400_v22 = vadd.f32 %v11175_v29, %v7220_v16  ;;  %11496 = vmatpush3.msra.mxu0 %v9757_v57  ;;  %11532 = vmatprep.subr.mxu1 %v15343_v40 }
 0x665   :  { %v11177_v32 = vpop.f32.mrf.mxu0  ;;  %11497 = vmatprep.subr.mxu0 %v15343_v40  ;;  %11533 = vmatpush3.msra.mxu1 %v9842_v20 }
 0x666   :  { %v7580_v31 = vadd.f32 %v11197_v56, %v7400_v22  ;;  %11498 = vmatpush3.msra.mxu0 %v9756_v5  ;;  %11534 = vmatprep.subr.mxu1 %v15343_v40 }
 0x667   :  { %11499 = vmatprep.subr.mxu0 %v15343_v40  ;;  %11535 = vmatpush3.msra.mxu1 %v9841_v24 }
 0x668   :  { %11500 = vmatpush3.msra.mxu0 %v9755_v58  ;;  %11536 = vmatprep.subr.mxu1 %v15343_v40 }
 0x669   :  { %11501 = vmatprep.subr.mxu0 %v15343_v40 }
 0x66a   :  { %11502 = vmatpush3.msra.mxu0 %v9754_v3 }
 0x66b   :  { %11503 = vmatprep.subr.mxu0 %v15343_v40 }
 0x66c   :  { %11504 = vmatpush3.msra.mxu0 %v9753_v45 }
 0x66d   :  { %11505 = vmatprep.subr.mxu0 %v15343_v40 }
 0x66e   :  { %11506 = vmatpush3.msra.mxu0 %v9752_v13 }
 0x66f   :  { %11507 = vmatprep.subr.mxu0 %v15343_v40 }
 0x670   :  { %11508 = vmatpush3.msra.mxu0 %v9751_v34 }
 0x671   :  { %11509 = vmatprep.subr.mxu0 %v15343_v40 }
 0x672   :  { %11510 = vmatpush3.msra.mxu0 %v9750_v47 }
 0x673   :  { %11511 = vmatprep.subr.mxu0 %v15343_v40 }
 0x674   :  { %11512 = vmatpush3.msra.mxu0 %v9749_v44  ;;  %v9839_v44 = vld [vmem:[%s15073_s9 + $0x8] sm:$0xff] }
 0x675   :  { %11513 = vmatprep.subr.mxu0 %v15343_v40 }
 0x676   :  { %11514 = vmatpush3.msra.mxu0 %v9748_v49  ;;  %v9838_v49 = vld [vmem:[%s15073_s9] sm:$0xff] }
 0x677   :  { %11515 = vmatprep.subr.mxu0 %v15343_v40 }
 0x678   :  { %11516 = vmatpush3.msra.mxu0 %v9747_v19  ;;  %v10750_v19 = vld [vmem:[#allocation10] ss:$0 sm:$0xff] }
 0x679   :  { %11517 = vmatprep.subr.mxu0 %v15343_v40 }
 0x67a   :  { %11518 = vmatpush3.msra.mxu0 %v9746_v8 }
 0x67b   :  { %11519 = vmatprep.subr.mxu0 %v15343_v40 }
 0x67c   :  { %11520 = vmatpush3.msra.mxu0 %v9745_v28 }
 0x67d   :  { %v11239_v43 = vpop.f32.mrf.mxu1  ;;  %11521 = vmatprep.subr.mxu0 %v15343_v40 }
 0x67e   :  { %11522 = vmatpush3.msra.mxu0 %v9744_v26  ;;  %v10751_v26 = vld [vmem:[#allocation12] ss:$0 sm:$0xff] }
 0x67f   :  { %v11217_v46 = vpop.f32.mrf.mxu0  ;;  %v11240_v37 = vpop.f32.mrf.mxu1 }
 0x680   :  { %v11241_v39 = vadd.f32 %v11240_v37, %v11239_v43 }
 0x681   :  { %v11218_v27 = vpop.f32.mrf.mxu0  ;;  %v11242_v18 = vpop.f32.mrf.mxu1 }
 0x682   :  { %v11219_v6 = vadd.f32 %v11218_v27, %v11217_v46 }
 0x683   :  { %v11220_v61 = vpop.f32.mrf.mxu0  ;;  %v11243_v54 = vpop.f32.mrf.mxu1 }
 0x684   :  { %v7758_v9 = vadd.f32 %v11219_v6, %v7580_v31 }
 0x685   :  { %v11221_v25 = vpop.f32.mrf.mxu0 }
 0x686   :  { %v7938_v51 = vadd.f32 %v11241_v39, %v7758_v9 }
 0x69d   :  { %v11283_v33 = vpop.f32.mrf.mxu1 }
 0x69f   :  { %v11261_v48 = vpop.f32.mrf.mxu0  ;;  %v11284_v11 = vpop.f32.mrf.mxu1 }
 0x6a0   :  { %v11285_v41 = vadd.f32 %v11284_v11, %v11283_v33 }
 0x6a1   :  { %v11262_v10 = vpop.f32.mrf.mxu0  ;;  %v11286_v38 = vpop.f32.mrf.mxu1 }
 0x6a2   :  { %v11263_v0 = vadd.f32 %v11262_v10, %v11261_v48 }
 0x6a3   :  { %v11264_v16 = vpop.f32.mrf.mxu0  ;;  %v11287_v15 = vpop.f32.mrf.mxu1 }
 0x6a4   :  { %v8118_v36 = vadd.f32 %v11263_v0, %v7938_v51  ;;  %v10749_v0 = vld [vmem:[#allocation9] ss:$0 sm:$0xff] }
 0x6a5   :  { %v11265_v7 = vpop.f32.mrf.mxu0 }
 0x6a6   :  { %v8298_v1 = vadd.f32 %v11285_v41, %v8118_v36 }
 0x6bd   :  { %v11327_v35 = vpop.f32.mrf.mxu1 }
 0x6bf   :  { %v11305_v62 = vpop.f32.mrf.mxu0  ;;  %v11328_v2 = vpop.f32.mrf.mxu1 }
 0x6c0   :  { %v11329_v50 = vadd.f32 %v11328_v2, %v11327_v35 }
 0x6c1   :  { %v11306_v14 = vpop.f32.mrf.mxu0  ;;  %v11330_v21 = vpop.f32.mrf.mxu1 }
 0x6c2   :  { %v11307_v12 = vadd.f32 %v11306_v14, %v11305_v62 }
 0x6c3   :  { %v11308_v55 = vpop.f32.mrf.mxu0  ;;  %v11331_v53 = vpop.f32.mrf.mxu1 }
 0x6c4   :  { %v8476_v56 = vadd.f32 %v11307_v12, %v8298_v1  ;;  %v9840_v1 = vld [vmem:[%s15073_s9 + $0x10] sm:$0xff]  ;;  %s12458_s9 = smov [#allocation13]  }
 0x6c5   :  { %v11309_v60 = vpop.f32.mrf.mxu0  ;;  %11537 = vmatpush3.msra.mxu1 %v9840_v1  ;;  %s9946_s8 = sshll.u32 %s12458_s9, 4  ;;  %s9947_s8 = int_to_ptr.vmem [resolvable:$true] %s9946_s8 }
 0x6c6   :  { %v8656_v63 = vadd.f32 %v11329_v50, %v8476_v56  ;;  %11538 = vmatprep.subr.mxu1 %v15343_v40  ;;  %s12410_s21 = scalar_lea.vmem %s9947_s8, 32  ;;  %p12415_p12 = scmp.lt.s32.totalorder %s9947_s8, %s9947_s8 }
 0x6c7   :  { %11539 = vmatpush3.msra.mxu1 %v9839_v44  ;;  %p12411_p11 = scmp.ne.s32.totalorder %s9947_s8, %s12410_s21  ;;  %p12416_p13 = scmp.lt.s32.totalorder %s12410_s21, %s12410_s21 }
 0x6c8   :  { %11540 = vmatprep.subr.mxu1 %v15343_v40 }
 0x6c9   :  { %11541 = vmatpush3.msra.mxu1 %v9838_v49  ;;  %p12417_p0 = por %p12416_p13, %p12415_p12 }
 0x6cb   :  { %p12418_p1 = pnand %p12417_p0, %p12411_p11 }
 0x6dd   :  { %v11371_v29 = vpop.f32.mrf.mxu1 }
 0x6df   :  { %v11349_v59 = vpop.f32.mrf.mxu0  ;;  %v11372_v23 = vpop.f32.mrf.mxu1 }
 0x6e0   :  { %v11373_v30 = vadd.f32 %v11372_v23, %v11371_v29 }
 0x6e1   :  { %v11350_v22 = vpop.f32.mrf.mxu0  ;;  %v11374_v32 = vpop.f32.mrf.mxu1 }
 0x6e2   :  { %v11351_v25 = vadd.f32 %v11350_v22, %v11349_v59 }
 0x6e3   :  { %v11352_v31 = vpop.f32.mrf.mxu0  ;;  %v11375_v43 = vpop.f32.mrf.mxu1 }
 0x6e4   :  { %v8836_v42 = vadd.f32 %v11351_v25, %v8656_v63 }
 0x6e5   :  { %v11353_v46 = vpop.f32.mrf.mxu0 }
 0x6e6   :  { %v9016_v57 = vadd.f32 %v11373_v30, %v8836_v42 }
 0x6fd   :  { %v11415_v37 = vpop.f32.mrf.mxu1 }
 0x6ff   :  { %v11393_v39 = vpop.f32.mrf.mxu0  ;;  %v11416_v27 = vpop.f32.mrf.mxu1 }
 0x700   :  { %v11417_v13 = vadd.f32 %v11416_v27, %v11415_v37 }
 0x701   :  { %v11394_v18 = vpop.f32.mrf.mxu0  ;;  %v11418_v6 = vpop.f32.mrf.mxu1 }
 0x702   :  { %v11395_v51 = vadd.f32 %v11394_v18, %v11393_v39 }
 0x703   :  { %v11396_v61 = vpop.f32.mrf.mxu0  ;;  %v11419_v54 = vpop.f32.mrf.mxu1 }
 0x704   :  { %v9194_v58 = vadd.f32 %v11395_v51, %v9016_v57 }
 0x705   :  { %v11397_v9 = vpop.f32.mrf.mxu0 }
 0x706   :  { %v9374_v48 = vadd.f32 %v11417_v13, %v9194_v58 }
 0x71d   :  { %v11459_v5 = vpop.f32.mrf.mxu1 }
 0x71f   :  { %v11437_v3 = vpop.f32.mrf.mxu0  ;;  %v11460_v45 = vpop.f32.mrf.mxu1 }
 0x720   :  { %v11461_v10 = vadd.f32 %v11460_v45, %v11459_v5 }
 0x721   :  { %v11438_v33 = vpop.f32.mrf.mxu0  ;;  %v11462_v34 = vpop.f32.mrf.mxu1 }
 0x722   :  { %v11439_v11 = vadd.f32 %v11438_v33, %v11437_v3 }
 0x723   :  { %v11440_v41 = vpop.f32.mrf.mxu0  ;;  %v11463_v47 = vpop.f32.mrf.mxu1 }
 0x724   :  { %v9554_v38 = vadd.f32 %v11439_v11, %v9374_v48 }
 0x725   :  { %v11441_v16 = vpop.f32.mrf.mxu0 }
 0x726   :  { %v9734_v15 = vadd.f32 %v11461_v10, %v9554_v38 }
 0x728   :  { %v9742_v36 = vadd.f32 %v10749_v0, %v9734_v15 }
 0x72a   :  { %v9743_v7 = vmax.f32 %v9742_v36, 0.0 }
 0x72c   :  { %11524 = vmatmul.mubr.f32.vlgmr.msra.gmra.mxu0 %v9743_v7 }
 0x7ec   :  { %v9833_v8 = vpop.f32.mrf.mxu0 }
 0x7ed   :  { %v9834_v28 = vadd.f32 %v10750_v19, %v9833_v8 }
 0x7ee   :  { %v11525_v17 = vpop.f32.mrf.mxu0 }
 0x7ef   :  { %v9837_v4 = vmax.f32 %v9834_v28, 0.0 }
 0x7f1   :  { %11543 = vmatmul.mubr.msk.f32.vlgmr.msra.gmra.mxu1 %vm1889_vm9, %v9837_v4 }
 0x8b1   :  { %v9922_v52 = vpop.f32.mrf.mxu1 }
 0x8b2   :  { %v9923_v20 = vadd.f32 %v10751_v26, %v9922_v52 }
 0x8b3   :  { %v11544_v24 = vpop.f32.mrf.mxu1 }
 0x8b4   :  { %v9927_v35 = vsel %vm9926_vm11, %v9923_v20, -inf }
 0x8b5   :  { %9928 = vmax.xlane.f32.xlu1 %v9927_v35 }
 0x93e   :  { %v9929_v62 = vpop.xlane.xlu1 %9928 }
 0x93f   :  { %v9930_v2 = vsub.f32 %v9923_v20, %v9929_v62 }
 0x941   :  { %v9931_v50 = vmul.f32 1.442695, %v9930_v2 }
 0x943   :  { %12306 = vpow2.f32 %v9931_v50 }
 0x950   :  { %v12307_v40 = vpop.eup %12306 }
 0x951   :  { %v9933_v14 = vsel %vm9926_vm11, %v12307_v40, 0.0 }
 0x952   :  { %9934 = vadd.xlane.f32.xlu0 %v9933_v14 }
 0x9db   :  { %v9935_v21 = vpop.xlane.xlu0 %9934 }
 0x9dc   :  { %12308 = vlog2.f32 %v9935_v21 }
 0x9e9   :  { %v12309_v12 = vpop.eup %12308 }
 0x9ea   :  { %v9937_v55 = vmul.f32 0.6931472, %v12309_v12 }
 0x9ec   :  { %v9938_v53 = vsub.f32 %v9930_v2, %v9937_v55 }
 0x9ee   :  { %9939 = vst.msk [vmem:[#allocation13] sm:$0x3] %vm9926_vm11, %v9938_v53 }
 0x9ef   :  { %12421 = shalt.err (!%p12418_p1)
}
 0x9f0   :  { %9949 = dma.vmem_to_hbm [thread:$0]  %s9947_s8, 32, %s15075_s11, [#allocation6]  }
 0x9f1   :  { %12436 = dma.done.wait [#allocation6], 32  }
 0x9f2   :  { %12437 = vsyncadd [#allocation6], 4294967264 }
 0x9f3   :  { %9953 = vsyncpa [#allocation5], 1 }
 0x9f4   :  { %9954 = vsyncpa [#allocation8], 1 }
 0x9f5   :  { %9955 = vsyncpa [#allocation11], 1 }
 0x9f6   :  { %9956 = vsyncpa [#allocation6], 1 }

</bundles_post_ra>
